<compile_context>
chip_gen: v5e
topology: v5e:2x2
jax: 0.10.0
libtpu: 0.0.40
codegen_flags: <defaults>
</compile_context>

<pallas_src>
import numpy as np
import jax
import jax.numpy as jnp
from jax import lax
from jax.experimental import pallas as pl
from jax.experimental.pallas import tpu as pltpu

PAD_token = 0
SOS_token = 1
EOS_token = 2

T_CHUNK = 8                     # decoder timesteps per grid step
MXU_DTYPE = jnp.float32         # set to jnp.bfloat16 on v6e/v7x (relax tolerances)


def _round_up(x, m):
    return ((x + m - 1) // m) * m


# --------------------------------------------------------------------------
# Kernel 1: one chunk of T_CHUNK decoder time-steps per grid iteration.
#   grid = (N // nb, To_pad // T_CHUNK); batch axis "parallel", time axis "arbitrary".
#   h / c / att_c live in VMEM scratch and persist across the time-chunk axis.
# --------------------------------------------------------------------------
def decoder_chunk_kernel(emb_ref, enc_ref, wg_ref, bg_ref, w1_ref, b1_ref,
                         w2_ref, b2_ref, logits_ref, h_scr, c_scr, attc_scr):
    @pl.when(pl.program_id(1) == 0)
    def _():
        h_scr[...] = jnp.zeros_like(h_scr)
        c_scr[...] = jnp.zeros_like(c_scr)
        attc_scr[...] = jnp.zeros_like(attc_scr)

    nb, t_chunk, _ = emb_ref.shape
    hp = h_scr.shape[1]
    vp = w2_ref.shape[1]

    enc = enc_ref[...]                                    # (nb, Ti, Hp)
    w_gates = wg_ref[...]                                 # (Ep+2Hp, 4Hp)
    w1 = w1_ref[...]                                      # (2Hp, Hp)
    w2 = w2_ref[...]                                      # (Hp, Vp)
    # Hoist bias broadcasts out of the unrolled per-step loop.
    b_gates = jnp.broadcast_to(bg_ref[...], (nb, 4 * hp))
    b1 = jnp.broadcast_to(b1_ref[...], (nb, hp))
    b2 = jnp.broadcast_to(b2_ref[...], (nb, vp))

    h = h_scr[...]
    c = c_scr[...]
    att_c = attc_scr[...]

    for t in range(t_chunk):     # static, fully unrolled recurrence within the chunk
        # Fused LSTMCell gates: [emb_t, att_c, h] @ W_gates + b (single MXU matmul).
        x = jnp.concatenate([emb_ref[:, t, :], att_c, h], axis=1)   # (nb, Ep+2Hp)
        gates = jnp.dot(x.astype(MXU_DTYPE), w_gates,
                        preferred_element_type=jnp.float32) + b_gates
        i_g = jax.nn.sigmoid(gates[:, 0 * hp:1 * hp])
        f_g = jax.nn.sigmoid(gates[:, 1 * hp:2 * hp])
        g_g = jnp.tanh(gates[:, 2 * hp:3 * hp])
        o_g = jax.nn.sigmoid(gates[:, 3 * hp:4 * hp])
        c = f_g * c + i_g * g_g
        h = o_g * jnp.tanh(c)

        # Dot-product attention: VPU/XLU formulation (batched matvec underfills MXU).
        scores = jnp.sum(h[:, None, :] * enc, axis=-1)              # (nb, Ti)
        m = jnp.max(scores, axis=1, keepdims=True)
        e = jnp.exp(scores - m)
        attn = e * pl.reciprocal(jnp.sum(e, axis=1, keepdims=True), approx=True)
        att_c = jnp.sum(attn[:, :, None] * enc, axis=1)             # (nb, Hp)

        # MLP: Linear(2Hp -> Hp) on concat(h, att_c), Tanh, Linear(Hp -> Vp).
        hid = jnp.tanh(
            jnp.dot(jnp.concatenate([h, att_c], axis=1).astype(MXU_DTYPE), w1,
                    preferred_element_type=jnp.float32) + b1)
        logits_ref[:, t, :] = jnp.dot(hid.astype(MXU_DTYPE), w2,
                                      preferred_element_type=jnp.float32) + b2

    h_scr[...] = h
    c_scr[...] = c
    attc_scr[...] = att_c


def run_decoder_steps(embedded, enc, kp, *, t_chunk=T_CHUNK):
    N, To, E = embedded.shape
    _, Ti, H = enc.shape
    Ep, Hp, Vp = kp['Ep'], kp['Hp'], kp['Vp']

    To_pad = _round_up(To, t_chunk)
    emb_p = jnp.pad(embedded, ((0, 0), (0, To_pad - To), (0, Ep - E)))
    enc_p = jnp.pad(enc, ((0, 0), (0, 0), (0, Hp - H)))

    nb = N   # batch block: shrink (e.g. N//2) to shard the batch across v7x's 2 TCs
    num_chunks = To_pad // t_chunk

    grid_spec = pltpu.PrefetchScalarGridSpec(
        num_scalar_prefetch=0,
        grid=(N // nb, num_chunks),
        in_specs=[
            pl.BlockSpec((nb, t_chunk, Ep), lambda b, c: (b, c, 0)),   # embedded chunk
            pl.BlockSpec((nb, Ti, Hp), lambda b, c: (b, 0, 0)),        # encoder outputs
            pl.BlockSpec((Ep + 2 * Hp, 4 * Hp), lambda b, c: (0, 0)),  # fused gate weights
            pl.BlockSpec((1, 4 * Hp), lambda b, c: (0, 0)),
            pl.BlockSpec((2 * Hp, Hp), lambda b, c: (0, 0)),           # fused MLP-1 weights
            pl.BlockSpec((1, Hp), lambda b, c: (0, 0)),
            pl.BlockSpec((Hp, Vp), lambda b, c: (0, 0)),               # output projection
            pl.BlockSpec((1, Vp), lambda b, c: (0, 0)),
        ],
        out_specs=pl.BlockSpec((nb, t_chunk, Vp), lambda b, c: (b, c, 0)),
        scratch_shapes=[pltpu.VMEM((nb, Hp), jnp.float32),
                        pltpu.VMEM((nb, Hp), jnp.float32),
                        pltpu.VMEM((nb, Hp), jnp.float32)],
    )
    out = pl.pallas_call(
        decoder_chunk_kernel,
        out_shape=jax.ShapeDtypeStruct((N, To_pad, Vp), jnp.float32),
        grid_spec=grid_spec,
        compiler_params=pltpu.CompilerParams(
            dimension_semantics=("parallel", "arbitrary"),
            vmem_limit_bytes=32 * 1024 * 1024,
        ),
    )(emb_p, enc_p, kp['w_gates'], kp['b_gates'], kp['w1'], kp['b1'],
      kp['w2'], kp['b2'])
    return out, To_pad


# --------------------------------------------------------------------------
# Kernel 2: tiled per-token cross-entropy with ignore_index=PAD_token.
#   Vocab is padded to Vp=multiple of 128; padded columns are masked in-kernel.
# --------------------------------------------------------------------------
def make_ce_kernel(v_real):
    def ce_kernel(logits_ref, tgt_ref, loss_ref):
        logits = logits_ref[...]                       # (tile, Vp)
        tgt = tgt_ref[...]                             # (tile, 1) int32
        col = lax.broadcasted_iota(jnp.int32, logits.shape, 1)
        masked = jnp.where(col < v_real, logits, -1e30)
        m = jnp.max(masked, axis=1, keepdims=True)
        lse = m + jnp.log(jnp.sum(jnp.exp(masked - m), axis=1, keepdims=True))
        onehot = (col == tgt).astype(jnp.float32)
        tgt_logit = jnp.sum(onehot * logits, axis=1, keepdims=True)
        valid = (tgt != PAD_token).astype(jnp.float32)
        loss_ref[...] = (lse - tgt_logit) * valid
    return ce_kernel


def run_ce(logits_flat, targets_flat, v_real):
    NT, Vp = logits_flat.shape
    tile = min(256, _round_up(NT, 8))
    NTp = _round_up(NT, tile)
    lg = jnp.pad(logits_flat, ((0, NTp - NT), (0, 0)))
    tg = jnp.pad(targets_flat.astype(jnp.int32), ((0, NTp - NT),),
                 constant_values=PAD_token).reshape(NTp, 1)

    per_tok = pl.pallas_call(
        make_ce_kernel(v_real),
        out_shape=jax.ShapeDtypeStruct((NTp, 1), jnp.float32),
        grid_spec=pltpu.PrefetchScalarGridSpec(
            num_scalar_prefetch=0,
            grid=(NTp // tile,),
            in_specs=[pl.BlockSpec((tile, Vp), lambda i: (i, 0)),
                      pl.BlockSpec((tile, 1), lambda i: (i, 0))],
            out_specs=pl.BlockSpec((tile, 1), lambda i: (i, 0)),
        ),
        compiler_params=pltpu.CompilerParams(
            dimension_semantics=("parallel",),
            vmem_limit_bytes=32 * 1024 * 1024,
        ),
    )(lg, tg)
    n_valid = jnp.sum((targets_flat != PAD_token).astype(jnp.float32))
    return jnp.sum(per_tok) / n_valid


# --------------------------------------------------------------------------
# Host-side glue: token preprocessing (pad_list), parameters, weight packing,
# and a pure-JAX reference of the same math for verification.
# --------------------------------------------------------------------------
def preprocess(padded_input_np):
    ys = [row[row != PAD_token] for row in padded_input_np]
    ys_in = [np.concatenate([[SOS_token], y]) for y in ys]
    ys_out = [np.concatenate([y, [EOS_token]]) for y in ys]
    To = max(len(y) for y in ys_in)
    ys_in_pad = np.full((len(ys), To), EOS_token, dtype=np.int32)
    ys_out_pad = np.full((len(ys), To), PAD_token, dtype=np.int32)
    for i, (yi, yo) in enumerate(zip(ys_in, ys_out)):
        ys_in_pad[i, :len(yi)] = yi
        ys_out_pad[i, :len(yo)] = yo
    return jnp.asarray(ys_in_pad), jnp.asarray(ys_out_pad)


def init_params(key, V, E, H):
    ks = jax.random.split(key, 9)
    s = 0.1
    return {
        'embedding': jax.random.normal(ks[0], (V, E), jnp.float32) * s,
        'W_ih': jax.random.normal(ks[1], (4 * H, E + H), jnp.float32) * s,
        'W_hh': jax.random.normal(ks[2], (4 * H, H), jnp.float32) * s,
        'b_ih': jax.random.normal(ks[3], (4 * H,), jnp.float32) * s,
        'b_hh': jax.random.normal(ks[4], (4 * H,), jnp.float32) * s,
        'W1': jax.random.normal(ks[5], (H, 2 * H), jnp.float32) * s,
        'b1': jax.random.normal(ks[6], (H,), jnp.float32) * s,
        'W2': jax.random.normal(ks[7], (V, H), jnp.float32) * s,
        'b2': jax.random.normal(ks[8], (V,), jnp.float32) * s,
    }


def pack_params(p, E, H, V):
    """Transpose / fuse / zero-pad weights to lane-aligned (128-multiple) shapes."""
    Ep, Hp, Vp = _round_up(E, 128), _round_up(H, 128), _round_up(V, 128)

    def pad_gate_cols(w):  # (rows, 4H) -> (rows, 4Hp), each gate block padded to Hp
        return jnp.concatenate(
            [jnp.pad(w[:, g * H:(g + 1) * H], ((0, 0), (0, Hp - H))) for g in range(4)],
            axis=1)

    wih_T = p['W_ih'].T                                            # (E+H, 4H)
    w_emb = jnp.pad(pad_gate_cols(wih_T[:E]), ((0, Ep - E), (0, 0)))
    w_att = jnp.pad(pad_gate_cols(wih_T[E:]), ((0, Hp - H), (0, 0)))
    w_hid = jnp.pad(pad_gate_cols(p['W_hh'].T), ((0, Hp - H), (0, 0)))
    w_gates = jnp.concatenate([w_emb, w_att, w_hid], axis=0)       # (Ep+2Hp, 4Hp)
    b_gates = pad_gate_cols((p['b_ih'] + p['b_hh']).reshape(1, 4 * H))

    w1_T = p['W1'].T                                               # (2H, H)
    w1 = jnp.concatenate([jnp.pad(w1_T[:H], ((0, Hp - H), (0, Hp - H))),
                          jnp.pad(w1_T[H:], ((0, Hp - H), (0, Hp - H)))], axis=0)
    b1 = jnp.pad(p['b1'].reshape(1, H), ((0, 0), (0, Hp - H)))
    w2 = jnp.pad(p['W2'].T, ((0, Hp - H), (0, Vp - V)))            # (Hp, Vp)
    b2 = jnp.pad(p['b2'].reshape(1, V), ((0, 0), (0, Vp - V)))

    cast = lambda a: a.astype(MXU_DTYPE)
    return dict(w_gates=cast(w_gates), b_gates=b_gates, w1=cast(w1), b1=b1,
                w2=cast(w2), b2=b2, Ep=Ep, Hp=Hp, Vp=Vp)


def reference_logits(embedded, enc, p):
    N, To, _ = embedded.shape
    H = p['W_hh'].shape[1]
    h = jnp.zeros((N, H)); c = jnp.zeros((N, H)); att_c = jnp.zeros((N, H))
    outs = []
    for t in range(To):
        x = jnp.concatenate([embedded[:, t, :], att_c], axis=1)
        gates = x @ p['W_ih'].T + p['b_ih'] + h @ p['W_hh'].T + p['b_hh']
        i, f, g, o = jnp.split(gates, 4, axis=1)
        i = jax.nn.sigmoid(i); f = jax.nn.sigmoid(f)
        g = jnp.tanh(g); o = jax.nn.sigmoid(o)
        c = f * c + i * g
        h = o * jnp.tanh(c)
        scores = jnp.einsum('nh,nth->nt', h, enc)
        attn = jax.nn.softmax(scores, axis=1)
        att_c = jnp.einsum('nt,nth->nh', attn, enc)
        hid = jnp.tanh(jnp.concatenate([h, att_c], axis=1) @ p['W1'].T + p['b1'])
        outs.append(hid @ p['W2'].T + p['b2'])
    return jnp.stack(outs, axis=1)


def reference_ce(logits_flat, targets_flat):
    lse = jax.nn.logsumexp(logits_flat, axis=1)
    tgt_logit = jnp.take_along_axis(logits_flat, targets_flat[:, None], axis=1)[:, 0]
    valid = (targets_flat != PAD_token).astype(jnp.float32)
    return jnp.sum((lse - tgt_logit) * valid) / jnp.sum(valid)


if __name__ == "__main__":
    N, Ti, H, E, V = 2, 8, 32, 16, 24

    key = jax.random.PRNGKey(0)
    k_par, k_enc = jax.random.split(key)
    params = init_params(k_par, V, E, H)
    kparams = pack_params(params, E, H, V)

    # Deterministic small inputs (tokens >= 3, PAD_token padding at the tail).
    padded_input = np.array([[5, 6, 7, PAD_token, PAD_token],
                             [4, 9, PAD_token, PAD_token, PAD_token]], dtype=np.int32)
    encoder_padded_outputs = jax.random.normal(k_enc, (N, Ti, H), jnp.float32)

    ys_in_pad, ys_out_pad = preprocess(padded_input)                 # (N, To)
    To = ys_in_pad.shape[1]
    embedded = jnp.take(params['embedding'], ys_in_pad, axis=0)      # (N, To, E)  glue

    # Pallas hot path: chunked LSTM recurrence + attention + MLP.
    logits_full, To_pad = run_decoder_steps(embedded, encoder_padded_outputs, kparams)
    Vp = kparams['Vp']

    # Pallas cross-entropy (ignore_index=PAD_token, reduction='mean') on padded logits;
    # padded timesteps carry PAD targets and padded vocab columns are masked in-kernel.
    tgt_pad = jnp.pad(ys_out_pad, ((0, 0), (0, To_pad - To)), constant_values=PAD_token)
    ce_loss = run_ce(logits_full.reshape(N * To_pad, Vp), tgt_pad.reshape(-1), V)
    ce_loss = jax.block_until_ready(ce_loss)

    # Verify against a pure-JAX reference of the same math.
    # (tolerance 1e-3: the softmax denominator uses the EUP approx reciprocal;
    #  with approx=False / exact division this matches at 1e-4.)
    logits = logits_full[:, :To, :V]
    ref_logits = reference_logits(embedded, encoder_padded_outputs, params)
    ref_loss = reference_ce(ref_logits.reshape(N * To, V), ys_out_pad.reshape(-1))
    np.testing.assert_allclose(np.asarray(logits), np.asarray(ref_logits),
                               rtol=1e-3, atol=1e-3)
    np.testing.assert_allclose(float(ce_loss), float(ref_loss), rtol=1e-3, atol=1e-3)

    print("KERNEL_OK")
</pallas_src>

<mosaic_0001>
module attributes {stable_mosaic.version = 11 : i64} {
  func.func @decoder_chunk_kernel(%arg0: i32, %arg1: i32, %arg2: memref<2x8x128xf32, #tpu.memory_space<vmem>>, %arg3: memref<2x8x128xf32, #tpu.memory_space<vmem>>, %arg4: memref<384x512xf32, #tpu.memory_space<vmem>>, %arg5: memref<1x512xf32, #tpu.memory_space<vmem>>, %arg6: memref<256x128xf32, #tpu.memory_space<vmem>>, %arg7: memref<1x128xf32, #tpu.memory_space<vmem>>, %arg8: memref<128x128xf32, #tpu.memory_space<vmem>>, %arg9: memref<1x128xf32, #tpu.memory_space<vmem>>, %arg10: memref<2x8x128xf32, #tpu.memory_space<vmem>>, %arg11: memref<2x128xf32, #tpu.memory_space<vmem>>, %arg12: memref<2x128xf32, #tpu.memory_space<vmem>>, %arg13: memref<2x128xf32, #tpu.memory_space<vmem>>) attributes {dimension_semantics = [#tpu.dimension_semantics<parallel>, #tpu.dimension_semantics<arbitrary>], iteration_bounds = array<i64: 1, 1>, scalar_prefetch = 0 : i64, scratch_operands = 3 : i64, tpu.core_type = #tpu.core_type<tc>, window_params = [{transform_indices = @transform_0, window_bounds = array<i64: 2, 8, 128>}, {transform_indices = @transform_1, window_bounds = array<i64: 2, 8, 128>}, {pipeline_mode = #tpu.pipeline_mode<synchronous>, transform_indices = @transform_2, window_bounds = array<i64: 384, 512>}, {pipeline_mode = #tpu.pipeline_mode<synchronous>, transform_indices = @transform_3, window_bounds = array<i64: 1, 512>}, {pipeline_mode = #tpu.pipeline_mode<synchronous>, transform_indices = @transform_4, window_bounds = array<i64: 256, 128>}, {pipeline_mode = #tpu.pipeline_mode<synchronous>, transform_indices = @transform_5, window_bounds = array<i64: 1, 128>}, {pipeline_mode = #tpu.pipeline_mode<synchronous>, transform_indices = @transform_6, window_bounds = array<i64: 128, 128>}, {pipeline_mode = #tpu.pipeline_mode<synchronous>, transform_indices = @transform_7, window_bounds = array<i64: 1, 128>}, {transform_indices = @transform_8, window_bounds = array<i64: 2, 8, 128>}]} {
    %c0_i32 = arith.constant 0 : i32
    %0 = arith.cmpi eq, %arg1, %c0_i32 : i32
    %1 = arith.extui %0 : i1 to i32
    %c0_i32_0 = arith.constant 0 : i32
    %2 = arith.cmpi ne, %1, %c0_i32_0 : i32
    scf.if %2 {
      %cst_147 = arith.constant 0.000000e+00 : f32
      %478 = vector.broadcast %cst_147 : f32 to vector<2x128xf32>
      %c0_148 = arith.constant 0 : index
      %c0_149 = arith.constant 0 : index
      %479 = vector.load %arg11[%c0_148, %c0_149] : memref<2x128xf32, #tpu.memory_space<vmem>>, vector<2x128xf32>
      tpu.vector_store %arg11[%c0_148, %c0_149], %478 {strides = array<i32>} : memref<2x128xf32, #tpu.memory_space<vmem>>, vector<2x128xf32>,
      %cst_150 = arith.constant 0.000000e+00 : f32
      %480 = vector.broadcast %cst_150 : f32 to vector<2x128xf32>
      %c0_151 = arith.constant 0 : index
      %c0_152 = arith.constant 0 : index
      %481 = vector.load %arg12[%c0_151, %c0_152] : memref<2x128xf32, #tpu.memory_space<vmem>>, vector<2x128xf32>
      tpu.vector_store %arg12[%c0_151, %c0_152], %480 {strides = array<i32>} : memref<2x128xf32, #tpu.memory_space<vmem>>, vector<2x128xf32>,
      %cst_153 = arith.constant 0.000000e+00 : f32
      %482 = vector.broadcast %cst_153 : f32 to vector<2x128xf32>
      %c0_154 = arith.constant 0 : index
      %c0_155 = arith.constant 0 : index
      %483 = vector.load %arg13[%c0_154, %c0_155] : memref<2x128xf32, #tpu.memory_space<vmem>>, vector<2x128xf32>
      tpu.vector_store %arg13[%c0_154, %c0_155], %482 {strides = array<i32>} : memref<2x128xf32, #tpu.memory_space<vmem>>, vector<2x128xf32>,
    } else {
    }
    %c0 = arith.constant 0 : index
    %c0_1 = arith.constant 0 : index
    %c0_2 = arith.constant 0 : index
    %3 = vector.load %arg3[%c0, %c0_1, %c0_2] : memref<2x8x128xf32, #tpu.memory_space<vmem>>, vector<2x8x128xf32>
    %c0_3 = arith.constant 0 : index
    %c0_4 = arith.constant 0 : index
    %4 = vector.load %arg4[%c0_3, %c0_4] : memref<384x512xf32, #tpu.memory_space<vmem>>, vector<384x512xf32>
    %c0_5 = arith.constant 0 : index
    %c0_6 = arith.constant 0 : index
    %5 = vector.load %arg6[%c0_5, %c0_6] : memref<256x128xf32, #tpu.memory_space<vmem>>, vector<256x128xf32>
    %c0_7 = arith.constant 0 : index
    %c0_8 = arith.constant 0 : index
    %6 = vector.load %arg8[%c0_7, %c0_8] : memref<128x128xf32, #tpu.memory_space<vmem>>, vector<128x128xf32>
    %c0_9 = arith.constant 0 : index
    %c0_10 = arith.constant 0 : index
    %7 = vector.load %arg5[%c0_9, %c0_10] : memref<1x512xf32, #tpu.memory_space<vmem>>, vector<1x512xf32>
    %8 = vector.shape_cast %7 : vector<1x512xf32> to vector<1x512xf32>
    %9 = vector.broadcast %8 : vector<1x512xf32> to vector<2x512xf32>
    %c0_11 = arith.constant 0 : index
    %c0_12 = arith.constant 0 : index
    %10 = vector.load %arg7[%c0_11, %c0_12] : memref<1x128xf32, #tpu.memory_space<vmem>>, vector<1x128xf32>
    %11 = vector.shape_cast %10 : vector<1x128xf32> to vector<1x128xf32>
    %12 = vector.broadcast %11 : vector<1x128xf32> to vector<2x128xf32>
    %c0_13 = arith.constant 0 : index
    %c0_14 = arith.constant 0 : index
    %13 = vector.load %arg9[%c0_13, %c0_14] : memref<1x128xf32, #tpu.memory_space<vmem>>, vector<1x128xf32>
    %14 = vector.shape_cast %13 : vector<1x128xf32> to vector<1x128xf32>
    %15 = vector.broadcast %14 : vector<1x128xf32> to vector<2x128xf32>
    %c0_15 = arith.constant 0 : index
    %c0_16 = arith.constant 0 : index
    %16 = vector.load %arg11[%c0_15, %c0_16] : memref<2x128xf32, #tpu.memory_space<vmem>>, vector<2x128xf32>
    %c0_17 = arith.constant 0 : index
    %c0_18 = arith.constant 0 : index
    %17 = vector.load %arg12[%c0_17, %c0_18] : memref<2x128xf32, #tpu.memory_space<vmem>>, vector<2x128xf32>
    %c0_19 = arith.constant 0 : index
    %c0_20 = arith.constant 0 : index
    %18 = vector.load %arg13[%c0_19, %c0_20] : memref<2x128xf32, #tpu.memory_space<vmem>>, vector<2x128xf32>
    %c0_21 = arith.constant 0 : index
    %c0_22 = arith.constant 0 : index
    %c0_23 = arith.constant 0 : index
    %19 = vector.load %arg2[%c0_21, %c0_22, %c0_23] : memref<2x8x128xf32, #tpu.memory_space<vmem>>, vector<2x1x128xf32>
    %20 = vector.shape_cast %19 : vector<2x1x128xf32> to vector<2x128xf32>
    %21 = tpu.concatenate %20, %18, %16 in 1 : vector<2x128xf32>, vector<2x128xf32>, vector<2x128xf32> -> vector<2x384xf32>
    %cst = arith.constant dense<0.000000e+00> : vector<2x512xf32>
    %22 = tpu.matmul %21, %4, %cst {dimension_numbers = #tpu.dot_dimension_numbers<[1], [0], [0], [1], [0, 0, 1, 1], [], []>} : vector<2x384xf32>, vector<384x512xf32>, vector<2x512xf32> -> vector<2x512xf32>
    %23 = arith.addf %22, %9 : vector<2x512xf32>
    %24 = vector.extract_strided_slice %23 {offsets = [0, 0], sizes = [2, 128], strides = [1, 1]} : vector<2x512xf32> to vector<2x128xf32>
    %25 = arith.negf %24 : vector<2x128xf32>
    %26 = math.exp %25 : vector<2x128xf32>
    %cst_24 = arith.constant 1.000000e+00 : f32
    %27 = vector.broadcast %cst_24 : f32 to vector<2x128xf32>
    %28 = arith.addf %27, %26 : vector<2x128xf32>
    %29 = arith.divf %27, %28 : vector<2x128xf32>
    %30 = vector.extract_strided_slice %23 {offsets = [0, 128], sizes = [2, 128], strides = [1, 1]} : vector<2x512xf32> to vector<2x128xf32>
    %31 = arith.negf %30 : vector<2x128xf32>
    %32 = math.exp %31 : vector<2x128xf32>
    %cst_25 = arith.constant 1.000000e+00 : f32
    %33 = vector.broadcast %cst_25 : f32 to vector<2x128xf32>
    %34 = arith.addf %33, %32 : vector<2x128xf32>
    %35 = arith.divf %33, %34 : vector<2x128xf32>
    %36 = vector.extract_strided_slice %23 {offsets = [0, 256], sizes = [2, 128], strides = [1, 1]} : vector<2x512xf32> to vector<2x128xf32>
    %37 = math.tanh %36 : vector<2x128xf32>
    %38 = vector.extract_strided_slice %23 {offsets = [0, 384], sizes = [2, 128], strides = [1, 1]} : vector<2x512xf32> to vector<2x128xf32>
    %39 = arith.negf %38 : vector<2x128xf32>
    %40 = math.exp %39 : vector<2x128xf32>
    %cst_26 = arith.constant 1.000000e+00 : f32
    %41 = vector.broadcast %cst_26 : f32 to vector<2x128xf32>
    %42 = arith.addf %41, %40 : vector<2x128xf32>
    %43 = arith.divf %41, %42 : vector<2x128xf32>
    %44 = arith.mulf %35, %17 : vector<2x128xf32>
    %45 = arith.mulf %29, %37 : vector<2x128xf32>
    %46 = arith.addf %44, %45 : vector<2x128xf32>
    %47 = math.tanh %46 : vector<2x128xf32>
    %48 = arith.mulf %43, %47 : vector<2x128xf32>
    %49 = vector.shape_cast %48 : vector<2x128xf32> to vector<2x1x128xf32>
    %50 = vector.broadcast %49 : vector<2x1x128xf32> to vector<2x8x128xf32>
    %51 = arith.mulf %50, %3 : vector<2x8x128xf32>
    %cst_27 = arith.constant dense<0.000000e+00> : vector<2x8xf32>
    %52 = vector.multi_reduction <add>, %51, %cst_27 [2] : vector<2x8x128xf32> to vector<2x8xf32>
    %cst_28 = arith.constant dense<0xFF800000> : vector<2xf32>
    %53 = vector.multi_reduction <maximumf>, %52, %cst_28 [1] : vector<2x8xf32> to vector<2xf32>
    %54 = vector.shape_cast %53 : vector<2xf32> to vector<2x1xf32>
    %55 = vector.broadcast %54 : vector<2x1xf32> to vector<2x8xf32>
    %56 = arith.subf %52, %55 : vector<2x8xf32>
    %57 = math.exp %56 : vector<2x8xf32>
    %cst_29 = arith.constant dense<0.000000e+00> : vector<2xf32>
    %58 = vector.multi_reduction <add>, %57, %cst_29 [1] : vector<2x8xf32> to vector<2xf32>
    %59 = vector.shape_cast %58 : vector<2xf32> to vector<2x1xf32>
    %60 = tpu.reciprocal %59 {approx = true} : vector<2x1xf32> -> vector<2x1xf32>
    %61 = vector.broadcast %60 : vector<2x1xf32> to vector<2x8xf32>
    %62 = arith.mulf %57, %61 : vector<2x8xf32>
    %63 = vector.shape_cast %62 : vector<2x8xf32> to vector<2x8x1xf32>
    %64 = vector.broadcast %63 : vector<2x8x1xf32> to vector<2x8x128xf32>
    %65 = arith.mulf %64, %3 : vector<2x8x128xf32>
    %cst_30 = arith.constant dense<0.000000e+00> : vector<2x128xf32>
    %66 = vector.multi_reduction <add>, %65, %cst_30 [1] : vector<2x8x128xf32> to vector<2x128xf32>
    %67 = tpu.concatenate %48, %66 in 1 : vector<2x128xf32>, vector<2x128xf32> -> vector<2x256xf32>
    %cst_31 = arith.constant dense<0.000000e+00> : vector<2x128xf32>
    %68 = tpu.matmul %67, %5, %cst_31 {dimension_numbers = #tpu.dot_dimension_numbers<[1], [0], [0], [1], [0, 0, 1, 1], [], []>} : vector<2x256xf32>, vector<256x128xf32>, vector<2x128xf32> -> vector<2x128xf32>
    %69 = arith.addf %68, %12 : vector<2x128xf32>
    %70 = math.tanh %69 : vector<2x128xf32>
    %cst_32 = arith.constant dense<0.000000e+00> : vector<2x128xf32>
    %71 = tpu.matmul %70, %6, %cst_32 {dimension_numbers = #tpu.dot_dimension_numbers<[1], [0], [0], [1], [0, 0, 1, 1], [], []>} : vector<2x128xf32>, vector<128x128xf32>, vector<2x128xf32> -> vector<2x128xf32>
    %72 = arith.addf %71, %15 : vector<2x128xf32>
    %c0_33 = arith.constant 0 : index
    %c0_34 = arith.constant 0 : index
    %c0_35 = arith.constant 0 : index
    %73 = vector.load %arg10[%c0_33, %c0_34, %c0_35] : memref<2x8x128xf32, #tpu.memory_space<vmem>>, vector<2x1x128xf32>
    %74 = vector.shape_cast %73 : vector<2x1x128xf32> to vector<2x128xf32>
    %75 = vector.shape_cast %72 : vector<2x128xf32> to vector<2x1x128xf32>
    tpu.vector_store %arg10[%c0_33, %c0_34, %c0_35], %75 {strides = array<i32>} : memref<2x8x128xf32, #tpu.memory_space<vmem>>, vector<2x1x128xf32>,
    %c0_36 = arith.constant 0 : index
    %c1 = arith.constant 1 : index
    %c0_37 = arith.constant 0 : index
    %76 = vector.load %arg2[%c0_36, %c1, %c0_37] : memref<2x8x128xf32, #tpu.memory_space<vmem>>, vector<2x1x128xf32>
    %77 = vector.shape_cast %76 : vector<2x1x128xf32> to vector<2x128xf32>
    %78 = tpu.concatenate %77, %66, %48 in 1 : vector<2x128xf32>, vector<2x128xf32>, vector<2x128xf32> -> vector<2x384xf32>
    %cst_38 = arith.constant dense<0.000000e+00> : vector<2x512xf32>
    %79 = tpu.matmul %78, %4, %cst_38 {dimension_numbers = #tpu.dot_dimension_numbers<[1], [0], [0], [1], [0, 0, 1, 1], [], []>} : vector<2x384xf32>, vector<384x512xf32>, vector<2x512xf32> -> vector<2x512xf32>
    %80 = arith.addf %79, %9 : vector<2x512xf32>
    %81 = vector.extract_strided_slice %80 {offsets = [0, 0], sizes = [2, 128], strides = [1, 1]} : vector<2x512xf32> to vector<2x128xf32>
    %82 = arith.negf %81 : vector<2x128xf32>
    %83 = math.exp %82 : vector<2x128xf32>
    %cst_39 = arith.constant 1.000000e+00 : f32
    %84 = vector.broadcast %cst_39 : f32 to vector<2x128xf32>
    %85 = arith.addf %84, %83 : vector<2x128xf32>
    %86 = arith.divf %84, %85 : vector<2x128xf32>
    %87 = vector.extract_strided_slice %80 {offsets = [0, 128], sizes = [2, 128], strides = [1, 1]} : vector<2x512xf32> to vector<2x128xf32>
    %88 = arith.negf %87 : vector<2x128xf32>
    %89 = math.exp %88 : vector<2x128xf32>
    %cst_40 = arith.constant 1.000000e+00 : f32
    %90 = vector.broadcast %cst_40 : f32 to vector<2x128xf32>
    %91 = arith.addf %90, %89 : vector<2x128xf32>
    %92 = arith.divf %90, %91 : vector<2x128xf32>
    %93 = vector.extract_strided_slice %80 {offsets = [0, 256], sizes = [2, 128], strides = [1, 1]} : vector<2x512xf32> to vector<2x128xf32>
    %94 = math.tanh %93 : vector<2x128xf32>
    %95 = vector.extract_strided_slice %80 {offsets = [0, 384], sizes = [2, 128], strides = [1, 1]} : vector<2x512xf32> to vector<2x128xf32>
    %96 = arith.negf %95 : vector<2x128xf32>
    %97 = math.exp %96 : vector<2x128xf32>
    %cst_41 = arith.constant 1.000000e+00 : f32
    %98 = vector.broadcast %cst_41 : f32 to vector<2x128xf32>
    %99 = arith.addf %98, %97 : vector<2x128xf32>
    %100 = arith.divf %98, %99 : vector<2x128xf32>
    %101 = arith.mulf %92, %46 : vector<2x128xf32>
    %102 = arith.mulf %86, %94 : vector<2x128xf32>
    %103 = arith.addf %101, %102 : vector<2x128xf32>
    %104 = math.tanh %103 : vector<2x128xf32>
    %105 = arith.mulf %100, %104 : vector<2x128xf32>
    %106 = vector.shape_cast %105 : vector<2x128xf32> to vector<2x1x128xf32>
    %107 = vector.broadcast %106 : vector<2x1x128xf32> to vector<2x8x128xf32>
    %108 = arith.mulf %107, %3 : vector<2x8x128xf32>
    %cst_42 = arith.constant dense<0.000000e+00> : vector<2x8xf32>
    %109 = vector.multi_reduction <add>, %108, %cst_42 [2] : vector<2x8x128xf32> to vector<2x8xf32>
    %cst_43 = arith.constant dense<0xFF800000> : vector<2xf32>
    %110 = vector.multi_reduction <maximumf>, %109, %cst_43 [1] : vector<2x8xf32> to vector<2xf32>
    %111 = vector.shape_cast %110 : vector<2xf32> to vector<2x1xf32>
    %112 = vector.broadcast %111 : vector<2x1xf32> to vector<2x8xf32>
    %113 = arith.subf %109, %112 : vector<2x8xf32>
    %114 = math.exp %113 : vector<2x8xf32>
    %cst_44 = arith.constant dense<0.000000e+00> : vector<2xf32>
    %115 = vector.multi_reduction <add>, %114, %cst_44 [1] : vector<2x8xf32> to vector<2xf32>
    %116 = vector.shape_cast %115 : vector<2xf32> to vector<2x1xf32>
    %117 = tpu.reciprocal %116 {approx = true} : vector<2x1xf32> -> vector<2x1xf32>
    %118 = vector.broadcast %117 : vector<2x1xf32> to vector<2x8xf32>
    %119 = arith.mulf %114, %118 : vector<2x8xf32>
    %120 = vector.shape_cast %119 : vector<2x8xf32> to vector<2x8x1xf32>
    %121 = vector.broadcast %120 : vector<2x8x1xf32> to vector<2x8x128xf32>
    %122 = arith.mulf %121, %3 : vector<2x8x128xf32>
    %cst_45 = arith.constant dense<0.000000e+00> : vector<2x128xf32>
    %123 = vector.multi_reduction <add>, %122, %cst_45 [1] : vector<2x8x128xf32> to vector<2x128xf32>
    %124 = tpu.concatenate %105, %123 in 1 : vector<2x128xf32>, vector<2x128xf32> -> vector<2x256xf32>
    %cst_46 = arith.constant dense<0.000000e+00> : vector<2x128xf32>
    %125 = tpu.matmul %124, %5, %cst_46 {dimension_numbers = #tpu.dot_dimension_numbers<[1], [0], [0], [1], [0, 0, 1, 1], [], []>} : vector<2x256xf32>, vector<256x128xf32>, vector<2x128xf32> -> vector<2x128xf32>
    %126 = arith.addf %125, %12 : vector<2x128xf32>
    %127 = math.tanh %126 : vector<2x128xf32>
    %cst_47 = arith.constant dense<0.000000e+00> : vector<2x128xf32>
    %128 = tpu.matmul %127, %6, %cst_47 {dimension_numbers = #tpu.dot_dimension_numbers<[1], [0], [0], [1], [0, 0, 1, 1], [], []>} : vector<2x128xf32>, vector<128x128xf32>, vector<2x128xf32> -> vector<2x128xf32>
    %129 = arith.addf %128, %15 : vector<2x128xf32>
    %c0_48 = arith.constant 0 : index
    %c1_49 = arith.constant 1 : index
    %c0_50 = arith.constant 0 : index
    %130 = vector.load %arg10[%c0_48, %c1_49, %c0_50] : memref<2x8x128xf32, #tpu.memory_space<vmem>>, vector<2x1x128xf32>
    %131 = vector.shape_cast %130 : vector<2x1x128xf32> to vector<2x128xf32>
    %132 = vector.shape_cast %129 : vector<2x128xf32> to vector<2x1x128xf32>
    tpu.vector_store %arg10[%c0_48, %c1_49, %c0_50], %132 {strides = array<i32>} : memref<2x8x128xf32, #tpu.memory_space<vmem>>, vector<2x1x128xf32>,
    %c0_51 = arith.constant 0 : index
    %c2 = arith.constant 2 : index
    %c0_52 = arith.constant 0 : index
    %133 = vector.load %arg2[%c0_51, %c2, %c0_52] : memref<2x8x128xf32, #tpu.memory_space<vmem>>, vector<2x1x128xf32>
    %134 = vector.shape_cast %133 : vector<2x1x128xf32> to vector<2x128xf32>
    %135 = tpu.concatenate %134, %123, %105 in 1 : vector<2x128xf32>, vector<2x128xf32>, vector<2x128xf32> -> vector<2x384xf32>
    %cst_53 = arith.constant dense<0.000000e+00> : vector<2x512xf32>
    %136 = tpu.matmul %135, %4, %cst_53 {dimension_numbers = #tpu.dot_dimension_numbers<[1], [0], [0], [1], [0, 0, 1, 1], [], []>} : vector<2x384xf32>, vector<384x512xf32>, vector<2x512xf32> -> vector<2x512xf32>
    %137 = arith.addf %136, %9 : vector<2x512xf32>
    %138 = vector.extract_strided_slice %137 {offsets = [0, 0], sizes = [2, 128], strides = [1, 1]} : vector<2x512xf32> to vector<2x128xf32>
    %139 = arith.negf %138 : vector<2x128xf32>
    %140 = math.exp %139 : vector<2x128xf32>
    %cst_54 = arith.constant 1.000000e+00 : f32
    %141 = vector.broadcast %cst_54 : f32 to vector<2x128xf32>
    %142 = arith.addf %141, %140 : vector<2x128xf32>
    %143 = arith.divf %141, %142 : vector<2x128xf32>
    %144 = vector.extract_strided_slice %137 {offsets = [0, 128], sizes = [2, 128], strides = [1, 1]} : vector<2x512xf32> to vector<2x128xf32>
    %145 = arith.negf %144 : vector<2x128xf32>
    %146 = math.exp %145 : vector<2x128xf32>
    %cst_55 = arith.constant 1.000000e+00 : f32
    %147 = vector.broadcast %cst_55 : f32 to vector<2x128xf32>
    %148 = arith.addf %147, %146 : vector<2x128xf32>
    %149 = arith.divf %147, %148 : vector<2x128xf32>
    %150 = vector.extract_strided_slice %137 {offsets = [0, 256], sizes = [2, 128], strides = [1, 1]} : vector<2x512xf32> to vector<2x128xf32>
    %151 = math.tanh %150 : vector<2x128xf32>
    %152 = vector.extract_strided_slice %137 {offsets = [0, 384], sizes = [2, 128], strides = [1, 1]} : vector<2x512xf32> to vector<2x128xf32>
    %153 = arith.negf %152 : vector<2x128xf32>
    %154 = math.exp %153 : vector<2x128xf32>
    %cst_56 = arith.constant 1.000000e+00 : f32
    %155 = vector.broadcast %cst_56 : f32 to vector<2x128xf32>
    %156 = arith.addf %155, %154 : vector<2x128xf32>
    %157 = arith.divf %155, %156 : vector<2x128xf32>
    %158 = arith.mulf %149, %103 : vector<2x128xf32>
    %159 = arith.mulf %143, %151 : vector<2x128xf32>
    %160 = arith.addf %158, %159 : vector<2x128xf32>
    %161 = math.tanh %160 : vector<2x128xf32>
    %162 = arith.mulf %157, %161 : vector<2x128xf32>
    %163 = vector.shape_cast %162 : vector<2x128xf32> to vector<2x1x128xf32>
    %164 = vector.broadcast %163 : vector<2x1x128xf32> to vector<2x8x128xf32>
    %165 = arith.mulf %164, %3 : vector<2x8x128xf32>
    %cst_57 = arith.constant dense<0.000000e+00> : vector<2x8xf32>
    %166 = vector.multi_reduction <add>, %165, %cst_57 [2] : vector<2x8x128xf32> to vector<2x8xf32>
    %cst_58 = arith.constant dense<0xFF800000> : vector<2xf32>
    %167 = vector.multi_reduction <maximumf>, %166, %cst_58 [1] : vector<2x8xf32> to vector<2xf32>
    %168 = vector.shape_cast %167 : vector<2xf32> to vector<2x1xf32>
    %169 = vector.broadcast %168 : vector<2x1xf32> to vector<2x8xf32>
    %170 = arith.subf %166, %169 : vector<2x8xf32>
    %171 = math.exp %170 : vector<2x8xf32>
    %cst_59 = arith.constant dense<0.000000e+00> : vector<2xf32>
    %172 = vector.multi_reduction <add>, %171, %cst_59 [1] : vector<2x8xf32> to vector<2xf32>
    %173 = vector.shape_cast %172 : vector<2xf32> to vector<2x1xf32>
    %174 = tpu.reciprocal %173 {approx = true} : vector<2x1xf32> -> vector<2x1xf32>
    %175 = vector.broadcast %174 : vector<2x1xf32> to vector<2x8xf32>
    %176 = arith.mulf %171, %175 : vector<2x8xf32>
    %177 = vector.shape_cast %176 : vector<2x8xf32> to vector<2x8x1xf32>
    %178 = vector.broadcast %177 : vector<2x8x1xf32> to vector<2x8x128xf32>
    %179 = arith.mulf %178, %3 : vector<2x8x128xf32>
    %cst_60 = arith.constant dense<0.000000e+00> : vector<2x128xf32>
    %180 = vector.multi_reduction <add>, %179, %cst_60 [1] : vector<2x8x128xf32> to vector<2x128xf32>
    %181 = tpu.concatenate %162, %180 in 1 : vector<2x128xf32>, vector<2x128xf32> -> vector<2x256xf32>
    %cst_61 = arith.constant dense<0.000000e+00> : vector<2x128xf32>
    %182 = tpu.matmul %181, %5, %cst_61 {dimension_numbers = #tpu.dot_dimension_numbers<[1], [0], [0], [1], [0, 0, 1, 1], [], []>} : vector<2x256xf32>, vector<256x128xf32>, vector<2x128xf32> -> vector<2x128xf32>
    %183 = arith.addf %182, %12 : vector<2x128xf32>
    %184 = math.tanh %183 : vector<2x128xf32>
    %cst_62 = arith.constant dense<0.000000e+00> : vector<2x128xf32>
    %185 = tpu.matmul %184, %6, %cst_62 {dimension_numbers = #tpu.dot_dimension_numbers<[1], [0], [0], [1], [0, 0, 1, 1], [], []>} : vector<2x128xf32>, vector<128x128xf32>, vector<2x128xf32> -> vector<2x128xf32>
    %186 = arith.addf %185, %15 : vector<2x128xf32>
    %c0_63 = arith.constant 0 : index
    %c2_64 = arith.constant 2 : index
    %c0_65 = arith.constant 0 : index
    %187 = vector.load %arg10[%c0_63, %c2_64, %c0_65] : memref<2x8x128xf32, #tpu.memory_space<vmem>>, vector<2x1x128xf32>
    %188 = vector.shape_cast %187 : vector<2x1x128xf32> to vector<2x128xf32>
    %189 = vector.shape_cast %186 : vector<2x128xf32> to vector<2x1x128xf32>
    tpu.vector_store %arg10[%c0_63, %c2_64, %c0_65], %189 {strides = array<i32>} : memref<2x8x128xf32, #tpu.memory_space<vmem>>, vector<2x1x128xf32>,
    %c0_66 = arith.constant 0 : index
    %c3 = arith.constant 3 : index
    %c0_67 = arith.constant 0 : index
    %190 = vector.load %arg2[%c0_66, %c3, %c0_67] : memref<2x8x128xf32, #tpu.memory_space<vmem>>, vector<2x1x128xf32>
    %191 = vector.shape_cast %190 : vector<2x1x128xf32> to vector<2x128xf32>
    %192 = tpu.concatenate %191, %180, %162 in 1 : vector<2x128xf32>, vector<2x128xf32>, vector<2x128xf32> -> vector<2x384xf32>
    %cst_68 = arith.constant dense<0.000000e+00> : vector<2x512xf32>
    %193 = tpu.matmul %192, %4, %cst_68 {dimension_numbers = #tpu.dot_dimension_numbers<[1], [0], [0], [1], [0, 0, 1, 1], [], []>} : vector<2x384xf32>, vector<384x512xf32>, vector<2x512xf32> -> vector<2x512xf32>
    %194 = arith.addf %193, %9 : vector<2x512xf32>
    %195 = vector.extract_strided_slice %194 {offsets = [0, 0], sizes = [2, 128], strides = [1, 1]} : vector<2x512xf32> to vector<2x128xf32>
    %196 = arith.negf %195 : vector<2x128xf32>
    %197 = math.exp %196 : vector<2x128xf32>
    %cst_69 = arith.constant 1.000000e+00 : f32
    %198 = vector.broadcast %cst_69 : f32 to vector<2x128xf32>
    %199 = arith.addf %198, %197 : vector<2x128xf32>
    %200 = arith.divf %198, %199 : vector<2x128xf32>
    %201 = vector.extract_strided_slice %194 {offsets = [0, 128], sizes = [2, 128], strides = [1, 1]} : vector<2x512xf32> to vector<2x128xf32>
    %202 = arith.negf %201 : vector<2x128xf32>
    %203 = math.exp %202 : vector<2x128xf32>
    %cst_70 = arith.constant 1.000000e+00 : f32
    %204 = vector.broadcast %cst_70 : f32 to vector<2x128xf32>
    %205 = arith.addf %204, %203 : vector<2x128xf32>
    %206 = arith.divf %204, %205 : vector<2x128xf32>
    %207 = vector.extract_strided_slice %194 {offsets = [0, 256], sizes = [2, 128], strides = [1, 1]} : vector<2x512xf32> to vector<2x128xf32>
    %208 = math.tanh %207 : vector<2x128xf32>
    %209 = vector.extract_strided_slice %194 {offsets = [0, 384], sizes = [2, 128], strides = [1, 1]} : vector<2x512xf32> to vector<2x128xf32>
    %210 = arith.negf %209 : vector<2x128xf32>
    %211 = math.exp %210 : vector<2x128xf32>
    %cst_71 = arith.constant 1.000000e+00 : f32
    %212 = vector.broadcast %cst_71 : f32 to vector<2x128xf32>
    %213 = arith.addf %212, %211 : vector<2x128xf32>
    %214 = arith.divf %212, %213 : vector<2x128xf32>
    %215 = arith.mulf %206, %160 : vector<2x128xf32>
    %216 = arith.mulf %200, %208 : vector<2x128xf32>
    %217 = arith.addf %215, %216 : vector<2x128xf32>
    %218 = math.tanh %217 : vector<2x128xf32>
    %219 = arith.mulf %214, %218 : vector<2x128xf32>
    %220 = vector.shape_cast %219 : vector<2x128xf32> to vector<2x1x128xf32>
    %221 = vector.broadcast %220 : vector<2x1x128xf32> to vector<2x8x128xf32>
    %222 = arith.mulf %221, %3 : vector<2x8x128xf32>
    %cst_72 = arith.constant dense<0.000000e+00> : vector<2x8xf32>
    %223 = vector.multi_reduction <add>, %222, %cst_72 [2] : vector<2x8x128xf32> to vector<2x8xf32>
    %cst_73 = arith.constant dense<0xFF800000> : vector<2xf32>
    %224 = vector.multi_reduction <maximumf>, %223, %cst_73 [1] : vector<2x8xf32> to vector<2xf32>
    %225 = vector.shape_cast %224 : vector<2xf32> to vector<2x1xf32>
    %226 = vector.broadcast %225 : vector<2x1xf32> to vector<2x8xf32>
    %227 = arith.subf %223, %226 : vector<2x8xf32>
    %228 = math.exp %227 : vector<2x8xf32>
    %cst_74 = arith.constant dense<0.000000e+00> : vector<2xf32>
    %229 = vector.multi_reduction <add>, %228, %cst_74 [1] : vector<2x8xf32> to vector<2xf32>
    %230 = vector.shape_cast %229 : vector<2xf32> to vector<2x1xf32>
    %231 = tpu.reciprocal %230 {approx = true} : vector<2x1xf32> -> vector<2x1xf32>
    %232 = vector.broadcast %231 : vector<2x1xf32> to vector<2x8xf32>
    %233 = arith.mulf %228, %232 : vector<2x8xf32>
    %234 = vector.shape_cast %233 : vector<2x8xf32> to vector<2x8x1xf32>
    %235 = vector.broadcast %234 : vector<2x8x1xf32> to vector<2x8x128xf32>
    %236 = arith.mulf %235, %3 : vector<2x8x128xf32>
    %cst_75 = arith.constant dense<0.000000e+00> : vector<2x128xf32>
    %237 = vector.multi_reduction <add>, %236, %cst_75 [1] : vector<2x8x128xf32> to vector<2x128xf32>
    %238 = tpu.concatenate %219, %237 in 1 : vector<2x128xf32>, vector<2x128xf32> -> vector<2x256xf32>
    %cst_76 = arith.constant dense<0.000000e+00> : vector<2x128xf32>
    %239 = tpu.matmul %238, %5, %cst_76 {dimension_numbers = #tpu.dot_dimension_numbers<[1], [0], [0], [1], [0, 0, 1, 1], [], []>} : vector<2x256xf32>, vector<256x128xf32>, vector<2x128xf32> -> vector<2x128xf32>
    %240 = arith.addf %239, %12 : vector<2x128xf32>
    %241 = math.tanh %240 : vector<2x128xf32>
    %cst_77 = arith.constant dense<0.000000e+00> : vector<2x128xf32>
    %242 = tpu.matmul %241, %6, %cst_77 {dimension_numbers = #tpu.dot_dimension_numbers<[1], [0], [0], [1], [0, 0, 1, 1], [], []>} : vector<2x128xf32>, vector<128x128xf32>, vector<2x128xf32> -> vector<2x128xf32>
    %243 = arith.addf %242, %15 : vector<2x128xf32>
    %c0_78 = arith.constant 0 : index
    %c3_79 = arith.constant 3 : index
    %c0_80 = arith.constant 0 : index
    %244 = vector.load %arg10[%c0_78, %c3_79, %c0_80] : memref<2x8x128xf32, #tpu.memory_space<vmem>>, vector<2x1x128xf32>
    %245 = vector.shape_cast %244 : vector<2x1x128xf32> to vector<2x128xf32>
    %246 = vector.shape_cast %243 : vector<2x128xf32> to vector<2x1x128xf32>
    tpu.vector_store %arg10[%c0_78, %c3_79, %c0_80], %246 {strides = array<i32>} : memref<2x8x128xf32, #tpu.memory_space<vmem>>, vector<2x1x128xf32>,
    %c0_81 = arith.constant 0 : index
    %c4 = arith.constant 4 : index
    %c0_82 = arith.constant 0 : index
    %247 = vector.load %arg2[%c0_81, %c4, %c0_82] : memref<2x8x128xf32, #tpu.memory_space<vmem>>, vector<2x1x128xf32>
    %248 = vector.shape_cast %247 : vector<2x1x128xf32> to vector<2x128xf32>
    %249 = tpu.concatenate %248, %237, %219 in 1 : vector<2x128xf32>, vector<2x128xf32>, vector<2x128xf32> -> vector<2x384xf32>
    %cst_83 = arith.constant dense<0.000000e+00> : vector<2x512xf32>
    %250 = tpu.matmul %249, %4, %cst_83 {dimension_numbers = #tpu.dot_dimension_numbers<[1], [0], [0], [1], [0, 0, 1, 1], [], []>} : vector<2x384xf32>, vector<384x512xf32>, vector<2x512xf32> -> vector<2x512xf32>
    %251 = arith.addf %250, %9 : vector<2x512xf32>
    %252 = vector.extract_strided_slice %251 {offsets = [0, 0], sizes = [2, 128], strides = [1, 1]} : vector<2x512xf32> to vector<2x128xf32>
    %253 = arith.negf %252 : vector<2x128xf32>
    %254 = math.exp %253 : vector<2x128xf32>
    %cst_84 = arith.constant 1.000000e+00 : f32
    %255 = vector.broadcast %cst_84 : f32 to vector<2x128xf32>
    %256 = arith.addf %255, %254 : vector<2x128xf32>
    %257 = arith.divf %255, %256 : vector<2x128xf32>
    %258 = vector.extract_strided_slice %251 {offsets = [0, 128], sizes = [2, 128], strides = [1, 1]} : vector<2x512xf32> to vector<2x128xf32>
    %259 = arith.negf %258 : vector<2x128xf32>
    %260 = math.exp %259 : vector<2x128xf32>
    %cst_85 = arith.constant 1.000000e+00 : f32
    %261 = vector.broadcast %cst_85 : f32 to vector<2x128xf32>
    %262 = arith.addf %261, %260 : vector<2x128xf32>
    %263 = arith.divf %261, %262 : vector<2x128xf32>
    %264 = vector.extract_strided_slice %251 {offsets = [0, 256], sizes = [2, 128], strides = [1, 1]} : vector<2x512xf32> to vector<2x128xf32>
    %265 = math.tanh %264 : vector<2x128xf32>
    %266 = vector.extract_strided_slice %251 {offsets = [0, 384], sizes = [2, 128], strides = [1, 1]} : vector<2x512xf32> to vector<2x128xf32>
    %267 = arith.negf %266 : vector<2x128xf32>
    %268 = math.exp %267 : vector<2x128xf32>
    %cst_86 = arith.constant 1.000000e+00 : f32
    %269 = vector.broadcast %cst_86 : f32 to vector<2x128xf32>
    %270 = arith.addf %269, %268 : vector<2x128xf32>
    %271 = arith.divf %269, %270 : vector<2x128xf32>
    %272 = arith.mulf %263, %217 : vector<2x128xf32>
    %273 = arith.mulf %257, %265 : vector<2x128xf32>
    %274 = arith.addf %272, %273 : vector<2x128xf32>
    %275 = math.tanh %274 : vector<2x128xf32>
    %276 = arith.mulf %271, %275 : vector<2x128xf32>
    %277 = vector.shape_cast %276 : vector<2x128xf32> to vector<2x1x128xf32>
    %278 = vector.broadcast %277 : vector<2x1x128xf32> to vector<2x8x128xf32>
    %279 = arith.mulf %278, %3 : vector<2x8x128xf32>
    %cst_87 = arith.constant dense<0.000000e+00> : vector<2x8xf32>
    %280 = vector.multi_reduction <add>, %279, %cst_87 [2] : vector<2x8x128xf32> to vector<2x8xf32>
    %cst_88 = arith.constant dense<0xFF800000> : vector<2xf32>
    %281 = vector.multi_reduction <maximumf>, %280, %cst_88 [1] : vector<2x8xf32> to vector<2xf32>
    %282 = vector.shape_cast %281 : vector<2xf32> to vector<2x1xf32>
    %283 = vector.broadcast %282 : vector<2x1xf32> to vector<2x8xf32>
    %284 = arith.subf %280, %283 : vector<2x8xf32>
    %285 = math.exp %284 : vector<2x8xf32>
    %cst_89 = arith.constant dense<0.000000e+00> : vector<2xf32>
    %286 = vector.multi_reduction <add>, %285, %cst_89 [1] : vector<2x8xf32> to vector<2xf32>
    %287 = vector.shape_cast %286 : vector<2xf32> to vector<2x1xf32>
    %288 = tpu.reciprocal %287 {approx = true} : vector<2x1xf32> -> vector<2x1xf32>
    %289 = vector.broadcast %288 : vector<2x1xf32> to vector<2x8xf32>
    %290 = arith.mulf %285, %289 : vector<2x8xf32>
    %291 = vector.shape_cast %290 : vector<2x8xf32> to vector<2x8x1xf32>
    %292 = vector.broadcast %291 : vector<2x8x1xf32> to vector<2x8x128xf32>
    %293 = arith.mulf %292, %3 : vector<2x8x128xf32>
    %cst_90 = arith.constant dense<0.000000e+00> : vector<2x128xf32>
    %294 = vector.multi_reduction <add>, %293, %cst_90 [1] : vector<2x8x128xf32> to vector<2x128xf32>
    %295 = tpu.concatenate %276, %294 in 1 : vector<2x128xf32>, vector<2x128xf32> -> vector<2x256xf32>
    %cst_91 = arith.constant dense<0.000000e+00> : vector<2x128xf32>
    %296 = tpu.matmul %295, %5, %cst_91 {dimension_numbers = #tpu.dot_dimension_numbers<[1], [0], [0], [1], [0, 0, 1, 1], [], []>} : vector<2x256xf32>, vector<256x128xf32>, vector<2x128xf32> -> vector<2x128xf32>
    %297 = arith.addf %296, %12 : vector<2x128xf32>
    %298 = math.tanh %297 : vector<2x128xf32>
    %cst_92 = arith.constant dense<0.000000e+00> : vector<2x128xf32>
    %299 = tpu.matmul %298, %6, %cst_92 {dimension_numbers = #tpu.dot_dimension_numbers<[1], [0], [0], [1], [0, 0, 1, 1], [], []>} : vector<2x128xf32>, vector<128x128xf32>, vector<2x128xf32> -> vector<2x128xf32>
    %300 = arith.addf %299, %15 : vector<2x128xf32>
    %c0_93 = arith.constant 0 : index
    %c4_94 = arith.constant 4 : index
    %c0_95 = arith.constant 0 : index
    %301 = vector.load %arg10[%c0_93, %c4_94, %c0_95] : memref<2x8x128xf32, #tpu.memory_space<vmem>>, vector<2x1x128xf32>
    %302 = vector.shape_cast %301 : vector<2x1x128xf32> to vector<2x128xf32>
    %303 = vector.shape_cast %300 : vector<2x128xf32> to vector<2x1x128xf32>
    tpu.vector_store %arg10[%c0_93, %c4_94, %c0_95], %303 {strides = array<i32>} : memref<2x8x128xf32, #tpu.memory_space<vmem>>, vector<2x1x128xf32>,
    %c0_96 = arith.constant 0 : index
    %c5 = arith.constant 5 : index
    %c0_97 = arith.constant 0 : index
    %304 = vector.load %arg2[%c0_96, %c5, %c0_97] : memref<2x8x128xf32, #tpu.memory_space<vmem>>, vector<2x1x128xf32>
    %305 = vector.shape_cast %304 : vector<2x1x128xf32> to vector<2x128xf32>
    %306 = tpu.concatenate %305, %294, %276 in 1 : vector<2x128xf32>, vector<2x128xf32>, vector<2x128xf32> -> vector<2x384xf32>
    %cst_98 = arith.constant dense<0.000000e+00> : vector<2x512xf32>
    %307 = tpu.matmul %306, %4, %cst_98 {dimension_numbers = #tpu.dot_dimension_numbers<[1], [0], [0], [1], [0, 0, 1, 1], [], []>} : vector<2x384xf32>, vector<384x512xf32>, vector<2x512xf32> -> vector<2x512xf32>
    %308 = arith.addf %307, %9 : vector<2x512xf32>
    %309 = vector.extract_strided_slice %308 {offsets = [0, 0], sizes = [2, 128], strides = [1, 1]} : vector<2x512xf32> to vector<2x128xf32>
    %310 = arith.negf %309 : vector<2x128xf32>
    %311 = math.exp %310 : vector<2x128xf32>
    %cst_99 = arith.constant 1.000000e+00 : f32
    %312 = vector.broadcast %cst_99 : f32 to vector<2x128xf32>
    %313 = arith.addf %312, %311 : vector<2x128xf32>
    %314 = arith.divf %312, %313 : vector<2x128xf32>
    %315 = vector.extract_strided_slice %308 {offsets = [0, 128], sizes = [2, 128], strides = [1, 1]} : vector<2x512xf32> to vector<2x128xf32>
    %316 = arith.negf %315 : vector<2x128xf32>
    %317 = math.exp %316 : vector<2x128xf32>
    %cst_100 = arith.constant 1.000000e+00 : f32
    %318 = vector.broadcast %cst_100 : f32 to vector<2x128xf32>
    %319 = arith.addf %318, %317 : vector<2x128xf32>
    %320 = arith.divf %318, %319 : vector<2x128xf32>
    %321 = vector.extract_strided_slice %308 {offsets = [0, 256], sizes = [2, 128], strides = [1, 1]} : vector<2x512xf32> to vector<2x128xf32>
    %322 = math.tanh %321 : vector<2x128xf32>
    %323 = vector.extract_strided_slice %308 {offsets = [0, 384], sizes = [2, 128], strides = [1, 1]} : vector<2x512xf32> to vector<2x128xf32>
    %324 = arith.negf %323 : vector<2x128xf32>
    %325 = math.exp %324 : vector<2x128xf32>
    %cst_101 = arith.constant 1.000000e+00 : f32
    %326 = vector.broadcast %cst_101 : f32 to vector<2x128xf32>
    %327 = arith.addf %326, %325 : vector<2x128xf32>
    %328 = arith.divf %326, %327 : vector<2x128xf32>
    %329 = arith.mulf %320, %274 : vector<2x128xf32>
    %330 = arith.mulf %314, %322 : vector<2x128xf32>
    %331 = arith.addf %329, %330 : vector<2x128xf32>
    %332 = math.tanh %331 : vector<2x128xf32>
    %333 = arith.mulf %328, %332 : vector<2x128xf32>
    %334 = vector.shape_cast %333 : vector<2x128xf32> to vector<2x1x128xf32>
    %335 = vector.broadcast %334 : vector<2x1x128xf32> to vector<2x8x128xf32>
    %336 = arith.mulf %335, %3 : vector<2x8x128xf32>
    %cst_102 = arith.constant dense<0.000000e+00> : vector<2x8xf32>
    %337 = vector.multi_reduction <add>, %336, %cst_102 [2] : vector<2x8x128xf32> to vector<2x8xf32>
    %cst_103 = arith.constant dense<0xFF800000> : vector<2xf32>
    %338 = vector.multi_reduction <maximumf>, %337, %cst_103 [1] : vector<2x8xf32> to vector<2xf32>
    %339 = vector.shape_cast %338 : vector<2xf32> to vector<2x1xf32>
    %340 = vector.broadcast %339 : vector<2x1xf32> to vector<2x8xf32>
    %341 = arith.subf %337, %340 : vector<2x8xf32>
    %342 = math.exp %341 : vector<2x8xf32>
    %cst_104 = arith.constant dense<0.000000e+00> : vector<2xf32>
    %343 = vector.multi_reduction <add>, %342, %cst_104 [1] : vector<2x8xf32> to vector<2xf32>
    %344 = vector.shape_cast %343 : vector<2xf32> to vector<2x1xf32>
    %345 = tpu.reciprocal %344 {approx = true} : vector<2x1xf32> -> vector<2x1xf32>
    %346 = vector.broadcast %345 : vector<2x1xf32> to vector<2x8xf32>
    %347 = arith.mulf %342, %346 : vector<2x8xf32>
    %348 = vector.shape_cast %347 : vector<2x8xf32> to vector<2x8x1xf32>
    %349 = vector.broadcast %348 : vector<2x8x1xf32> to vector<2x8x128xf32>
    %350 = arith.mulf %349, %3 : vector<2x8x128xf32>
    %cst_105 = arith.constant dense<0.000000e+00> : vector<2x128xf32>
    %351 = vector.multi_reduction <add>, %350, %cst_105 [1] : vector<2x8x128xf32> to vector<2x128xf32>
    %352 = tpu.concatenate %333, %351 in 1 : vector<2x128xf32>, vector<2x128xf32> -> vector<2x256xf32>
    %cst_106 = arith.constant dense<0.000000e+00> : vector<2x128xf32>
    %353 = tpu.matmul %352, %5, %cst_106 {dimension_numbers = #tpu.dot_dimension_numbers<[1], [0], [0], [1], [0, 0, 1, 1], [], []>} : vector<2x256xf32>, vector<256x128xf32>, vector<2x128xf32> -> vector<2x128xf32>
    %354 = arith.addf %353, %12 : vector<2x128xf32>
    %355 = math.tanh %354 : vector<2x128xf32>
    %cst_107 = arith.constant dense<0.000000e+00> : vector<2x128xf32>
    %356 = tpu.matmul %355, %6, %cst_107 {dimension_numbers = #tpu.dot_dimension_numbers<[1], [0], [0], [1], [0, 0, 1, 1], [], []>} : vector<2x128xf32>, vector<128x128xf32>, vector<2x128xf32> -> vector<2x128xf32>
    %357 = arith.addf %356, %15 : vector<2x128xf32>
    %c0_108 = arith.constant 0 : index
    %c5_109 = arith.constant 5 : index
    %c0_110 = arith.constant 0 : index
    %358 = vector.load %arg10[%c0_108, %c5_109, %c0_110] : memref<2x8x128xf32, #tpu.memory_space<vmem>>, vector<2x1x128xf32>
    %359 = vector.shape_cast %358 : vector<2x1x128xf32> to vector<2x128xf32>
    %360 = vector.shape_cast %357 : vector<2x128xf32> to vector<2x1x128xf32>
    tpu.vector_store %arg10[%c0_108, %c5_109, %c0_110], %360 {strides = array<i32>} : memref<2x8x128xf32, #tpu.memory_space<vmem>>, vector<2x1x128xf32>,
    %c0_111 = arith.constant 0 : index
    %c6 = arith.constant 6 : index
    %c0_112 = arith.constant 0 : index
    %361 = vector.load %arg2[%c0_111, %c6, %c0_112] : memref<2x8x128xf32, #tpu.memory_space<vmem>>, vector<2x1x128xf32>
    %362 = vector.shape_cast %361 : vector<2x1x128xf32> to vector<2x128xf32>
    %363 = tpu.concatenate %362, %351, %333 in 1 : vector<2x128xf32>, vector<2x128xf32>, vector<2x128xf32> -> vector<2x384xf32>
    %cst_113 = arith.constant dense<0.000000e+00> : vector<2x512xf32>
    %364 = tpu.matmul %363, %4, %cst_113 {dimension_numbers = #tpu.dot_dimension_numbers<[1], [0], [0], [1], [0, 0, 1, 1], [], []>} : vector<2x384xf32>, vector<384x512xf32>, vector<2x512xf32> -> vector<2x512xf32>
    %365 = arith.addf %364, %9 : vector<2x512xf32>
    %366 = vector.extract_strided_slice %365 {offsets = [0, 0], sizes = [2, 128], strides = [1, 1]} : vector<2x512xf32> to vector<2x128xf32>
    %367 = arith.negf %366 : vector<2x128xf32>
    %368 = math.exp %367 : vector<2x128xf32>
    %cst_114 = arith.constant 1.000000e+00 : f32
    %369 = vector.broadcast %cst_114 : f32 to vector<2x128xf32>
    %370 = arith.addf %369, %368 : vector<2x128xf32>
    %371 = arith.divf %369, %370 : vector<2x128xf32>
    %372 = vector.extract_strided_slice %365 {offsets = [0, 128], sizes = [2, 128], strides = [1, 1]} : vector<2x512xf32> to vector<2x128xf32>
    %373 = arith.negf %372 : vector<2x128xf32>
    %374 = math.exp %373 : vector<2x128xf32>
    %cst_115 = arith.constant 1.000000e+00 : f32
    %375 = vector.broadcast %cst_115 : f32 to vector<2x128xf32>
    %376 = arith.addf %375, %374 : vector<2x128xf32>
    %377 = arith.divf %375, %376 : vector<2x128xf32>
    %378 = vector.extract_strided_slice %365 {offsets = [0, 256], sizes = [2, 128], strides = [1, 1]} : vector<2x512xf32> to vector<2x128xf32>
    %379 = math.tanh %378 : vector<2x128xf32>
    %380 = vector.extract_strided_slice %365 {offsets = [0, 384], sizes = [2, 128], strides = [1, 1]} : vector<2x512xf32> to vector<2x128xf32>
    %381 = arith.negf %380 : vector<2x128xf32>
    %382 = math.exp %381 : vector<2x128xf32>
    %cst_116 = arith.constant 1.000000e+00 : f32
    %383 = vector.broadcast %cst_116 : f32 to vector<2x128xf32>
    %384 = arith.addf %383, %382 : vector<2x128xf32>
    %385 = arith.divf %383, %384 : vector<2x128xf32>
    %386 = arith.mulf %377, %331 : vector<2x128xf32>
    %387 = arith.mulf %371, %379 : vector<2x128xf32>
    %388 = arith.addf %386, %387 : vector<2x128xf32>
    %389 = math.tanh %388 : vector<2x128xf32>
    %390 = arith.mulf %385, %389 : vector<2x128xf32>
    %391 = vector.shape_cast %390 : vector<2x128xf32> to vector<2x1x128xf32>
    %392 = vector.broadcast %391 : vector<2x1x128xf32> to vector<2x8x128xf32>
    %393 = arith.mulf %392, %3 : vector<2x8x128xf32>
    %cst_117 = arith.constant dense<0.000000e+00> : vector<2x8xf32>
    %394 = vector.multi_reduction <add>, %393, %cst_117 [2] : vector<2x8x128xf32> to vector<2x8xf32>
    %cst_118 = arith.constant dense<0xFF800000> : vector<2xf32>
    %395 = vector.multi_reduction <maximumf>, %394, %cst_118 [1] : vector<2x8xf32> to vector<2xf32>
    %396 = vector.shape_cast %395 : vector<2xf32> to vector<2x1xf32>
    %397 = vector.broadcast %396 : vector<2x1xf32> to vector<2x8xf32>
    %398 = arith.subf %394, %397 : vector<2x8xf32>
    %399 = math.exp %398 : vector<2x8xf32>
    %cst_119 = arith.constant dense<0.000000e+00> : vector<2xf32>
    %400 = vector.multi_reduction <add>, %399, %cst_119 [1] : vector<2x8xf32> to vector<2xf32>
    %401 = vector.shape_cast %400 : vector<2xf32> to vector<2x1xf32>
    %402 = tpu.reciprocal %401 {approx = true} : vector<2x1xf32> -> vector<2x1xf32>
    %403 = vector.broadcast %402 : vector<2x1xf32> to vector<2x8xf32>
    %404 = arith.mulf %399, %403 : vector<2x8xf32>
    %405 = vector.shape_cast %404 : vector<2x8xf32> to vector<2x8x1xf32>
    %406 = vector.broadcast %405 : vector<2x8x1xf32> to vector<2x8x128xf32>
    %407 = arith.mulf %406, %3 : vector<2x8x128xf32>
    %cst_120 = arith.constant dense<0.000000e+00> : vector<2x128xf32>
    %408 = vector.multi_reduction <add>, %407, %cst_120 [1] : vector<2x8x128xf32> to vector<2x128xf32>
    %409 = tpu.concatenate %390, %408 in 1 : vector<2x128xf32>, vector<2x128xf32> -> vector<2x256xf32>
    %cst_121 = arith.constant dense<0.000000e+00> : vector<2x128xf32>
    %410 = tpu.matmul %409, %5, %cst_121 {dimension_numbers = #tpu.dot_dimension_numbers<[1], [0], [0], [1], [0, 0, 1, 1], [], []>} : vector<2x256xf32>, vector<256x128xf32>, vector<2x128xf32> -> vector<2x128xf32>
    %411 = arith.addf %410, %12 : vector<2x128xf32>
    %412 = math.tanh %411 : vector<2x128xf32>
    %cst_122 = arith.constant dense<0.000000e+00> : vector<2x128xf32>
    %413 = tpu.matmul %412, %6, %cst_122 {dimension_numbers = #tpu.dot_dimension_numbers<[1], [0], [0], [1], [0, 0, 1, 1], [], []>} : vector<2x128xf32>, vector<128x128xf32>, vector<2x128xf32> -> vector<2x128xf32>
    %414 = arith.addf %413, %15 : vector<2x128xf32>
    %c0_123 = arith.constant 0 : index
    %c6_124 = arith.constant 6 : index
    %c0_125 = arith.constant 0 : index
    %415 = vector.load %arg10[%c0_123, %c6_124, %c0_125] : memref<2x8x128xf32, #tpu.memory_space<vmem>>, vector<2x1x128xf32>
    %416 = vector.shape_cast %415 : vector<2x1x128xf32> to vector<2x128xf32>
    %417 = vector.shape_cast %414 : vector<2x128xf32> to vector<2x1x128xf32>
    tpu.vector_store %arg10[%c0_123, %c6_124, %c0_125], %417 {strides = array<i32>} : memref<2x8x128xf32, #tpu.memory_space<vmem>>, vector<2x1x128xf32>,
    %c0_126 = arith.constant 0 : index
    %c7 = arith.constant 7 : index
    %c0_127 = arith.constant 0 : index
    %418 = vector.load %arg2[%c0_126, %c7, %c0_127] : memref<2x8x128xf32, #tpu.memory_space<vmem>>, vector<2x1x128xf32>
    %419 = vector.shape_cast %418 : vector<2x1x128xf32> to vector<2x128xf32>
    %420 = tpu.concatenate %419, %408, %390 in 1 : vector<2x128xf32>, vector<2x128xf32>, vector<2x128xf32> -> vector<2x384xf32>
    %cst_128 = arith.constant dense<0.000000e+00> : vector<2x512xf32>
    %421 = tpu.matmul %420, %4, %cst_128 {dimension_numbers = #tpu.dot_dimension_numbers<[1], [0], [0], [1], [0, 0, 1, 1], [], []>} : vector<2x384xf32>, vector<384x512xf32>, vector<2x512xf32> -> vector<2x512xf32>
    %422 = arith.addf %421, %9 : vector<2x512xf32>
    %423 = vector.extract_strided_slice %422 {offsets = [0, 0], sizes = [2, 128], strides = [1, 1]} : vector<2x512xf32> to vector<2x128xf32>
    %424 = arith.negf %423 : vector<2x128xf32>
    %425 = math.exp %424 : vector<2x128xf32>
    %cst_129 = arith.constant 1.000000e+00 : f32
    %426 = vector.broadcast %cst_129 : f32 to vector<2x128xf32>
    %427 = arith.addf %426, %425 : vector<2x128xf32>
    %428 = arith.divf %426, %427 : vector<2x128xf32>
    %429 = vector.extract_strided_slice %422 {offsets = [0, 128], sizes = [2, 128], strides = [1, 1]} : vector<2x512xf32> to vector<2x128xf32>
    %430 = arith.negf %429 : vector<2x128xf32>
    %431 = math.exp %430 : vector<2x128xf32>
    %cst_130 = arith.constant 1.000000e+00 : f32
    %432 = vector.broadcast %cst_130 : f32 to vector<2x128xf32>
    %433 = arith.addf %432, %431 : vector<2x128xf32>
    %434 = arith.divf %432, %433 : vector<2x128xf32>
    %435 = vector.extract_strided_slice %422 {offsets = [0, 256], sizes = [2, 128], strides = [1, 1]} : vector<2x512xf32> to vector<2x128xf32>
    %436 = math.tanh %435 : vector<2x128xf32>
    %437 = vector.extract_strided_slice %422 {offsets = [0, 384], sizes = [2, 128], strides = [1, 1]} : vector<2x512xf32> to vector<2x128xf32>
    %438 = arith.negf %437 : vector<2x128xf32>
    %439 = math.exp %438 : vector<2x128xf32>
    %cst_131 = arith.constant 1.000000e+00 : f32
    %440 = vector.broadcast %cst_131 : f32 to vector<2x128xf32>
    %441 = arith.addf %440, %439 : vector<2x128xf32>
    %442 = arith.divf %440, %441 : vector<2x128xf32>
    %443 = arith.mulf %434, %388 : vector<2x128xf32>
    %444 = arith.mulf %428, %436 : vector<2x128xf32>
    %445 = arith.addf %443, %444 : vector<2x128xf32>
    %446 = math.tanh %445 : vector<2x128xf32>
    %447 = arith.mulf %442, %446 : vector<2x128xf32>
    %448 = vector.shape_cast %447 : vector<2x128xf32> to vector<2x1x128xf32>
    %449 = vector.broadcast %448 : vector<2x1x128xf32> to vector<2x8x128xf32>
    %450 = arith.mulf %449, %3 : vector<2x8x128xf32>
    %cst_132 = arith.constant dense<0.000000e+00> : vector<2x8xf32>
    %451 = vector.multi_reduction <add>, %450, %cst_132 [2] : vector<2x8x128xf32> to vector<2x8xf32>
    %cst_133 = arith.constant dense<0xFF800000> : vector<2xf32>
    %452 = vector.multi_reduction <maximumf>, %451, %cst_133 [1] : vector<2x8xf32> to vector<2xf32>
    %453 = vector.shape_cast %452 : vector<2xf32> to vector<2x1xf32>
    %454 = vector.broadcast %453 : vector<2x1xf32> to vector<2x8xf32>
    %455 = arith.subf %451, %454 : vector<2x8xf32>
    %456 = math.exp %455 : vector<2x8xf32>
    %cst_134 = arith.constant dense<0.000000e+00> : vector<2xf32>
    %457 = vector.multi_reduction <add>, %456, %cst_134 [1] : vector<2x8xf32> to vector<2xf32>
    %458 = vector.shape_cast %457 : vector<2xf32> to vector<2x1xf32>
    %459 = tpu.reciprocal %458 {approx = true} : vector<2x1xf32> -> vector<2x1xf32>
    %460 = vector.broadcast %459 : vector<2x1xf32> to vector<2x8xf32>
    %461 = arith.mulf %456, %460 : vector<2x8xf32>
    %462 = vector.shape_cast %461 : vector<2x8xf32> to vector<2x8x1xf32>
    %463 = vector.broadcast %462 : vector<2x8x1xf32> to vector<2x8x128xf32>
    %464 = arith.mulf %463, %3 : vector<2x8x128xf32>
    %cst_135 = arith.constant dense<0.000000e+00> : vector<2x128xf32>
    %465 = vector.multi_reduction <add>, %464, %cst_135 [1] : vector<2x8x128xf32> to vector<2x128xf32>
    %466 = tpu.concatenate %447, %465 in 1 : vector<2x128xf32>, vector<2x128xf32> -> vector<2x256xf32>
    %cst_136 = arith.constant dense<0.000000e+00> : vector<2x128xf32>
    %467 = tpu.matmul %466, %5, %cst_136 {dimension_numbers = #tpu.dot_dimension_numbers<[1], [0], [0], [1], [0, 0, 1, 1], [], []>} : vector<2x256xf32>, vector<256x128xf32>, vector<2x128xf32> -> vector<2x128xf32>
    %468 = arith.addf %467, %12 : vector<2x128xf32>
    %469 = math.tanh %468 : vector<2x128xf32>
    %cst_137 = arith.constant dense<0.000000e+00> : vector<2x128xf32>
    %470 = tpu.matmul %469, %6, %cst_137 {dimension_numbers = #tpu.dot_dimension_numbers<[1], [0], [0], [1], [0, 0, 1, 1], [], []>} : vector<2x128xf32>, vector<128x128xf32>, vector<2x128xf32> -> vector<2x128xf32>
    %471 = arith.addf %470, %15 : vector<2x128xf32>
    %c0_138 = arith.constant 0 : index
    %c7_139 = arith.constant 7 : index
    %c0_140 = arith.constant 0 : index
    %472 = vector.load %arg10[%c0_138, %c7_139, %c0_140] : memref<2x8x128xf32, #tpu.memory_space<vmem>>, vector<2x1x128xf32>
    %473 = vector.shape_cast %472 : vector<2x1x128xf32> to vector<2x128xf32>
    %474 = vector.shape_cast %471 : vector<2x128xf32> to vector<2x1x128xf32>
    tpu.vector_store %arg10[%c0_138, %c7_139, %c0_140], %474 {strides = array<i32>} : memref<2x8x128xf32, #tpu.memory_space<vmem>>, vector<2x1x128xf32>,
    %c0_141 = arith.constant 0 : index
    %c0_142 = arith.constant 0 : index
    %475 = vector.load %arg11[%c0_141, %c0_142] : memref<2x128xf32, #tpu.memory_space<vmem>>, vector<2x128xf32>
    tpu.vector_store %arg11[%c0_141, %c0_142], %447 {strides = array<i32>} : memref<2x128xf32, #tpu.memory_space<vmem>>, vector<2x128xf32>,
    %c0_143 = arith.constant 0 : index
    %c0_144 = arith.constant 0 : index
    %476 = vector.load %arg12[%c0_143, %c0_144] : memref<2x128xf32, #tpu.memory_space<vmem>>, vector<2x128xf32>
    tpu.vector_store %arg12[%c0_143, %c0_144], %445 {strides = array<i32>} : memref<2x128xf32, #tpu.memory_space<vmem>>, vector<2x128xf32>,
    %c0_145 = arith.constant 0 : index
    %c0_146 = arith.constant 0 : index
    %477 = vector.load %arg13[%c0_145, %c0_146] : memref<2x128xf32, #tpu.memory_space<vmem>>, vector<2x128xf32>
    tpu.vector_store %arg13[%c0_145, %c0_146], %465 {strides = array<i32>} : memref<2x128xf32, #tpu.memory_space<vmem>>, vector<2x128xf32>,
    return
  }
  func.func @transform_0(%arg0: i32, %arg1: i32) -> (i32, i32, i32) {
    %c0_i32 = arith.constant 0 : i32
    %c0_i32_0 = arith.constant 0 : i32
    return %arg0, %arg1, %c0_i32 : i32, i32, i32
  }
  func.func @transform_1(%arg0: i32, %arg1: i32) -> (i32, i32, i32) {
    %c0_i32 = arith.constant 0 : i32
    %c0_i32_0 = arith.constant 0 : i32
    %c0_i32_1 = arith.constant 0 : i32
    return %arg0, %c0_i32, %c0_i32_0 : i32, i32, i32
  }
  func.func @transform_2(%arg0: i32, %arg1: i32) -> (i32, i32) {
    %c0_i32 = arith.constant 0 : i32
    %c0_i32_0 = arith.constant 0 : i32
    %c0_i32_1 = arith.constant 0 : i32
    return %c0_i32, %c0_i32_0 : i32, i32
  }
  func.func @transform_3(%arg0: i32, %arg1: i32) -> (i32, i32) {
    %c0_i32 = arith.constant 0 : i32
    %c0_i32_0 = arith.constant 0 : i32
    %c0_i32_1 = arith.constant 0 : i32
    return %c0_i32, %c0_i32_0 : i32, i32
  }
  func.func @transform_4(%arg0: i32, %arg1: i32) -> (i32, i32) {
    %c0_i32 = arith.constant 0 : i32
    %c0_i32_0 = arith.constant 0 : i32
    %c0_i32_1 = arith.constant 0 : i32
    return %c0_i32, %c0_i32_0 : i32, i32
  }
  func.func @transform_5(%arg0: i32, %arg1: i32) -> (i32, i32) {
    %c0_i32 = arith.constant 0 : i32
    %c0_i32_0 = arith.constant 0 : i32
    %c0_i32_1 = arith.constant 0 : i32
    return %c0_i32, %c0_i32_0 : i32, i32
  }
  func.func @transform_6(%arg0: i32, %arg1: i32) -> (i32, i32) {
    %c0_i32 = arith.constant 0 : i32
    %c0_i32_0 = arith.constant 0 : i32
    %c0_i32_1 = arith.constant 0 : i32
    return %c0_i32, %c0_i32_0 : i32, i32
  }
  func.func @transform_7(%arg0: i32, %arg1: i32) -> (i32, i32) {
    %c0_i32 = arith.constant 0 : i32
    %c0_i32_0 = arith.constant 0 : i32
    %c0_i32_1 = arith.constant 0 : i32
    return %c0_i32, %c0_i32_0 : i32, i32
  }
  func.func @transform_8(%arg0: i32, %arg1: i32) -> (i32, i32, i32) {
    %c0_i32 = arith.constant 0 : i32
    %c0_i32_0 = arith.constant 0 : i32
    return %arg0, %arg1, %c0_i32 : i32, i32, i32
  }
}

</mosaic_0001>

<bundles_post_ra>
// kernel: tpu_custom_call.1
= control target key start
LH: loop header
LB: loop body
LE: loop exit
PB: predicated region body
PF: predicated region fallthrough
CT: control target
= control target key end

     0   :  { %13 = vsyncpa [#allocation6], 0  ;;  %s9334_s0 = inlined_call_operand.hbm [shape: f32[2,8,128], index: 0, kind: input, shape index: {}]   ;;  %s9335_s1 = inlined_call_operand.hbm [shape: f32[2,8,128], index: 1, kind: input, shape index: {}]   ;;  %s9336_s2 = inlined_call_operand.hbm [shape: f32[384,512], index: 2, kind: input, shape index: {}]   ;;  %s9337_s3 = inlined_call_operand.hbm [shape: f32[1,512], index: 3, kind: input, shape index: {}]   ;;  %s9338_s4 = inlined_call_operand.hbm [shape: f32[256,128], index: 4, kind: input, shape index: {}]   ;;  %s9339_s5 = inlined_call_operand.vmem [shape: f32[1,128], index: 5, kind: input, shape index: {}]   ;;  %s9340_s6 = inlined_call_operand.hbm [shape: f32[128,128], index: 6, kind: input, shape index: {}]   ;;  %s9341_s7 = inlined_call_operand.vmem [shape: f32[1,128], index: 7, kind: input, shape index: {}]   ;;  %s9342_s8 = inlined_call_operand.hbm [shape: f32[2,8,128], index: 8, kind: output, shape index: {}]  }
   0x1   :  { %14 = vsyncpa [#allocation9], 0 }
   0x2   :  { %15 = vsyncpa [#allocation12], 0 }
   0x3   :  { %16 = vsyncpa [#allocation15], 0 }
   0x4   :  { %17 = vsyncpa [#allocation7], 0  ;;  %s35_s29 = sshll.u32 %s9335_s1, 4  ;;  %s5308_s30 = smov [#allocation8]   ;;  %s36_s29 = int_to_ptr.hbm [resolvable:$true] %s35_s29 }
   0x5   :  { %s37_s9 = sshll.u32 %s5308_s30, 4  ;;  %s62_s12 = sshll.u32 %s9337_s3, 4  ;;  %s38_s9 = int_to_ptr.vmem [resolvable:$true] %s37_s9  ;;  %s63_s12 = int_to_ptr.hbm [resolvable:$true] %s62_s12 }
   0x6   :  { %s5309_s13 = smov 128   ;;  %s5310_s14 = smov 8  }
   0x7   :  { %43 = dma.hbm_to_vmem [thread:$0]  %s36_s29, 256, %s38_s9, [#allocation9], %s5309_s13, %s5309_s13, %s5310_s14  }
   0x8   :  { %s5311_s15 = smov [#allocation11]   ;;  %s22_s1 = sshll.u32 %s9334_s0, 4  ;;  %s23_s1 = int_to_ptr.hbm [resolvable:$true] %s22_s1 }
   0x9   :  { %s64_s16 = sshll.u32 %s5311_s15, 4  ;;  %s48_s3 = sshll.u32 %s9336_s2, 4  ;;  %s65_s16 = int_to_ptr.vmem [resolvable:$true] %s64_s16  ;;  %s49_s3 = int_to_ptr.hbm [resolvable:$true] %s48_s3 }
   0xa   :  { %67 = dma.hbm_to_vmem [thread:$0]  %s63_s12, 64, %s65_s16, [#allocation12]  }
   0xb   :  { %s5312_s21 = smov [#allocation5]   ;;  %s5313_s23 = smov [#allocation10]  }
   0xc   :  { %s24_s22 = sshll.u32 %s5312_s21, 4  ;;  %s50_s24 = sshll.u32 %s5313_s23, 4  ;;  %s25_s22 = int_to_ptr.vmem [resolvable:$true] %s24_s22  ;;  %s51_s24 = int_to_ptr.vmem [resolvable:$true] %s50_s24 }
   0xd   :  { %30 = dma.hbm_to_vmem [thread:$0]  %s23_s1, 256, %s25_s22, [#allocation6], %s5309_s13, %s5309_s13, %s5310_s14  }
   0xe   :  { %s5314_s25 = smov 512   ;;  %s5315_s0 = smov 32  }
   0xf   :  { %56 = dma.hbm_to_vmem [thread:$0]  %s49_s3, 24576, %s51_s24, [#allocation9], %s5314_s25, %s5314_s25, %s5315_s0  }
  0x10   :  { %s72_s28 = sshll.u32 %s9338_s4, 4  ;;  %s5316_s2 = smov [#allocation13]   ;;  %s73_s28 = int_to_ptr.hbm [resolvable:$true] %s72_s28 }
  0x11   :  { %s74_s29 = sshll.u32 %s5316_s2, 4  ;;  %s87_s10 = sshll.u32 %s9340_s6, 4  ;;  %s75_s29 = int_to_ptr.vmem [resolvable:$true] %s74_s29  ;;  %s88_s10 = int_to_ptr.hbm [resolvable:$true] %s87_s10 }
  0x12   :  { %80 = dma.hbm_to_vmem [thread:$0]  %s73_s28, 4096, %s75_s29, [#allocation12], %s5309_s13, %s5309_s13, %s5310_s14  }
  0x13   :  { %s5317_s11 = smov [#allocation14]  }
  0x14   :  { %s89_s12 = sshll.u32 %s5317_s11, 4  ;;  %s90_s12 = int_to_ptr.vmem [resolvable:$true] %s89_s12 }
  0x15   :  { %95 = dma.hbm_to_vmem [thread:$0]  %s88_s10, 2048, %s90_s12, [#allocation15], %s5309_s13, %s5309_s13, %s5310_s14  }
  0x16   :  { %5298 = dma.done.wait [#allocation6], 256  }
  0x17   :  { %5299 = vsyncadd [#allocation6], 4294967040 }
  0x18   :  { %5300 = dma.done.wait [#allocation9], 24832  }
  0x19   :  { %5301 = vsyncadd [#allocation9], 4294942464 }
  0x1a   :  { %5302 = dma.done.wait [#allocation12], 4160  }
  0x1b   :  { %5303 = vsyncadd [#allocation12], 4294963136 }
  0x1c   :  { %5304 = dma.done.wait [#allocation15], 2048  }
  0x1d   :  { %5305 = vsyncadd [#allocation15], 4294965248  ;;  %v5396_v0 = vld [vmem:[#allocation10 + $0x1e0] sm:$0xff]  ;;  %v192_v5 = vld [vmem:[#allocation10 + $0x1e8] sm:$0xff]  ;;  %v5318_v28 = vmov 0.0   ;;  %vm397_vm0 = vcmask 1041409  }
  0x1e   :  { %v319_v1 = vld [vmem:[#allocation10 + $0x5e0] sm:$0xff]  ;;  %400 = vmatpush.msra.mxu0 %v5396_v0  ;;  %460 = vmatpush.msra.mxu3 %v192_v5  ;;  %v188_v9 = vld [vmem:[#allocation10 + $0x1c8] sm:$0xff]  ;;  %126 = vst [vmem:[#allocation2] sm:$0x3] %v5318_v28  ;;  %vm723_vm13 = vcmask 58368   ;;  %s4077_s28 = sshll.u32 %s9342_s8, 4  ;;  %s4078_s28 = int_to_ptr.hbm [resolvable:$true] %s4077_s28 }
  0x1f   :  { %v5398_v2 = vld [vmem:[#allocation10 + $0x1c0] sm:$0xff]  ;;  %440 = vmatpush.msra.mxu2 %v319_v1  ;;  %v184_v13 = vld [vmem:[#allocation10 + $0x1a8] sm:$0xff]  ;;  %127 = vst [vmem:[#allocation3] sm:$0x3] %v5318_v28  ;;  %v193_v1 = vld [vmem:[#allocation10 + $0x1f0] sm:$0xff] }
  0x20   :  { %v255_v3 = vld [vmem:[#allocation10 + $0x3e0] sm:$0xff]  ;;  %401 = vmatpush.msra.mxu0 %v5398_v2  ;;  %461 = vmatpush.msra.mxu3 %v188_v9  ;;  %v180_v15 = vld [vmem:[#allocation10 + $0x188] sm:$0xff]  ;;  %128 = vst [vmem:[#allocation4] sm:$0x3] %v5318_v28  ;;  %v189_v9 = vld [vmem:[#allocation10 + $0x1d0] sm:$0xff] }
  0x21   :  { %v315_v4 = vld [vmem:[#allocation10 + $0x5c0] sm:$0xff]  ;;  %420 = vmatpush.msra.mxu1 %v255_v3  ;;  %v176_v19 = vld [vmem:[#allocation10 + $0x168] sm:$0xff] }
  0x22   :  { %v5401_v6 = vld [vmem:[#allocation10 + $0x1a0] sm:$0xff]  ;;  %441 = vmatpush.msra.mxu2 %v315_v4  ;;  %462 = vmatpush.msra.mxu3 %v184_v13  ;;  %v172_v23 = vld [vmem:[#allocation10 + $0x148] sm:$0xff] }
  0x23   :  { %v5403_v7 = vld [vmem:[#allocation10 + $0x3c0] sm:$0xff]  ;;  %402 = vmatpush.msra.mxu0 %v5401_v6  ;;  %v168_v27 = vld [vmem:[#allocation10 + $0x128] sm:$0xff] }
  0x24   :  { %v311_v8 = vld [vmem:[#allocation10 + $0x5a0] sm:$0xff]  ;;  %421 = vmatpush.msra.mxu1 %v5403_v7  ;;  %463 = vmatpush.msra.mxu3 %v180_v15  ;;  %v164_v32 = vld [vmem:[#allocation10 + $0x108] sm:$0xff] }
  0x25   :  { %v5406_v10 = vld [vmem:[#allocation10 + $0x3a0] sm:$0xff]  ;;  %442 = vmatpush.msra.mxu2 %v311_v8  ;;  %v160_v36 = vld [vmem:[#allocation10 + $0xe8] sm:$0xff] }
  0x26   :  { %v5409_v11 = vld [vmem:[#allocation10 + $0x180] sm:$0xff]  ;;  %422 = vmatpush.msra.mxu1 %v5406_v10  ;;  %464 = vmatpush.msra.mxu3 %v176_v19  ;;  %v156_v40 = vld [vmem:[#allocation10 + $0xc8] sm:$0xff]  ;;  %v253_v19 = vld [vmem:[#allocation10 + $0x3d0] sm:$0xff] }
  0x27   :  { %v307_v12 = vld [vmem:[#allocation10 + $0x580] sm:$0xff]  ;;  %403 = vmatpush.msra.mxu0 %v5409_v11  ;;  %v152_v44 = vld [vmem:[#allocation10 + $0xa8] sm:$0xff] }
  0x28   :  { %v5412_v14 = vld [vmem:[#allocation10 + $0x380] sm:$0xff]  ;;  %443 = vmatpush.msra.mxu2 %v307_v12  ;;  %465 = vmatpush.msra.mxu3 %v172_v23  ;;  %v148_v48 = vld [vmem:[#allocation10 + $0x88] sm:$0xff]  ;;  %v257_v12 = vld [vmem:[#allocation10 + $0x3f0] sm:$0xff] }
  0x29   :  { %v5415_v16 = vld [vmem:[#allocation10 + $0x160] sm:$0xff]  ;;  %423 = vmatpush.msra.mxu1 %v5412_v14  ;;  %v144_v52 = vld [vmem:[#allocation10 + $0x68] sm:$0xff] }
  0x2a   :  { %v303_v17 = vld [vmem:[#allocation10 + $0x560] sm:$0xff]  ;;  %404 = vmatpush.msra.mxu0 %v5415_v16  ;;  %466 = vmatpush.msra.mxu3 %v168_v27  ;;  %v140_v56 = vld [vmem:[#allocation10 + $0x48] sm:$0xff]  ;;  %v249_v27 = vld [vmem:[#allocation10 + $0x3b0] sm:$0xff] }
  0x2b   :  { %v5418_v18 = vld [vmem:[#allocation10 + $0x360] sm:$0xff]  ;;  %444 = vmatpush.msra.mxu2 %v303_v17  ;;  %v136_v60 = vld [vmem:[#allocation10 + $0x28] sm:$0xff]  ;;  %v185_v17 = vld [vmem:[#allocation10 + $0x1b0] sm:$0xff] }
  0x2c   :  { %v5421_v20 = vld [vmem:[#allocation10 + $0x140] sm:$0xff]  ;;  %424 = vmatpush.msra.mxu1 %v5418_v18  ;;  %467 = vmatpush.msra.mxu3 %v164_v32  ;;  %v5484_v63 = vld [vmem:[#allocation10 + $0x3e8] sm:$0xff]  ;;  %v177_v32 = vld [vmem:[#allocation10 + $0x170] sm:$0xff] }
  0x2d   :  { %v299_v21 = vld [vmem:[#allocation10 + $0x540] sm:$0xff]  ;;  %405 = vmatpush.msra.mxu0 %v5421_v20  ;;  %v132_v4 = vld [vmem:[#allocation10 + $0x8] sm:$0xff] }
  0x2e   :  { %v5424_v22 = vld [vmem:[#allocation10 + $0x340] sm:$0xff]  ;;  %445 = vmatpush.msra.mxu2 %v299_v21  ;;  %468 = vmatpush.msra.mxu3 %v160_v36  ;;  %v5490_v5 = vld [vmem:[#allocation10 + $0x3c8] sm:$0xff] }
  0x2f   :  { %v5427_v24 = vld [vmem:[#allocation10 + $0x120] sm:$0xff]  ;;  %425 = vmatpush.msra.mxu1 %v5424_v22  ;;  %v5492_v8 = vld [vmem:[#allocation10 + $0x5e8] sm:$0xff] }
  0x30   :  { %v295_v25 = vld [vmem:[#allocation10 + $0x520] sm:$0xff]  ;;  %406 = vmatpush.msra.mxu0 %v5427_v24  ;;  %469 = vmatpush.msra.mxu3 %v156_v40  ;;  %v5496_v13 = vld [vmem:[#allocation10 + $0x3a8] sm:$0xff]  ;;  %v173_v40 = vld [vmem:[#allocation10 + $0x150] sm:$0xff] }
  0x31   :  { %v5430_v26 = vld [vmem:[#allocation10 + $0x320] sm:$0xff]  ;;  %446 = vmatpush.msra.mxu2 %v295_v25  ;;  %v5498_v15 = vld [vmem:[#allocation10 + $0x5c8] sm:$0xff]  ;;  %v181_v25 = vld [vmem:[#allocation10 + $0x190] sm:$0xff] }
  0x32   :  { %v5433_v29 = vld [vmem:[#allocation10 + $0x100] sm:$0xff]  ;;  %426 = vmatpush.msra.mxu1 %v5430_v26  ;;  %470 = vmatpush.msra.mxu3 %v152_v44  ;;  %v5502_v21 = vld [vmem:[#allocation10 + $0x388] sm:$0xff] }
  0x33   :  { %v291_v30 = vld [vmem:[#allocation10 + $0x500] sm:$0xff]  ;;  %407 = vmatpush.msra.mxu0 %v5433_v29  ;;  %v5504_v23 = vld [vmem:[#allocation10 + $0x5a8] sm:$0xff] }
  0x34   :  { %v5436_v31 = vld [vmem:[#allocation10 + $0x300] sm:$0xff]  ;;  %447 = vmatpush.msra.mxu2 %v291_v30  ;;  %471 = vmatpush.msra.mxu3 %v148_v48  ;;  %9918 = vst [vmem:[#allocation22_spill] sm:$0xff] %v5504_v23  ;;  %v5508_v28 = vld [vmem:[#allocation10 + $0x368] sm:$0xff]  ;;  %v169_v48 = vld [vmem:[#allocation10 + $0x130] sm:$0xff] }
  0x35   :  { %v5439_v33 = vld [vmem:[#allocation10 + $0xe0] sm:$0xff]  ;;  %427 = vmatpush.msra.mxu1 %v5436_v31  ;;  %v5510_v30 = vld [vmem:[#allocation10 + $0x588] sm:$0xff] }
  0x36   :  { %v287_v34 = vld [vmem:[#allocation10 + $0x4e0] sm:$0xff]  ;;  %408 = vmatpush.msra.mxu0 %v5439_v33  ;;  %472 = vmatpush.msra.mxu3 %v144_v52  ;;  %9919 = vst [vmem:[#allocation23_spill] sm:$0xff] %v5510_v30  ;;  %v5514_v36 = vld [vmem:[#allocation10 + $0x348] sm:$0xff] }
  0x37   :  { %v5442_v35 = vld [vmem:[#allocation10 + $0x2e0] sm:$0xff]  ;;  %448 = vmatpush.msra.mxu2 %v287_v34  ;;  %v245_v34 = vld [vmem:[#allocation10 + $0x390] sm:$0xff]  ;;  %v5520_v44 = vld [vmem:[#allocation10 + $0x328] sm:$0xff] }
  0x38   :  { %v5445_v37 = vld [vmem:[#allocation10 + $0xc0] sm:$0xff]  ;;  %428 = vmatpush.msra.mxu1 %v5442_v35  ;;  %473 = vmatpush.msra.mxu3 %v140_v56  ;;  %v393_v52 = vld [vmem:[#allocation5 + $0x8] sm:$0x1] }
  0x39   :  { %v283_v38 = vld [vmem:[#allocation10 + $0x4c0] sm:$0xff]  ;;  %409 = vmatpush.msra.mxu0 %v5445_v37  ;;  %v5528_v56 = vld [vmem:[#allocation10 + $0x528] sm:$0xff] }
  0x3a   :  { %v5448_v39 = vld [vmem:[#allocation10 + $0x2c0] sm:$0xff]  ;;  %449 = vmatpush.msra.mxu2 %v283_v38  ;;  %474 = vmatpush.msra.mxu3 %v136_v60  ;;  %v5516_v38 = vld [vmem:[#allocation10 + $0x568] sm:$0xff]  ;;  %9922 = vst [vmem:[#allocation26_spill] sm:$0xff] %v5528_v56  ;;  %v233_v60 = vld [vmem:[#allocation10 + $0x330] sm:$0xff] }
  0x3b   :  { %v5451_v41 = vld [vmem:[#allocation10 + $0xa0] sm:$0xff]  ;;  %429 = vmatpush.msra.mxu1 %v5448_v39  ;;  %9920 = vst [vmem:[#allocation24_spill] sm:$0xff] %v5516_v38 }
  0x3c   :  { %v279_v42 = vld [vmem:[#allocation10 + $0x4a0] sm:$0xff]  ;;  %410 = vmatpush.msra.mxu0 %v5451_v41  ;;  %475 = vmatpush.msra.mxu3 %v132_v4  ;;  %v396_v4 = vrot.slane %v393_v52, 7  ;;  %v221_v52 = vld [vmem:[#allocation10 + $0x2d0] sm:$0xff] }
  0x3d   :  { %v5454_v43 = vld [vmem:[#allocation10 + $0x2a0] sm:$0xff]  ;;  %450 = vmatpush.msra.mxu2 %v279_v42  ;;  %v241_v42 = vld [vmem:[#allocation10 + $0x370] sm:$0xff] }
  0x3e   :  { %v5457_v45 = vld [vmem:[#allocation10 + $0x80] sm:$0xff]  ;;  %430 = vmatpush.msra.mxu1 %v5454_v43  ;;  %540 = vmatpush.msrb.mxu3 %v257_v12  ;;  %v229_v12 = vld [vmem:[#allocation10 + $0x310] sm:$0xff] }
  0x3f   :  { %v275_v46 = vld [vmem:[#allocation10 + $0x480] sm:$0xff]  ;;  %411 = vmatpush.msra.mxu0 %v5457_v45 }
  0x40   :  { %v5460_v47 = vld [vmem:[#allocation10 + $0x280] sm:$0xff]  ;;  %451 = vmatpush.msra.mxu2 %v275_v46  ;;  %541 = vmatpush.msrb.mxu3 %v253_v19  ;;  %v5522_v46 = vld [vmem:[#allocation10 + $0x548] sm:$0xff]  ;;  %v5538_v19 = vld [vmem:[#allocation2] sm:$0x3] }
  0x41   :  { %v5463_v49 = vld [vmem:[#allocation10 + $0x60] sm:$0xff]  ;;  %431 = vmatpush.msra.mxu1 %v5460_v47  ;;  %9921 = vst [vmem:[#allocation25_spill] sm:$0xff] %v5522_v46 }
  0x42   :  { %v271_v50 = vld [vmem:[#allocation10 + $0x460] sm:$0xff]  ;;  %412 = vmatpush.msra.mxu0 %v5463_v49  ;;  %542 = vmatpush.msrb.mxu3 %v249_v27  ;;  %v5544_v27 = vld [vmem:[#allocation10 + $0x4e8] sm:$0xff] }
  0x43   :  { %v5466_v51 = vld [vmem:[#allocation10 + $0x260] sm:$0xff]  ;;  %452 = vmatpush.msra.mxu2 %v271_v50  ;;  %v237_v50 = vld [vmem:[#allocation10 + $0x350] sm:$0xff]  ;;  %9924 = vst [vmem:[#allocation28_spill] sm:$0xff] %v5544_v27 }
  0x44   :  { %v5469_v53 = vld [vmem:[#allocation10 + $0x40] sm:$0xff]  ;;  %432 = vmatpush.msra.mxu1 %v5466_v51  ;;  %543 = vmatpush.msrb.mxu3 %v245_v34  ;;  %v225_v34 = vld [vmem:[#allocation10 + $0x2f0] sm:$0xff] }
  0x45   :  { %v267_v54 = vld [vmem:[#allocation10 + $0x440] sm:$0xff]  ;;  %413 = vmatpush.msra.mxu0 %v5469_v53 }
  0x46   :  { %v5472_v55 = vld [vmem:[#allocation10 + $0x240] sm:$0xff]  ;;  %453 = vmatpush.msra.mxu2 %v267_v54  ;;  %544 = vmatpush.msrb.mxu3 %v241_v42  ;;  %v5526_v54 = vld [vmem:[#allocation10 + $0x308] sm:$0xff] }
  0x47   :  { %v5475_v57 = vld [vmem:[#allocation10 + $0x20] sm:$0xff]  ;;  %433 = vmatpush.msra.mxu1 %v5472_v55  ;;  %v5551_v42 = vld [vmem:[#allocation10 + $0x2a8] sm:$0xff] }
  0x48   :  { %v263_v58 = vld [vmem:[#allocation10 + $0x420] sm:$0xff]  ;;  %414 = vmatpush.msra.mxu0 %v5475_v57  ;;  %545 = vmatpush.msrb.mxu3 %v237_v50  ;;  %v153_v50 = vld [vmem:[#allocation10 + $0xb0] sm:$0xff] }
  0x49   :  { %v5478_v59 = vld [vmem:[#allocation10 + $0x220] sm:$0xff]  ;;  %454 = vmatpush.msra.mxu2 %v263_v58  ;;  %v165_v58 = vld [vmem:[#allocation10 + $0x110] sm:$0xff] }
  0x4a   :  { %v5481_v61 = vld [vmem:[#allocation10] sm:$0xff]  ;;  %434 = vmatpush.msra.mxu1 %v5478_v59  ;;  %546 = vmatpush.msrb.mxu3 %v233_v60  ;;  %v5559_v60 = vld [vmem:[#allocation10 + $0x288] sm:$0xff] }
  0x4b   :  { %v259_v62 = vld [vmem:[#allocation10 + $0x400] sm:$0xff]  ;;  %415 = vmatpush.msra.mxu0 %v5481_v61 }
  0x4c   :  { %v5487_v3 = vld [vmem:[#allocation10 + $0x200] sm:$0xff]  ;;  %455 = vmatpush.msra.mxu2 %v259_v62  ;;  %v5532_v62 = vld [vmem:[#allocation10 + $0x2e8] sm:$0xff]  ;;  %547 = vmatpush.msrb.mxu3 %v229_v12  ;;  %v217_v12 = vld [vmem:[#allocation10 + $0x2b0] sm:$0xff] }
  0x4d   :  { %480 = vmatpush.msrb.mxu0 %v5484_v63  ;;  %435 = vmatpush.msra.mxu1 %v5487_v3 }
  0x4e   :  { %520 = vmatpush.msrb.mxu2 %v193_v1  ;;  %v5534_v1 = vld [vmem:[#allocation10 + $0x508] sm:$0xff]  ;;  %548 = vmatpush.msrb.mxu3 %v225_v34  ;;  %v145_v34 = vld [vmem:[#allocation10 + $0x70] sm:$0xff] }
  0x4f   :  { %481 = vmatpush.msrb.mxu0 %v5490_v5  ;;  %500 = vmatpush.msrb.mxu1 %v5492_v8  ;;  %9923 = vst [vmem:[#allocation27_spill] sm:$0xff] %v5534_v1 }
  0x50   :  { %521 = vmatpush.msrb.mxu2 %v189_v9  ;;  %v161_v9 = vld [vmem:[#allocation10 + $0xf0] sm:$0xff]  ;;  %549 = vmatpush.msrb.mxu3 %v221_v52 }
  0x51   :  { %482 = vmatpush.msrb.mxu0 %v5496_v13  ;;  %501 = vmatpush.msrb.mxu1 %v5498_v15  ;;  %v141_v52 = vld [vmem:[#allocation10 + $0x50] sm:$0xff] }
  0x52   :  { %522 = vmatpush.msrb.mxu2 %v185_v17  ;;  %v392_v17 = vld [vmem:[#allocation5] sm:$0x1]  ;;  %550 = vmatpush.msrb.mxu3 %v217_v12  ;;  %v205_v12 = vld [vmem:[#allocation10 + $0x250] sm:$0xff] }
  0x53   :  { %483 = vmatpush.msrb.mxu0 %v5502_v21  ;;  %502 = vmatpush.msrb.mxu1 %v5504_v23  ;;  %v5614_v23 = vld [vmem:[#allocation10 + $0x1b8] sm:$0xff] }
  0x54   :  { %523 = vmatpush.msrb.mxu2 %v181_v25  ;;  %v5540_v25 = vld [vmem:[#allocation10 + $0x2c8] sm:$0xff]  ;;  %9938 = vst [vmem:[#allocation42_spill] sm:$0xff] %v5614_v23 }
  0x55   :  { %484 = vmatpush.msrb.mxu0 %v5508_v28  ;;  %503 = vmatpush.msrb.mxu1 %v5510_v30  ;;  %v254_v30 = vld [vmem:[#allocation10 + $0x3d8] sm:$0xff] }
  0x56   :  { %524 = vmatpush.msrb.mxu2 %v177_v32  ;;  %v157_v32 = vld [vmem:[#allocation10 + $0xd0] sm:$0xff] }
  0x57   :  { %485 = vmatpush.msrb.mxu0 %v5514_v36  ;;  %504 = vmatpush.msrb.mxu1 %v5516_v38  ;;  %v5587_v38 = vld [vmem:[#allocation10 + $0x428] sm:$0xff] }
  0x58   :  { %525 = vmatpush.msrb.mxu2 %v173_v40  ;;  %v5547_v40 = vsel %vm397_vm0, %v396_v4, %v392_v17  ;;  %v5563_v4 = vld [vmem:[#allocation10 + $0x4a8] sm:$0xff]  ;;  %9930 = vst [vmem:[#allocation34_spill] sm:$0xff] %v5587_v38 }
  0x59   :  { %486 = vmatpush.msrb.mxu0 %v5520_v44  ;;  %505 = vmatpush.msrb.mxu1 %v5522_v46  ;;  %9926 = vst [vmem:[#allocation30_spill] sm:$0xff] %v5563_v4  ;;  %v5565_v17 = vld [vmem:[#allocation10 + $0x268] sm:$0xff] }
  0x5a   :  { %526 = vmatpush.msrb.mxu2 %v169_v48  ;;  %v5553_v48 = vld [vmem:[#allocation10 + $0x4c8] sm:$0xff]  ;;  %416 = vmatmul.f32.vlgmr.msra.gmra.mxu0 %v5547_v40 }
  0x5b   :  { %487 = vmatpush.msrb.mxu0 %v5526_v54  ;;  %506 = vmatpush.msrb.mxu1 %v5528_v56  ;;  %9925 = vst [vmem:[#allocation29_spill] sm:$0xff] %v5553_v48  ;;  %v5579_v56 = vld [vmem:[#allocation10 + $0x228] sm:$0xff] }
  0x5c   :  { %527 = vmatpush.msrb.mxu2 %v165_v58  ;;  %v5557_v58 = vld [vmem:[#allocation4] sm:$0x3]  ;;  %476 = vmatmul.f32.vlgmr.msra.gmra.mxu3 %v5547_v40  ;;  %v5585_v46 = vld [vmem:[#allocation10 + $0x208] sm:$0xff] }
  0x5d   :  { %488 = vmatpush.msrb.mxu0 %v5532_v62  ;;  %507 = vmatpush.msrb.mxu1 %v5534_v1  ;;  %v209_v1 = vld [vmem:[#allocation10 + $0x270] sm:$0xff] }
  0x5e   :  { %528 = vmatpush.msrb.mxu2 %v161_v9  ;;  %v149_v9 = vld [vmem:[#allocation10 + $0x90] sm:$0xff]  ;;  %436 = vmatmul.f32.vlgmr.msra.gmra.mxu1 %v5557_v58 }
  0x5f   :  { %456 = vmatmul.f32.vlgmr.msra.gmra.mxu2 %v5538_v19  ;;  %489 = vmatpush.msrb.mxu0 %v5540_v25 }
  0x60   :  { %508 = vmatpush.msrb.mxu1 %v5544_v27  ;;  %529 = vmatpush.msrb.mxu2 %v157_v32  ;;  %v5569_v32 = vld [vmem:[#allocation10 + $0x488] sm:$0xff]  ;;  %v213_v27 = vld [vmem:[#allocation10 + $0x290] sm:$0xff] }
  0x61   :  { %490 = vmatpush.msrb.mxu0 %v5551_v42  ;;  %9927 = vst [vmem:[#allocation31_spill] sm:$0xff] %v5569_v32  ;;  %551 = vmatpush.msrb.mxu3 %v213_v27  ;;  %v133_v27 = vld [vmem:[#allocation10 + $0x10] sm:$0xff] }
  0x62   :  { %509 = vmatpush.msrb.mxu1 %v5553_v48  ;;  %530 = vmatpush.msrb.mxu2 %v153_v50  ;;  %v5573_v48 = vld [vmem:[#allocation10 + $0x248] sm:$0xff] }
  0x63   :  { %491 = vmatpush.msrb.mxu0 %v5559_v60  ;;  %v5575_v50 = vld [vmem:[#allocation10 + $0x468] sm:$0xff]  ;;  %552 = vmatpush.msrb.mxu3 %v209_v1 }
  0x64   :  { %510 = vmatpush.msrb.mxu1 %v5563_v4  ;;  %531 = vmatpush.msrb.mxu2 %v149_v9  ;;  %9928 = vst [vmem:[#allocation32_spill] sm:$0xff] %v5575_v50  ;;  %v5581_v9 = vld [vmem:[#allocation10 + $0x448] sm:$0xff]  ;;  %v137_v4 = vld [vmem:[#allocation10 + $0x30] sm:$0xff] }
  0x65   :  { %492 = vmatpush.msrb.mxu0 %v5565_v17  ;;  %9929 = vst [vmem:[#allocation33_spill] sm:$0xff] %v5581_v9  ;;  %553 = vmatpush.msrb.mxu3 %v205_v12  ;;  %v5595_v1 = vld [vmem:[#allocation10 + $0x408] sm:$0xff]  ;;  %v5602_v12 = vld [vmem:[#allocation10 + $0x1f8] sm:$0xff] }
  0x66   :  { %511 = vmatpush.msrb.mxu1 %v5569_v32  ;;  %532 = vmatpush.msrb.mxu2 %v145_v34  ;;  %v201_v34 = vld [vmem:[#allocation10 + $0x230] sm:$0xff]  ;;  %v258_v32 = vld [vmem:[#allocation10 + $0x3f8] sm:$0xff]  ;;  %9932 = vst [vmem:[#allocation36_spill] sm:$0xff] %v5595_v1 }
  0x67   :  { %493 = vmatpush.msrb.mxu0 %v5573_v48  ;;  %554 = vmatpush.msrb.mxu3 %v201_v34  ;;  %9934 = vst [vmem:[#allocation38_spill] sm:$0xff] %v5602_v12  ;;  %v5608_v34 = vld [vmem:[#allocation10 + $0x1d8] sm:$0xff] }
  0x68   :  { %512 = vmatpush.msrb.mxu1 %v5575_v50  ;;  %533 = vmatpush.msrb.mxu2 %v141_v52  ;;  %v5593_v50 = vld [vmem:[#allocation10 + $0x5f0] sm:$0xff]  ;;  %9936 = vst [vmem:[#allocation40_spill] sm:$0xff] %v5608_v34 }
  0x69   :  { %494 = vmatpush.msrb.mxu0 %v5579_v56  ;;  %9931 = vst [vmem:[#allocation35_spill] sm:$0xff] %v5593_v50  ;;  %v197_v52 = vld [vmem:[#allocation10 + $0x210] sm:$0xff] }
  0x6a   :  { %513 = vmatpush.msrb.mxu1 %v5581_v9  ;;  %534 = vmatpush.msrb.mxu2 %v137_v4  ;;  %v5598_v9 = vld [vmem:[#allocation10 + $0x5d0] sm:$0xff]  ;;  %v322_v4 = vld [vmem:[#allocation10 + $0x5f8] sm:$0xff] }
  0x6b   :  { %495 = vmatpush.msrb.mxu0 %v5585_v46  ;;  %9933 = vst [vmem:[#allocation37_spill] sm:$0xff] %v5598_v9  ;;  %555 = vmatpush.msrb.mxu3 %v197_v52  ;;  %v314_v52 = vld [vmem:[#allocation10 + $0x5b8] sm:$0xff] }
  0x6c   :  { %514 = vmatpush.msrb.mxu1 %v5587_v38  ;;  %535 = vmatpush.msrb.mxu2 %v133_v27  ;;  %v5605_v38 = vld [vmem:[#allocation10 + $0x5b0] sm:$0xff]  ;;  %v250_v27 = vld [vmem:[#allocation10 + $0x3b8] sm:$0xff] }
  0x6d   :  { %496 = vmatmul.f32.vlgmr.msrb.gmra.mxu0 %v5557_v58  ;;  %9935 = vst [vmem:[#allocation39_spill] sm:$0xff] %v5605_v38  ;;  %620 = vmatpush.msra.mxu3 %v322_v4  ;;  %v310_v4 = vld [vmem:[#allocation10 + $0x598] sm:$0xff] }
  0x6e   :  { %600 = vmatpush.msra.mxu2 %v258_v32  ;;  %560 = vmatpush.msra.mxu0 %v5593_v50  ;;  %v318_v32 = vld [vmem:[#allocation10 + $0x5d8] sm:$0xff]  ;;  %v5611_v50 = vld [vmem:[#allocation10 + $0x590] sm:$0xff] }
  0x6f   :  { %515 = vmatpush.msrb.mxu1 %v5595_v1  ;;  %9937 = vst [vmem:[#allocation41_spill] sm:$0xff] %v5611_v50  ;;  %v246_v1 = vld [vmem:[#allocation10 + $0x398] sm:$0xff]  ;;  %621 = vmatpush.msra.mxu3 %v318_v32 }
  0x70   :  { %516 = vmatmul.f32.vlgmr.msrb.gmra.mxu1 %v5538_v19  ;;  %561 = vmatpush.msra.mxu0 %v5598_v9  ;;  %v5617_v9 = vld [vmem:[#allocation10 + $0x570] sm:$0xff]  ;;  %v306_v32 = vld [vmem:[#allocation10 + $0x578] sm:$0xff] }
  0x71   :  { %601 = vmatpush.msra.mxu2 %v254_v30  ;;  %580 = vmatpush.msra.mxu1 %v5602_v12  ;;  %9939 = vst [vmem:[#allocation43_spill] sm:$0xff] %v5617_v9  ;;  %v5619_v30 = vld [vmem:[#allocation10 + $0x378] sm:$0xff] }
  0x72   :  { %562 = vmatpush.msra.mxu0 %v5605_v38  ;;  %9940 = vst [vmem:[#allocation44_spill] sm:$0xff] %v5619_v30  ;;  %v5622_v12 = vld [vmem:[#allocation10 + $0x198] sm:$0xff]  ;;  %622 = vmatpush.msra.mxu3 %v314_v52 }
  0x73   :  { %602 = vmatpush.msra.mxu2 %v250_v27  ;;  %581 = vmatpush.msra.mxu1 %v5608_v34  ;;  %9941 = vst [vmem:[#allocation45_spill] sm:$0xff] %v5622_v12  ;;  %v5625_v27 = vld [vmem:[#allocation10 + $0x550] sm:$0xff]  ;;  %v5627_v38 = vld [vmem:[#allocation10 + $0x358] sm:$0xff] }
  0x74   :  { %563 = vmatpush.msra.mxu0 %v5611_v50  ;;  %9942 = vst [vmem:[#allocation46_spill] sm:$0xff] %v5625_v27  ;;  %v5631_v34 = vld [vmem:[#allocation10 + $0x178] sm:$0xff]  ;;  %623 = vmatpush.msra.mxu3 %v310_v4 }
  0x75   :  { %603 = vmatpush.msra.mxu2 %v246_v1  ;;  %582 = vmatpush.msra.mxu1 %v5614_v23  ;;  %9943 = vst [vmem:[#allocation47_spill] sm:$0xff] %v5627_v38  ;;  %v5634_v1 = vld [vmem:[#allocation10 + $0x530] sm:$0xff]  ;;  %v5636_v50 = vld [vmem:[#allocation10 + $0x338] sm:$0xff] }
  0x76   :  { %564 = vmatpush.msra.mxu0 %v5617_v9  ;;  %9944 = vst [vmem:[#allocation48_spill] sm:$0xff] %v5631_v34  ;;  %v302_v52 = vld [vmem:[#allocation10 + $0x558] sm:$0xff]  ;;  %624 = vmatpush.msra.mxu3 %v306_v32 }
  0x77   :  { %604 = vmatpush.msra.mxu2 %v5619_v30  ;;  %583 = vmatpush.msra.mxu1 %v5622_v12  ;;  %9945 = vst [vmem:[#allocation49_spill] sm:$0xff] %v5634_v1  ;;  %v5640_v23 = vld [vmem:[#allocation10 + $0x158] sm:$0xff]  ;;  %v5643_v30 = vld [vmem:[#allocation10 + $0x510] sm:$0xff] }
  0x78   :  { %9946 = vst [vmem:[#allocation50_spill] sm:$0xff] %v5636_v50  ;;  %565 = vmatpush.msra.mxu0 %v5625_v27  ;;  %v5645_v9 = vld [vmem:[#allocation10 + $0x318] sm:$0xff]  ;;  %625 = vmatpush.msra.mxu3 %v302_v52 }
  0x79   :  { %605 = vmatpush.msra.mxu2 %v5627_v38  ;;  %9947 = vst [vmem:[#allocation51_spill] sm:$0xff] %v5640_v23  ;;  %584 = vmatpush.msra.mxu1 %v5631_v34  ;;  %v298_v4 = vld [vmem:[#allocation10 + $0x538] sm:$0xff]  ;;  %v5652_v38 = vld [vmem:[#allocation10 + $0x4f0] sm:$0xff] }
  0x7a   :  { %9948 = vst [vmem:[#allocation52_spill] sm:$0xff] %v5643_v30  ;;  %566 = vmatpush.msra.mxu0 %v5634_v1  ;;  %v5649_v12 = vld [vmem:[#allocation10 + $0x138] sm:$0xff]  ;;  %626 = vmatpush.msra.mxu3 %v298_v4 }
  0x7b   :  { %9949 = vst [vmem:[#allocation53_spill] sm:$0xff] %v5645_v9  ;;  %606 = vmatpush.msra.mxu2 %v5636_v50  ;;  %585 = vmatpush.msra.mxu1 %v5640_v23  ;;  %v5654_v27 = vld [vmem:[#allocation10 + $0x2f8] sm:$0xff]  ;;  %v5661_v50 = vld [vmem:[#allocation10 + $0x4d0] sm:$0xff] }
  0x7c   :  { %9950 = vst [vmem:[#allocation54_spill] sm:$0xff] %v5649_v12  ;;  %567 = vmatpush.msra.mxu0 %v5643_v30  ;;  %v294_v32 = vld [vmem:[#allocation10 + $0x518] sm:$0xff]  ;;  %536 = vmatmul.f32.vlgmr.msrb.gmra.mxu2 %v5547_v40 }
  0x7d   :  { %9951 = vst [vmem:[#allocation55_spill] sm:$0xff] %v5652_v38  ;;  %607 = vmatpush.msra.mxu2 %v5645_v9  ;;  %v5658_v34 = vld [vmem:[#allocation10 + $0x118] sm:$0xff]  ;;  %586 = vmatpush.msra.mxu1 %v5649_v12  ;;  %v5670_v9 = vld [vmem:[#allocation10 + $0x4b0] sm:$0xff] }
  0x7e   :  { %9952 = vst [vmem:[#allocation56_spill] sm:$0xff] %v5654_v27  ;;  %v5663_v1 = vld [vmem:[#allocation10 + $0x2d8] sm:$0xff]  ;;  %568 = vmatpush.msra.mxu0 %v5652_v38  ;;  %627 = vmatpush.msra.mxu3 %v294_v32  ;;  %v5677_v12 = vld [vmem:[#allocation10 + $0x490] sm:$0xff] }
  0x7f   :  { %9953 = vst [vmem:[#allocation57_spill] sm:$0xff] %v5658_v34  ;;  %608 = vmatpush.msra.mxu2 %v5654_v27  ;;  %v290_v52 = vld [vmem:[#allocation10 + $0x4f8] sm:$0xff]  ;;  %587 = vmatpush.msra.mxu1 %v5658_v34  ;;  %v5714_v38 = vld [vmem:[#allocation10 + $0x410] sm:$0xff] }
  0x80   :  { %9954 = vst [vmem:[#allocation58_spill] sm:$0xff] %v5661_v50  ;;  %v5667_v23 = vld [vmem:[#allocation10 + $0xf8] sm:$0xff]  ;;  %569 = vmatpush.msra.mxu0 %v5661_v50  ;;  %628 = vmatpush.msra.mxu3 %v290_v52  ;;  %v5686_v50 = vld [vmem:[#allocation10 + $0x470] sm:$0xff] }
  0x81   :  { %9955 = vst [vmem:[#allocation59_spill] sm:$0xff] %v5663_v1  ;;  %v5672_v30 = vld [vmem:[#allocation10 + $0x2b8] sm:$0xff]  ;;  %609 = vmatpush.msra.mxu2 %v5663_v1  ;;  %588 = vmatpush.msra.mxu1 %v5667_v23 }
  0x82   :  { %9956 = vst [vmem:[#allocation60_spill] sm:$0xff] %v5667_v23  ;;  %v286_v4 = vld [vmem:[#allocation10 + $0x4d8] sm:$0xff]  ;;  %570 = vmatpush.msra.mxu0 %v5670_v9  ;;  %v5695_v23 = vld [vmem:[#allocation10 + $0x450] sm:$0xff]  ;;  %556 = vmatmul.f32.vlgmr.msrb.gmra.mxu3 %v5557_v58 }
  0x83   :  { %9957 = vst [vmem:[#allocation61_spill] sm:$0xff] %v5670_v9  ;;  %v5679_v27 = vld [vmem:[#allocation10 + $0xd8] sm:$0xff]  ;;  %610 = vmatpush.msra.mxu2 %v5672_v30  ;;  %629 = vmatpush.msra.mxu3 %v286_v4 }
  0x84   :  { %9958 = vst [vmem:[#allocation62_spill] sm:$0xff] %v5672_v30  ;;  %v5683_v32 = vld [vmem:[#allocation10 + $0x298] sm:$0xff]  ;;  %571 = vmatpush.msra.mxu0 %v5677_v12  ;;  %589 = vmatpush.msra.mxu1 %v5679_v27 }
  0x85   :  { %9959 = vst [vmem:[#allocation63_spill] sm:$0xff] %v5677_v12  ;;  %v282_v34 = vld [vmem:[#allocation10 + $0x4b8] sm:$0xff]  ;;  %611 = vmatpush.msra.mxu2 %v5683_v32  ;;  %v5705_v12 = vld [vmem:[#allocation10 + $0x430] sm:$0xff] }
  0x86   :  { %9960 = vst [vmem:[#allocation64_spill] sm:$0xff] %v5679_v27  ;;  %v5690_v52 = vld [vmem:[#allocation10 + $0xb8] sm:$0xff]  ;;  %630 = vmatpush.msra.mxu3 %v282_v34  ;;  %572 = vmatpush.msra.mxu0 %v5686_v50 }
  0x87   :  { %9961 = vst [vmem:[#allocation65_spill] sm:$0xff] %v5683_v32  ;;  %v5692_v1 = vld [vmem:[#allocation10 + $0x278] sm:$0xff]  ;;  %590 = vmatpush.msra.mxu1 %v5690_v52 }
  0x88   :  { %9962 = vst [vmem:[#allocation66_spill] sm:$0xff] %v5686_v50  ;;  %v278_v30 = vld [vmem:[#allocation10 + $0x498] sm:$0xff]  ;;  %612 = vmatpush.msra.mxu2 %v5692_v1  ;;  %573 = vmatpush.msra.mxu0 %v5695_v23 }
  0x89   :  { %9963 = vst [vmem:[#allocation67_spill] sm:$0xff] %v5690_v52  ;;  %v5699_v4 = vld [vmem:[#allocation10 + $0x98] sm:$0xff]  ;;  %631 = vmatpush.msra.mxu3 %v278_v30 }
  0x8a   :  { %9964 = vst [vmem:[#allocation68_spill] sm:$0xff] %v5692_v1  ;;  %v5701_v9 = vld [vmem:[#allocation10 + $0x258] sm:$0xff]  ;;  %591 = vmatpush.msra.mxu1 %v5699_v4  ;;  %574 = vmatpush.msra.mxu0 %v5705_v12 }
  0x8b   :  { %9965 = vst [vmem:[#allocation69_spill] sm:$0xff] %v5699_v4  ;;  %v274_v27 = vld [vmem:[#allocation10 + $0x478] sm:$0xff]  ;;  %613 = vmatpush.msra.mxu2 %v5701_v9 }
  0x8c   :  { %9966 = vst [vmem:[#allocation70_spill] sm:$0xff] %v5701_v9  ;;  %v5708_v34 = vld [vmem:[#allocation10 + $0x78] sm:$0xff]  ;;  %632 = vmatpush.msra.mxu3 %v274_v27  ;;  %575 = vmatpush.msra.mxu0 %v5714_v38 }
  0x8d   :  { %v5710_v32 = vld [vmem:[#allocation10 + $0x238] sm:$0xff]  ;;  %592 = vmatpush.msra.mxu1 %v5708_v34  ;;  %576 = vmatmul.f32.vlgmr.msra.gmra.mxu0 %v5538_v19 }
  0x8e   :  { %v270_v50 = vld [vmem:[#allocation10 + $0x458] sm:$0xff]  ;;  %614 = vmatpush.msra.mxu2 %v5710_v32 }
  0x8f   :  { %v5717_v1 = vld [vmem:[#allocation10 + $0x58] sm:$0xff]  ;;  %633 = vmatpush.msra.mxu3 %v270_v50 }
  0x90   :  { %v5719_v52 = vld [vmem:[#allocation10 + $0x218] sm:$0xff]  ;;  %593 = vmatpush.msra.mxu1 %v5717_v1 }
  0x91   :  { %v266_v30 = vld [vmem:[#allocation10 + $0x438] sm:$0xff]  ;;  %615 = vmatpush.msra.mxu2 %v5719_v52 }
  0x92   :  { %v5724_v4 = vld [vmem:[#allocation10 + $0x38] sm:$0xff]  ;;  %634 = vmatpush.msra.mxu3 %v266_v30  ;;  %616 = vmatmul.f32.vlgmr.msra.gmra.mxu2 %v5557_v58  ;;  %v5810_v58 = vld [vmem:[#allocation13 + $0x28] sm:$0xff]  ;;  %v5817_v30 = vld [vmem:[#allocation13 + $0x20] sm:$0xff] }
  0x93   :  { %v262_v27 = vld [vmem:[#allocation10 + $0x418] sm:$0xff]  ;;  %594 = vmatpush.msra.mxu1 %v5724_v4 }
  0x94   :  { %v5729_v9 = vld [vmem:[#allocation10 + $0x18] sm:$0xff]  ;;  %635 = vmatpush.msra.mxu3 %v262_v27 }
  0x95   :  { %636 = vmatmul.f32.vlgmr.msra.gmra.mxu3 %v5538_v19  ;;  %595 = vmatpush.msra.mxu1 %v5729_v9 }
  0x96   :  { %596 = vmatmul.f32.vlgmr.msra.gmra.mxu1 %v5547_v40  ;;  %862 = vmatpush.msrb.mxu3 %v5396_v0  ;;  %v371_v0 = vld [vmem:[#allocation11] sm:$0xf] }
  0x97   :  { %v5802_v40 = vld [vmem:[#allocation13 + $0x38] sm:$0xff]  ;;  %v5815_v50 = vperm.slane %v371_v0, 3 }
  0x98   :  { %863 = vmatpush.msrb.mxu3 %v5398_v2 }
  0x99   :  { %9970 = vst [vmem:[#allocation74_spill] sm:$0xff] %v5815_v50 }
  0x9a   :  { %864 = vmatpush.msrb.mxu3 %v5401_v6  ;;  %v5768_v6 = vperm.slane %v371_v0, 0 }
  0x9c   :  { %865 = vmatpush.msrb.mxu3 %v5409_v11  ;;  %9967 = vst [vmem:[#allocation71_spill] sm:$0xff] %v5768_v6  ;;  %v5770_v11 = vperm.slane %v371_v0, 1 }
  0x9e   :  { %866 = vmatpush.msrb.mxu3 %v5415_v16  ;;  %9968 = vst [vmem:[#allocation72_spill] sm:$0xff] %v5770_v11 }
  0xa0   :  { %867 = vmatpush.msrb.mxu3 %v5421_v20 }
  0xa2   :  { %868 = vmatpush.msrb.mxu3 %v5427_v24 }
  0xa4   :  { %869 = vmatpush.msrb.mxu3 %v5433_v29 }
  0xa6   :  { %870 = vmatpush.msrb.mxu3 %v5439_v33 }
  0xa8   :  { %871 = vmatpush.msrb.mxu3 %v5445_v37 }
  0xaa   :  { %872 = vmatpush.msrb.mxu3 %v5451_v41 }
  0xac   :  { %873 = vmatpush.msrb.mxu3 %v5457_v45 }
  0xae   :  { %874 = vmatpush.msrb.mxu3 %v5463_v49 }
  0xb0   :  { %875 = vmatpush.msrb.mxu3 %v5469_v53 }
  0xb2   :  { %876 = vmatpush.msrb.mxu3 %v5475_v57 }
  0xb4   :  { %877 = vmatpush.msrb.mxu3 %v5481_v61 }
  0xb6   :  { %942 = vmatpush.msra.mxu3 %v5484_v63  ;;  %v5774_v63 = vld [vmem:[#allocation13 + $0x78] sm:$0xff] }
  0xb7   :  { %789 = vmatpush.msrb.mxu0 %v5774_v63 }
  0xb8   :  { %943 = vmatpush.msra.mxu3 %v5490_v5 }
  0xba   :  { %944 = vmatpush.msra.mxu3 %v5496_v13  ;;  %v5777_v13 = vld [vmem:[#allocation13 + $0x70] sm:$0xff] }
  0xbb   :  { %790 = vmatpush.msrb.mxu0 %v5777_v13 }
  0xbc   :  { %945 = vmatpush.msra.mxu3 %v5502_v21  ;;  %v5780_v21 = vld [vmem:[#allocation13 + $0x68] sm:$0xff] }
  0xbd   :  { %791 = vmatpush.msrb.mxu0 %v5780_v21 }
  0xbe   :  { %946 = vmatpush.msra.mxu3 %v5508_v28  ;;  %v5783_v28 = vld [vmem:[#allocation13 + $0x60] sm:$0xff] }
  0xbf   :  { %792 = vmatpush.msrb.mxu0 %v5783_v28 }
  0xc0   :  { %947 = vmatpush.msra.mxu3 %v5514_v36  ;;  %v5786_v36 = vld [vmem:[#allocation13 + $0x58] sm:$0xff] }
  0xc1   :  { %793 = vmatpush.msrb.mxu0 %v5786_v36 }
  0xc2   :  { %948 = vmatpush.msra.mxu3 %v5520_v44 }
  0xc4   :  { %949 = vmatpush.msra.mxu3 %v5526_v54 }
  0xc6   :  { %950 = vmatpush.msra.mxu3 %v5532_v62 }
  0xc8   :  { %951 = vmatpush.msra.mxu3 %v5540_v25  ;;  %v5799_v25 = vld [vmem:[#allocation13 + $0x40] sm:$0xff] }
  0xca   :  { %952 = vmatpush.msra.mxu3 %v5551_v42  ;;  %v5807_v42 = vld [vmem:[#allocation13 + $0x30] sm:$0xff] }
  0xcc   :  { %953 = vmatpush.msra.mxu3 %v5559_v60  ;;  %v5813_v60 = vperm.slane %v371_v0, 2 }
  0xce   :  { %954 = vmatpush.msra.mxu3 %v5565_v17  ;;  %9969 = vst [vmem:[#allocation73_spill] sm:$0xff] %v5813_v60 }
  0xd0   :  { %955 = vmatpush.msra.mxu3 %v5573_v48 }
  0xd2   :  { %956 = vmatpush.msra.mxu3 %v5579_v56  ;;  %v5792_v56 = vld [vmem:[#allocation13 + $0x48] sm:$0xff] }
  0xd4   :  { %957 = vmatpush.msra.mxu3 %v5585_v46  ;;  %v5789_v46 = vld [vmem:[#allocation13 + $0x50] sm:$0xff] }
  0xd5   :  { %794 = vmatpush.msrb.mxu0 %v5789_v46 }
  0xd7   :  { %v417_v2 = vpop.f32.mrf.mxu0  ;;  %795 = vmatpush.msrb.mxu0 %v5792_v56 }
  0xd8   :  { %v418_v24 = vadd.f32 %v417_v2, %v5768_v6 }
  0xd9   :  { %796 = vmatpush.msrb.mxu0 %v5799_v25 }
  0xdb   :  { %v437_v16 = vpop.f32.mrf.mxu1  ;;  %797 = vmatpush.msrb.mxu0 %v5802_v40 }
  0xdc   :  { %v438_v37 = vadd.f32 %v437_v16, %v418_v24  ;;  %v5822_v16 = vld [vmem:[#allocation13 + $0x18] sm:$0xff] }
  0xdd   :  { %798 = vmatpush.msrb.mxu0 %v5807_v42 }
  0xdf   :  { %v477_v20 = vpop.f32.mrf.mxu3  ;;  %799 = vmatpush.msrb.mxu0 %v5810_v58 }
  0xe0   :  { %v478_v29 = vadd.f32 %v477_v20, %v5770_v11 }
  0xe1   :  { %800 = vmatpush.msrb.mxu0 %v5817_v30 }
  0xe2   :  { %v457_v41 = vpop.f32.mrf.mxu2 }
  0xe3   :  { %v458_v53 = vadd.f32 %v457_v41, %v438_v37  ;;  %801 = vmatpush.msrb.mxu0 %v5822_v16 }
  0xe5   :  { %v4093_v61 = vmul.f32 -1.442695, %v458_v53 }
  0xe7   :  { %4135 = vpow2.f32 %v4093_v61  ;;  %v5836_v61 = vld [vmem:[#allocation13] sm:$0xff] }
  0xea   :  { %v497_v33 = vpop.f32.mrf.mxu0 }
  0xeb   :  { %v498_v45 = vadd.f32 %v497_v33, %v478_v29  ;;  %v5827_v33 = vld [vmem:[#allocation13 + $0x10] sm:$0xff] }
  0xec   :  { %802 = vmatpush.msrb.mxu0 %v5827_v33 }
  0xed   :  { %v517_v49 = vpop.f32.mrf.mxu1  ;;  %v4136_v44 = vpop.eup %4135 }
  0xee   :  { %v518_v57 = vadd.f32 %v517_v49, %v498_v45  ;;  %v5794_v62 = vadd.f32 1.0, %v4136_v44  ;;  %v5833_v45 = vld [vmem:[#allocation13 + $0x8] sm:$0xff] }
  0xef   :  { %803 = vmatpush.msrb.mxu0 %v5833_v45 }
  0xf0   :  { %v4094_v5 = vmul.f32 -1.442695, %v518_v57  ;;  %vm649_vm1 = vweird.f32 %v5794_v62 }
  0xf1   :  { %804 = vmatpush.msrb.mxu0 %v5836_v61 }
  0xf2   :  { %4137 = vpow2.f32 %v4094_v5 }
  0xf3   :  { %4139 = vrcp.f32 %v5794_v62 }
  0xf8   :  { %v4138_v54 = vpop.eup %4137 }
  0xf9   :  { %v5797_v19 = vadd.f32 1.0, %v4138_v54  ;;  %v5819_v27 = vpop.eup %4139 }
  0xfa   :  { %v645_v0 = vmul.f32 %v5819_v27, %v5794_v62  ;;  %vm650_vm2 = vweird.f32 %v5819_v27 }
  0xfb   :  { %4141 = vrcp.f32 %v5797_v19  ;;  %vm668_vm3 = vweird.f32 %v5797_v19  ;;  %vm5853_vm5 = vmor %vm649_vm1, %vm650_vm2 }
  0xfc   :  { %v646_v5 = vsub.f32 1.0, %v645_v0  ;;  %v655_v0 = vand.u32 2147483648, %v5794_v62 }
  0xff   :  { %v537_v48 = vpop.f32.mrf.mxu2 }
 0x100   :  { %v538_v24 = vadd.f32 %v537_v48, %v5813_v60 }
 0x101   :  { %v4142_v2 = vpop.eup %4141 }
 0x102   :  { %v664_v37 = vmul.f32 %v4142_v2, %v5797_v19  ;;  %vm669_vm4 = vweird.f32 %v4142_v2 }
 0x103   :  { %vm670_vm6 = vmor %vm668_vm3, %vm669_vm4 }
 0x104   :  { %v665_v44 = vsub.f32 1.0, %v664_v37 }
 0x105   :  { %v557_v17 = vpop.f32.mrf.mxu3 }
 0x106   :  { %v558_v53 = vadd.f32 %v557_v17, %v538_v24  ;;  %v647_v17 = vmul.f32 %v5819_v27, %v646_v5  ;;  %v653_v24 = vand.u32 2147483647, %v5794_v62 }
 0x108   :  { %vm654_vm7 = vcmp.eq.f32.partialorder %v653_v24, 8.507059e+37 }
 0x10a   :  { %v577_v54 = vpop.f32.mrf.mxu0 }
 0x10b   :  { %v578_v60 = vadd.f32 %v577_v54, %v558_v53 }
 0x113   :  { %v597_v20 = vpop.f32.mrf.mxu1 }
 0x114   :  { %v598_v29 = vadd.f32 %v597_v20, %v5815_v50  ;;  %v5839_v20 = vld [vmem:[#allocation10 + $0x3e0] sm:$0xff] }
 0x115   :  { %v617_v41 = vpop.f32.mrf.mxu2  ;;  %882 = vmatpush.msra.mxu0 %v5839_v20 }
 0x116   :  { %v618_v49 = vadd.f32 %v617_v41, %v598_v29  ;;  %v666_v29 = vmul.f32 %v4142_v2, %v665_v44  ;;  %v672_v41 = vand.u32 2147483647, %v5797_v19 }
 0x117   :  { %883 = vmatpush.msra.mxu0 %v5403_v7  ;;  %v648_v7 = vadd.f32 %v5819_v27, %v647_v17 }
 0x118   :  { %v637_v57 = vpop.f32.mrf.mxu3  ;;  %v667_v37 = vadd.f32 %v4142_v2, %v666_v29  ;;  %vm673_vm8 = vcmp.eq.f32.partialorder %v672_v41, 8.507059e+37  ;;  %v9976_v41 = vld [vmem:[#allocation24_spill] sm:$0xff] }
 0x119   :  { %v638_v48 = vadd.f32 %v637_v57, %v618_v49  ;;  %884 = vmatpush.msra.mxu0 %v5406_v10  ;;  %v5887_v10 = vld [vmem:[#allocation8 + $0x8] sm:$0xff] }
 0x11a   :  { %v671_v49 = vsel %vm670_vm6, %v4142_v2, %v667_v37 }
 0x11b   :  { %v4095_v50 = vmul.f32 -1.442695, %v638_v48  ;;  %885 = vmatpush.msra.mxu0 %v5412_v14  ;;  %v652_v14 = vsel %vm5853_vm5, %v5819_v27, %v648_v7  ;;  %v5878_v7 = vld [vmem:[#allocation8] sm:$0xff] }
 0x11d   :  { %4143 = vpow2.f32 %v4095_v50  ;;  %v674_v50 = vand.u32 2147483648, %v5797_v19  ;;  %886 = vmatpush.msra.mxu0 %v5418_v18  ;;  %v390_v18 = vld [vmem:[#allocation3] sm:$0x3] }
 0x11e   :  { %4145 = vtanh.f32 %v578_v60  ;;  %v656_v60 = vor.u32 1.1754944e-38, %v655_v0 }
 0x11f   :  { %887 = vmatpush.msra.mxu0 %v5424_v22  ;;  %v675_v5 = vor.u32 1.1754944e-38, %v674_v50 }
 0x120   :  { %v657_v19 = vsel %vm654_vm7, %v656_v60, %v652_v14  ;;  %v9977_v60 = vld [vmem:[#allocation25_spill] sm:$0xff]  ;;  %v9979_v14 = vld [vmem:[#allocation27_spill] sm:$0xff] }
 0x121   :  { %888 = vmatpush.msra.mxu0 %v5430_v26  ;;  %v676_v44 = vsel %vm673_vm8, %v675_v5, %v671_v49  ;;  %v9981_v49 = vld [vmem:[#allocation29_spill] sm:$0xff]  ;;  %v9984_v5 = vld [vmem:[#allocation32_spill] sm:$0xff] }
 0x122   :  { %v698_v22 = vmul.f32 %v676_v44, %v390_v18  ;;  %v9985_v18 = vld [vmem:[#allocation33_spill] sm:$0xff]  ;;  %v9987_v44 = vld [vmem:[#allocation36_spill] sm:$0xff] }
 0x123   :  { %v4144_v62 = vpop.eup %4143  ;;  %889 = vmatpush.msra.mxu0 %v5436_v31 }
 0x124   :  { %v682_v53 = vadd.f32 1.0, %v4144_v62  ;;  %v4146_v57 = vpop.eup %4145 }
 0x125   :  { %v699_v54 = vmul.f32 %v4146_v57, %v657_v19  ;;  %890 = vmatpush.msra.mxu0 %v5442_v35  ;;  %v9983_v57 = vld [vmem:[#allocation31_spill] sm:$0xff]  ;;  %v9986_v19 = vld [vmem:[#allocation34_spill] sm:$0xff] }
 0x126   :  { %4147 = vrcp.f32 %v682_v53  ;;  %v694_v29 = vand.u32 2147483648, %v682_v53  ;;  %v692_v31 = vand.u32 2147483647, %v682_v53  ;;  %vm688_vm10 = vweird.f32 %v682_v53 }
 0x127   :  { %891 = vmatpush.msra.mxu0 %v5448_v39  ;;  %v5867_v2 = vadd.f32 %v699_v54, %v698_v22  ;;  %v717_v22 = vlaneseq }
 0x128   :  { %v695_v39 = vor.u32 1.1754944e-38, %v694_v29  ;;  %vm693_vm12 = vcmp.eq.f32.partialorder %v692_v31, 8.507059e+37 }
 0x129   :  { %9973 = vst [vmem:[#allocation75_spill] sm:$0xff] %v5867_v2  ;;  %892 = vmatpush.msra.mxu0 %v5454_v43  ;;  %4149 = vtanh.f32 %v5867_v2 }
 0x12b   :  { %893 = vmatpush.msra.mxu0 %v5460_v47 }
 0x12c   :  { %v4148_v27 = vpop.eup %4147 }
 0x12d   :  { %v684_v48 = vmul.f32 %v4148_v27, %v682_v53  ;;  %vm689_vm9 = vweird.f32 %v4148_v27  ;;  %894 = vmatpush.msra.mxu0 %v5466_v51  ;;  %v9982_v53 = vld [vmem:[#allocation30_spill] sm:$0xff] }
 0x12e   :  { %vm690_vm11 = vmor %vm688_vm10, %vm689_vm9 }
 0x12f   :  { %v685_v26 = vsub.f32 1.0, %v684_v48  ;;  %895 = vmatpush.msra.mxu0 %v5472_v55  ;;  %v4150_v43 = vpop.eup %4149 }
 0x131   :  { %v686_v17 = vmul.f32 %v4148_v27, %v685_v26  ;;  %896 = vmatpush.msra.mxu0 %v5478_v59  ;;  %v9974_v59 = vld [vmem:[#allocation22_spill] sm:$0xff] }
 0x133   :  { %v687_v35 = vadd.f32 %v4148_v27, %v686_v17  ;;  %897 = vmatpush.msra.mxu0 %v5487_v3  ;;  %v9975_v3 = vld [vmem:[#allocation23_spill] sm:$0xff] }
 0x135   :  { %v691_v24 = vsel %vm690_vm11, %v4148_v27, %v687_v35  ;;  %v5903_v27 = vand.u32 127, %v717_v22  ;;  %v5319_v35 = vmov 0   ;;  %v5930_v22 = vld [vmem:[#allocation13 + $0xc8] sm:$0xff] }
 0x136   :  { %v696_v47 = vsel %vm693_vm12, %v695_v39, %v691_v24  ;;  %4131 = vset.pattern.permute.xlu2 %v5319_v35  ;;  %4130 = vset.pattern.permute.xlu1 %v5319_v35 }
 0x137   :  { %v5875_v0 = vmul.f32 %v4150_v43, %v696_v47  ;;  %9988 = vst [vmem:[#allocation22_spill] sm:$0xff] %v5903_v27  ;;  %4132 = vset.pattern.permute.xlu0 %v5319_v35  ;;  %v5945_v35 = vld [vmem:[#allocation13 + $0xb0] sm:$0xff] }
 0x139   :  { %805 = vmatmul.f32.vlgmr.msrb.gmra.mxu0 %v5875_v0  ;;  %v705_v51 = vperm.slane %v5875_v0, 0  ;;  %v704_v37 = vrot.slane %v5875_v0, 1 }
 0x13a   :  { %962 = vmatpush.msrb.mxu0 %v5492_v8  ;;  %v9978_v8 = vld [vmem:[#allocation26_spill] sm:$0xff] }
 0x13b   :  { %v709_v55 = vmul.f32 %v705_v51, %v5878_v7  ;;  %v706_v50 = vperm.slane %v704_v37, 0 }
 0x13c   :  { %963 = vmatpush.msrb.mxu0 %v5498_v15  ;;  %v9980_v15 = vld [vmem:[#allocation28_spill] sm:$0xff] }
 0x13d   :  { %711 = vadd.xlane.f32.xlu0 %v709_v55  ;;  %v710_v62 = vmul.f32 %v706_v50, %v5887_v10 }
 0x13e   :  { %964 = vmatpush.msrb.mxu0 %v9974_v59 }
 0x140   :  { %965 = vmatpush.msrb.mxu0 %v9975_v3 }
 0x142   :  { %966 = vmatpush.msrb.mxu0 %v9976_v41 }
 0x144   :  { %967 = vmatpush.msrb.mxu0 %v9977_v60 }
 0x145   :  { %713 = vadd.xlane.f32.xlu0 %v710_v62 }
 0x146   :  { %968 = vmatpush.msrb.mxu0 %v9978_v8 }
 0x148   :  { %969 = vmatpush.msrb.mxu0 %v9979_v14 }
 0x14a   :  { %970 = vmatpush.msrb.mxu0 %v9980_v15  ;;  %v5913_v15 = vld [vmem:[#allocation13 + $0xf8] sm:$0xff] }
 0x14b   :  { %809 = vmatpush.msrb.mxu1 %v5913_v15 }
 0x14c   :  { %971 = vmatpush.msrb.mxu0 %v9981_v49  ;;  %v5915_v49 = vld [vmem:[#allocation13 + $0xf0] sm:$0xff] }
 0x14d   :  { %810 = vmatpush.msrb.mxu1 %v5915_v49 }
 0x14e   :  { %972 = vmatpush.msrb.mxu0 %v9982_v53  ;;  %v5918_v53 = vld [vmem:[#allocation13 + $0xe8] sm:$0xff] }
 0x14f   :  { %811 = vmatpush.msrb.mxu1 %v5918_v53 }
 0x150   :  { %973 = vmatpush.msrb.mxu0 %v9983_v57  ;;  %v5921_v57 = vld [vmem:[#allocation13 + $0xe0] sm:$0xff] }
 0x151   :  { %812 = vmatpush.msrb.mxu1 %v5921_v57 }
 0x152   :  { %974 = vmatpush.msrb.mxu0 %v9984_v5  ;;  %v5924_v5 = vld [vmem:[#allocation13 + $0xd8] sm:$0xff] }
 0x153   :  { %813 = vmatpush.msrb.mxu1 %v5924_v5 }
 0x154   :  { %975 = vmatpush.msrb.mxu0 %v9985_v18  ;;  %v855_v18 = vld [vmem:[#allocation5 + $0x1] sm:$0x1] }
 0x156   :  { %976 = vmatpush.msrb.mxu0 %v9986_v19  ;;  %v856_v19 = vld [vmem:[#allocation5 + $0x9] sm:$0x1] }
 0x158   :  { %977 = vmatpush.msrb.mxu0 %v9987_v44  ;;  %v5927_v44 = vld [vmem:[#allocation13 + $0xd0] sm:$0xff] }
 0x159   :  { %814 = vmatpush.msrb.mxu1 %v5927_v44 }
 0x15b   :  { %815 = vmatpush.msrb.mxu1 %v5930_v22 }
 0x1b0   :  { %v712_v54 = vpop.xlane.xlu0 %711 }
 0x1b1   :  { %v719_v26 = vperm.slane %v712_v54, %v5903_v27 }
 0x1b8   :  { %v714_v48 = vpop.xlane.xlu0 %713 }
 0x1b9   :  { %v720_v29 = vperm.slane %v714_v48, %v5903_v27 }
 0x1bb   :  { %v721_v17 = vsel %vm397_vm0, %v720_v29, %v719_v26  ;;  %v5937_v26 = vld [vmem:[#allocation13 + $0xc0] sm:$0xff]  ;;  %v9989_v29 = vld [vmem:[#allocation35_spill] sm:$0xff] }
 0x1bc   :  { %v724_v31 = vsel %vm723_vm13, %v721_v17, -inf  ;;  %v5941_v17 = vld [vmem:[#allocation13 + $0xb8] sm:$0xff]  ;;  %816 = vmatpush.msrb.mxu1 %v5937_v26 }
 0x1bd   :  { %725 = vmax.xlane.f32.xlu1 %v724_v31  ;;  %v9990_v31 = vld [vmem:[#allocation37_spill] sm:$0xff] }
 0x1be   :  { %817 = vmatpush.msrb.mxu1 %v5941_v17 }
 0x1c0   :  { %818 = vmatpush.msrb.mxu1 %v5945_v35 }
 0x230   :  { %v726_v39 = vpop.xlane.xlu1 %725 }
 0x231   :  { %v728_v24 = vperm.slane %v726_v39, 0  ;;  %v729_v43 = vperm.slane %v726_v39, 1  ;;  %v9991_v39 = vld [vmem:[#allocation39_spill] sm:$0xff] }
 0x233   :  { %v732_v47 = vsub.f32 %v712_v54, %v728_v24  ;;  %v733_v51 = vsub.f32 %v714_v48, %v729_v43  ;;  %v859_v54 = vrot.slane %v856_v19, 7  ;;  %v5949_v24 = vld [vmem:[#allocation13 + $0xa8] sm:$0xff] }
 0x234   :  { %v9992_v43 = vld [vmem:[#allocation41_spill] sm:$0xff]  ;;  %819 = vmatpush.msrb.mxu1 %v5949_v24 }
 0x235   :  { %v734_v55 = vmul.f32 1.442695, %v732_v47  ;;  %v736_v37 = vmul.f32 1.442695, %v733_v51  ;;  %v5933_v48 = vsel %vm397_vm0, %v859_v54, %v855_v18  ;;  %v5953_v51 = vld [vmem:[#allocation13 + $0xa0] sm:$0xff] }
 0x236   :  { %878 = vmatmul.f32.vlgmr.msrb.gmra.mxu3 %v5933_v48  ;;  %820 = vmatpush.msrb.mxu1 %v5953_v51  ;;  %v5969_v54 = vld [vmem:[#allocation13 + $0x80] sm:$0xff] }
 0x237   :  { %4151 = vpow2.f32 %v734_v55  ;;  %1022 = vmatpush.msrb.mxu3 %v9989_v29  ;;  %v9993_v55 = vld [vmem:[#allocation43_spill] sm:$0xff] }
 0x238   :  { %4153 = vpow2.f32 %v736_v37  ;;  %v5957_v37 = vld [vmem:[#allocation13 + $0x98] sm:$0xff] }
 0x239   :  { %1023 = vmatpush.msrb.mxu3 %v9990_v31  ;;  %821 = vmatpush.msrb.mxu1 %v5957_v37  ;;  %v9997_v29 = vld [vmem:[#allocation55_spill] sm:$0xff] }
 0x23b   :  { %1024 = vmatpush.msrb.mxu3 %v9991_v39 }
 0x23d   :  { %v4152_v59 = vpop.eup %4151  ;;  %1025 = vmatpush.msrb.mxu3 %v9992_v43  ;;  %v9998_v43 = vld [vmem:[#allocation58_spill] sm:$0xff] }
 0x23e   :  { %v4154_v50 = vpop.eup %4153  ;;  %741 = vperm.xlu1 %4130, %v4152_v59  }
 0x23f   :  { %744 = vperm.xlu2 %4131, %v4154_v50   ;;  %1026 = vmatpush.msrb.mxu3 %v9993_v55  ;;  %v9999_v55 = vld [vmem:[#allocation61_spill] sm:$0xff] }
 0x299   :  { %v745_v3 = vpop.permute.xlu2 %744 }
 0x29a   :  { %v747_v62 = vperm.slane %v745_v3, %v5903_v27  ;;  %v9994_v3 = vld [vmem:[#allocation46_spill] sm:$0xff] }
 0x29b   :  { %1027 = vmatpush.msrb.mxu3 %v9994_v3  ;;  %v5979_v3 = vld [vmem:[#allocation10 + $0x5c0] sm:$0xff] }
 0x2b0   :  { %v742_v41 = vpop.permute.xlu1 %741 }
 0x2b1   :  { %v746_v60 = vperm.slane %v742_v41, %v5903_v27  ;;  %v5961_v41 = vld [vmem:[#allocation13 + $0x90] sm:$0xff] }
 0x2b2   :  { %822 = vmatpush.msrb.mxu1 %v5961_v41 }
 0x2b3   :  { %v748_v8 = vsel %vm397_vm0, %v747_v62, %v746_v60  ;;  %v9995_v62 = vld [vmem:[#allocation49_spill] sm:$0xff] }
 0x2b4   :  { %v750_v14 = vsel %vm723_vm13, %v748_v8, 0.0  ;;  %1028 = vmatpush.msrb.mxu3 %v9995_v62  ;;  %v5965_v60 = vld [vmem:[#allocation13 + $0x88] sm:$0xff]  ;;  %v9996_v8 = vld [vmem:[#allocation52_spill] sm:$0xff]  ;;  %v10000_v62 = vld [vmem:[#allocation63_spill] sm:$0xff] }
 0x2b5   :  { %751 = vadd.xlane.f32.xlu2 %v750_v14  ;;  %823 = vmatpush.msrb.mxu1 %v5965_v60 }
 0x2b6   :  { %1029 = vmatpush.msrb.mxu3 %v9996_v8  ;;  %v5987_v8 = vld [vmem:[#allocation10 + $0x580] sm:$0xff] }
 0x2b7   :  { %824 = vmatpush.msrb.mxu1 %v5969_v54 }
 0x2b8   :  { %1030 = vmatpush.msrb.mxu3 %v9997_v29  ;;  %v6002_v29 = vld [vmem:[#allocation10 + $0x500] sm:$0xff] }
 0x2b9   :  { %10005 = vst [vmem:[#allocation26_spill] sm:$0xff] %v6002_v29 }
 0x2ba   :  { %1031 = vmatpush.msrb.mxu3 %v9998_v43  ;;  %v6020_v43 = vld [vmem:[#allocation10 + $0x440] sm:$0xff] }
 0x2bb   :  { %10011 = vst [vmem:[#allocation32_spill] sm:$0xff] %v6020_v43 }
 0x2bc   :  { %1032 = vmatpush.msrb.mxu3 %v9999_v55  ;;  %v6023_v55 = vld [vmem:[#allocation10 + $0x420] sm:$0xff] }
 0x2bd   :  { %10012 = vst [vmem:[#allocation33_spill] sm:$0xff] %v6023_v55 }
 0x2be   :  { %1033 = vmatpush.msrb.mxu3 %v10000_v62  ;;  %v6026_v62 = vld [vmem:[#allocation10 + $0x400] sm:$0xff] }
 0x2bf   :  { %10013 = vst [vmem:[#allocation34_spill] sm:$0xff] %v6026_v62 }
 0x328   :  { %v752_v47 = vpop.xlane.xlu2 %751 }
 0x329   :  { %4155 = vrcp.f32 %v752_v47  ;;  %v5975_v47 = vld [vmem:[#allocation10 + $0x5e0] sm:$0xff] }
 0x32a   :  { %902 = vmatpush.msra.mxu1 %v5975_v47 }
 0x32c   :  { %903 = vmatpush.msra.mxu1 %v5979_v3 }
 0x32f   :  { %v4156_v14 = vpop.eup %4155 }
 0x330   :  { %v756_v18 = vperm.slane %v4156_v14, 1  ;;  %v755_v19 = vperm.slane %v4156_v14, 0  ;;  %v5991_v14 = vld [vmem:[#allocation10 + $0x560] sm:$0xff] }
 0x331   :  { %10002 = vst [vmem:[#allocation23_spill] sm:$0xff] %v5991_v14 }
 0x332   :  { %v760_v31 = vmul.f32 %v4154_v50, %v756_v18  ;;  %v759_v39 = vmul.f32 %v4152_v59, %v755_v19  ;;  %v5983_v50 = vld [vmem:[#allocation10 + $0x5a0] sm:$0xff]  ;;  %v10001_v59 = vld [vmem:[#allocation66_spill] sm:$0xff] }
 0x333   :  { %904 = vmatpush.msra.mxu1 %v5983_v50  ;;  %1034 = vmatpush.msrb.mxu3 %v10001_v59  ;;  %v5995_v18 = vld [vmem:[#allocation10 + $0x540] sm:$0xff] }
 0x334   :  { %768 = vperm.xlu1 %4130, %v760_v31   ;;  %763 = vperm.xlu0 %4132, %v759_v39   ;;  %10003 = vst [vmem:[#allocation24_spill] sm:$0xff] %v5995_v18  ;;  %v5999_v19 = vld [vmem:[#allocation10 + $0x520] sm:$0xff] }
 0x335   :  { %905 = vmatpush.msra.mxu1 %v5987_v8  ;;  %1035 = vmatpush.msrb.mxu3 %v5695_v23  ;;  %10004 = vst [vmem:[#allocation25_spill] sm:$0xff] %v5999_v19  ;;  %v6005_v23 = vld [vmem:[#allocation10 + $0x4e0] sm:$0xff] }
 0x336   :  { %10006 = vst [vmem:[#allocation27_spill] sm:$0xff] %v6005_v23  ;;  %v6008_v31 = vld [vmem:[#allocation10 + $0x4c0] sm:$0xff] }
 0x337   :  { %906 = vmatpush.msra.mxu1 %v5991_v14  ;;  %1036 = vmatpush.msrb.mxu3 %v5705_v12  ;;  %10007 = vst [vmem:[#allocation28_spill] sm:$0xff] %v6008_v31  ;;  %v6011_v12 = vld [vmem:[#allocation10 + $0x4a0] sm:$0xff] }
 0x338   :  { %10008 = vst [vmem:[#allocation29_spill] sm:$0xff] %v6011_v12  ;;  %v6017_v39 = vld [vmem:[#allocation10 + $0x460] sm:$0xff] }
 0x339   :  { %907 = vmatpush.msra.mxu1 %v5995_v18  ;;  %1037 = vmatpush.msrb.mxu3 %v5714_v38  ;;  %v6014_v38 = vld [vmem:[#allocation10 + $0x480] sm:$0xff]  ;;  %10010 = vst [vmem:[#allocation31_spill] sm:$0xff] %v6017_v39 }
 0x33a   :  { %10009 = vst [vmem:[#allocation30_spill] sm:$0xff] %v6014_v38 }
 0x33b   :  { %908 = vmatpush.msra.mxu1 %v5999_v19 }
 0x33d   :  { %909 = vmatpush.msra.mxu1 %v6002_v29 }
 0x33f   :  { %910 = vmatpush.msra.mxu1 %v6005_v23 }
 0x341   :  { %911 = vmatpush.msra.mxu1 %v6008_v31 }
 0x343   :  { %912 = vmatpush.msra.mxu1 %v6011_v12 }
 0x345   :  { %913 = vmatpush.msra.mxu1 %v6014_v38 }
 0x347   :  { %914 = vmatpush.msra.mxu1 %v6017_v39 }
 0x349   :  { %915 = vmatpush.msra.mxu1 %v6020_v43 }
 0x34b   :  { %916 = vmatpush.msra.mxu1 %v6023_v55 }
 0x34d   :  { %917 = vmatpush.msra.mxu1 %v6026_v62 }
 0x3a6   :  { %v769_v59 = vpop.permute.xlu1 %768  ;;  %v764_v27 = vpop.permute.xlu0 %763 }
 0x3a7   :  { %v772_v2 = vmul.f32 %v769_v59, %v5887_v10  ;;  %v771_v6 = vmul.f32 %v764_v27, %v5878_v7  ;;  %v6037_v7 = vld [vmem:[#allocation10 + $0x1f0] sm:$0xff]  ;;  %v6118_v59 = vld [vmem:[#allocation10 + $0x3f8] sm:$0xff] }
 0x3a8   :  { %v6047_v10 = vld [vmem:[#allocation10 + $0x1b0] sm:$0xff] }
 0x3a9   :  { %v779_v11 = vrot.slane %v772_v2, 4  ;;  %v773_v39 = vrot.slane %v771_v6, 4  ;;  %v10016_v27 = vld [vmem:[#allocation42_spill] sm:$0xff] }
 0x3ab   :  { %v780_v38 = vadd.f32 %v779_v11, %v772_v2  ;;  %v774_v12 = vadd.f32 %v773_v39, %v771_v6  ;;  %v10014_v6 = vld [vmem:[#allocation38_spill] sm:$0xff]  ;;  %v10015_v2 = vld [vmem:[#allocation40_spill] sm:$0xff] }
 0x3ac   :  { %v6042_v11 = vld [vmem:[#allocation10 + $0x1d0] sm:$0xff] }
 0x3ad   :  { %v781_v31 = vrot.slane %v780_v38, 2  ;;  %v775_v43 = vrot.slane %v774_v12, 2  ;;  %v6093_v39 = vld [vmem:[#allocation10 + $0x90] sm:$0xff] }
 0x3af   :  { %v782_v23 = vadd.f32 %v781_v31, %v780_v38  ;;  %v776_v29 = vadd.f32 %v775_v43, %v774_v12  ;;  %v6078_v31 = vld [vmem:[#allocation10 + $0xf0] sm:$0xff] }
 0x3b0   :  { %v6083_v12 = vld [vmem:[#allocation10 + $0xd0] sm:$0xff] }
 0x3b1   :  { %v783_v19 = vrot.slane %v782_v23, 1  ;;  %v777_v55 = vrot.slane %v776_v29, 1  ;;  %v6088_v38 = vld [vmem:[#allocation10 + $0xb0] sm:$0xff] }
 0x3b2   :  { %v6098_v43 = vld [vmem:[#allocation10 + $0x70] sm:$0xff] }
 0x3b3   :  { %v784_v18 = vadd.f32 %v783_v19, %v782_v23  ;;  %v778_v14 = vadd.f32 %v777_v55, %v776_v29  ;;  %v6068_v19 = vld [vmem:[#allocation10 + $0x130] sm:$0xff]  ;;  %v10019_v29 = vld [vmem:[#allocation51_spill] sm:$0xff] }
 0x3b4   :  { %v6073_v23 = vld [vmem:[#allocation10 + $0x110] sm:$0xff] }
 0x3b5   :  { %v6032_v62 = vsel %vm397_vm0, %v784_v18, %v778_v14  ;;  %v6052_v14 = vld [vmem:[#allocation10 + $0x190] sm:$0xff] }
 0x3b6   :  { %825 = vmatmul.f32.vlgmr.msrb.gmra.mxu1 %v6032_v62  ;;  %898 = vmatmul.f32.vlgmr.msra.gmra.mxu0 %v6032_v62  ;;  %v6063_v18 = vld [vmem:[#allocation10 + $0x150] sm:$0xff] }
 0x3b7   :  { %958 = vmatmul.f32.vlgmr.msra.gmra.mxu3 %v6032_v62  ;;  %982 = vmatpush.msrb.mxu1 %v6037_v7  ;;  %v6103_v55 = vld [vmem:[#allocation10 + $0x50] sm:$0xff] }
 0x3b8   :  { %1042 = vmatpush.msra.mxu0 %v10014_v6  ;;  %1248 = vmatpush.msra.mxu3 %v5774_v63  ;;  %v6057_v63 = vld [vmem:[#allocation10 + $0x170] sm:$0xff]  ;;  %v6142_v6 = vld [vmem:[#allocation10 + $0x398] sm:$0xff] }
 0x3b9   :  { %983 = vmatpush.msrb.mxu1 %v6042_v11 }
 0x3ba   :  { %1043 = vmatpush.msra.mxu0 %v10015_v2  ;;  %1249 = vmatpush.msra.mxu3 %v5777_v13  ;;  %v10017_v13 = vld [vmem:[#allocation45_spill] sm:$0xff]  ;;  %v10026_v2 = vld [vmem:[#allocation44_spill] sm:$0xff] }
 0x3bb   :  { %984 = vmatpush.msrb.mxu1 %v6047_v10 }
 0x3bc   :  { %1044 = vmatpush.msra.mxu0 %v10016_v27  ;;  %1250 = vmatpush.msra.mxu3 %v5780_v21  ;;  %v10018_v21 = vld [vmem:[#allocation48_spill] sm:$0xff]  ;;  %v6151_v27 = vld [vmem:[#allocation14 + $0x50] sm:$0xff] }
 0x3bd   :  { %985 = vmatpush.msrb.mxu1 %v6052_v14 }
 0x3be   :  { %918 = vmatmul.f32.vlgmr.msra.gmra.mxu1 %v5875_v0  ;;  %978 = vmatmul.f32.vlgmr.msrb.gmra.mxu0 %v5875_v0 }
 0x3bf   :  { %986 = vmatpush.msrb.mxu1 %v6057_v63  ;;  %1038 = vmatmul.f32.vlgmr.msrb.gmra.mxu3 %v5875_v0 }
 0x3c0   :  { %1045 = vmatpush.msra.mxu0 %v10017_v13  ;;  %1251 = vmatpush.msra.mxu3 %v5783_v28  ;;  %v10020_v28 = vld [vmem:[#allocation54_spill] sm:$0xff]  ;;  %v6159_v13 = vld [vmem:[#allocation10 + $0x3c0] sm:$0xff] }
 0x3c1   :  { %987 = vmatpush.msrb.mxu1 %v6063_v18 }
 0x3c2   :  { %1046 = vmatpush.msra.mxu0 %v10018_v21  ;;  %1252 = vmatpush.msra.mxu3 %v5786_v36  ;;  %v10021_v36 = vld [vmem:[#allocation57_spill] sm:$0xff]  ;;  %v6173_v21 = vld [vmem:[#allocation14 + $0x38] sm:$0xff] }
 0x3c3   :  { %988 = vmatpush.msrb.mxu1 %v6068_v19  ;;  %10031 = vst [vmem:[#allocation35_spill] sm:$0xff] %v6173_v21 }
 0x3c4   :  { %1047 = vmatpush.msra.mxu0 %v10019_v29  ;;  %1253 = vmatpush.msra.mxu3 %v5789_v46  ;;  %v10022_v46 = vld [vmem:[#allocation60_spill] sm:$0xff] }
 0x3c5   :  { %989 = vmatpush.msrb.mxu1 %v6073_v23  ;;  %v6175_v29 = vld [vmem:[#allocation10 + $0x380] sm:$0xff] }
 0x3c6   :  { %1048 = vmatpush.msra.mxu0 %v10020_v28  ;;  %1254 = vmatpush.msra.mxu3 %v5792_v56  ;;  %v10023_v56 = vld [vmem:[#allocation64_spill] sm:$0xff]  ;;  %v6181_v28 = vld [vmem:[#allocation14 + $0x30] sm:$0xff] }
 0x3c7   :  { %990 = vmatpush.msrb.mxu1 %v6078_v31  ;;  %10033 = vst [vmem:[#allocation37_spill] sm:$0xff] %v6181_v28 }
 0x3c8   :  { %1049 = vmatpush.msra.mxu0 %v10021_v36  ;;  %1255 = vmatpush.msra.mxu3 %v5799_v25  ;;  %v10024_v25 = vld [vmem:[#allocation67_spill] sm:$0xff] }
 0x3c9   :  { %991 = vmatpush.msrb.mxu1 %v6083_v12  ;;  %v6183_v36 = vld [vmem:[#allocation10 + $0x360] sm:$0xff] }
 0x3ca   :  { %1050 = vmatpush.msra.mxu0 %v10022_v46  ;;  %1256 = vmatpush.msra.mxu3 %v5802_v40  ;;  %v10025_v40 = vld [vmem:[#allocation69_spill] sm:$0xff] }
 0x3cb   :  { %992 = vmatpush.msrb.mxu1 %v6088_v38  ;;  %v6189_v46 = vld [vmem:[#allocation14 + $0x28] sm:$0xff] }
 0x3cc   :  { %1051 = vmatpush.msra.mxu0 %v10023_v56  ;;  %1257 = vmatpush.msra.mxu3 %v5807_v42  ;;  %v6108_v42 = vld [vmem:[#allocation10 + $0x30] sm:$0xff]  ;;  %10035 = vst [vmem:[#allocation39_spill] sm:$0xff] %v6189_v46  ;;  %v6191_v56 = vld [vmem:[#allocation10 + $0x340] sm:$0xff] }
 0x3cd   :  { %993 = vmatpush.msrb.mxu1 %v6093_v39 }
 0x3ce   :  { %1052 = vmatpush.msra.mxu0 %v10024_v25  ;;  %1258 = vmatpush.msra.mxu3 %v5810_v58  ;;  %v6113_v58 = vld [vmem:[#allocation10 + $0x10] sm:$0xff]  ;;  %v6197_v25 = vld [vmem:[#allocation14 + $0x20] sm:$0xff] }
 0x3cf   :  { %994 = vmatpush.msrb.mxu1 %v6098_v43  ;;  %10037 = vst [vmem:[#allocation41_spill] sm:$0xff] %v6197_v25 }
 0x3d0   :  { %1053 = vmatpush.msra.mxu0 %v10025_v40  ;;  %1259 = vmatpush.msra.mxu3 %v5817_v30  ;;  %v6116_v30 = vld [vmem:[#allocation14 + $0x78] sm:$0xff] }
 0x3d1   :  { %995 = vmatpush.msrb.mxu1 %v6103_v55  ;;  %830 = vmatpush.msrb.mxu2 %v6116_v30  ;;  %v6199_v40 = vld [vmem:[#allocation10 + $0x320] sm:$0xff] }
 0x3d2   :  { %1054 = vmatpush.msra.mxu0 %v5708_v34  ;;  %1260 = vmatpush.msra.mxu3 %v5822_v16  ;;  %v6122_v34 = vld [vmem:[#allocation14 + $0x70] sm:$0xff]  ;;  %v6130_v16 = vld [vmem:[#allocation14 + $0x68] sm:$0xff] }
 0x3d3   :  { %996 = vmatpush.msrb.mxu1 %v6108_v42  ;;  %831 = vmatpush.msrb.mxu2 %v6122_v34 }
 0x3d4   :  { %1055 = vmatpush.msra.mxu0 %v5717_v1  ;;  %1261 = vmatpush.msra.mxu3 %v5827_v33  ;;  %v6126_v1 = vld [vmem:[#allocation10 + $0x3d8] sm:$0xff] }
 0x3d5   :  { %997 = vmatpush.msrb.mxu1 %v6113_v58  ;;  %v6134_v33 = vld [vmem:[#allocation10 + $0x3b8] sm:$0xff]  ;;  %832 = vmatpush.msrb.mxu2 %v6130_v16 }
 0x3d6   :  { %1056 = vmatpush.msra.mxu0 %v5724_v4  ;;  %998 = vmatmul.f32.vlgmr.msrb.gmra.mxu1 %v5933_v48  ;;  %v6137_v4 = vld [vmem:[#allocation14 + $0x60] sm:$0xff] }
 0x3d7   :  { %1062 = vmatpush.msra.mxu1 %v6118_v59  ;;  %1262 = vmatpush.msra.mxu3 %v5833_v45  ;;  %v10027_v45 = vld [vmem:[#allocation47_spill] sm:$0xff] }
 0x3d8   :  { %1057 = vmatpush.msra.mxu0 %v5729_v9  ;;  %v6145_v9 = vld [vmem:[#allocation14 + $0x58] sm:$0xff]  ;;  %833 = vmatpush.msrb.mxu2 %v6137_v4 }
 0x3d9   :  { %1063 = vmatpush.msra.mxu1 %v6126_v1  ;;  %1058 = vmatmul.f32.vlgmr.msra.gmra.mxu0 %v5933_v48 }
 0x3da   :  { %1268 = vmatpush.msrb.mxu0 %v5913_v15  ;;  %1263 = vmatpush.msra.mxu3 %v5836_v61  ;;  %v6157_v15 = vld [vmem:[#allocation14 + $0x48] sm:$0xff]  ;;  %v10028_v61 = vld [vmem:[#allocation50_spill] sm:$0xff] }
 0x3db   :  { %1064 = vmatpush.msra.mxu1 %v6134_v33  ;;  %834 = vmatpush.msrb.mxu2 %v6145_v9 }
 0x3dc   :  { %1269 = vmatpush.msrb.mxu0 %v5915_v49  ;;  %1341 = vmatpush.msrb.mxu3 %v5839_v20  ;;  %v6165_v49 = vld [vmem:[#allocation14 + $0x40] sm:$0xff] }
 0x3dd   :  { %1065 = vmatpush.msra.mxu1 %v6142_v6  ;;  %835 = vmatpush.msrb.mxu2 %v6151_v27  ;;  %10029 = vst [vmem:[#allocation36_spill] sm:$0xff] %v6165_v49  ;;  %v6167_v20 = vld [vmem:[#allocation10 + $0x3a0] sm:$0xff] }
 0x3de   :  { %1270 = vmatpush.msrb.mxu0 %v5918_v53  ;;  %1342 = vmatpush.msrb.mxu3 %v6159_v13  ;;  %v10030_v53 = vld [vmem:[#allocation53_spill] sm:$0xff] }
 0x3df   :  { %1066 = vmatpush.msra.mxu1 %v10026_v2  ;;  %836 = vmatpush.msrb.mxu2 %v6157_v15  ;;  %v6205_v2 = vld [vmem:[#allocation14 + $0x18] sm:$0xff] }
 0x3e0   :  { %1271 = vmatpush.msrb.mxu0 %v5921_v57  ;;  %1343 = vmatpush.msrb.mxu3 %v6167_v20  ;;  %v10032_v57 = vld [vmem:[#allocation56_spill] sm:$0xff]  ;;  %10039 = vst [vmem:[#allocation43_spill] sm:$0xff] %v6205_v2 }
 0x3e1   :  { %1067 = vmatpush.msra.mxu1 %v10027_v45  ;;  %837 = vmatpush.msrb.mxu2 %v6165_v49  ;;  %v6207_v45 = vld [vmem:[#allocation10 + $0x300] sm:$0xff] }
 0x3e2   :  { %1272 = vmatpush.msrb.mxu0 %v5924_v5  ;;  %1344 = vmatpush.msrb.mxu3 %v6175_v29  ;;  %v10034_v5 = vld [vmem:[#allocation59_spill] sm:$0xff] }
 0x3e3   :  { %1068 = vmatpush.msra.mxu1 %v10028_v61  ;;  %838 = vmatpush.msrb.mxu2 %v6173_v21  ;;  %v6213_v61 = vld [vmem:[#allocation14 + $0x10] sm:$0xff] }
 0x3e4   :  { %1273 = vmatpush.msrb.mxu0 %v5927_v44  ;;  %1345 = vmatpush.msrb.mxu3 %v6183_v36  ;;  %v10036_v44 = vld [vmem:[#allocation62_spill] sm:$0xff]  ;;  %10041 = vst [vmem:[#allocation46_spill] sm:$0xff] %v6213_v61 }
 0x3e5   :  { %1069 = vmatpush.msra.mxu1 %v10030_v53  ;;  %839 = vmatpush.msrb.mxu2 %v6181_v28  ;;  %v6215_v53 = vld [vmem:[#allocation10 + $0x2e0] sm:$0xff] }
 0x3e6   :  { %1274 = vmatpush.msrb.mxu0 %v5930_v22  ;;  %1346 = vmatpush.msrb.mxu3 %v6191_v56  ;;  %v10038_v22 = vld [vmem:[#allocation65_spill] sm:$0xff] }
 0x3e7   :  { %1070 = vmatpush.msra.mxu1 %v10032_v57  ;;  %840 = vmatpush.msrb.mxu2 %v6189_v46  ;;  %v6221_v57 = vld [vmem:[#allocation14 + $0x8] sm:$0xff] }
 0x3e8   :  { %1275 = vmatpush.msrb.mxu0 %v5937_v26  ;;  %1347 = vmatpush.msrb.mxu3 %v6199_v40  ;;  %v10040_v26 = vld [vmem:[#allocation68_spill] sm:$0xff]  ;;  %10043 = vst [vmem:[#allocation49_spill] sm:$0xff] %v6221_v57 }
 0x3e9   :  { %1071 = vmatpush.msra.mxu1 %v10034_v5  ;;  %841 = vmatpush.msrb.mxu2 %v6197_v25  ;;  %v6223_v5 = vld [vmem:[#allocation10 + $0x2c0] sm:$0xff] }
 0x3ea   :  { %1276 = vmatpush.msrb.mxu0 %v5941_v17  ;;  %1348 = vmatpush.msrb.mxu3 %v6207_v45  ;;  %v10042_v17 = vld [vmem:[#allocation70_spill] sm:$0xff] }
 0x3eb   :  { %1072 = vmatpush.msra.mxu1 %v10036_v44  ;;  %842 = vmatpush.msrb.mxu2 %v6205_v2  ;;  %v6231_v44 = vld [vmem:[#allocation10 + $0x2a0] sm:$0xff] }
 0x3ec   :  { %1277 = vmatpush.msrb.mxu0 %v5945_v35  ;;  %1349 = vmatpush.msrb.mxu3 %v6215_v53  ;;  %v6229_v35 = vld [vmem:[#allocation14] sm:$0xff] }
 0x3ed   :  { %1073 = vmatpush.msra.mxu1 %v10038_v22  ;;  %843 = vmatpush.msrb.mxu2 %v6213_v61  ;;  %10044 = vst [vmem:[#allocation52_spill] sm:$0xff] %v6229_v35  ;;  %v6258_v22 = vld [vmem:[#allocation10 + $0x1a8] sm:$0xff] }
 0x3ee   :  { %1278 = vmatpush.msrb.mxu0 %v5949_v24  ;;  %1350 = vmatpush.msrb.mxu3 %v6223_v5  ;;  %v6237_v24 = vld [vmem:[#allocation10 + $0x280] sm:$0xff]  ;;  %10047 = vst [vmem:[#allocation61_spill] sm:$0xff] %v6258_v22 }
 0x3ef   :  { %1074 = vmatpush.msra.mxu1 %v10040_v26  ;;  %844 = vmatpush.msrb.mxu2 %v6221_v57  ;;  %v10058_v26 = vld [vmem:[#allocation26_spill] sm:$0xff] }
 0x3f0   :  { %1279 = vmatpush.msrb.mxu0 %v5953_v51  ;;  %1351 = vmatpush.msrb.mxu3 %v6231_v44  ;;  %v6246_v51 = vld [vmem:[#allocation10 + $0x260] sm:$0xff] }
 0x3f1   :  { %1075 = vmatpush.msra.mxu1 %v10042_v17  ;;  %845 = vmatpush.msrb.mxu2 %v6229_v35  ;;  %v6304_v17 = vld [vmem:[#allocation10 + $0xa8] sm:$0xff] }
 0x3f2   :  { %1280 = vmatpush.msrb.mxu0 %v5957_v37  ;;  %1352 = vmatpush.msrb.mxu3 %v6237_v24  ;;  %v6254_v37 = vld [vmem:[#allocation10 + $0x240] sm:$0xff]  ;;  %10059 = vst [vmem:[#allocation51_spill] sm:$0xff] %v6304_v17 }
 0x3f3   :  { %1076 = vmatpush.msra.mxu1 %v5710_v32  ;;  %v6242_v32 = vld [vmem:[#allocation10 + $0x1e8] sm:$0xff] }
 0x3f4   :  { %10045 = vst [vmem:[#allocation55_spill] sm:$0xff] %v6242_v32  ;;  %922 = vmatpush.msra.mxu2 %v6242_v32  ;;  %1281 = vmatpush.msrb.mxu0 %v5961_v41  ;;  %v6263_v41 = vld [vmem:[#allocation10 + $0x220] sm:$0xff] }
 0x3f5   :  { %1077 = vmatpush.msra.mxu1 %v5719_v52  ;;  %1353 = vmatpush.msrb.mxu3 %v6246_v51  ;;  %v6250_v52 = vld [vmem:[#allocation10 + $0x1c8] sm:$0xff] }
 0x3f6   :  { %1078 = vmatmul.f32.vlgmr.msra.gmra.mxu1 %v6032_v62  ;;  %10046 = vst [vmem:[#allocation58_spill] sm:$0xff] %v6250_v52  ;;  %923 = vmatpush.msra.mxu2 %v6250_v52 }
 0x3f7   :  { %1289 = vmatpush.msrb.mxu1 %v6116_v30  ;;  %1282 = vmatpush.msrb.mxu0 %v5965_v60  ;;  %v6266_v30 = vld [vmem:[#allocation10 + $0x188] sm:$0xff]  ;;  %v6271_v60 = vld [vmem:[#allocation10 + $0x200] sm:$0xff] }
 0x3f8   :  { %1354 = vmatpush.msrb.mxu3 %v6254_v37  ;;  %924 = vmatpush.msra.mxu2 %v6258_v22  ;;  %10048 = vst [vmem:[#allocation63_spill] sm:$0xff] %v6266_v30 }
 0x3f9   :  { %1290 = vmatpush.msrb.mxu1 %v6122_v34  ;;  %1283 = vmatpush.msrb.mxu0 %v5969_v54  ;;  %v6274_v34 = vld [vmem:[#allocation10 + $0x168] sm:$0xff] }
 0x3fa   :  { %1355 = vmatpush.msrb.mxu3 %v6263_v41  ;;  %925 = vmatpush.msra.mxu2 %v6266_v30  ;;  %10049 = vst [vmem:[#allocation66_spill] sm:$0xff] %v6274_v34  ;;  %v6279_v54 = vld [vmem:[#allocation10 + $0x148] sm:$0xff] }
 0x3fb   :  { %1361 = vmatpush.msra.mxu0 %v5975_v47  ;;  %1291 = vmatpush.msrb.mxu1 %v6130_v16  ;;  %10050 = vst [vmem:[#allocation38_spill] sm:$0xff] %v6279_v54  ;;  %v6284_v47 = vld [vmem:[#allocation10 + $0x128] sm:$0xff] }
 0x3fc   :  { %1356 = vmatpush.msrb.mxu3 %v6271_v60  ;;  %926 = vmatpush.msra.mxu2 %v6274_v34  ;;  %10051 = vst [vmem:[#allocation40_spill] sm:$0xff] %v6284_v47  ;;  %v6289_v16 = vld [vmem:[#allocation10 + $0x108] sm:$0xff] }
 0x3fd   :  { %1362 = vmatpush.msra.mxu0 %v5979_v3  ;;  %1292 = vmatpush.msrb.mxu1 %v6137_v4  ;;  %v10052_v3 = vld [vmem:[#allocation23_spill] sm:$0xff]  ;;  %10053 = vst [vmem:[#allocation42_spill] sm:$0xff] %v6289_v16  ;;  %v6294_v4 = vld [vmem:[#allocation10 + $0xe8] sm:$0xff] }
 0x3fe   :  { %927 = vmatpush.msra.mxu2 %v6279_v54  ;;  %10055 = vst [vmem:[#allocation45_spill] sm:$0xff] %v6294_v4 }
 0x3ff   :  { %1363 = vmatpush.msra.mxu0 %v5983_v50  ;;  %1293 = vmatpush.msrb.mxu1 %v6145_v9  ;;  %v10054_v50 = vld [vmem:[#allocation24_spill] sm:$0xff] }
 0x400   :  { %928 = vmatpush.msra.mxu2 %v6284_v47  ;;  %v6299_v9 = vld [vmem:[#allocation10 + $0xc8] sm:$0xff] }
 0x401   :  { %1364 = vmatpush.msra.mxu0 %v5987_v8  ;;  %1294 = vmatpush.msrb.mxu1 %v6151_v27  ;;  %v10056_v8 = vld [vmem:[#allocation25_spill] sm:$0xff]  ;;  %10057 = vst [vmem:[#allocation48_spill] sm:$0xff] %v6299_v9 }
 0x402   :  { %929 = vmatpush.msra.mxu2 %v6289_v16 }
 0x403   :  { %1365 = vmatpush.msra.mxu0 %v10052_v3  ;;  %1295 = vmatpush.msrb.mxu1 %v6157_v15  ;;  %v10060_v3 = vld [vmem:[#allocation27_spill] sm:$0xff] }
 0x404   :  { %930 = vmatpush.msra.mxu2 %v6294_v4 }
 0x405   :  { %1366 = vmatpush.msra.mxu0 %v10054_v50  ;;  %1296 = vmatpush.msrb.mxu1 %v6165_v49  ;;  %v6309_v50 = vld [vmem:[#allocation10 + $0x88] sm:$0xff] }
 0x406   :  { %931 = vmatpush.msra.mxu2 %v6299_v9  ;;  %10061 = vst [vmem:[#allocation54_spill] sm:$0xff] %v6309_v50  ;;  %v6314_v49 = vld [vmem:[#allocation10 + $0x68] sm:$0xff] }
 0x407   :  { %1367 = vmatpush.msra.mxu0 %v10056_v8  ;;  %1297 = vmatpush.msrb.mxu1 %v6173_v21  ;;  %v10062_v8 = vld [vmem:[#allocation28_spill] sm:$0xff]  ;;  %10063 = vst [vmem:[#allocation57_spill] sm:$0xff] %v6314_v49 }
 0x408   :  { %932 = vmatpush.msra.mxu2 %v6304_v17  ;;  %v6319_v21 = vld [vmem:[#allocation10 + $0x48] sm:$0xff] }
 0x409   :  { %1368 = vmatpush.msra.mxu0 %v10058_v26  ;;  %1298 = vmatpush.msrb.mxu1 %v6181_v28  ;;  %v10064_v26 = vld [vmem:[#allocation29_spill] sm:$0xff]  ;;  %10065 = vst [vmem:[#allocation60_spill] sm:$0xff] %v6319_v21 }
 0x40a   :  { %933 = vmatpush.msra.mxu2 %v6309_v50  ;;  %v6324_v28 = vld [vmem:[#allocation10 + $0x28] sm:$0xff] }
 0x40b   :  { %1369 = vmatpush.msra.mxu0 %v10060_v3  ;;  %1299 = vmatpush.msrb.mxu1 %v6189_v46  ;;  %v10066_v3 = vld [vmem:[#allocation30_spill] sm:$0xff]  ;;  %10067 = vst [vmem:[#allocation64_spill] sm:$0xff] %v6324_v28  ;;  %v6329_v46 = vld [vmem:[#allocation10 + $0x8] sm:$0xff] }
 0x40c   :  { %934 = vmatpush.msra.mxu2 %v6314_v49  ;;  %10069 = vst [vmem:[#allocation67_spill] sm:$0xff] %v6329_v46 }
 0x40d   :  { %1370 = vmatpush.msra.mxu0 %v10062_v8  ;;  %1300 = vmatpush.msrb.mxu1 %v6197_v25  ;;  %v10068_v8 = vld [vmem:[#allocation31_spill] sm:$0xff] }
 0x40e   :  { %935 = vmatpush.msra.mxu2 %v6319_v21 }
 0x40f   :  { %1371 = vmatpush.msra.mxu0 %v10064_v26  ;;  %1301 = vmatpush.msrb.mxu1 %v6205_v2  ;;  %v10070_v26 = vld [vmem:[#allocation32_spill] sm:$0xff]  ;;  %v10071_v2 = vld [vmem:[#allocation33_spill] sm:$0xff] }
 0x410   :  { %936 = vmatpush.msra.mxu2 %v6324_v28 }
 0x411   :  { %1372 = vmatpush.msra.mxu0 %v10066_v3  ;;  %1302 = vmatpush.msrb.mxu1 %v6213_v61  ;;  %v10072_v3 = vld [vmem:[#allocation34_spill] sm:$0xff] }
 0x412   :  { %937 = vmatpush.msra.mxu2 %v6329_v46 }
 0x413   :  { %1373 = vmatpush.msra.mxu0 %v10068_v8  ;;  %1303 = vmatpush.msrb.mxu1 %v6221_v57  ;;  %v806_v8 = vpop.f32.mrf.mxu0 }
 0x415   :  { %1374 = vmatpush.msra.mxu0 %v10070_v26  ;;  %1304 = vmatpush.msrb.mxu1 %v6229_v35 }
 0x417   :  { %1375 = vmatpush.msra.mxu0 %v10071_v2  ;;  %1381 = vmatpush.msra.mxu1 %v6242_v32  ;;  %v6352_v2 = vld [vmem:[%s9339_s5] ss:$0 sm:$0xff] }
 0x418   :  { %10073 = vst [vmem:[#allocation69_spill] sm:$0xff] %v6352_v2  ;;  %v807_v26 = vadd.f32 %v6352_v2, %v806_v8  ;;  %v6368_v8 = vld [vmem:[#allocation10 + $0x390] sm:$0xff] }
 0x419   :  { %1376 = vmatpush.msra.mxu0 %v10072_v3  ;;  %1382 = vmatpush.msra.mxu1 %v6250_v52  ;;  %10077 = vst [vmem:[#allocation53_spill] sm:$0xff] %v6368_v8 }
 0x41b   :  { %1383 = vmatpush.msra.mxu1 %v6258_v22 }
 0x41d   :  { %1384 = vmatpush.msra.mxu1 %v6266_v30 }
 0x41f   :  { %1385 = vmatpush.msra.mxu1 %v6274_v34 }
 0x421   :  { %1386 = vmatpush.msra.mxu1 %v6279_v54 }
 0x423   :  { %1387 = vmatpush.msra.mxu1 %v6284_v47 }
 0x425   :  { %1388 = vmatpush.msra.mxu1 %v6289_v16 }
 0x427   :  { %1389 = vmatpush.msra.mxu1 %v6294_v4  ;;  %v6362_v4 = vld [vmem:[#allocation10 + $0x3d0] sm:$0xff] }
 0x428   :  { %10075 = vst [vmem:[#allocation47_spill] sm:$0xff] %v6362_v4 }
 0x429   :  { %1390 = vmatpush.msra.mxu1 %v6299_v9 }
 0x42b   :  { %1391 = vmatpush.msra.mxu1 %v6304_v17  ;;  %v6359_v17 = vld [vmem:[#allocation10 + $0x3f0] sm:$0xff] }
 0x42c   :  { %10074 = vst [vmem:[#allocation44_spill] sm:$0xff] %v6359_v17 }
 0x42d   :  { %1392 = vmatpush.msra.mxu1 %v6309_v50 }
 0x42f   :  { %1393 = vmatpush.msra.mxu1 %v6314_v49 }
 0x431   :  { %1394 = vmatpush.msra.mxu1 %v6319_v21  ;;  %v6365_v21 = vld [vmem:[#allocation10 + $0x3b0] sm:$0xff] }
 0x432   :  { %10076 = vst [vmem:[#allocation50_spill] sm:$0xff] %v6365_v21 }
 0x433   :  { %v826_v3 = vpop.f32.mrf.mxu1  ;;  %1395 = vmatpush.msra.mxu1 %v6324_v28 }
 0x434   :  { %v827_v9 = vadd.f32 %v826_v3, %v807_v26  ;;  %v6378_v26 = vld [vmem:[#allocation10 + $0x330] sm:$0xff] }
 0x435   :  { %1396 = vmatpush.msra.mxu1 %v6329_v46  ;;  %10080 = vst [vmem:[#allocation62_spill] sm:$0xff] %v6378_v26  ;;  %v6381_v3 = vld [vmem:[#allocation10 + $0x310] sm:$0xff]  ;;  %v10140_v46 = vld [vmem:[#allocation71_spill] sm:$0xff] }
 0x436   :  { %4157 = vtanh.f32 %v827_v9  ;;  %v6372_v9 = vld [vmem:[#allocation10 + $0x370] sm:$0xff]  ;;  %10081 = vst [vmem:[#allocation65_spill] sm:$0xff] %v6381_v3 }
 0x437   :  { %10078 = vst [vmem:[#allocation56_spill] sm:$0xff] %v6372_v9 }
 0x43b   :  { %v919_v28 = vpop.f32.mrf.mxu1 }
 0x43c   :  { %v4158_v50 = vpop.eup %4157 }
 0x43d   :  { %846 = vmatmul.f32.vlgmr.msrb.gmra.mxu2 %v4158_v50  ;;  %v6375_v50 = vld [vmem:[#allocation10 + $0x350] sm:$0xff] }
 0x43e   :  { %1002 = vmatpush.msrb.mxu2 %v6359_v17  ;;  %10079 = vst [vmem:[#allocation59_spill] sm:$0xff] %v6375_v50 }
 0x440   :  { %1003 = vmatpush.msrb.mxu2 %v6362_v4  ;;  %v10139_v4 = vld [vmem:[#allocation72_spill] sm:$0xff] }
 0x442   :  { %1004 = vmatpush.msrb.mxu2 %v6365_v21  ;;  %v6384_v21 = vld [vmem:[#allocation10 + $0x2f0] sm:$0xff] }
 0x443   :  { %10082 = vst [vmem:[#allocation68_spill] sm:$0xff] %v6384_v21 }
 0x444   :  { %1005 = vmatpush.msrb.mxu2 %v6368_v8 }
 0x445   :  { %938 = vmatmul.f32.vlgmr.msra.gmra.mxu2 %v5933_v48  ;;  %v6387_v48 = vld [vmem:[#allocation10 + $0x2d0] sm:$0xff] }
 0x446   :  { %1006 = vmatpush.msrb.mxu2 %v6372_v9  ;;  %10083 = vst [vmem:[#allocation70_spill] sm:$0xff] %v6387_v48  ;;  %v6390_v9 = vld [vmem:[#allocation10 + $0x2b0] sm:$0xff] }
 0x447   :  { %10084 = vst [vmem:[#allocation23_spill] sm:$0xff] %v6390_v9 }
 0x448   :  { %1007 = vmatpush.msrb.mxu2 %v6375_v50  ;;  %v6393_v50 = vld [vmem:[#allocation10 + $0x290] sm:$0xff] }
 0x449   :  { %10085 = vst [vmem:[#allocation24_spill] sm:$0xff] %v6393_v50 }
 0x44a   :  { %1008 = vmatpush.msrb.mxu2 %v6378_v26  ;;  %v6396_v26 = vld [vmem:[#allocation10 + $0x270] sm:$0xff] }
 0x44b   :  { %10086 = vst [vmem:[#allocation25_spill] sm:$0xff] %v6396_v26 }
 0x44c   :  { %1009 = vmatpush.msrb.mxu2 %v6381_v3  ;;  %v6399_v3 = vld [vmem:[#allocation10 + $0x250] sm:$0xff] }
 0x44d   :  { %10087 = vst [vmem:[#allocation26_spill] sm:$0xff] %v6399_v3 }
 0x44e   :  { %1010 = vmatpush.msrb.mxu2 %v6384_v21  ;;  %v6402_v21 = vld [vmem:[#allocation10 + $0x230] sm:$0xff] }
 0x44f   :  { %10088 = vst [vmem:[#allocation27_spill] sm:$0xff] %v6402_v21 }
 0x450   :  { %1011 = vmatpush.msrb.mxu2 %v6387_v48  ;;  %v6405_v48 = vld [vmem:[#allocation10 + $0x210] sm:$0xff] }
 0x451   :  { %10089 = vst [vmem:[#allocation28_spill] sm:$0xff] %v6405_v48 }
 0x452   :  { %1012 = vmatpush.msrb.mxu2 %v6390_v9  ;;  %v6409_v9 = vld [vmem:[#allocation10 + $0x5f8] sm:$0xff] }
 0x453   :  { %10090 = vst [vmem:[#allocation29_spill] sm:$0xff] %v6409_v9  ;;  %v999_v22 = vpop.f32.mrf.mxu1 }
 0x454   :  { %1013 = vmatpush.msrb.mxu2 %v6393_v50  ;;  %v6412_v50 = vld [vmem:[#allocation10 + $0x5d8] sm:$0xff] }
 0x455   :  { %10091 = vst [vmem:[#allocation30_spill] sm:$0xff] %v6412_v50 }
 0x456   :  { %1014 = vmatpush.msrb.mxu2 %v6396_v26  ;;  %v6415_v26 = vld [vmem:[#allocation10 + $0x5b8] sm:$0xff] }
 0x457   :  { %10092 = vst [vmem:[#allocation31_spill] sm:$0xff] %v6415_v26 }
 0x458   :  { %1015 = vmatpush.msrb.mxu2 %v6399_v3  ;;  %v6418_v3 = vld [vmem:[#allocation10 + $0x598] sm:$0xff] }
 0x459   :  { %10093 = vst [vmem:[#allocation32_spill] sm:$0xff] %v6418_v3 }
 0x45a   :  { %1016 = vmatpush.msrb.mxu2 %v6402_v21  ;;  %v6421_v21 = vld [vmem:[#allocation10 + $0x578] sm:$0xff] }
 0x45b   :  { %10094 = vst [vmem:[#allocation33_spill] sm:$0xff] %v6421_v21 }
 0x45c   :  { %1017 = vmatpush.msrb.mxu2 %v6405_v48  ;;  %v899_v48 = vpop.f32.mrf.mxu0 }
 0x45d   :  { %1018 = vmatmul.f32.vlgmr.msrb.gmra.mxu2 %v6032_v62  ;;  %v6424_v62 = vld [vmem:[#allocation10 + $0x558] sm:$0xff] }
 0x45e   :  { %1082 = vmatpush.msra.mxu2 %v6409_v9  ;;  %10095 = vst [vmem:[#allocation34_spill] sm:$0xff] %v6424_v62  ;;  %v6427_v9 = vld [vmem:[#allocation10 + $0x538] sm:$0xff] }
 0x45f   :  { %10096 = vst [vmem:[#allocation76_spill] sm:$0xff] %v6427_v9 }
 0x460   :  { %1083 = vmatpush.msra.mxu2 %v6412_v50  ;;  %v6430_v50 = vld [vmem:[#allocation10 + $0x518] sm:$0xff] }
 0x461   :  { %10097 = vst [vmem:[#allocation77_spill] sm:$0xff] %v6430_v50 }
 0x462   :  { %1084 = vmatpush.msra.mxu2 %v6415_v26  ;;  %v6433_v26 = vld [vmem:[#allocation10 + $0x4f8] sm:$0xff] }
 0x463   :  { %10098 = vst [vmem:[#allocation78_spill] sm:$0xff] %v6433_v26 }
 0x464   :  { %1085 = vmatpush.msra.mxu2 %v6418_v3  ;;  %v6436_v3 = vld [vmem:[#allocation10 + $0x4d8] sm:$0xff]  ;;  %v979_v49 = vpop.f32.mrf.mxu0 }
 0x465   :  { %10099 = vst [vmem:[#allocation79_spill] sm:$0xff] %v6436_v3 }
 0x466   :  { %1086 = vmatpush.msra.mxu2 %v6421_v21  ;;  %v6439_v21 = vld [vmem:[#allocation10 + $0x4b8] sm:$0xff] }
 0x467   :  { %10100 = vst [vmem:[#allocation80_spill] sm:$0xff] %v6439_v21 }
 0x468   :  { %1087 = vmatpush.msra.mxu2 %v6424_v62  ;;  %v6442_v62 = vld [vmem:[#allocation10 + $0x498] sm:$0xff] }
 0x469   :  { %10101 = vst [vmem:[#allocation81_spill] sm:$0xff] %v6442_v62 }
 0x46a   :  { %1088 = vmatpush.msra.mxu2 %v6427_v9  ;;  %v6445_v9 = vld [vmem:[#allocation10 + $0x478] sm:$0xff] }
 0x46b   :  { %10102 = vst [vmem:[#allocation82_spill] sm:$0xff] %v6445_v9 }
 0x46c   :  { %1089 = vmatpush.msra.mxu2 %v6430_v50  ;;  %v6448_v50 = vld [vmem:[#allocation10 + $0x458] sm:$0xff] }
 0x46d   :  { %10103 = vst [vmem:[#allocation83_spill] sm:$0xff] %v6448_v50 }
 0x46e   :  { %1090 = vmatpush.msra.mxu2 %v6433_v26  ;;  %v6451_v26 = vld [vmem:[#allocation10 + $0x438] sm:$0xff] }
 0x46f   :  { %10104 = vst [vmem:[#allocation84_spill] sm:$0xff] %v6451_v26 }
 0x470   :  { %1091 = vmatpush.msra.mxu2 %v6436_v3  ;;  %v6454_v3 = vld [vmem:[#allocation10 + $0x418] sm:$0xff] }
 0x471   :  { %10105 = vst [vmem:[#allocation85_spill] sm:$0xff] %v6454_v3 }
 0x472   :  { %1092 = vmatpush.msra.mxu2 %v6439_v21  ;;  %v6458_v21 = vld [vmem:[#allocation10 + $0x1e0] sm:$0xff] }
 0x473   :  { %10106 = vst [vmem:[#allocation86_spill] sm:$0xff] %v6458_v21 }
 0x474   :  { %1093 = vmatpush.msra.mxu2 %v6442_v62  ;;  %v6461_v62 = vld [vmem:[#allocation10 + $0x1c0] sm:$0xff] }
 0x475   :  { %10107 = vst [vmem:[#allocation87_spill] sm:$0xff] %v6461_v62 }
 0x476   :  { %1094 = vmatpush.msra.mxu2 %v6445_v9  ;;  %v6464_v9 = vld [vmem:[#allocation10 + $0x1a0] sm:$0xff] }
 0x477   :  { %10108 = vst [vmem:[#allocation88_spill] sm:$0xff] %v6464_v9 }
 0x478   :  { %1095 = vmatpush.msra.mxu2 %v6448_v50  ;;  %v6467_v50 = vld [vmem:[#allocation10 + $0x180] sm:$0xff] }
 0x479   :  { %10109 = vst [vmem:[#allocation89_spill] sm:$0xff] %v6467_v50 }
 0x47a   :  { %1096 = vmatpush.msra.mxu2 %v6451_v26  ;;  %v6470_v26 = vld [vmem:[#allocation10 + $0x160] sm:$0xff] }
 0x47b   :  { %10110 = vst [vmem:[#allocation90_spill] sm:$0xff] %v6470_v26 }
 0x47c   :  { %1097 = vmatpush.msra.mxu2 %v6454_v3 }
 0x47d   :  { %1098 = vmatmul.f32.vlgmr.msra.gmra.mxu2 %v5875_v0  ;;  %v6473_v0 = vld [vmem:[#allocation10 + $0x140] sm:$0xff] }
 0x47e   :  { %1321 = vmatpush.msrb.mxu2 %v6458_v21  ;;  %10111 = vst [vmem:[#allocation91_spill] sm:$0xff] %v6473_v0  ;;  %v6476_v21 = vld [vmem:[#allocation10 + $0x120] sm:$0xff] }
 0x47f   :  { %10112 = vst [vmem:[#allocation92_spill] sm:$0xff] %v6476_v21 }
 0x480   :  { %1322 = vmatpush.msrb.mxu2 %v6461_v62  ;;  %v6479_v62 = vld [vmem:[#allocation10 + $0x100] sm:$0xff] }
 0x481   :  { %10113 = vst [vmem:[#allocation93_spill] sm:$0xff] %v6479_v62 }
 0x482   :  { %1323 = vmatpush.msrb.mxu2 %v6464_v9  ;;  %v6482_v9 = vld [vmem:[#allocation10 + $0xe0] sm:$0xff] }
 0x483   :  { %10114 = vst [vmem:[#allocation94_spill] sm:$0xff] %v6482_v9 }
 0x484   :  { %1324 = vmatpush.msrb.mxu2 %v6467_v50  ;;  %v6485_v50 = vld [vmem:[#allocation10 + $0xc0] sm:$0xff] }
 0x485   :  { %10115 = vst [vmem:[#allocation95_spill] sm:$0xff] %v6485_v50 }
 0x486   :  { %1325 = vmatpush.msrb.mxu2 %v6470_v26  ;;  %v6488_v26 = vld [vmem:[#allocation10 + $0xa0] sm:$0xff] }
 0x487   :  { %10116 = vst [vmem:[#allocation96_spill] sm:$0xff] %v6488_v26 }
 0x488   :  { %1326 = vmatpush.msrb.mxu2 %v6473_v0  ;;  %v6491_v0 = vld [vmem:[#allocation10 + $0x80] sm:$0xff] }
 0x489   :  { %10117 = vst [vmem:[#allocation97_spill] sm:$0xff] %v6491_v0 }
 0x48a   :  { %1327 = vmatpush.msrb.mxu2 %v6476_v21  ;;  %v6494_v21 = vld [vmem:[#allocation10 + $0x60] sm:$0xff] }
 0x48b   :  { %10118 = vst [vmem:[#allocation98_spill] sm:$0xff] %v6494_v21 }
 0x48c   :  { %1328 = vmatpush.msrb.mxu2 %v6479_v62  ;;  %v6497_v62 = vld [vmem:[#allocation10 + $0x40] sm:$0xff] }
 0x48d   :  { %10119 = vst [vmem:[#allocation99_spill] sm:$0xff] %v6497_v62 }
 0x48e   :  { %1329 = vmatpush.msrb.mxu2 %v6482_v9  ;;  %v6500_v9 = vld [vmem:[#allocation10 + $0x20] sm:$0xff] }
 0x48f   :  { %10120 = vst [vmem:[#allocation100_spill] sm:$0xff] %v6500_v9 }
 0x490   :  { %1330 = vmatpush.msrb.mxu2 %v6485_v50  ;;  %v6503_v50 = vld [vmem:[#allocation10] sm:$0xff] }
 0x491   :  { %10121 = vst [vmem:[#allocation101_spill] sm:$0xff] %v6503_v50 }
 0x492   :  { %1331 = vmatpush.msrb.mxu2 %v6488_v26  ;;  %v6506_v26 = vld [vmem:[#allocation10 + $0x3e8] sm:$0xff] }
 0x493   :  { %10122 = vst [vmem:[#allocation102_spill] sm:$0xff] %v6506_v26 }
 0x494   :  { %1332 = vmatpush.msrb.mxu2 %v6491_v0  ;;  %v6509_v0 = vld [vmem:[#allocation10 + $0x3c8] sm:$0xff] }
 0x495   :  { %10123 = vst [vmem:[#allocation103_spill] sm:$0xff] %v6509_v0 }
 0x496   :  { %1333 = vmatpush.msrb.mxu2 %v6494_v21  ;;  %v6512_v21 = vld [vmem:[#allocation10 + $0x3a8] sm:$0xff] }
 0x497   :  { %10124 = vst [vmem:[#allocation104_spill] sm:$0xff] %v6512_v21 }
 0x498   :  { %1334 = vmatpush.msrb.mxu2 %v6497_v62  ;;  %v6515_v62 = vld [vmem:[#allocation10 + $0x388] sm:$0xff] }
 0x499   :  { %10125 = vst [vmem:[#allocation105_spill] sm:$0xff] %v6515_v62 }
 0x49a   :  { %1335 = vmatpush.msrb.mxu2 %v6500_v9  ;;  %v6518_v9 = vld [vmem:[#allocation10 + $0x368] sm:$0xff] }
 0x49b   :  { %10126 = vst [vmem:[#allocation106_spill] sm:$0xff] %v6518_v9 }
 0x49c   :  { %1336 = vmatpush.msrb.mxu2 %v6503_v50  ;;  %v6521_v50 = vld [vmem:[#allocation10 + $0x348] sm:$0xff] }
 0x49d   :  { %10127 = vst [vmem:[#allocation107_spill] sm:$0xff] %v6521_v50 }
 0x49e   :  { %1401 = vmatpush.msra.mxu2 %v6506_v26  ;;  %v6524_v26 = vld [vmem:[#allocation10 + $0x328] sm:$0xff] }
 0x49f   :  { %10128 = vst [vmem:[#allocation108_spill] sm:$0xff] %v6524_v26 }
 0x4a0   :  { %1402 = vmatpush.msra.mxu2 %v6509_v0  ;;  %v6527_v0 = vld [vmem:[#allocation10 + $0x308] sm:$0xff] }
 0x4a1   :  { %10129 = vst [vmem:[#allocation109_spill] sm:$0xff] %v6527_v0 }
 0x4a2   :  { %1403 = vmatpush.msra.mxu2 %v6512_v21  ;;  %v6530_v21 = vld [vmem:[#allocation10 + $0x2e8] sm:$0xff] }
 0x4a3   :  { %10130 = vst [vmem:[#allocation110_spill] sm:$0xff] %v6530_v21 }
 0x4a4   :  { %1404 = vmatpush.msra.mxu2 %v6515_v62  ;;  %v6533_v62 = vld [vmem:[#allocation10 + $0x2c8] sm:$0xff] }
 0x4a5   :  { %10131 = vst [vmem:[#allocation111_spill] sm:$0xff] %v6533_v62 }
 0x4a6   :  { %1405 = vmatpush.msra.mxu2 %v6518_v9  ;;  %v6536_v9 = vld [vmem:[#allocation10 + $0x2a8] sm:$0xff] }
 0x4a7   :  { %10132 = vst [vmem:[#allocation112_spill] sm:$0xff] %v6536_v9 }
 0x4a8   :  { %1406 = vmatpush.msra.mxu2 %v6521_v50  ;;  %v6539_v50 = vld [vmem:[#allocation10 + $0x288] sm:$0xff] }
 0x4a9   :  { %10133 = vst [vmem:[#allocation113_spill] sm:$0xff] %v6539_v50 }
 0x4aa   :  { %1407 = vmatpush.msra.mxu2 %v6524_v26  ;;  %v6542_v26 = vld [vmem:[#allocation10 + $0x268] sm:$0xff] }
 0x4ab   :  { %10134 = vst [vmem:[#allocation114_spill] sm:$0xff] %v6542_v26 }
 0x4ac   :  { %1408 = vmatpush.msra.mxu2 %v6527_v0  ;;  %v6545_v0 = vld [vmem:[#allocation10 + $0x248] sm:$0xff] }
 0x4ad   :  { %10135 = vst [vmem:[#allocation115_spill] sm:$0xff] %v6545_v0 }
 0x4ae   :  { %1409 = vmatpush.msra.mxu2 %v6530_v21  ;;  %v6548_v21 = vld [vmem:[#allocation10 + $0x228] sm:$0xff] }
 0x4af   :  { %10136 = vst [vmem:[#allocation116_spill] sm:$0xff] %v6548_v21 }
 0x4b0   :  { %1410 = vmatpush.msra.mxu2 %v6533_v62  ;;  %v6551_v62 = vld [vmem:[#allocation10 + $0x208] sm:$0xff] }
 0x4b1   :  { %10137 = vst [vmem:[#allocation117_spill] sm:$0xff] %v6551_v62 }
 0x4b2   :  { %1411 = vmatpush.msra.mxu2 %v6536_v9 }
 0x4b4   :  { %1412 = vmatpush.msra.mxu2 %v6539_v50  ;;  %v6557_v50 = vld [vmem:[%s9341_s7] ss:$0 sm:$0xff] }
 0x4b5   :  { %10138 = vst [vmem:[#allocation118_spill] sm:$0xff] %v6557_v50 }
 0x4b6   :  { %1413 = vmatpush.msra.mxu2 %v6542_v26 }
 0x4b8   :  { %1414 = vmatpush.msra.mxu2 %v6545_v0  ;;  %v879_v0 = vpop.f32.mrf.mxu3 }
 0x4b9   :  { %v880_v2 = vadd.f32 %v879_v0, %v10140_v46  ;;  %v10141_v46 = vld [vmem:[#allocation73_spill] sm:$0xff] }
 0x4ba   :  { %1415 = vmatpush.msra.mxu2 %v6548_v21 }
 0x4bb   :  { %v900_v16 = vadd.f32 %v899_v48, %v880_v2  ;;  %v1000_v2 = vadd.f32 %v999_v22, %v10141_v46 }
 0x4bc   :  { %1416 = vmatpush.msra.mxu2 %v6551_v62 }
 0x4bd   :  { %v920_v54 = vadd.f32 %v919_v28, %v900_v16 }
 0x4bf   :  { %v4096_v30 = vmul.f32 -1.442695, %v920_v54  ;;  %v1079_v54 = vpop.f32.mrf.mxu1 }
 0x4c0   :  { %v847_v9 = vpop.f32.mrf.mxu2  ;;  %v959_v17 = vpop.f32.mrf.mxu3 }
 0x4c1   :  { %v848_v26 = vadd.f32 %v6557_v50, %v847_v9 }
 0x4c3   :  { %v851_v3 = vrot.slane %v848_v26, 1  ;;  %853 = vst [vmem:[#allocation16] sm:$0x1] %v848_v26 }
 0x4c5   :  { %854 = vst [vmem:[#allocation16 + $0x8] sm:$0x1] %v851_v3 }
 0x4c8   :  { %v939_v8 = vpop.f32.mrf.mxu2 }
 0x4c9   :  { %v940_v21 = vadd.f32 %v939_v8, %v10139_v4  ;;  %v1059_v4 = vpop.f32.mrf.mxu0 }
 0x4cb   :  { %v960_v62 = vadd.f32 %v959_v17, %v940_v21 }
 0x4cd   :  { %v980_v47 = vadd.f32 %v979_v49, %v960_v62  ;;  %v10142_v49 = vld [vmem:[#allocation74_spill] sm:$0xff] }
 0x4ce   :  { %v1060_v28 = vadd.f32 %v1059_v4, %v10142_v49 }
 0x4cf   :  { %v4097_v34 = vmul.f32 -1.442695, %v980_v47 }
 0x4d1   :  { %4159 = vpow2.f32 %v4097_v34 }
 0x4d2   :  { %4161 = vpow2.f32 %v4096_v30  ;;  %v1080_v30 = vadd.f32 %v1079_v54, %v1060_v28 }
 0x4d7   :  { %v4160_v9 = vpop.eup %4159 }
 0x4d8   :  { %v4162_v26 = vpop.eup %4161  ;;  %v1124_v3 = vadd.f32 1.0, %v4160_v9 }
 0x4d9   :  { %v1105_v50 = vadd.f32 1.0, %v4162_v26  ;;  %v1039_v26 = vpop.f32.mrf.mxu3 }
 0x4da   :  { %4163 = vrcp.f32 %v1124_v3  ;;  %v1136_v25 = vand.u32 2147483648, %v1124_v3  ;;  %vm1130_vm15 = vweird.f32 %v1124_v3  ;;  %v1134_v4 = vand.u32 2147483647, %v1124_v3 }
 0x4db   :  { %4165 = vrcp.f32 %v1105_v50  ;;  %vm1111_vm3 = vweird.f32 %v1105_v50 }
 0x4dc   :  { %vm1135_vm5 = vcmp.eq.f32.partialorder %v1134_v4, 8.507059e+37 }
 0x4e0   :  { %v4164_v8 = vpop.eup %4163  ;;  %v1019_v0 = vpop.f32.mrf.mxu2 }
 0x4e1   :  { %v4166_v21 = vpop.eup %4165  ;;  %v1126_v17 = vmul.f32 %v4164_v8, %v1124_v3  ;;  %v1020_v16 = vadd.f32 %v1019_v0, %v1000_v2  ;;  %vm1131_vm14 = vweird.f32 %v4164_v8  ;;  %v1115_v0 = vand.u32 2147483647, %v1105_v50 }
 0x4e2   :  { %v1107_v47 = vmul.f32 %v4166_v21, %v1105_v50  ;;  %vm1112_vm1 = vweird.f32 %v4166_v21  ;;  %vm1132_vm2 = vmor %vm1130_vm15, %vm1131_vm14 }
 0x4e3   :  { %v1127_v34 = vsub.f32 1.0, %v1126_v17  ;;  %v1040_v32 = vadd.f32 %v1039_v26, %v1020_v16  ;;  %v1117_v17 = vand.u32 2147483648, %v1105_v50  ;;  %vm1113_vm4 = vmor %vm1111_vm3, %vm1112_vm1  ;;  %vm1116_vm6 = vcmp.eq.f32.partialorder %v1115_v0, 8.507059e+37 }
 0x4e4   :  { %v1108_v48 = vsub.f32 1.0, %v1107_v47  ;;  %v1137_v47 = vor.u32 1.1754944e-38, %v1136_v25 }
 0x4e5   :  { %v1128_v52 = vmul.f32 %v4164_v8, %v1127_v34 }
 0x4e6   :  { %v1109_v57 = vmul.f32 %v4166_v21, %v1108_v48 }
 0x4e7   :  { %v1129_v61 = vadd.f32 %v4164_v8, %v1128_v52  ;;  %v1118_v52 = vor.u32 1.1754944e-38, %v1117_v17 }
 0x4e8   :  { %v1110_v22 = vadd.f32 %v4166_v21, %v1109_v57  ;;  %v10143_v57 = vld [vmem:[#allocation75_spill] sm:$0xff] }
 0x4e9   :  { %v1133_v2 = vsel %vm1132_vm2, %v4164_v8, %v1129_v61 }
 0x4ea   :  { %v1114_v54 = vsel %vm1113_vm4, %v4166_v21, %v1110_v22 }
 0x500   :  { %v1099_v62 = vpop.f32.mrf.mxu2 }
 0x501   :  { %v1100_v9 = vadd.f32 %v1099_v62, %v1080_v30  ;;  %v1138_v30 = vsel %vm1135_vm5, %v1137_v47, %v1133_v2  ;;  %v6573_v47 = vld [vmem:[#allocation10 + $0x5e8] sm:$0xff] }
 0x502   :  { %v1160_v16 = vmul.f32 %v1138_v30, %v10143_v57  ;;  %v6582_v30 = vld [vmem:[#allocation8 + $0x8] sm:$0xff]  ;;  %v6585_v57 = vld [vmem:[#allocation10 + $0x5a8] sm:$0xff] }
 0x503   :  { %v4098_v35 = vmul.f32 -1.442695, %v1100_v9 }
 0x505   :  { %4167 = vpow2.f32 %v4098_v35 }
 0x506   :  { %4169 = vtanh.f32 %v1040_v32  ;;  %v1119_v32 = vsel %vm1116_vm6, %v1118_v52, %v1114_v54  ;;  %v6576_v54 = vld [vmem:[#allocation8] sm:$0xff]  ;;  %v6579_v52 = vld [vmem:[#allocation10 + $0x5c8] sm:$0xff] }
 0x50b   :  { %v4168_v28 = vpop.eup %4167 }
 0x50c   :  { %v1144_v34 = vadd.f32 1.0, %v4168_v28  ;;  %v4170_v35 = vpop.eup %4169 }
 0x50d   :  { %v1161_v3 = vmul.f32 %v4170_v35, %v1119_v32 }
 0x50e   :  { %4171 = vrcp.f32 %v1144_v34  ;;  %v1156_v25 = vand.u32 2147483648, %v1144_v34  ;;  %v1154_v21 = vand.u32 2147483647, %v1144_v34  ;;  %vm1150_vm8 = vweird.f32 %v1144_v34 }
 0x50f   :  { %v6565_v62 = vadd.f32 %v1161_v3, %v1160_v16  ;;  %v6588_v16 = vld [vmem:[#allocation10 + $0x588] sm:$0xff] }
 0x510   :  { %v1157_v26 = vor.u32 1.1754944e-38, %v1156_v25  ;;  %vm1155_vm10 = vcmp.eq.f32.partialorder %v1154_v21, 8.507059e+37  ;;  %10144 = vst [vmem:[#allocation73_spill] sm:$0xff] %v6588_v16  ;;  %v6591_v3 = vld [vmem:[#allocation10 + $0x568] sm:$0xff] }
 0x511   :  { %4173 = vtanh.f32 %v6565_v62  ;;  %10145 = vst [vmem:[#allocation74_spill] sm:$0xff] %v6591_v3  ;;  %v6603_v25 = vld [vmem:[#allocation10 + $0x4e8] sm:$0xff] }
 0x512   :  { %10149 = vst [vmem:[#allocation121_spill] sm:$0xff] %v6603_v25  ;;  %v6609_v21 = vld [vmem:[#allocation10 + $0x4a8] sm:$0xff] }
 0x513   :  { %10151 = vst [vmem:[#allocation123_spill] sm:$0xff] %v6609_v21 }
 0x514   :  { %v4172_v48 = vpop.eup %4171 }
 0x515   :  { %v1146_v50 = vmul.f32 %v4172_v48, %v1144_v34  ;;  %vm1151_vm7 = vweird.f32 %v4172_v48 }
 0x516   :  { %vm1152_vm9 = vmor %vm1150_vm8, %vm1151_vm7 }
 0x517   :  { %v1147_v61 = vsub.f32 1.0, %v1146_v50  ;;  %v4174_v4 = vpop.eup %4173  ;;  %v6597_v50 = vld [vmem:[#allocation10 + $0x528] sm:$0xff] }
 0x518   :  { %10147 = vst [vmem:[#allocation119_spill] sm:$0xff] %v6597_v50 }
 0x519   :  { %v1148_v8 = vmul.f32 %v4172_v48, %v1147_v61  ;;  %v6600_v61 = vld [vmem:[#allocation10 + $0x508] sm:$0xff] }
 0x51a   :  { %10148 = vst [vmem:[#allocation120_spill] sm:$0xff] %v6600_v61 }
 0x51b   :  { %v1149_v9 = vadd.f32 %v4172_v48, %v1148_v8  ;;  %v6606_v8 = vld [vmem:[#allocation10 + $0x4c8] sm:$0xff] }
 0x51c   :  { %10150 = vst [vmem:[#allocation122_spill] sm:$0xff] %v6606_v8 }
 0x51d   :  { %v1153_v22 = vsel %vm1152_vm9, %v4172_v48, %v1149_v9  ;;  %v6594_v48 = vld [vmem:[#allocation10 + $0x548] sm:$0xff] }
 0x51e   :  { %v1158_v17 = vsel %vm1155_vm10, %v1157_v26, %v1153_v22  ;;  %10146 = vst [vmem:[#allocation75_spill] sm:$0xff] %v6594_v48  ;;  %v6612_v9 = vld [vmem:[#allocation10 + $0x488] sm:$0xff] }
 0x51f   :  { %v6568_v0 = vmul.f32 %v4174_v4, %v1158_v17  ;;  %10152 = vst [vmem:[#allocation124_spill] sm:$0xff] %v6612_v9  ;;  %v6615_v26 = vld [vmem:[#allocation10 + $0x468] sm:$0xff] }
 0x520   :  { %10153 = vst [vmem:[#allocation125_spill] sm:$0xff] %v6615_v26  ;;  %v6618_v22 = vld [vmem:[#allocation10 + $0x448] sm:$0xff] }
 0x521   :  { %1264 = vmatmul.f32.vlgmr.msra.gmra.mxu3 %v6568_v0  ;;  %v1167_v2 = vperm.slane %v6568_v0, 0  ;;  %v1166_v28 = vrot.slane %v6568_v0, 1  ;;  %10154 = vst [vmem:[#allocation126_spill] sm:$0xff] %v6618_v22  ;;  %v6621_v4 = vld [vmem:[#allocation10 + $0x428] sm:$0xff] }
 0x522   :  { %1421 = vmatpush.msra.mxu3 %v6573_v47  ;;  %10155 = vst [vmem:[#allocation127_spill] sm:$0xff] %v6621_v4  ;;  %v6624_v17 = vld [vmem:[#allocation10 + $0x408] sm:$0xff] }
 0x523   :  { %v1171_v34 = vmul.f32 %v6576_v54, %v1167_v2  ;;  %v1168_v35 = vperm.slane %v1166_v28, 0  ;;  %10156 = vst [vmem:[#allocation128_spill] sm:$0xff] %v6624_v17 }
 0x524   :  { %1422 = vmatpush.msra.mxu3 %v6579_v52 }
 0x525   :  { %1173 = vadd.xlane.f32.xlu1 %v1171_v34  ;;  %v1172_v32 = vmul.f32 %v6582_v30, %v1168_v35  ;;  %v10157_v34 = vld [vmem:[#allocation22_spill] sm:$0xff] }
 0x526   :  { %1423 = vmatpush.msra.mxu3 %v6585_v57 }
 0x527   :  { %1175 = vadd.xlane.f32.xlu2 %v1172_v32 }
 0x528   :  { %1424 = vmatpush.msra.mxu3 %v6588_v16 }
 0x52a   :  { %1425 = vmatpush.msra.mxu3 %v6591_v3 }
 0x52c   :  { %1426 = vmatpush.msra.mxu3 %v6594_v48 }
 0x52e   :  { %1427 = vmatpush.msra.mxu3 %v6597_v50 }
 0x530   :  { %1428 = vmatpush.msra.mxu3 %v6600_v61 }
 0x532   :  { %1429 = vmatpush.msra.mxu3 %v6603_v25 }
 0x534   :  { %1430 = vmatpush.msra.mxu3 %v6606_v8 }
 0x536   :  { %1431 = vmatpush.msra.mxu3 %v6609_v21 }
 0x538   :  { %1432 = vmatpush.msra.mxu3 %v6612_v9 }
 0x53a   :  { %1433 = vmatpush.msra.mxu3 %v6615_v26 }
 0x53c   :  { %1434 = vmatpush.msra.mxu3 %v6618_v22 }
 0x53e   :  { %1435 = vmatpush.msra.mxu3 %v6621_v4 }
 0x540   :  { %1436 = vmatpush.msra.mxu3 %v6624_v17 }
 0x598   :  { %v1174_v2 = vpop.xlane.xlu1 %1173 }
 0x599   :  { %v1179_v35 = vperm.slane %v1174_v2, %v10157_v34 }
 0x59a   :  { %v1176_v28 = vpop.xlane.xlu2 %1175 }
 0x59b   :  { %v1180_v32 = vperm.slane %v1176_v28, %v10157_v34 }
 0x59d   :  { %v1181_v26 = vsel %vm397_vm0, %v1180_v32, %v1179_v35 }
 0x59e   :  { %v1183_v9 = vsel %vm723_vm13, %v1181_v26, -inf }
 0x59f   :  { %1184 = vmax.xlane.f32.xlu0 %v1183_v9 }
 0x612   :  { %v1185_v22 = vpop.xlane.xlu0 %1184 }
 0x613   :  { %v1187_v21 = vperm.slane %v1185_v22, 0  ;;  %v1188_v8 = vperm.slane %v1185_v22, 1 }
 0x615   :  { %v1191_v25 = vsub.f32 %v1174_v2, %v1187_v21  ;;  %v1192_v61 = vsub.f32 %v1176_v28, %v1188_v8  ;;  %v1314_v2 = vld [vmem:[#allocation5 + $0x2] sm:$0x1]  ;;  %v1315_v28 = vld [vmem:[#allocation5 + $0xa] sm:$0x1] }
 0x616   :  { %v1318_v32 = vrot.slane %v1315_v28, 7  ;;  %v6678_v28 = vld [vmem:[#allocation10 + $0x450] sm:$0xff] }
 0x617   :  { %v1193_v4 = vmul.f32 1.442695, %v1191_v25  ;;  %v1195_v50 = vmul.f32 1.442695, %v1192_v61  ;;  %10171 = vst [vmem:[#allocation142_spill] sm:$0xff] %v6678_v28 }
 0x619   :  { %4175 = vpow2.f32 %v1193_v4 }
 0x61a   :  { %4177 = vpow2.f32 %v1195_v50 }
 0x61f   :  { %v4176_v17 = vpop.eup %4175 }
 0x620   :  { %1200 = vperm.xlu2 %4131, %v4176_v17   ;;  %v4178_v48 = vpop.eup %4177 }
 0x628   :  { %1203 = vperm.xlu2 %4131, %v4178_v48  }
 0x67a   :  { %v1201_v3 = vpop.permute.xlu2 %1200 }
 0x67b   :  { %v1205_v35 = vperm.slane %v1201_v3, %v10157_v34  ;;  %v6636_v3 = vsel %vm397_vm0, %v1318_v32, %v1314_v2  ;;  %v6675_v2 = vld [vmem:[#allocation10 + $0x470] sm:$0xff] }
 0x67c   :  { %1337 = vmatmul.f32.vlgmr.msrb.gmra.mxu2 %v6636_v3  ;;  %10170 = vst [vmem:[#allocation141_spill] sm:$0xff] %v6675_v2 }
 0x682   :  { %v1204_v16 = vpop.permute.xlu2 %1203 }
 0x683   :  { %v1206_v26 = vperm.slane %v1204_v16, %v10157_v34  ;;  %v6639_v16 = vld [vmem:[#allocation10 + $0x5f0] sm:$0xff] }
 0x684   :  { %10158 = vst [vmem:[#allocation129_spill] sm:$0xff] %v6639_v16  ;;  %1481 = vmatpush.msrb.mxu2 %v6639_v16 }
 0x685   :  { %v1207_v9 = vsel %vm397_vm0, %v1206_v26, %v1205_v35  ;;  %v6642_v35 = vld [vmem:[#allocation10 + $0x5d0] sm:$0xff] }
 0x686   :  { %v1209_v22 = vsel %vm723_vm13, %v1207_v9, 0.0  ;;  %10159 = vst [vmem:[#allocation130_spill] sm:$0xff] %v6642_v35  ;;  %1482 = vmatpush.msrb.mxu2 %v6642_v35  ;;  %v6651_v26 = vld [vmem:[#allocation10 + $0x570] sm:$0xff] }
 0x687   :  { %1210 = vadd.xlane.f32.xlu1 %v1209_v22  ;;  %10162 = vst [vmem:[#allocation133_spill] sm:$0xff] %v6651_v26  ;;  %v6654_v9 = vld [vmem:[#allocation10 + $0x550] sm:$0xff] }
 0x688   :  { %10163 = vst [vmem:[#allocation134_spill] sm:$0xff] %v6654_v9  ;;  %v6657_v22 = vld [vmem:[#allocation10 + $0x530] sm:$0xff] }
 0x689   :  { %10164 = vst [vmem:[#allocation135_spill] sm:$0xff] %v6657_v22 }
 0x6fa   :  { %v1211_v25 = vpop.xlane.xlu1 %1210 }
 0x6fb   :  { %4179 = vrcp.f32 %v1211_v25  ;;  %v6660_v25 = vld [vmem:[#allocation10 + $0x510] sm:$0xff] }
 0x6fc   :  { %10165 = vst [vmem:[#allocation136_spill] sm:$0xff] %v6660_v25 }
 0x701   :  { %v4180_v8 = vpop.eup %4179 }
 0x702   :  { %v1215_v61 = vperm.slane %v4180_v8, 1  ;;  %v1214_v21 = vperm.slane %v4180_v8, 0  ;;  %v6663_v8 = vld [vmem:[#allocation10 + $0x4f0] sm:$0xff] }
 0x703   :  { %10166 = vst [vmem:[#allocation137_spill] sm:$0xff] %v6663_v8 }
 0x704   :  { %v1219_v4 = vmul.f32 %v4178_v48, %v1215_v61  ;;  %v1218_v50 = vmul.f32 %v4176_v17, %v1214_v21  ;;  %v6645_v48 = vld [vmem:[#allocation10 + $0x5b0] sm:$0xff] }
 0x705   :  { %10160 = vst [vmem:[#allocation131_spill] sm:$0xff] %v6645_v48  ;;  %1483 = vmatpush.msrb.mxu2 %v6645_v48  ;;  %v6648_v17 = vld [vmem:[#allocation10 + $0x590] sm:$0xff] }
 0x706   :  { %1227 = vperm.xlu1 %4130, %v1219_v4   ;;  %1222 = vperm.xlu2 %4131, %v1218_v50   ;;  %10161 = vst [vmem:[#allocation132_spill] sm:$0xff] %v6648_v17  ;;  %v6666_v61 = vld [vmem:[#allocation10 + $0x4d0] sm:$0xff] }
 0x707   :  { %1484 = vmatpush.msrb.mxu2 %v6648_v17  ;;  %10167 = vst [vmem:[#allocation138_spill] sm:$0xff] %v6666_v61  ;;  %v6669_v21 = vld [vmem:[#allocation10 + $0x4b0] sm:$0xff] }
 0x708   :  { %10168 = vst [vmem:[#allocation139_spill] sm:$0xff] %v6669_v21  ;;  %v6672_v4 = vld [vmem:[#allocation10 + $0x490] sm:$0xff] }
 0x709   :  { %1485 = vmatpush.msrb.mxu2 %v6651_v26  ;;  %10169 = vst [vmem:[#allocation140_spill] sm:$0xff] %v6672_v4 }
 0x70b   :  { %1486 = vmatpush.msrb.mxu2 %v6654_v9 }
 0x70d   :  { %1487 = vmatpush.msrb.mxu2 %v6657_v22 }
 0x70f   :  { %1488 = vmatpush.msrb.mxu2 %v6660_v25 }
 0x711   :  { %1489 = vmatpush.msrb.mxu2 %v6663_v8 }
 0x713   :  { %1490 = vmatpush.msrb.mxu2 %v6666_v61  ;;  %v6682_v61 = vld [vmem:[#allocation10 + $0x430] sm:$0xff] }
 0x714   :  { %10172 = vst [vmem:[#allocation143_spill] sm:$0xff] %v6682_v61 }
 0x715   :  { %1491 = vmatpush.msrb.mxu2 %v6669_v21  ;;  %v6685_v21 = vld [vmem:[#allocation10 + $0x410] sm:$0xff] }
 0x717   :  { %1492 = vmatpush.msrb.mxu2 %v6672_v4 }
 0x719   :  { %1493 = vmatpush.msrb.mxu2 %v6675_v2 }
 0x71b   :  { %1494 = vmatpush.msrb.mxu2 %v6678_v28 }
 0x71d   :  { %1495 = vmatpush.msrb.mxu2 %v6682_v61 }
 0x71f   :  { %1496 = vmatpush.msrb.mxu2 %v6685_v21 }
 0x760   :  { %v1223_v50 = vpop.permute.xlu2 %1222 }
 0x761   :  { %v1230_v32 = vmul.f32 %v6576_v54, %v1223_v50 }
 0x763   :  { %v1232_v4 = vrot.slane %v1230_v32, 4 }
 0x765   :  { %v1233_v8 = vadd.f32 %v1232_v4, %v1230_v32  ;;  %v6766_v4 = vld [vmem:[#allocation13 + $0x30] sm:$0xff]  ;;  %v6787_v32 = vld [vmem:[#allocation13 + $0x18] sm:$0xff] }
 0x766   :  { %10173 = vst [vmem:[#allocation144_spill] sm:$0xff] %v6787_v32 }
 0x767   :  { %v1234_v22 = vrot.slane %v1233_v8, 2 }
 0x769   :  { %v1235_v26 = vadd.f32 %v1234_v22, %v1233_v8  ;;  %v6752_v22 = vld [vmem:[#allocation13 + $0x40] sm:$0xff]  ;;  %v6759_v8 = vld [vmem:[#allocation13 + $0x38] sm:$0xff] }
 0x76b   :  { %v1236_v48 = vrot.slane %v1235_v26, 1 }
 0x76d   :  { %v1237_v16 = vadd.f32 %v1236_v48, %v1235_v26  ;;  %v6728_v48 = vld [vmem:[#allocation10 + $0x178] sm:$0xff]  ;;  %v6745_v26 = vld [vmem:[#allocation13 + $0x48] sm:$0xff] }
 0x778   :  { %v1228_v25 = vpop.permute.xlu1 %1227 }
 0x779   :  { %v1231_v2 = vmul.f32 %v6582_v30, %v1228_v25  ;;  %v6696_v25 = vld [vmem:[#allocation10 + $0x1f8] sm:$0xff] }
 0x77b   :  { %v1238_v9 = vrot.slane %v1231_v2, 4 }
 0x77d   :  { %v1239_v17 = vadd.f32 %v1238_v9, %v1231_v2  ;;  %v6699_v9 = vld [vmem:[#allocation13 + $0x78] sm:$0xff]  ;;  %v6773_v2 = vld [vmem:[#allocation13 + $0x28] sm:$0xff] }
 0x77f   :  { %v1240_v28 = vrot.slane %v1239_v17, 2 }
 0x781   :  { %v1241_v50 = vadd.f32 %v1240_v28, %v1239_v17  ;;  %v6738_v17 = vld [vmem:[#allocation13 + $0x50] sm:$0xff]  ;;  %v6780_v28 = vld [vmem:[#allocation13 + $0x20] sm:$0xff] }
 0x783   :  { %v1242_v35 = vrot.slane %v1241_v50, 1 }
 0x785   :  { %v1243_v34 = vadd.f32 %v1242_v35, %v1241_v50  ;;  %v6713_v35 = vld [vmem:[#allocation13 + $0x68] sm:$0xff]  ;;  %v6794_v50 = vld [vmem:[#allocation13 + $0x10] sm:$0xff] }
 0x787   :  { %v6690_v61 = vsel %vm397_vm0, %v1243_v34, %v1237_v16  ;;  %v6703_v34 = vld [vmem:[#allocation10 + $0x1d8] sm:$0xff] }
 0x788   :  { %1284 = vmatmul.f32.vlgmr.msrb.gmra.mxu0 %v6690_v61  ;;  %1357 = vmatmul.f32.vlgmr.msrb.gmra.mxu3 %v6690_v61  ;;  %v6706_v16 = vld [vmem:[#allocation13 + $0x70] sm:$0xff] }
 0x789   :  { %1417 = vmatmul.f32.vlgmr.msra.gmra.mxu2 %v6690_v61  ;;  %1441 = vmatpush.msrb.mxu0 %v6037_v7  ;;  %v6710_v7 = vld [vmem:[#allocation10 + $0x1b8] sm:$0xff] }
 0x78a   :  { %1501 = vmatpush.msrb.mxu3 %v6696_v25  ;;  %1707 = vmatpush.msra.mxu2 %v6699_v9 }
 0x78b   :  { %1442 = vmatpush.msrb.mxu0 %v6042_v11  ;;  %v6721_v11 = vld [vmem:[#allocation10 + $0x198] sm:$0xff] }
 0x78c   :  { %1502 = vmatpush.msrb.mxu3 %v6703_v34  ;;  %1708 = vmatpush.msra.mxu2 %v6706_v16 }
 0x78d   :  { %1443 = vmatpush.msrb.mxu0 %v6047_v10  ;;  %v6724_v10 = vld [vmem:[#allocation13 + $0x60] sm:$0xff] }
 0x78e   :  { %1503 = vmatpush.msrb.mxu3 %v6710_v7  ;;  %1709 = vmatpush.msra.mxu2 %v6713_v35 }
 0x78f   :  { %1444 = vmatpush.msrb.mxu0 %v6052_v14  ;;  %v6731_v14 = vld [vmem:[#allocation13 + $0x58] sm:$0xff] }
 0x790   :  { %1377 = vmatmul.f32.vlgmr.msra.gmra.mxu0 %v6568_v0  ;;  %1437 = vmatmul.f32.vlgmr.msra.gmra.mxu3 %v6568_v0 }
 0x791   :  { %1445 = vmatpush.msrb.mxu0 %v6057_v63  ;;  %1497 = vmatmul.f32.vlgmr.msrb.gmra.mxu2 %v6568_v0  ;;  %v6735_v63 = vld [vmem:[#allocation10 + $0x158] sm:$0xff] }
 0x792   :  { %1504 = vmatpush.msrb.mxu3 %v6721_v11  ;;  %1710 = vmatpush.msra.mxu2 %v6724_v10 }
 0x793   :  { %1446 = vmatpush.msrb.mxu0 %v6063_v18  ;;  %v6742_v18 = vld [vmem:[#allocation10 + $0x138] sm:$0xff] }
 0x794   :  { %1505 = vmatpush.msrb.mxu3 %v6728_v48  ;;  %1711 = vmatpush.msra.mxu2 %v6731_v14 }
 0x795   :  { %1447 = vmatpush.msrb.mxu0 %v6068_v19  ;;  %v6749_v19 = vld [vmem:[#allocation10 + $0x118] sm:$0xff] }
 0x796   :  { %1506 = vmatpush.msrb.mxu3 %v6735_v63  ;;  %1712 = vmatpush.msra.mxu2 %v6738_v17 }
 0x797   :  { %1448 = vmatpush.msrb.mxu0 %v6073_v23  ;;  %v6756_v23 = vld [vmem:[#allocation10 + $0xf8] sm:$0xff] }
 0x798   :  { %1507 = vmatpush.msrb.mxu3 %v6742_v18  ;;  %1713 = vmatpush.msra.mxu2 %v6745_v26 }
 0x799   :  { %1449 = vmatpush.msrb.mxu0 %v6078_v31  ;;  %v6763_v31 = vld [vmem:[#allocation10 + $0xd8] sm:$0xff] }
 0x79a   :  { %1508 = vmatpush.msrb.mxu3 %v6749_v19  ;;  %1714 = vmatpush.msra.mxu2 %v6752_v22 }
 0x79b   :  { %1450 = vmatpush.msrb.mxu0 %v6083_v12  ;;  %v6770_v12 = vld [vmem:[#allocation10 + $0xb8] sm:$0xff] }
 0x79c   :  { %1509 = vmatpush.msrb.mxu3 %v6756_v23  ;;  %1715 = vmatpush.msra.mxu2 %v6759_v8 }
 0x79d   :  { %1451 = vmatpush.msrb.mxu0 %v6088_v38  ;;  %v6777_v38 = vld [vmem:[#allocation10 + $0x98] sm:$0xff] }
 0x79e   :  { %1510 = vmatpush.msrb.mxu3 %v6763_v31  ;;  %1716 = vmatpush.msra.mxu2 %v6766_v4 }
 0x79f   :  { %1452 = vmatpush.msrb.mxu0 %v6093_v39  ;;  %v6784_v39 = vld [vmem:[#allocation10 + $0x78] sm:$0xff] }
 0x7a0   :  { %1511 = vmatpush.msrb.mxu3 %v6770_v12  ;;  %1717 = vmatpush.msra.mxu2 %v6773_v2 }
 0x7a1   :  { %1453 = vmatpush.msrb.mxu0 %v6098_v43  ;;  %v6791_v43 = vld [vmem:[#allocation10 + $0x58] sm:$0xff] }
 0x7a2   :  { %1512 = vmatpush.msrb.mxu3 %v6777_v38  ;;  %1718 = vmatpush.msra.mxu2 %v6780_v28 }
 0x7a3   :  { %1454 = vmatpush.msrb.mxu0 %v6103_v55  ;;  %v6799_v55 = vld [vmem:[#allocation10 + $0x38] sm:$0xff] }
 0x7a4   :  { %1513 = vmatpush.msrb.mxu3 %v6784_v39  ;;  %1719 = vmatpush.msra.mxu2 %v6787_v32  ;;  %10174 = vst [vmem:[#allocation145_spill] sm:$0xff] %v6799_v55  ;;  %v6803_v32 = vld [vmem:[#allocation13 + $0x8] sm:$0xff] }
 0x7a5   :  { %1455 = vmatpush.msrb.mxu0 %v6108_v42  ;;  %v6807_v42 = vld [vmem:[#allocation10 + $0x18] sm:$0xff] }
 0x7a6   :  { %1514 = vmatpush.msrb.mxu3 %v6791_v43  ;;  %1720 = vmatpush.msra.mxu2 %v6794_v50  ;;  %10175 = vst [vmem:[#allocation146_spill] sm:$0xff] %v6807_v42 }
 0x7a7   :  { %1456 = vmatpush.msrb.mxu0 %v6113_v58  ;;  %v6811_v58 = vld [vmem:[#allocation13] sm:$0xff] }
 0x7a8   :  { %1515 = vmatpush.msrb.mxu3 %v6799_v55  ;;  %1457 = vmatmul.f32.vlgmr.msrb.gmra.mxu0 %v6636_v3  ;;  %v6818_v55 = vld [vmem:[#allocation10 + $0x3e0] sm:$0xff] }
 0x7a9   :  { %1521 = vmatpush.msra.mxu0 %v6118_v59  ;;  %1721 = vmatpush.msra.mxu2 %v6803_v32  ;;  %v6815_v59 = vld [vmem:[#allocation13 + $0xf8] sm:$0xff] }
 0x7aa   :  { %1516 = vmatpush.msrb.mxu3 %v6807_v42  ;;  %10176 = vst [vmem:[#allocation147_spill] sm:$0xff] %v6815_v59  ;;  %v6826_v42 = vld [vmem:[#allocation10 + $0x378] sm:$0xff] }
 0x7ab   :  { %1522 = vmatpush.msra.mxu0 %v6126_v1  ;;  %1517 = vmatmul.f32.vlgmr.msrb.gmra.mxu3 %v6636_v3  ;;  %v6822_v1 = vld [vmem:[#allocation13 + $0xf0] sm:$0xff]  ;;  %10178 = vst [vmem:[#allocation149_spill] sm:$0xff] %v6826_v42 }
 0x7ac   :  { %1722 = vmatpush.msra.mxu2 %v6811_v58  ;;  %1727 = vmatpush.msra.mxu3 %v6815_v59  ;;  %10177 = vst [vmem:[#allocation148_spill] sm:$0xff] %v6822_v1  ;;  %v6833_v59 = vld [vmem:[#allocation10 + $0x358] sm:$0xff] }
 0x7ad   :  { %1523 = vmatpush.msra.mxu0 %v6134_v33  ;;  %v6829_v33 = vld [vmem:[#allocation13 + $0xe8] sm:$0xff]  ;;  %10180 = vst [vmem:[#allocation151_spill] sm:$0xff] %v6833_v59 }
 0x7ae   :  { %1800 = vmatpush.msrb.mxu2 %v6818_v55  ;;  %1728 = vmatpush.msra.mxu3 %v6822_v1  ;;  %10179 = vst [vmem:[#allocation150_spill] sm:$0xff] %v6829_v33 }
 0x7af   :  { %1524 = vmatpush.msra.mxu0 %v6142_v6  ;;  %v6836_v6 = vld [vmem:[#allocation13 + $0xe0] sm:$0xff] }
 0x7b0   :  { %1801 = vmatpush.msrb.mxu2 %v6159_v13  ;;  %1729 = vmatpush.msra.mxu3 %v6829_v33  ;;  %10181 = vst [vmem:[#allocation152_spill] sm:$0xff] %v6836_v6  ;;  %v6840_v13 = vld [vmem:[#allocation10 + $0x338] sm:$0xff] }
 0x7b1   :  { %1525 = vmatpush.msra.mxu0 %v6826_v42  ;;  %10182 = vst [vmem:[#allocation153_spill] sm:$0xff] %v6840_v13  ;;  %v6843_v42 = vld [vmem:[#allocation13 + $0xd8] sm:$0xff] }
 0x7b2   :  { %1802 = vmatpush.msrb.mxu2 %v6167_v20  ;;  %1730 = vmatpush.msra.mxu3 %v6836_v6  ;;  %10183 = vst [vmem:[#allocation154_spill] sm:$0xff] %v6843_v42  ;;  %v6847_v20 = vld [vmem:[#allocation10 + $0x318] sm:$0xff] }
 0x7b3   :  { %1526 = vmatpush.msra.mxu0 %v6833_v59  ;;  %10184 = vst [vmem:[#allocation155_spill] sm:$0xff] %v6847_v20  ;;  %v6850_v59 = vld [vmem:[#allocation13 + $0xd0] sm:$0xff] }
 0x7b4   :  { %1803 = vmatpush.msrb.mxu2 %v6175_v29  ;;  %1731 = vmatpush.msra.mxu3 %v6843_v42  ;;  %10185 = vst [vmem:[#allocation156_spill] sm:$0xff] %v6850_v59  ;;  %v6854_v29 = vld [vmem:[#allocation10 + $0x2f8] sm:$0xff] }
 0x7b5   :  { %1527 = vmatpush.msra.mxu0 %v6840_v13  ;;  %10186 = vst [vmem:[#allocation157_spill] sm:$0xff] %v6854_v29  ;;  %v6857_v13 = vld [vmem:[#allocation13 + $0xc8] sm:$0xff] }
 0x7b6   :  { %1804 = vmatpush.msrb.mxu2 %v6183_v36  ;;  %1732 = vmatpush.msra.mxu3 %v6850_v59  ;;  %10187 = vst [vmem:[#allocation158_spill] sm:$0xff] %v6857_v13  ;;  %v6861_v36 = vld [vmem:[#allocation10 + $0x2d8] sm:$0xff] }
 0x7b7   :  { %1528 = vmatpush.msra.mxu0 %v6847_v20  ;;  %10188 = vst [vmem:[#allocation159_spill] sm:$0xff] %v6861_v36  ;;  %v6864_v20 = vld [vmem:[#allocation13 + $0xc0] sm:$0xff] }
 0x7b8   :  { %1805 = vmatpush.msrb.mxu2 %v6191_v56  ;;  %1733 = vmatpush.msra.mxu3 %v6857_v13  ;;  %10189 = vst [vmem:[#allocation160_spill] sm:$0xff] %v6864_v20  ;;  %v6868_v56 = vld [vmem:[#allocation10 + $0x2b8] sm:$0xff] }
 0x7b9   :  { %1529 = vmatpush.msra.mxu0 %v6854_v29  ;;  %10190 = vst [vmem:[#allocation161_spill] sm:$0xff] %v6868_v56  ;;  %v6871_v29 = vld [vmem:[#allocation13 + $0xb8] sm:$0xff] }
 0x7ba   :  { %1806 = vmatpush.msrb.mxu2 %v6199_v40  ;;  %1734 = vmatpush.msra.mxu3 %v6864_v20  ;;  %10191 = vst [vmem:[#allocation162_spill] sm:$0xff] %v6871_v29  ;;  %v6875_v40 = vld [vmem:[#allocation10 + $0x298] sm:$0xff] }
 0x7bb   :  { %1530 = vmatpush.msra.mxu0 %v6861_v36  ;;  %10192 = vst [vmem:[#allocation163_spill] sm:$0xff] %v6875_v40  ;;  %v6878_v36 = vld [vmem:[#allocation13 + $0xb0] sm:$0xff] }
 0x7bc   :  { %1807 = vmatpush.msrb.mxu2 %v6207_v45  ;;  %1735 = vmatpush.msra.mxu3 %v6871_v29  ;;  %10193 = vst [vmem:[#allocation164_spill] sm:$0xff] %v6878_v36  ;;  %v6882_v45 = vld [vmem:[#allocation10 + $0x278] sm:$0xff] }
 0x7bd   :  { %1531 = vmatpush.msra.mxu0 %v6868_v56  ;;  %10194 = vst [vmem:[#allocation165_spill] sm:$0xff] %v6882_v45  ;;  %v6885_v56 = vld [vmem:[#allocation13 + $0xa8] sm:$0xff] }
 0x7be   :  { %1808 = vmatpush.msrb.mxu2 %v6215_v53  ;;  %1736 = vmatpush.msra.mxu3 %v6878_v36  ;;  %10195 = vst [vmem:[#allocation166_spill] sm:$0xff] %v6885_v56  ;;  %v6889_v53 = vld [vmem:[#allocation10 + $0x258] sm:$0xff] }
 0x7bf   :  { %1532 = vmatpush.msra.mxu0 %v6875_v40  ;;  %10196 = vst [vmem:[#allocation167_spill] sm:$0xff] %v6889_v53  ;;  %v6892_v40 = vld [vmem:[#allocation13 + $0xa0] sm:$0xff] }
 0x7c0   :  { %1809 = vmatpush.msrb.mxu2 %v6223_v5  ;;  %1737 = vmatpush.msra.mxu3 %v6885_v56  ;;  %10197 = vst [vmem:[#allocation168_spill] sm:$0xff] %v6892_v40  ;;  %v6896_v5 = vld [vmem:[#allocation10 + $0x238] sm:$0xff] }
 0x7c1   :  { %1533 = vmatpush.msra.mxu0 %v6882_v45  ;;  %10198 = vst [vmem:[#allocation169_spill] sm:$0xff] %v6896_v5  ;;  %v6899_v45 = vld [vmem:[#allocation13 + $0x98] sm:$0xff] }
 0x7c2   :  { %1810 = vmatpush.msrb.mxu2 %v6231_v44  ;;  %1738 = vmatpush.msra.mxu3 %v6892_v40  ;;  %10199 = vst [vmem:[#allocation170_spill] sm:$0xff] %v6899_v45  ;;  %v6903_v44 = vld [vmem:[#allocation10 + $0x218] sm:$0xff] }
 0x7c3   :  { %1534 = vmatpush.msra.mxu0 %v6889_v53  ;;  %10200 = vst [vmem:[#allocation171_spill] sm:$0xff] %v6903_v44  ;;  %v6906_v53 = vld [vmem:[#allocation13 + $0x90] sm:$0xff]  ;;  %v10250_v56 = vld [vmem:[#allocation67_spill] sm:$0xff] }
 0x7c4   :  { %1811 = vmatpush.msrb.mxu2 %v6237_v24  ;;  %1739 = vmatpush.msra.mxu3 %v6899_v45  ;;  %10201 = vst [vmem:[#allocation172_spill] sm:$0xff] %v6906_v53  ;;  %v6911_v24 = vld [vmem:[#allocation13 + $0x88] sm:$0xff]  ;;  %v10244_v45 = vld [vmem:[#allocation51_spill] sm:$0xff] }
 0x7c5   :  { %1535 = vmatpush.msra.mxu0 %v6896_v5  ;;  %10202 = vst [vmem:[#allocation173_spill] sm:$0xff] %v6911_v24  ;;  %v6914_v5 = vld [vmem:[#allocation14 + $0x78] sm:$0xff] }
 0x7c6   :  { %1812 = vmatpush.msrb.mxu2 %v6246_v51  ;;  %1740 = vmatpush.msra.mxu3 %v6906_v53  ;;  %10203 = vst [vmem:[#allocation174_spill] sm:$0xff] %v6914_v5  ;;  %v6918_v51 = vld [vmem:[#allocation13 + $0x80] sm:$0xff] }
 0x7c7   :  { %1536 = vmatpush.msra.mxu0 %v6903_v44  ;;  %10204 = vst [vmem:[#allocation175_spill] sm:$0xff] %v6918_v51  ;;  %v6921_v44 = vld [vmem:[#allocation14 + $0x70] sm:$0xff]  ;;  %v6924_v53 = vld [vmem:[#allocation10 + $0x5e0] sm:$0xff] }
 0x7c8   :  { %1537 = vmatmul.f32.vlgmr.msra.gmra.mxu0 %v6690_v61  ;;  %1813 = vmatpush.msrb.mxu2 %v6254_v37  ;;  %10205 = vst [vmem:[#allocation176_spill] sm:$0xff] %v6921_v44  ;;  %v6928_v37 = vld [vmem:[#allocation14 + $0x68] sm:$0xff] }
 0x7c9   :  { %1741 = vmatpush.msra.mxu3 %v6911_v24  ;;  %1748 = vmatpush.msrb.mxu0 %v6914_v5  ;;  %10206 = vst [vmem:[#allocation177_spill] sm:$0xff] %v6924_v53  ;;  %v6931_v5 = vld [vmem:[#allocation10 + $0x5c0] sm:$0xff]  ;;  %v10241_v24 = vld [vmem:[#allocation42_spill] sm:$0xff] }
 0x7ca   :  { %1814 = vmatpush.msrb.mxu2 %v6263_v41  ;;  %10207 = vst [vmem:[#allocation178_spill] sm:$0xff] %v6928_v37  ;;  %v6934_v41 = vld [vmem:[#allocation14 + $0x60] sm:$0xff] }
 0x7cb   :  { %1742 = vmatpush.msra.mxu3 %v6918_v51  ;;  %1749 = vmatpush.msrb.mxu0 %v6921_v44  ;;  %10208 = vst [vmem:[#allocation179_spill] sm:$0xff] %v6931_v5  ;;  %v6937_v51 = vld [vmem:[#allocation10 + $0x5a0] sm:$0xff] }
 0x7cc   :  { %1815 = vmatpush.msrb.mxu2 %v6271_v60  ;;  %10209 = vst [vmem:[#allocation180_spill] sm:$0xff] %v6934_v41  ;;  %v6940_v44 = vld [vmem:[#allocation14 + $0x58] sm:$0xff] }
 0x7cd   :  { %1820 = vmatpush.msrb.mxu3 %v6924_v53  ;;  %1750 = vmatpush.msrb.mxu0 %v6928_v37  ;;  %10210 = vst [vmem:[#allocation181_spill] sm:$0xff] %v6937_v51  ;;  %v6943_v60 = vld [vmem:[#allocation10 + $0x580] sm:$0xff]  ;;  %v10238_v53 = vld [vmem:[#allocation66_spill] sm:$0xff] }
 0x7ce   :  { %10211 = vst [vmem:[#allocation182_spill] sm:$0xff] %v6940_v44  ;;  %v6947_v37 = vld [vmem:[#allocation10 + $0x560] sm:$0xff] }
 0x7cf   :  { %1821 = vmatpush.msrb.mxu3 %v6931_v5  ;;  %1751 = vmatpush.msrb.mxu0 %v6934_v41  ;;  %10212 = vst [vmem:[#allocation183_spill] sm:$0xff] %v6943_v60  ;;  %v6951_v41 = vld [vmem:[#allocation10 + $0x540] sm:$0xff] }
 0x7d0   :  { %10213 = vst [vmem:[#allocation184_spill] sm:$0xff] %v6947_v37  ;;  %v6955_v5 = vld [vmem:[#allocation10 + $0x520] sm:$0xff] }
 0x7d1   :  { %1822 = vmatpush.msrb.mxu3 %v6937_v51  ;;  %1752 = vmatpush.msrb.mxu0 %v6940_v44  ;;  %10214 = vst [vmem:[#allocation185_spill] sm:$0xff] %v6951_v41  ;;  %v10215_v51 = vld [vmem:[#allocation36_spill] sm:$0xff]  ;;  %v10217_v44 = vld [vmem:[#allocation35_spill] sm:$0xff] }
 0x7d2   :  { %10216 = vst [vmem:[#allocation36_spill] sm:$0xff] %v6955_v5 }
 0x7d3   :  { %1823 = vmatpush.msrb.mxu3 %v6943_v60  ;;  %1753 = vmatpush.msrb.mxu0 %v6151_v27  ;;  %v6959_v60 = vld [vmem:[#allocation10 + $0x500] sm:$0xff]  ;;  %v10219_v27 = vld [vmem:[#allocation37_spill] sm:$0xff] }
 0x7d4   :  { %10218 = vst [vmem:[#allocation35_spill] sm:$0xff] %v6959_v60 }
 0x7d5   :  { %1824 = vmatpush.msrb.mxu3 %v6947_v37  ;;  %1754 = vmatpush.msrb.mxu0 %v6157_v15  ;;  %v6963_v37 = vld [vmem:[#allocation10 + $0x4e0] sm:$0xff] }
 0x7d6   :  { %10220 = vst [vmem:[#allocation37_spill] sm:$0xff] %v6963_v37  ;;  %v10221_v15 = vld [vmem:[#allocation39_spill] sm:$0xff] }
 0x7d7   :  { %1825 = vmatpush.msrb.mxu3 %v6951_v41  ;;  %1755 = vmatpush.msrb.mxu0 %v10215_v51  ;;  %v6967_v41 = vld [vmem:[#allocation10 + $0x4c0] sm:$0xff]  ;;  %v10223_v51 = vld [vmem:[#allocation41_spill] sm:$0xff] }
 0x7d8   :  { %10222 = vst [vmem:[#allocation39_spill] sm:$0xff] %v6967_v41 }
 0x7d9   :  { %1826 = vmatpush.msrb.mxu3 %v6955_v5  ;;  %1756 = vmatpush.msrb.mxu0 %v10217_v44  ;;  %v6971_v5 = vld [vmem:[#allocation10 + $0x4a0] sm:$0xff] }
 0x7da   :  { %10224 = vst [vmem:[#allocation41_spill] sm:$0xff] %v6971_v5  ;;  %v10225_v44 = vld [vmem:[#allocation43_spill] sm:$0xff] }
 0x7db   :  { %1827 = vmatpush.msrb.mxu3 %v6959_v60  ;;  %1757 = vmatpush.msrb.mxu0 %v10219_v27  ;;  %v6975_v60 = vld [vmem:[#allocation10 + $0x480] sm:$0xff]  ;;  %v10227_v27 = vld [vmem:[#allocation46_spill] sm:$0xff] }
 0x7dc   :  { %10226 = vst [vmem:[#allocation43_spill] sm:$0xff] %v6975_v60 }
 0x7dd   :  { %1828 = vmatpush.msrb.mxu3 %v6963_v37  ;;  %1758 = vmatpush.msrb.mxu0 %v10221_v15  ;;  %v6979_v37 = vld [vmem:[#allocation10 + $0x460] sm:$0xff]  ;;  %v10229_v15 = vld [vmem:[#allocation49_spill] sm:$0xff] }
 0x7de   :  { %10228 = vst [vmem:[#allocation46_spill] sm:$0xff] %v6979_v37 }
 0x7df   :  { %1829 = vmatpush.msrb.mxu3 %v6967_v41  ;;  %1759 = vmatpush.msrb.mxu0 %v10223_v51  ;;  %v6983_v41 = vld [vmem:[#allocation10 + $0x440] sm:$0xff] }
 0x7e0   :  { %10230 = vst [vmem:[#allocation49_spill] sm:$0xff] %v6983_v41  ;;  %v10231_v51 = vld [vmem:[#allocation52_spill] sm:$0xff] }
 0x7e1   :  { %1830 = vmatpush.msrb.mxu3 %v6971_v5  ;;  %1760 = vmatpush.msrb.mxu0 %v10225_v44  ;;  %v6987_v5 = vld [vmem:[#allocation10 + $0x420] sm:$0xff] }
 0x7e2   :  { %10232 = vst [vmem:[#allocation52_spill] sm:$0xff] %v6987_v5  ;;  %v10233_v44 = vld [vmem:[#allocation55_spill] sm:$0xff] }
 0x7e3   :  { %1831 = vmatpush.msrb.mxu3 %v6975_v60  ;;  %1761 = vmatpush.msrb.mxu0 %v10227_v27  ;;  %v6991_v60 = vld [vmem:[#allocation10 + $0x400] sm:$0xff]  ;;  %v10235_v27 = vld [vmem:[#allocation58_spill] sm:$0xff] }
 0x7e4   :  { %10234 = vst [vmem:[#allocation55_spill] sm:$0xff] %v6991_v60 }
 0x7e5   :  { %1832 = vmatpush.msrb.mxu3 %v6979_v37  ;;  %1762 = vmatpush.msrb.mxu0 %v10229_v15  ;;  %v10236_v37 = vld [vmem:[#allocation61_spill] sm:$0xff]  ;;  %v10237_v15 = vld [vmem:[#allocation63_spill] sm:$0xff] }
 0x7e7   :  { %1833 = vmatpush.msrb.mxu3 %v6983_v41  ;;  %1763 = vmatpush.msrb.mxu0 %v10231_v51  ;;  %v10239_v41 = vld [vmem:[#allocation38_spill] sm:$0xff]  ;;  %v10240_v51 = vld [vmem:[#allocation40_spill] sm:$0xff] }
 0x7e9   :  { %1834 = vmatpush.msrb.mxu3 %v6987_v5  ;;  %1840 = vmatpush.msra.mxu0 %v10233_v44  ;;  %v10242_v5 = vld [vmem:[#allocation45_spill] sm:$0xff]  ;;  %v10243_v44 = vld [vmem:[#allocation48_spill] sm:$0xff] }
 0x7eb   :  { %1835 = vmatpush.msrb.mxu3 %v6991_v60  ;;  %1841 = vmatpush.msra.mxu0 %v10235_v27  ;;  %v10245_v60 = vld [vmem:[#allocation54_spill] sm:$0xff]  ;;  %v10246_v27 = vld [vmem:[#allocation57_spill] sm:$0xff] }
 0x7ed   :  { %1842 = vmatpush.msra.mxu0 %v10236_v37  ;;  %v1265_v37 = vpop.f32.mrf.mxu3 }
 0x7ef   :  { %1843 = vmatpush.msra.mxu0 %v10237_v15  ;;  %v10247_v15 = vld [vmem:[#allocation60_spill] sm:$0xff] }
 0x7f1   :  { %1844 = vmatpush.msra.mxu0 %v10238_v53  ;;  %v10248_v53 = vld [vmem:[#allocation64_spill] sm:$0xff] }
 0x7f3   :  { %1845 = vmatpush.msra.mxu0 %v10239_v41  ;;  %v10249_v41 = vld [vmem:[#allocation69_spill] sm:$0xff] }
 0x7f4   :  { %v1266_v40 = vadd.f32 %v10249_v41, %v1265_v37  ;;  %v10256_v37 = vld [vmem:[#allocation59_spill] sm:$0xff]  ;;  %v10260_v41 = vld [vmem:[#allocation70_spill] sm:$0xff] }
 0x7f5   :  { %1846 = vmatpush.msra.mxu0 %v10240_v51 }
 0x7f7   :  { %1847 = vmatpush.msra.mxu0 %v10241_v24 }
 0x7f9   :  { %1848 = vmatpush.msra.mxu0 %v10242_v5 }
 0x7fb   :  { %1849 = vmatpush.msra.mxu0 %v10243_v44  ;;  %v10251_v44 = vld [vmem:[#allocation44_spill] sm:$0xff] }
 0x7fd   :  { %1850 = vmatpush.msra.mxu0 %v10244_v45  ;;  %v10252_v45 = vld [vmem:[#allocation47_spill] sm:$0xff] }
 0x7ff   :  { %1851 = vmatpush.msra.mxu0 %v10245_v60  ;;  %v10253_v60 = vld [vmem:[#allocation50_spill] sm:$0xff] }
 0x801   :  { %1852 = vmatpush.msra.mxu0 %v10246_v27  ;;  %v10254_v27 = vld [vmem:[#allocation53_spill] sm:$0xff] }
 0x803   :  { %1853 = vmatpush.msra.mxu0 %v10247_v15  ;;  %v10255_v15 = vld [vmem:[#allocation56_spill] sm:$0xff] }
 0x805   :  { %1854 = vmatpush.msra.mxu0 %v10248_v53  ;;  %v1285_v51 = vpop.f32.mrf.mxu0  ;;  %v10257_v53 = vld [vmem:[#allocation62_spill] sm:$0xff] }
 0x806   :  { %v1286_v24 = vadd.f32 %v1285_v51, %v1266_v40  ;;  %v10259_v40 = vld [vmem:[#allocation68_spill] sm:$0xff]  ;;  %v10261_v51 = vld [vmem:[#allocation23_spill] sm:$0xff] }
 0x807   :  { %1855 = vmatpush.msra.mxu0 %v10250_v56  ;;  %v10258_v56 = vld [vmem:[#allocation65_spill] sm:$0xff] }
 0x808   :  { %4181 = vtanh.f32 %v1286_v24  ;;  %v10262_v24 = vld [vmem:[#allocation24_spill] sm:$0xff] }
 0x80d   :  { %v1378_v36 = vpop.f32.mrf.mxu0 }
 0x80e   :  { %v4182_v5 = vpop.eup %4181 }
 0x80f   :  { %1305 = vmatmul.f32.vlgmr.msrb.gmra.mxu1 %v4182_v5  ;;  %v10263_v5 = vld [vmem:[#allocation25_spill] sm:$0xff] }
 0x810   :  { %1461 = vmatpush.msrb.mxu1 %v10251_v44  ;;  %v10264_v44 = vld [vmem:[#allocation26_spill] sm:$0xff] }
 0x812   :  { %1462 = vmatpush.msrb.mxu1 %v10252_v45  ;;  %v10266_v45 = vld [vmem:[#allocation28_spill] sm:$0xff] }
 0x814   :  { %1463 = vmatpush.msrb.mxu1 %v10253_v60  ;;  %v10267_v60 = vld [vmem:[#allocation29_spill] sm:$0xff] }
 0x816   :  { %1464 = vmatpush.msrb.mxu1 %v10254_v27  ;;  %v10268_v27 = vld [vmem:[#allocation30_spill] sm:$0xff] }
 0x817   :  { %1397 = vmatmul.f32.vlgmr.msra.gmra.mxu1 %v6636_v3  ;;  %v10265_v3 = vld [vmem:[#allocation27_spill] sm:$0xff] }
 0x818   :  { %1465 = vmatpush.msrb.mxu1 %v10255_v15  ;;  %v10269_v15 = vld [vmem:[#allocation31_spill] sm:$0xff] }
 0x81a   :  { %1466 = vmatpush.msrb.mxu1 %v10256_v37  ;;  %v10270_v37 = vld [vmem:[#allocation32_spill] sm:$0xff] }
 0x81c   :  { %1467 = vmatpush.msrb.mxu1 %v10257_v53  ;;  %v10271_v53 = vld [vmem:[#allocation33_spill] sm:$0xff] }
 0x81e   :  { %1468 = vmatpush.msrb.mxu1 %v10258_v56  ;;  %v10272_v56 = vld [vmem:[#allocation34_spill] sm:$0xff] }
 0x820   :  { %1469 = vmatpush.msrb.mxu1 %v10259_v40  ;;  %v10273_v40 = vld [vmem:[#allocation76_spill] sm:$0xff] }
 0x822   :  { %1470 = vmatpush.msrb.mxu1 %v10260_v41  ;;  %v10274_v41 = vld [vmem:[#allocation77_spill] sm:$0xff] }
 0x824   :  { %1471 = vmatpush.msrb.mxu1 %v10261_v51  ;;  %v10275_v51 = vld [vmem:[#allocation78_spill] sm:$0xff] }
 0x825   :  { %v1458_v59 = vpop.f32.mrf.mxu0 }
 0x826   :  { %1472 = vmatpush.msrb.mxu1 %v10262_v24  ;;  %v10276_v24 = vld [vmem:[#allocation79_spill] sm:$0xff] }
 0x828   :  { %1473 = vmatpush.msrb.mxu1 %v10263_v5  ;;  %v10278_v5 = vld [vmem:[#allocation81_spill] sm:$0xff] }
 0x82a   :  { %1474 = vmatpush.msrb.mxu1 %v10264_v44  ;;  %v10279_v44 = vld [vmem:[#allocation82_spill] sm:$0xff] }
 0x82c   :  { %1475 = vmatpush.msrb.mxu1 %v10265_v3  ;;  %v10280_v3 = vld [vmem:[#allocation83_spill] sm:$0xff] }
 0x82e   :  { %1476 = vmatpush.msrb.mxu1 %v10266_v45  ;;  %v10281_v45 = vld [vmem:[#allocation84_spill] sm:$0xff] }
 0x82f   :  { %1477 = vmatmul.f32.vlgmr.msrb.gmra.mxu1 %v6690_v61  ;;  %v10277_v61 = vld [vmem:[#allocation80_spill] sm:$0xff] }
 0x830   :  { %1541 = vmatpush.msra.mxu1 %v10267_v60  ;;  %v10282_v60 = vld [vmem:[#allocation85_spill] sm:$0xff] }
 0x832   :  { %1542 = vmatpush.msra.mxu1 %v10268_v27  ;;  %v10283_v27 = vld [vmem:[#allocation86_spill] sm:$0xff] }
 0x834   :  { %1543 = vmatpush.msra.mxu1 %v10269_v15  ;;  %v10284_v15 = vld [vmem:[#allocation87_spill] sm:$0xff] }
 0x836   :  { %1544 = vmatpush.msra.mxu1 %v10270_v37  ;;  %v10285_v37 = vld [vmem:[#allocation88_spill] sm:$0xff] }
 0x838   :  { %1545 = vmatpush.msra.mxu1 %v10271_v53  ;;  %v10286_v53 = vld [vmem:[#allocation89_spill] sm:$0xff] }
 0x83a   :  { %1546 = vmatpush.msra.mxu1 %v10272_v56  ;;  %v10287_v56 = vld [vmem:[#allocation90_spill] sm:$0xff] }
 0x83c   :  { %1547 = vmatpush.msra.mxu1 %v10273_v40  ;;  %v10288_v40 = vld [vmem:[#allocation91_spill] sm:$0xff] }
 0x83e   :  { %1548 = vmatpush.msra.mxu1 %v10274_v41  ;;  %v10289_v41 = vld [vmem:[#allocation92_spill] sm:$0xff] }
 0x840   :  { %1549 = vmatpush.msra.mxu1 %v10275_v51  ;;  %v10290_v51 = vld [vmem:[#allocation93_spill] sm:$0xff] }
 0x842   :  { %1550 = vmatpush.msra.mxu1 %v10276_v24  ;;  %v10291_v24 = vld [vmem:[#allocation94_spill] sm:$0xff] }
 0x844   :  { %1551 = vmatpush.msra.mxu1 %v10277_v61  ;;  %v10292_v61 = vld [vmem:[#allocation95_spill] sm:$0xff] }
 0x846   :  { %1552 = vmatpush.msra.mxu1 %v10278_v5  ;;  %v10294_v5 = vld [vmem:[#allocation97_spill] sm:$0xff] }
 0x848   :  { %1553 = vmatpush.msra.mxu1 %v10279_v44  ;;  %v10295_v44 = vld [vmem:[#allocation98_spill] sm:$0xff] }
 0x84a   :  { %1554 = vmatpush.msra.mxu1 %v10280_v3  ;;  %v10296_v3 = vld [vmem:[#allocation99_spill] sm:$0xff] }
 0x84c   :  { %1555 = vmatpush.msra.mxu1 %v10281_v45  ;;  %v10297_v45 = vld [vmem:[#allocation100_spill] sm:$0xff] }
 0x84e   :  { %1556 = vmatpush.msra.mxu1 %v10282_v60  ;;  %v10298_v60 = vld [vmem:[#allocation101_spill] sm:$0xff] }
 0x84f   :  { %1557 = vmatmul.f32.vlgmr.msra.gmra.mxu1 %v6568_v0  ;;  %v10293_v0 = vld [vmem:[#allocation96_spill] sm:$0xff] }
 0x850   :  { %1780 = vmatpush.msrb.mxu1 %v10283_v27  ;;  %v10299_v27 = vld [vmem:[#allocation102_spill] sm:$0xff] }
 0x852   :  { %1781 = vmatpush.msrb.mxu1 %v10284_v15  ;;  %v10300_v15 = vld [vmem:[#allocation103_spill] sm:$0xff] }
 0x854   :  { %1782 = vmatpush.msrb.mxu1 %v10285_v37  ;;  %v10301_v37 = vld [vmem:[#allocation104_spill] sm:$0xff] }
 0x856   :  { %1783 = vmatpush.msrb.mxu1 %v10286_v53  ;;  %v10302_v53 = vld [vmem:[#allocation105_spill] sm:$0xff] }
 0x858   :  { %1784 = vmatpush.msrb.mxu1 %v10287_v56  ;;  %v10303_v56 = vld [vmem:[#allocation106_spill] sm:$0xff] }
 0x85a   :  { %1785 = vmatpush.msrb.mxu1 %v10288_v40  ;;  %v10304_v40 = vld [vmem:[#allocation107_spill] sm:$0xff] }
 0x85c   :  { %1786 = vmatpush.msrb.mxu1 %v10289_v41  ;;  %v10305_v41 = vld [vmem:[#allocation108_spill] sm:$0xff] }
 0x85e   :  { %1787 = vmatpush.msrb.mxu1 %v10290_v51  ;;  %v10306_v51 = vld [vmem:[#allocation109_spill] sm:$0xff] }
 0x860   :  { %1788 = vmatpush.msrb.mxu1 %v10291_v24  ;;  %v10307_v24 = vld [vmem:[#allocation110_spill] sm:$0xff] }
 0x862   :  { %1789 = vmatpush.msrb.mxu1 %v10292_v61  ;;  %v10308_v61 = vld [vmem:[#allocation111_spill] sm:$0xff] }
 0x864   :  { %1790 = vmatpush.msrb.mxu1 %v10293_v0  ;;  %v10309_v0 = vld [vmem:[#allocation112_spill] sm:$0xff] }
 0x866   :  { %1791 = vmatpush.msrb.mxu1 %v10294_v5  ;;  %v10310_v5 = vld [vmem:[#allocation113_spill] sm:$0xff] }
 0x868   :  { %1792 = vmatpush.msrb.mxu1 %v10295_v44  ;;  %v10311_v44 = vld [vmem:[#allocation114_spill] sm:$0xff] }
 0x86a   :  { %1793 = vmatpush.msrb.mxu1 %v10296_v3  ;;  %v10312_v3 = vld [vmem:[#allocation115_spill] sm:$0xff] }
 0x86c   :  { %1794 = vmatpush.msrb.mxu1 %v10297_v45  ;;  %v10313_v45 = vld [vmem:[#allocation116_spill] sm:$0xff] }
 0x86e   :  { %1795 = vmatpush.msrb.mxu1 %v10298_v60 }
 0x870   :  { %1860 = vmatpush.msra.mxu1 %v10299_v27  ;;  %v10314_v27 = vld [vmem:[#allocation118_spill] sm:$0xff] }
 0x872   :  { %1861 = vmatpush.msra.mxu1 %v10300_v15 }
 0x874   :  { %1862 = vmatpush.msra.mxu1 %v10301_v37  ;;  %v10315_v37 = vld [vmem:[#allocation117_spill] sm:$0xff] }
 0x876   :  { %1863 = vmatpush.msra.mxu1 %v10302_v53 }
 0x878   :  { %1864 = vmatpush.msra.mxu1 %v10303_v56  ;;  %v1338_v56 = vpop.f32.mrf.mxu2 }
 0x87a   :  { %1865 = vmatpush.msra.mxu1 %v10304_v40  ;;  %v1358_v40 = vpop.f32.mrf.mxu3 }
 0x87c   :  { %1866 = vmatpush.msra.mxu1 %v10305_v41 }
 0x87e   :  { %1867 = vmatpush.msra.mxu1 %v10306_v51  ;;  %v10316_v51 = vld [vmem:[#allocation72_spill] sm:$0xff] }
 0x880   :  { %1868 = vmatpush.msra.mxu1 %v10307_v24 }
 0x882   :  { %1869 = vmatpush.msra.mxu1 %v10308_v61  ;;  %v10317_v61 = vld [vmem:[#allocation71_spill] sm:$0xff] }
 0x884   :  { %1870 = vmatpush.msra.mxu1 %v10309_v0  ;;  %v1339_v0 = vadd.f32 %v1338_v56, %v10317_v61 }
 0x886   :  { %1871 = vmatpush.msra.mxu1 %v10310_v5  ;;  %v1418_v5 = vpop.f32.mrf.mxu2 }
 0x888   :  { %1872 = vmatpush.msra.mxu1 %v10311_v44 }
 0x88a   :  { %1873 = vmatpush.msra.mxu1 %v10312_v3  ;;  %v1359_v3 = vadd.f32 %v1358_v40, %v1339_v0  ;;  %v1459_v0 = vadd.f32 %v1458_v59, %v10141_v46 }
 0x88c   :  { %1874 = vmatpush.msra.mxu1 %v10313_v45  ;;  %v1306_v60 = vpop.f32.mrf.mxu1  ;;  %v1438_v45 = vpop.f32.mrf.mxu3  ;;  %v1379_v20 = vadd.f32 %v1378_v36, %v1359_v3 }
 0x88d   :  { %v1307_v15 = vadd.f32 %v10314_v27, %v1306_v60 }
 0x88e   :  { %1875 = vmatpush.msra.mxu1 %v10315_v37  ;;  %v4099_v27 = vmul.f32 -1.442695, %v1379_v20  ;;  %v1538_v20 = vpop.f32.mrf.mxu0 }
 0x88f   :  { %v1310_v53 = vrot.slane %v1307_v15, 1  ;;  %1312 = vst [vmem:[#allocation16 + $0x1] sm:$0x1] %v1307_v15 }
 0x891   :  { %1313 = vst [vmem:[#allocation16 + $0x9] sm:$0x1] %v1310_v53 }
 0x894   :  { %v1398_v41 = vpop.f32.mrf.mxu1  ;;  %v1518_v56 = vpop.f32.mrf.mxu3 }
 0x895   :  { %v1399_v24 = vadd.f32 %v1398_v41, %v10316_v51  ;;  %v1519_v36 = vadd.f32 %v1518_v56, %v10142_v49 }
 0x897   :  { %v1419_v44 = vadd.f32 %v1418_v5, %v1399_v24 }
 0x899   :  { %v1439_v29 = vadd.f32 %v1438_v45, %v1419_v44  ;;  %v1539_v44 = vadd.f32 %v1538_v20, %v1519_v36 }
 0x89b   :  { %v4100_v60 = vmul.f32 -1.442695, %v1439_v29 }
 0x89d   :  { %4183 = vpow2.f32 %v4100_v60 }
 0x89e   :  { %4185 = vpow2.f32 %v4099_v27 }
 0x8a3   :  { %v4184_v15 = vpop.eup %4183 }
 0x8a4   :  { %v4186_v37 = vpop.eup %4185  ;;  %v1583_v53 = vadd.f32 1.0, %v4184_v15  ;;  %v1498_v15 = vpop.f32.mrf.mxu2 }
 0x8a5   :  { %v1564_v13 = vadd.f32 1.0, %v4186_v37 }
 0x8a6   :  { %4187 = vrcp.f32 %v1583_v53  ;;  %v1595_v1 = vand.u32 2147483648, %v1583_v53  ;;  %vm1589_vm12 = vweird.f32 %v1583_v53  ;;  %v1593_v56 = vand.u32 2147483647, %v1583_v53 }
 0x8a7   :  { %4189 = vrcp.f32 %v1564_v13  ;;  %vm1570_vm1 = vweird.f32 %v1564_v13 }
 0x8a8   :  { %vm1594_vm3 = vcmp.eq.f32.partialorder %v1593_v56, 8.507059e+37 }
 0x8ac   :  { %v4188_v41 = vpop.eup %4187  ;;  %v1478_v61 = vpop.f32.mrf.mxu1 }
 0x8ad   :  { %v4190_v24 = vpop.eup %4189  ;;  %v1585_v40 = vmul.f32 %v4188_v41, %v1583_v53  ;;  %v1479_v3 = vadd.f32 %v1478_v61, %v1459_v0  ;;  %vm1590_vm11 = vweird.f32 %v4188_v41  ;;  %v1574_v61 = vand.u32 2147483647, %v1564_v13 }
 0x8ae   :  { %v1566_v29 = vmul.f32 %v4190_v24, %v1564_v13  ;;  %vm1571_vm14 = vweird.f32 %v4190_v24  ;;  %vm1591_vm15 = vmor %vm1589_vm12, %vm1590_vm11 }
 0x8af   :  { %v1586_v5 = vsub.f32 1.0, %v1585_v40  ;;  %v1499_v51 = vadd.f32 %v1498_v15, %v1479_v3  ;;  %v1576_v40 = vand.u32 2147483648, %v1564_v13  ;;  %vm1572_vm2 = vmor %vm1570_vm1, %vm1571_vm14  ;;  %vm1575_vm4 = vcmp.eq.f32.partialorder %v1574_v61, 8.507059e+37 }
 0x8b0   :  { %v1567_v45 = vsub.f32 1.0, %v1566_v29  ;;  %v1596_v29 = vor.u32 1.1754944e-38, %v1595_v1 }
 0x8b1   :  { %v1587_v37 = vmul.f32 %v4188_v41, %v1586_v5 }
 0x8b2   :  { %v1568_v6 = vmul.f32 %v4190_v24, %v1567_v45 }
 0x8b3   :  { %v1588_v33 = vadd.f32 %v4188_v41, %v1587_v37 }
 0x8b4   :  { %v1569_v59 = vadd.f32 %v4190_v24, %v1568_v6 }
 0x8b5   :  { %v1592_v0 = vsel %vm1591_vm15, %v4188_v41, %v1588_v33 }
 0x8b6   :  { %v1573_v20 = vsel %vm1572_vm2, %v4190_v24, %v1569_v59  ;;  %v1597_v3 = vsel %vm1594_vm3, %v1596_v29, %v1592_v0 }
 0x8b7   :  { %v1619_v6 = vmul.f32 %v1597_v3, %v6565_v62  ;;  %v10323_v3 = vld [vmem:[#allocation121_spill] sm:$0xff] }
 0x8cc   :  { %v1558_v60 = vpop.f32.mrf.mxu1 }
 0x8cd   :  { %v1559_v27 = vadd.f32 %v1558_v60, %v1539_v44  ;;  %v1577_v44 = vor.u32 1.1754944e-38, %v1576_v40 }
 0x8cf   :  { %v4101_v42 = vmul.f32 -1.442695, %v1559_v27 }
 0x8d1   :  { %4191 = vpow2.f32 %v4101_v42 }
 0x8d2   :  { %4193 = vtanh.f32 %v1499_v51  ;;  %v1578_v51 = vsel %vm1575_vm4, %v1577_v44, %v1573_v20  ;;  %v10318_v20 = vld [vmem:[#allocation73_spill] sm:$0xff]  ;;  %v10321_v44 = vld [vmem:[#allocation119_spill] sm:$0xff] }
 0x8d7   :  { %v4192_v36 = vpop.eup %4191 }
 0x8d8   :  { %v1603_v5 = vadd.f32 1.0, %v4192_v36  ;;  %v4194_v42 = vpop.eup %4193 }
 0x8d9   :  { %v1620_v53 = vmul.f32 %v4194_v42, %v1578_v51  ;;  %v10320_v42 = vld [vmem:[#allocation75_spill] sm:$0xff]  ;;  %v10324_v51 = vld [vmem:[#allocation122_spill] sm:$0xff] }
 0x8da   :  { %4195 = vrcp.f32 %v1603_v5  ;;  %v1615_v1 = vand.u32 2147483648, %v1603_v5  ;;  %v1613_v24 = vand.u32 2147483647, %v1603_v5  ;;  %vm1609_vm6 = vweird.f32 %v1603_v5 }
 0x8db   :  { %v7083_v60 = vadd.f32 %v1620_v53, %v1619_v6  ;;  %v10326_v6 = vld [vmem:[#allocation124_spill] sm:$0xff]  ;;  %v10328_v53 = vld [vmem:[#allocation126_spill] sm:$0xff] }
 0x8dc   :  { %v1616_v15 = vor.u32 1.1754944e-38, %v1615_v1  ;;  %vm1614_vm8 = vcmp.eq.f32.partialorder %v1613_v24, 8.507059e+37 }
 0x8dd   :  { %4197 = vtanh.f32 %v7083_v60 }
 0x8e0   :  { %v4196_v45 = vpop.eup %4195 }
 0x8e1   :  { %v1605_v13 = vmul.f32 %v4196_v45, %v1603_v5  ;;  %vm1610_vm5 = vweird.f32 %v4196_v45  ;;  %v10319_v5 = vld [vmem:[#allocation74_spill] sm:$0xff] }
 0x8e2   :  { %vm1611_vm7 = vmor %vm1609_vm6, %vm1610_vm5 }
 0x8e3   :  { %v1606_v33 = vsub.f32 1.0, %v1605_v13  ;;  %v4198_v59 = vpop.eup %4197  ;;  %v10330_v13 = vld [vmem:[#allocation128_spill] sm:$0xff] }
 0x8e5   :  { %v1607_v41 = vmul.f32 %v4196_v45, %v1606_v33 }
 0x8e7   :  { %v1608_v27 = vadd.f32 %v4196_v45, %v1607_v41  ;;  %v10331_v41 = vld [vmem:[#allocation22_spill] sm:$0xff] }
 0x8e9   :  { %v1612_v37 = vsel %vm1611_vm7, %v4196_v45, %v1608_v27  ;;  %v10329_v45 = vld [vmem:[#allocation127_spill] sm:$0xff] }
 0x8ea   :  { %v1617_v62 = vsel %vm1614_vm8, %v1616_v15, %v1612_v37 }
 0x8eb   :  { %v7086_v56 = vmul.f32 %v4198_v59, %v1617_v62 }
 0x8ed   :  { %1723 = vmatmul.f32.vlgmr.msra.gmra.mxu2 %v7086_v56  ;;  %v1626_v40 = vperm.slane %v7086_v56, 0  ;;  %v1625_v61 = vrot.slane %v7086_v56, 1 }
 0x8ee   :  { %1880 = vmatpush.msra.mxu2 %v6573_v47  ;;  %v10322_v47 = vld [vmem:[#allocation120_spill] sm:$0xff] }
 0x8ef   :  { %v1630_v0 = vmul.f32 %v6576_v54, %v1626_v40  ;;  %v1627_v36 = vperm.slane %v1625_v61, 0 }
 0x8f0   :  { %1881 = vmatpush.msra.mxu2 %v6579_v52  ;;  %v10325_v52 = vld [vmem:[#allocation123_spill] sm:$0xff] }
 0x8f1   :  { %1632 = vadd.xlane.f32.xlu2 %v1630_v0  ;;  %v1631_v29 = vmul.f32 %v6582_v30, %v1627_v36 }
 0x8f2   :  { %1882 = vmatpush.msra.mxu2 %v6585_v57  ;;  %v10327_v57 = vld [vmem:[#allocation125_spill] sm:$0xff] }
 0x8f3   :  { %1634 = vadd.xlane.f32.xlu0 %v1631_v29 }
 0x8f4   :  { %1883 = vmatpush.msra.mxu2 %v10318_v20 }
 0x8f6   :  { %1884 = vmatpush.msra.mxu2 %v10319_v5 }
 0x8f8   :  { %1885 = vmatpush.msra.mxu2 %v10320_v42 }
 0x8fa   :  { %1886 = vmatpush.msra.mxu2 %v10321_v44 }
 0x8fc   :  { %1887 = vmatpush.msra.mxu2 %v10322_v47 }
 0x8fe   :  { %1888 = vmatpush.msra.mxu2 %v10323_v3 }
 0x900   :  { %1889 = vmatpush.msra.mxu2 %v10324_v51 }
 0x902   :  { %1890 = vmatpush.msra.mxu2 %v10325_v52 }
 0x904   :  { %1891 = vmatpush.msra.mxu2 %v10326_v6 }
 0x906   :  { %1892 = vmatpush.msra.mxu2 %v10327_v57 }
 0x908   :  { %1893 = vmatpush.msra.mxu2 %v10328_v53 }
 0x90a   :  { %1894 = vmatpush.msra.mxu2 %v10329_v45 }
 0x90c   :  { %1895 = vmatpush.msra.mxu2 %v10330_v13 }
 0x964   :  { %v1633_v33 = vpop.xlane.xlu2 %1632 }
 0x965   :  { %v1638_v24 = vperm.slane %v1633_v33, %v10331_v41 }
 0x966   :  { %v1635_v1 = vpop.xlane.xlu0 %1634 }
 0x967   :  { %v1639_v27 = vperm.slane %v1635_v1, %v10331_v41 }
 0x969   :  { %v1640_v15 = vsel %vm397_vm0, %v1639_v27, %v1638_v24  ;;  %v1774_v24 = vld [vmem:[#allocation5 + $0xb] sm:$0x1] }
 0x96a   :  { %v1642_v37 = vsel %vm723_vm13, %v1640_v15, -inf  ;;  %v1777_v27 = vrot.slane %v1774_v24, 7 }
 0x96b   :  { %1643 = vmax.xlane.f32.xlu0 %v1642_v37  ;;  %v10332_v37 = vld [vmem:[#allocation129_spill] sm:$0xff] }
 0x9de   :  { %v1644_v59 = vpop.xlane.xlu0 %1643 }
 0x9df   :  { %v1646_v62 = vperm.slane %v1644_v59, 0  ;;  %v1647_v40 = vperm.slane %v1644_v59, 1  ;;  %v10333_v59 = vld [vmem:[#allocation130_spill] sm:$0xff] }
 0x9e1   :  { %v1650_v61 = vsub.f32 %v1633_v33, %v1646_v62  ;;  %v1651_v0 = vsub.f32 %v1635_v1, %v1647_v40  ;;  %v1773_v1 = vld [vmem:[#allocation5 + $0x3] sm:$0x1]  ;;  %v10335_v40 = vld [vmem:[#allocation132_spill] sm:$0xff] }
 0x9e2   :  { %v7118_v15 = vsel %vm397_vm0, %v1777_v27, %v1773_v1  ;;  %v10334_v62 = vld [vmem:[#allocation131_spill] sm:$0xff] }
 0x9e3   :  { %v1652_v36 = vmul.f32 1.442695, %v1650_v61  ;;  %v1654_v29 = vmul.f32 1.442695, %v1651_v0  ;;  %1796 = vmatmul.f32.vlgmr.msrb.gmra.mxu1 %v7118_v15  ;;  %v10336_v61 = vld [vmem:[#allocation133_spill] sm:$0xff]  ;;  %v10337_v0 = vld [vmem:[#allocation134_spill] sm:$0xff] }
 0x9e4   :  { %1940 = vmatpush.msrb.mxu1 %v10332_v37 }
 0x9e5   :  { %4199 = vpow2.f32 %v1652_v36  ;;  %v10338_v36 = vld [vmem:[#allocation135_spill] sm:$0xff] }
 0x9e6   :  { %4201 = vpow2.f32 %v1654_v29  ;;  %1941 = vmatpush.msrb.mxu1 %v10333_v59  ;;  %v10339_v29 = vld [vmem:[#allocation136_spill] sm:$0xff] }
 0x9e8   :  { %1942 = vmatpush.msrb.mxu1 %v10334_v62 }
 0x9ea   :  { %1943 = vmatpush.msrb.mxu1 %v10335_v40 }
 0x9eb   :  { %v4200_v20 = vpop.eup %4199 }
 0x9ec   :  { %v4202_v5 = vpop.eup %4201  ;;  %1659 = vperm.xlu0 %4132, %v4200_v20   ;;  %1944 = vmatpush.msrb.mxu1 %v10336_v61 }
 0x9ed   :  { %1662 = vperm.xlu1 %4130, %v4202_v5  }
 0x9ee   :  { %1945 = vmatpush.msrb.mxu1 %v10337_v0 }
 0x9f0   :  { %1946 = vmatpush.msrb.mxu1 %v10338_v36  ;;  %v7155_v36 = vld [vmem:[#allocation10 + $0x1b0] sm:$0xff] }
 0x9f2   :  { %1947 = vmatpush.msrb.mxu1 %v10339_v29  ;;  %v7160_v29 = vld [vmem:[#allocation10 + $0x190] sm:$0xff] }
 0xa5e   :  { %v1660_v42 = vpop.permute.xlu0 %1659 }
 0xa5f   :  { %v1663_v44 = vpop.permute.xlu1 %1662  ;;  %v1664_v47 = vperm.slane %v1660_v42, %v10331_v41  ;;  %v10342_v42 = vld [vmem:[#allocation139_spill] sm:$0xff] }
 0xa60   :  { %v1665_v3 = vperm.slane %v1663_v44, %v10331_v41  ;;  %v10343_v44 = vld [vmem:[#allocation140_spill] sm:$0xff] }
 0xa62   :  { %v1666_v51 = vsel %vm397_vm0, %v1665_v3, %v1664_v47  ;;  %v10344_v3 = vld [vmem:[#allocation141_spill] sm:$0xff] }
 0xa63   :  { %v1668_v52 = vsel %vm723_vm13, %v1666_v51, 0.0  ;;  %v10345_v51 = vld [vmem:[#allocation142_spill] sm:$0xff] }
 0xa64   :  { %1669 = vadd.xlane.f32.xlu1 %v1668_v52 }
 0xad7   :  { %v1670_v6 = vpop.xlane.xlu1 %1669 }
 0xad8   :  { %4203 = vrcp.f32 %v1670_v6  ;;  %v10346_v6 = vld [vmem:[#allocation143_spill] sm:$0xff] }
 0xade   :  { %v4204_v57 = vpop.eup %4203 }
 0xadf   :  { %v1674_v53 = vperm.slane %v4204_v57, 1  ;;  %v1673_v45 = vperm.slane %v4204_v57, 0 }
 0xae1   :  { %v1678_v13 = vmul.f32 %v4202_v5, %v1674_v53  ;;  %v1677_v33 = vmul.f32 %v4200_v20, %v1673_v45  ;;  %v10340_v20 = vld [vmem:[#allocation137_spill] sm:$0xff]  ;;  %v10341_v5 = vld [vmem:[#allocation138_spill] sm:$0xff] }
 0xae2   :  { %1948 = vmatpush.msrb.mxu1 %v10340_v20  ;;  %v7260_v20 = vld [vmem:[#allocation10 + $0x360] sm:$0xff] }
 0xae3   :  { %1686 = vperm.xlu2 %4131, %v1678_v13   ;;  %1681 = vperm.xlu0 %4132, %v1677_v33  }
 0xae4   :  { %1949 = vmatpush.msrb.mxu1 %v10341_v5  ;;  %v10358_v5 = vld [vmem:[#allocation155_spill] sm:$0xff] }
 0xae6   :  { %1950 = vmatpush.msrb.mxu1 %v10342_v42  ;;  %v10359_v42 = vld [vmem:[#allocation156_spill] sm:$0xff] }
 0xae8   :  { %1951 = vmatpush.msrb.mxu1 %v10343_v44  ;;  %v7265_v44 = vld [vmem:[#allocation10 + $0x340] sm:$0xff] }
 0xaea   :  { %1952 = vmatpush.msrb.mxu1 %v10344_v3  ;;  %v10361_v3 = vld [vmem:[#allocation158_spill] sm:$0xff] }
 0xaec   :  { %1953 = vmatpush.msrb.mxu1 %v10345_v51  ;;  %v7270_v51 = vld [vmem:[#allocation10 + $0x320] sm:$0xff] }
 0xaee   :  { %1954 = vmatpush.msrb.mxu1 %v10346_v6  ;;  %v10363_v6 = vld [vmem:[#allocation160_spill] sm:$0xff] }
 0xaf0   :  { %1955 = vmatpush.msrb.mxu1 %v6685_v21  ;;  %v7145_v21 = vld [vmem:[#allocation10 + $0x1f0] sm:$0xff] }
 0xb3d   :  { %v1687_v47 = vpop.permute.xlu2 %1686 }
 0xb3e   :  { %v1690_v52 = vmul.f32 %v6582_v30, %v1687_v47  ;;  %v10360_v47 = vld [vmem:[#allocation157_spill] sm:$0xff] }
 0xb40   :  { %v1697_v57 = vrot.slane %v1690_v52, 4 }
 0xb42   :  { %v1698_v53 = vadd.f32 %v1697_v57, %v1690_v52  ;;  %v10362_v52 = vld [vmem:[#allocation159_spill] sm:$0xff] }
 0xb43   :  { %v7275_v57 = vld [vmem:[#allocation10 + $0x300] sm:$0xff] }
 0xb44   :  { %v1699_v13 = vrot.slane %v1698_v53, 2 }
 0xb46   :  { %v1700_v24 = vadd.f32 %v1699_v13, %v1698_v53  ;;  %v10364_v53 = vld [vmem:[#allocation161_spill] sm:$0xff]  ;;  %v7280_v13 = vld [vmem:[#allocation10 + $0x2e0] sm:$0xff] }
 0xb48   :  { %v1701_v59 = vrot.slane %v1700_v24, 1 }
 0xb4a   :  { %v1702_v61 = vadd.f32 %v1701_v59, %v1700_v24  ;;  %v7285_v24 = vld [vmem:[#allocation10 + $0x2c0] sm:$0xff] }
 0xb4b   :  { %v7290_v59 = vld [vmem:[#allocation10 + $0x2a0] sm:$0xff] }
 0xb55   :  { %v1682_v45 = vpop.permute.xlu0 %1681 }
 0xb56   :  { %v1689_v33 = vmul.f32 %v6576_v54, %v1682_v45  ;;  %v7150_v54 = vld [vmem:[#allocation10 + $0x1d0] sm:$0xff] }
 0xb57   :  { %v10365_v45 = vld [vmem:[#allocation162_spill] sm:$0xff] }
 0xb58   :  { %v1691_v1 = vrot.slane %v1689_v33, 4 }
 0xb5a   :  { %v1692_v27 = vadd.f32 %v1691_v1, %v1689_v33  ;;  %v10366_v33 = vld [vmem:[#allocation163_spill] sm:$0xff]  ;;  %v10367_v1 = vld [vmem:[#allocation164_spill] sm:$0xff] }
 0xb5c   :  { %v1693_v37 = vrot.slane %v1692_v27, 2 }
 0xb5e   :  { %v1694_v62 = vadd.f32 %v1693_v37, %v1692_v27  ;;  %v10368_v27 = vld [vmem:[#allocation165_spill] sm:$0xff]  ;;  %v10369_v37 = vld [vmem:[#allocation166_spill] sm:$0xff] }
 0xb60   :  { %v1695_v40 = vrot.slane %v1694_v62, 1 }
 0xb62   :  { %v1696_v0 = vadd.f32 %v1695_v40, %v1694_v62  ;;  %v10370_v62 = vld [vmem:[#allocation167_spill] sm:$0xff]  ;;  %v10371_v40 = vld [vmem:[#allocation168_spill] sm:$0xff] }
 0xb64   :  { %v7140_v30 = vsel %vm397_vm0, %v1702_v61, %v1696_v0  ;;  %v7295_v61 = vld [vmem:[#allocation10 + $0x280] sm:$0xff]  ;;  %v10372_v0 = vld [vmem:[#allocation169_spill] sm:$0xff] }
 0xb65   :  { %1743 = vmatmul.f32.vlgmr.msra.gmra.mxu3 %v7140_v30  ;;  %1816 = vmatmul.f32.vlgmr.msrb.gmra.mxu2 %v7140_v30 }
 0xb66   :  { %1876 = vmatmul.f32.vlgmr.msra.gmra.mxu1 %v7140_v30  ;;  %1900 = vmatpush.msra.mxu3 %v7145_v21 }
 0xb67   :  { %1960 = vmatpush.msrb.mxu2 %v6696_v25  ;;  %2166 = vmatpush.msra.mxu1 %v6699_v9  ;;  %v7165_v25 = vld [vmem:[#allocation10 + $0x170] sm:$0xff] }
 0xb68   :  { %1901 = vmatpush.msra.mxu3 %v7150_v54  ;;  %v7171_v9 = vld [vmem:[#allocation10 + $0x150] sm:$0xff] }
 0xb69   :  { %1961 = vmatpush.msrb.mxu2 %v6703_v34  ;;  %2167 = vmatpush.msra.mxu1 %v6706_v16  ;;  %v7176_v34 = vld [vmem:[#allocation10 + $0x130] sm:$0xff] }
 0xb6a   :  { %1902 = vmatpush.msra.mxu3 %v7155_v36  ;;  %v7181_v16 = vld [vmem:[#allocation10 + $0x110] sm:$0xff] }
 0xb6b   :  { %1962 = vmatpush.msrb.mxu2 %v6710_v7  ;;  %2168 = vmatpush.msra.mxu1 %v6713_v35  ;;  %v7186_v7 = vld [vmem:[#allocation10 + $0xf0] sm:$0xff] }
 0xb6c   :  { %1903 = vmatpush.msra.mxu3 %v7160_v29  ;;  %v7191_v35 = vld [vmem:[#allocation10 + $0xd0] sm:$0xff] }
 0xb6d   :  { %1836 = vmatmul.f32.vlgmr.msrb.gmra.mxu3 %v7086_v56  ;;  %1896 = vmatmul.f32.vlgmr.msra.gmra.mxu2 %v7086_v56 }
 0xb6e   :  { %1904 = vmatpush.msra.mxu3 %v7165_v25  ;;  %1956 = vmatmul.f32.vlgmr.msrb.gmra.mxu1 %v7086_v56 }
 0xb6f   :  { %1963 = vmatpush.msrb.mxu2 %v6721_v11  ;;  %2169 = vmatpush.msra.mxu1 %v6724_v10  ;;  %v7196_v11 = vld [vmem:[#allocation10 + $0xb0] sm:$0xff] }
 0xb70   :  { %1905 = vmatpush.msra.mxu3 %v7171_v9  ;;  %v7201_v10 = vld [vmem:[#allocation10 + $0x90] sm:$0xff] }
 0xb71   :  { %1964 = vmatpush.msrb.mxu2 %v6728_v48  ;;  %2170 = vmatpush.msra.mxu1 %v6731_v14  ;;  %v7206_v48 = vld [vmem:[#allocation10 + $0x70] sm:$0xff] }
 0xb72   :  { %1906 = vmatpush.msra.mxu3 %v7176_v34  ;;  %v7211_v14 = vld [vmem:[#allocation10 + $0x50] sm:$0xff] }
 0xb73   :  { %1965 = vmatpush.msrb.mxu2 %v6735_v63  ;;  %2171 = vmatpush.msra.mxu1 %v6738_v17  ;;  %v10347_v63 = vld [vmem:[#allocation144_spill] sm:$0xff]  ;;  %v7216_v17 = vld [vmem:[#allocation10 + $0x30] sm:$0xff] }
 0xb74   :  { %1907 = vmatpush.msra.mxu3 %v7181_v16 }
 0xb75   :  { %1966 = vmatpush.msrb.mxu2 %v6742_v18  ;;  %2172 = vmatpush.msra.mxu1 %v6745_v26  ;;  %v7221_v18 = vld [vmem:[#allocation10 + $0x10] sm:$0xff]  ;;  %v7224_v26 = vld [vmem:[#allocation10 + $0x3f8] sm:$0xff] }
 0xb76   :  { %1908 = vmatpush.msra.mxu3 %v7186_v7 }
 0xb77   :  { %1967 = vmatpush.msrb.mxu2 %v6749_v19  ;;  %2173 = vmatpush.msra.mxu1 %v6752_v22  ;;  %v10348_v19 = vld [vmem:[#allocation145_spill] sm:$0xff]  ;;  %v7230_v22 = vld [vmem:[#allocation10 + $0x3d8] sm:$0xff] }
 0xb78   :  { %1909 = vmatpush.msra.mxu3 %v7191_v35 }
 0xb79   :  { %1968 = vmatpush.msrb.mxu2 %v6756_v23  ;;  %2174 = vmatpush.msra.mxu1 %v6759_v8  ;;  %v10349_v23 = vld [vmem:[#allocation146_spill] sm:$0xff] }
 0xb7a   :  { %1910 = vmatpush.msra.mxu3 %v7196_v11  ;;  %v7236_v8 = vld [vmem:[#allocation10 + $0x3b8] sm:$0xff] }
 0xb7b   :  { %1969 = vmatpush.msrb.mxu2 %v6763_v31  ;;  %2175 = vmatpush.msra.mxu1 %v6766_v4  ;;  %v10350_v31 = vld [vmem:[#allocation147_spill] sm:$0xff] }
 0xb7c   :  { %1911 = vmatpush.msra.mxu3 %v7201_v10  ;;  %v7241_v4 = vld [vmem:[#allocation10 + $0x398] sm:$0xff] }
 0xb7d   :  { %1970 = vmatpush.msrb.mxu2 %v6770_v12  ;;  %2176 = vmatpush.msra.mxu1 %v6773_v2  ;;  %v10351_v12 = vld [vmem:[#allocation148_spill] sm:$0xff] }
 0xb7e   :  { %1912 = vmatpush.msra.mxu3 %v7206_v48  ;;  %v7245_v2 = vld [vmem:[#allocation10 + $0x3c0] sm:$0xff] }
 0xb7f   :  { %1971 = vmatpush.msrb.mxu2 %v6777_v38  ;;  %2177 = vmatpush.msra.mxu1 %v6780_v28  ;;  %v10352_v38 = vld [vmem:[#allocation149_spill] sm:$0xff]  ;;  %v10353_v28 = vld [vmem:[#allocation150_spill] sm:$0xff] }
 0xb80   :  { %1913 = vmatpush.msra.mxu3 %v7211_v14 }
 0xb81   :  { %1972 = vmatpush.msrb.mxu2 %v6784_v39  ;;  %2178 = vmatpush.msra.mxu1 %v10347_v63  ;;  %v7250_v39 = vld [vmem:[#allocation10 + $0x3a0] sm:$0xff]  ;;  %v10373_v63 = vld [vmem:[#allocation170_spill] sm:$0xff] }
 0xb82   :  { %1914 = vmatpush.msra.mxu3 %v7216_v17 }
 0xb83   :  { %1973 = vmatpush.msrb.mxu2 %v6791_v43  ;;  %2179 = vmatpush.msra.mxu1 %v6794_v50  ;;  %v10355_v43 = vld [vmem:[#allocation152_spill] sm:$0xff] }
 0xb84   :  { %1915 = vmatpush.msra.mxu3 %v7221_v18  ;;  %v7255_v50 = vld [vmem:[#allocation10 + $0x380] sm:$0xff] }
 0xb85   :  { %1974 = vmatpush.msrb.mxu2 %v10348_v19  ;;  %1916 = vmatmul.f32.vlgmr.msra.gmra.mxu3 %v7118_v15  ;;  %v7300_v19 = vld [vmem:[#allocation10 + $0x260] sm:$0xff] }
 0xb86   :  { %1980 = vmatpush.msrb.mxu3 %v7224_v26  ;;  %2180 = vmatpush.msra.mxu1 %v6803_v32  ;;  %v10354_v32 = vld [vmem:[#allocation151_spill] sm:$0xff] }
 0xb87   :  { %1975 = vmatpush.msrb.mxu2 %v10349_v23  ;;  %v10374_v23 = vld [vmem:[#allocation171_spill] sm:$0xff] }
 0xb88   :  { %1981 = vmatpush.msrb.mxu3 %v7230_v22  ;;  %1976 = vmatmul.f32.vlgmr.msrb.gmra.mxu2 %v7118_v15 }
 0xb89   :  { %2181 = vmatpush.msra.mxu1 %v6811_v58  ;;  %2186 = vmatpush.msra.mxu2 %v10350_v31  ;;  %v10357_v58 = vld [vmem:[#allocation154_spill] sm:$0xff]  ;;  %v10375_v31 = vld [vmem:[#allocation172_spill] sm:$0xff] }
 0xb8a   :  { %1982 = vmatpush.msrb.mxu3 %v7236_v8 }
 0xb8b   :  { %2259 = vmatpush.msrb.mxu1 %v6818_v55  ;;  %2187 = vmatpush.msra.mxu2 %v10351_v12  ;;  %v10356_v55 = vld [vmem:[#allocation153_spill] sm:$0xff]  ;;  %v7306_v12 = vld [vmem:[#allocation10 + $0x240] sm:$0xff] }
 0xb8c   :  { %1983 = vmatpush.msrb.mxu3 %v7241_v4 }
 0xb8d   :  { %2260 = vmatpush.msrb.mxu1 %v7245_v2  ;;  %2188 = vmatpush.msra.mxu2 %v10353_v28  ;;  %v10377_v28 = vld [vmem:[#allocation174_spill] sm:$0xff] }
 0xb8e   :  { %1984 = vmatpush.msrb.mxu3 %v10352_v38  ;;  %v10376_v38 = vld [vmem:[#allocation173_spill] sm:$0xff] }
 0xb8f   :  { %2261 = vmatpush.msrb.mxu1 %v7250_v39  ;;  %2189 = vmatpush.msra.mxu2 %v10355_v43  ;;  %v10378_v43 = vld [vmem:[#allocation175_spill] sm:$0xff] }
 0xb90   :  { %1985 = vmatpush.msrb.mxu3 %v10354_v32  ;;  %v7311_v32 = vld [vmem:[#allocation10 + $0x220] sm:$0xff] }
 0xb91   :  { %2262 = vmatpush.msrb.mxu1 %v7255_v50  ;;  %2190 = vmatpush.msra.mxu2 %v10357_v58  ;;  %v10380_v58 = vld [vmem:[#allocation177_spill] sm:$0xff] }
 0xb92   :  { %1986 = vmatpush.msrb.mxu3 %v10356_v55  ;;  %v10379_v55 = vld [vmem:[#allocation176_spill] sm:$0xff] }
 0xb93   :  { %2263 = vmatpush.msrb.mxu1 %v7260_v20  ;;  %2191 = vmatpush.msra.mxu2 %v10359_v42  ;;  %v10381_v42 = vld [vmem:[#allocation178_spill] sm:$0xff] }
 0xb94   :  { %1987 = vmatpush.msrb.mxu3 %v10358_v5  ;;  %v7317_v5 = vld [vmem:[#allocation10 + $0x200] sm:$0xff] }
 0xb95   :  { %2264 = vmatpush.msrb.mxu1 %v7265_v44  ;;  %2192 = vmatpush.msra.mxu2 %v10361_v3  ;;  %v10383_v3 = vld [vmem:[#allocation180_spill] sm:$0xff] }
 0xb96   :  { %1988 = vmatpush.msrb.mxu3 %v10360_v47  ;;  %v10382_v47 = vld [vmem:[#allocation179_spill] sm:$0xff] }
 0xb97   :  { %2265 = vmatpush.msrb.mxu1 %v7270_v51  ;;  %2193 = vmatpush.msra.mxu2 %v10363_v6  ;;  %v10385_v6 = vld [vmem:[#allocation182_spill] sm:$0xff] }
 0xb98   :  { %1989 = vmatpush.msrb.mxu3 %v10362_v52  ;;  %v10384_v52 = vld [vmem:[#allocation181_spill] sm:$0xff] }
 0xb99   :  { %2266 = vmatpush.msrb.mxu1 %v7275_v57  ;;  %2194 = vmatpush.msra.mxu2 %v10365_v45  ;;  %v7326_v45 = vld [vmem:[#allocation14 + $0x50] sm:$0xff] }
 0xb9a   :  { %1990 = vmatpush.msrb.mxu3 %v10364_v53  ;;  %v10386_v53 = vld [vmem:[#allocation183_spill] sm:$0xff]  ;;  %10387 = vst [vmem:[#allocation58_spill] sm:$0xff] %v7326_v45 }
 0xb9b   :  { %2267 = vmatpush.msrb.mxu1 %v7280_v13  ;;  %2195 = vmatpush.msra.mxu2 %v10367_v1  ;;  %v7330_v1 = vld [vmem:[#allocation14 + $0x48] sm:$0xff] }
 0xb9c   :  { %1991 = vmatpush.msrb.mxu3 %v10366_v33  ;;  %v10388_v33 = vld [vmem:[#allocation184_spill] sm:$0xff]  ;;  %10389 = vst [vmem:[#allocation61_spill] sm:$0xff] %v7330_v1 }
 0xb9d   :  { %2268 = vmatpush.msrb.mxu1 %v7285_v24  ;;  %2196 = vmatpush.msra.mxu2 %v10369_v37  ;;  %v7334_v37 = vld [vmem:[#allocation14 + $0x40] sm:$0xff] }
 0xb9e   :  { %1992 = vmatpush.msrb.mxu3 %v10368_v27  ;;  %v10390_v27 = vld [vmem:[#allocation185_spill] sm:$0xff]  ;;  %10391 = vst [vmem:[#allocation63_spill] sm:$0xff] %v7334_v37 }
 0xb9f   :  { %2269 = vmatpush.msrb.mxu1 %v7290_v59  ;;  %2197 = vmatpush.msra.mxu2 %v10371_v40  ;;  %v7338_v40 = vld [vmem:[#allocation14 + $0x38] sm:$0xff] }
 0xba0   :  { %1993 = vmatpush.msrb.mxu3 %v10370_v62  ;;  %v10392_v62 = vld [vmem:[#allocation36_spill] sm:$0xff]  ;;  %10393 = vst [vmem:[#allocation66_spill] sm:$0xff] %v7338_v40 }
 0xba1   :  { %2270 = vmatpush.msrb.mxu1 %v7295_v61  ;;  %2198 = vmatpush.msra.mxu2 %v10373_v63  ;;  %v7342_v63 = vld [vmem:[#allocation14 + $0x30] sm:$0xff] }
 0xba2   :  { %1994 = vmatpush.msrb.mxu3 %v10372_v0  ;;  %v10394_v0 = vld [vmem:[#allocation35_spill] sm:$0xff]  ;;  %10395 = vst [vmem:[#allocation38_spill] sm:$0xff] %v7342_v63 }
 0xba3   :  { %2271 = vmatpush.msrb.mxu1 %v7300_v19  ;;  %2199 = vmatpush.msra.mxu2 %v10375_v31  ;;  %v7346_v31 = vld [vmem:[#allocation14 + $0x28] sm:$0xff] }
 0xba4   :  { %1995 = vmatpush.msrb.mxu3 %v10374_v23  ;;  %v10396_v23 = vld [vmem:[#allocation37_spill] sm:$0xff]  ;;  %10397 = vst [vmem:[#allocation40_spill] sm:$0xff] %v7346_v31 }
 0xba5   :  { %1996 = vmatmul.f32.vlgmr.msrb.gmra.mxu3 %v7140_v30  ;;  %2272 = vmatpush.msrb.mxu1 %v7306_v12 }
 0xba6   :  { %2200 = vmatpush.msra.mxu2 %v10376_v38  ;;  %2207 = vmatpush.msra.mxu3 %v10377_v28  ;;  %v10398_v38 = vld [vmem:[#allocation39_spill] sm:$0xff]  ;;  %v7350_v28 = vld [vmem:[#allocation14 + $0x20] sm:$0xff] }
 0xba7   :  { %2273 = vmatpush.msrb.mxu1 %v7311_v32  ;;  %10399 = vst [vmem:[#allocation42_spill] sm:$0xff] %v7350_v28 }
 0xba8   :  { %2201 = vmatpush.msra.mxu2 %v10378_v43  ;;  %2208 = vmatpush.msra.mxu3 %v10379_v55  ;;  %v10400_v43 = vld [vmem:[#allocation41_spill] sm:$0xff]  ;;  %v7354_v55 = vld [vmem:[#allocation14 + $0x18] sm:$0xff] }
 0xba9   :  { %2274 = vmatpush.msrb.mxu1 %v7317_v5  ;;  %10401 = vst [vmem:[#allocation45_spill] sm:$0xff] %v7354_v55 }
 0xbaa   :  { %2279 = vmatpush.msrb.mxu2 %v10380_v58  ;;  %2209 = vmatpush.msra.mxu3 %v10381_v42  ;;  %v10402_v58 = vld [vmem:[#allocation43_spill] sm:$0xff]  ;;  %v7358_v42 = vld [vmem:[#allocation14 + $0x10] sm:$0xff] }
 0xbab   :  { %10403 = vst [vmem:[#allocation48_spill] sm:$0xff] %v7358_v42 }
 0xbac   :  { %2280 = vmatpush.msrb.mxu2 %v10382_v47  ;;  %2210 = vmatpush.msra.mxu3 %v10383_v3  ;;  %v10404_v47 = vld [vmem:[#allocation46_spill] sm:$0xff]  ;;  %v7362_v3 = vld [vmem:[#allocation14 + $0x8] sm:$0xff] }
 0xbad   :  { %10405 = vst [vmem:[#allocation51_spill] sm:$0xff] %v7362_v3 }
 0xbae   :  { %2281 = vmatpush.msrb.mxu2 %v10384_v52  ;;  %2211 = vmatpush.msra.mxu3 %v10385_v6  ;;  %v10406_v52 = vld [vmem:[#allocation49_spill] sm:$0xff]  ;;  %v7366_v6 = vld [vmem:[#allocation14] sm:$0xff] }
 0xbaf   :  { %10407 = vst [vmem:[#allocation54_spill] sm:$0xff] %v7366_v6 }
 0xbb0   :  { %2282 = vmatpush.msrb.mxu2 %v10386_v53  ;;  %2212 = vmatpush.msra.mxu3 %v7326_v45  ;;  %v10408_v53 = vld [vmem:[#allocation52_spill] sm:$0xff] }
 0xbb2   :  { %2283 = vmatpush.msrb.mxu2 %v10388_v33  ;;  %2213 = vmatpush.msra.mxu3 %v7330_v1  ;;  %v7370_v33 = vld [vmem:[#allocation10 + $0x1e8] sm:$0xff] }
 0xbb3   :  { %10409 = vst [vmem:[#allocation57_spill] sm:$0xff] %v7370_v33 }
 0xbb4   :  { %2284 = vmatpush.msrb.mxu2 %v10390_v27  ;;  %2214 = vmatpush.msra.mxu3 %v7334_v37  ;;  %v10410_v27 = vld [vmem:[#allocation55_spill] sm:$0xff] }
 0xbb6   :  { %2285 = vmatpush.msrb.mxu2 %v10392_v62  ;;  %2215 = vmatpush.msra.mxu3 %v7338_v40  ;;  %v7374_v62 = vld [vmem:[#allocation10 + $0x1c8] sm:$0xff] }
 0xbb7   :  { %10411 = vst [vmem:[#allocation60_spill] sm:$0xff] %v7374_v62 }
 0xbb8   :  { %2286 = vmatpush.msrb.mxu2 %v10394_v0  ;;  %2216 = vmatpush.msra.mxu3 %v7342_v63  ;;  %v7377_v0 = vld [vmem:[#allocation10 + $0x1a8] sm:$0xff] }
 0xbb9   :  { %10412 = vst [vmem:[#allocation64_spill] sm:$0xff] %v7377_v0 }
 0xbba   :  { %2287 = vmatpush.msrb.mxu2 %v10396_v23  ;;  %2217 = vmatpush.msra.mxu3 %v7346_v31  ;;  %v7380_v23 = vld [vmem:[#allocation10 + $0x188] sm:$0xff] }
 0xbbb   :  { %10413 = vst [vmem:[#allocation69_spill] sm:$0xff] %v7380_v23 }
 0xbbc   :  { %2288 = vmatpush.msrb.mxu2 %v10398_v38  ;;  %2218 = vmatpush.msra.mxu3 %v7350_v28  ;;  %v7383_v38 = vld [vmem:[#allocation10 + $0x168] sm:$0xff] }
 0xbbd   :  { %10414 = vst [vmem:[#allocation67_spill] sm:$0xff] %v7383_v38 }
 0xbbe   :  { %2289 = vmatpush.msrb.mxu2 %v10400_v43  ;;  %2219 = vmatpush.msra.mxu3 %v7354_v55  ;;  %v7386_v43 = vld [vmem:[#allocation10 + $0x148] sm:$0xff] }
 0xbbf   :  { %10415 = vst [vmem:[#allocation44_spill] sm:$0xff] %v7386_v43 }
 0xbc0   :  { %2290 = vmatpush.msrb.mxu2 %v10402_v58  ;;  %2220 = vmatpush.msra.mxu3 %v7358_v42  ;;  %v7389_v58 = vld [vmem:[#allocation10 + $0x128] sm:$0xff] }
 0xbc1   :  { %10416 = vst [vmem:[#allocation47_spill] sm:$0xff] %v7389_v58 }
 0xbc2   :  { %2291 = vmatpush.msrb.mxu2 %v10404_v47  ;;  %2221 = vmatpush.msra.mxu3 %v7362_v3  ;;  %v7392_v47 = vld [vmem:[#allocation10 + $0x108] sm:$0xff] }
 0xbc3   :  { %10417 = vst [vmem:[#allocation50_spill] sm:$0xff] %v7392_v47 }
 0xbc4   :  { %2292 = vmatpush.msrb.mxu2 %v10406_v52  ;;  %2222 = vmatpush.msra.mxu3 %v7366_v6  ;;  %v7395_v52 = vld [vmem:[#allocation10 + $0xe8] sm:$0xff] }
 0xbc5   :  { %10418 = vst [vmem:[#allocation53_spill] sm:$0xff] %v7395_v52 }
 0xbc6   :  { %2293 = vmatpush.msrb.mxu2 %v10408_v53  ;;  %2299 = vmatpush.msrb.mxu3 %v7370_v33  ;;  %v7398_v53 = vld [vmem:[#allocation10 + $0xc8] sm:$0xff] }
 0xbc7   :  { %10419 = vst [vmem:[#allocation56_spill] sm:$0xff] %v7398_v53 }
 0xbc8   :  { %2294 = vmatpush.msrb.mxu2 %v10410_v27  ;;  %2300 = vmatpush.msrb.mxu3 %v7374_v62  ;;  %v7401_v27 = vld [vmem:[#allocation10 + $0xa8] sm:$0xff]  ;;  %v7434_v62 = vld [vmem:[#allocation10 + $0x390] sm:$0xff] }
 0xbc9   :  { %10420 = vst [vmem:[#allocation59_spill] sm:$0xff] %v7401_v27 }
 0xbca   :  { %2301 = vmatpush.msrb.mxu3 %v7377_v0  ;;  %v7425_v0 = vld [vmem:[#allocation10 + $0x3f0] sm:$0xff]  ;;  %10430 = vst [vmem:[#allocation28_spill] sm:$0xff] %v7434_v62 }
 0xbcb   :  { %10427 = vst [vmem:[#allocation25_spill] sm:$0xff] %v7425_v0 }
 0xbcc   :  { %2302 = vmatpush.msrb.mxu3 %v7380_v23 }
 0xbce   :  { %2303 = vmatpush.msrb.mxu3 %v7383_v38 }
 0xbd0   :  { %2304 = vmatpush.msrb.mxu3 %v7386_v43  ;;  %v7404_v43 = vld [vmem:[#allocation10 + $0x88] sm:$0xff] }
 0xbd1   :  { %10421 = vst [vmem:[#allocation62_spill] sm:$0xff] %v7404_v43 }
 0xbd2   :  { %2305 = vmatpush.msrb.mxu3 %v7389_v58  ;;  %v7407_v58 = vld [vmem:[#allocation10 + $0x68] sm:$0xff] }
 0xbd3   :  { %10422 = vst [vmem:[#allocation65_spill] sm:$0xff] %v7407_v58 }
 0xbd4   :  { %2306 = vmatpush.msrb.mxu3 %v7392_v47  ;;  %v7410_v47 = vld [vmem:[#allocation10 + $0x48] sm:$0xff] }
 0xbd5   :  { %10423 = vst [vmem:[#allocation68_spill] sm:$0xff] %v7410_v47 }
 0xbd6   :  { %2307 = vmatpush.msrb.mxu3 %v7395_v52  ;;  %v7413_v52 = vld [vmem:[#allocation10 + $0x28] sm:$0xff] }
 0xbd7   :  { %10424 = vst [vmem:[#allocation70_spill] sm:$0xff] %v7413_v52 }
 0xbd8   :  { %2308 = vmatpush.msrb.mxu3 %v7398_v53  ;;  %v7416_v53 = vld [vmem:[#allocation10 + $0x8] sm:$0xff] }
 0xbd9   :  { %10425 = vst [vmem:[#allocation23_spill] sm:$0xff] %v7416_v53 }
 0xbda   :  { %2309 = vmatpush.msrb.mxu3 %v7401_v27  ;;  %v1724_v27 = vpop.f32.mrf.mxu2 }
 0xbdc   :  { %2310 = vmatpush.msrb.mxu3 %v7404_v43  ;;  %v7422_v43 = vld [vmem:[%s9339_s5] ss:$0 sm:$0xff] }
 0xbdd   :  { %10426 = vst [vmem:[#allocation24_spill] sm:$0xff] %v7422_v43 }
 0xbde   :  { %2311 = vmatpush.msrb.mxu3 %v7407_v58  ;;  %v1725_v58 = vadd.f32 %v7422_v43, %v1724_v27  ;;  %v7450_v27 = vld [vmem:[#allocation10 + $0x2f0] sm:$0xff] }
 0xbdf   :  { %10435 = vst [vmem:[#allocation33_spill] sm:$0xff] %v7450_v27 }
 0xbe0   :  { %2312 = vmatpush.msrb.mxu3 %v7410_v47 }
 0xbe2   :  { %2313 = vmatpush.msrb.mxu3 %v7413_v52  ;;  %v7428_v52 = vld [vmem:[#allocation10 + $0x3d0] sm:$0xff] }
 0xbe3   :  { %10428 = vst [vmem:[#allocation26_spill] sm:$0xff] %v7428_v52 }
 0xbe4   :  { %2314 = vmatpush.msrb.mxu3 %v7416_v53  ;;  %v7431_v53 = vld [vmem:[#allocation10 + $0x3b0] sm:$0xff] }
 0xbe5   :  { %10429 = vst [vmem:[#allocation27_spill] sm:$0xff] %v7431_v53 }
 0xbe8   :  { %v1744_v38 = vpop.f32.mrf.mxu3 }
 0xbe9   :  { %v1745_v23 = vadd.f32 %v1744_v38, %v1725_v58  ;;  %v7441_v38 = vld [vmem:[#allocation10 + $0x350] sm:$0xff] }
 0xbea   :  { %10432 = vst [vmem:[#allocation30_spill] sm:$0xff] %v7441_v38  ;;  %v7444_v58 = vld [vmem:[#allocation10 + $0x330] sm:$0xff] }
 0xbeb   :  { %4205 = vtanh.f32 %v1745_v23  ;;  %v7438_v23 = vld [vmem:[#allocation10 + $0x370] sm:$0xff]  ;;  %10433 = vst [vmem:[#allocation31_spill] sm:$0xff] %v7444_v58 }
 0xbec   :  { %10431 = vst [vmem:[#allocation29_spill] sm:$0xff] %v7438_v23 }
 0xbf0   :  { %v1837_v6 = vpop.f32.mrf.mxu3 }
 0xbf1   :  { %v4206_v47 = vpop.eup %4205 }
 0xbf2   :  { %1764 = vmatmul.f32.vlgmr.msrb.gmra.mxu0 %v4206_v47  ;;  %v7447_v47 = vld [vmem:[#allocation10 + $0x310] sm:$0xff] }
 0xbf3   :  { %1920 = vmatpush.msrb.mxu0 %v7425_v0  ;;  %10434 = vst [vmem:[#allocation32_spill] sm:$0xff] %v7447_v47  ;;  %v10493_v0 = vld [vmem:[#allocation71_spill] sm:$0xff] }
 0xbf5   :  { %1921 = vmatpush.msrb.mxu0 %v7428_v52 }
 0xbf7   :  { %1922 = vmatpush.msrb.mxu0 %v7431_v53  ;;  %v10492_v53 = vld [vmem:[#allocation72_spill] sm:$0xff] }
 0xbf9   :  { %1923 = vmatpush.msrb.mxu0 %v7434_v62 }
 0xbfa   :  { %1856 = vmatmul.f32.vlgmr.msra.gmra.mxu0 %v7118_v15  ;;  %v7453_v15 = vld [vmem:[#allocation10 + $0x2d0] sm:$0xff] }
 0xbfb   :  { %1924 = vmatpush.msrb.mxu0 %v7438_v23  ;;  %10436 = vst [vmem:[#allocation34_spill] sm:$0xff] %v7453_v15  ;;  %v7456_v23 = vld [vmem:[#allocation10 + $0x2b0] sm:$0xff] }
 0xbfc   :  { %10437 = vst [vmem:[#allocation76_spill] sm:$0xff] %v7456_v23 }
 0xbfd   :  { %1925 = vmatpush.msrb.mxu0 %v7441_v38  ;;  %v7459_v38 = vld [vmem:[#allocation10 + $0x290] sm:$0xff] }
 0xbfe   :  { %10438 = vst [vmem:[#allocation77_spill] sm:$0xff] %v7459_v38 }
 0xbff   :  { %1926 = vmatpush.msrb.mxu0 %v7444_v58  ;;  %v7462_v58 = vld [vmem:[#allocation10 + $0x270] sm:$0xff] }
 0xc00   :  { %10439 = vst [vmem:[#allocation78_spill] sm:$0xff] %v7462_v58 }
 0xc01   :  { %1927 = vmatpush.msrb.mxu0 %v7447_v47  ;;  %v7465_v47 = vld [vmem:[#allocation10 + $0x250] sm:$0xff] }
 0xc02   :  { %10440 = vst [vmem:[#allocation79_spill] sm:$0xff] %v7465_v47 }
 0xc03   :  { %1928 = vmatpush.msrb.mxu0 %v7450_v27  ;;  %v7468_v27 = vld [vmem:[#allocation10 + $0x230] sm:$0xff] }
 0xc04   :  { %10441 = vst [vmem:[#allocation80_spill] sm:$0xff] %v7468_v27 }
 0xc05   :  { %1929 = vmatpush.msrb.mxu0 %v7453_v15  ;;  %v7471_v15 = vld [vmem:[#allocation10 + $0x210] sm:$0xff] }
 0xc06   :  { %10442 = vst [vmem:[#allocation81_spill] sm:$0xff] %v7471_v15 }
 0xc07   :  { %1930 = vmatpush.msrb.mxu0 %v7456_v23  ;;  %v7475_v23 = vld [vmem:[#allocation10 + $0x5f8] sm:$0xff] }
 0xc08   :  { %10443 = vst [vmem:[#allocation82_spill] sm:$0xff] %v7475_v23  ;;  %v1917_v63 = vpop.f32.mrf.mxu3 }
 0xc09   :  { %1931 = vmatpush.msrb.mxu0 %v7459_v38  ;;  %v7478_v38 = vld [vmem:[#allocation10 + $0x5d8] sm:$0xff] }
 0xc0a   :  { %10444 = vst [vmem:[#allocation83_spill] sm:$0xff] %v7478_v38 }
 0xc0b   :  { %1932 = vmatpush.msrb.mxu0 %v7462_v58  ;;  %v7481_v58 = vld [vmem:[#allocation10 + $0x5b8] sm:$0xff] }
 0xc0c   :  { %10445 = vst [vmem:[#allocation84_spill] sm:$0xff] %v7481_v58 }
 0xc0d   :  { %1933 = vmatpush.msrb.mxu0 %v7465_v47  ;;  %v7484_v47 = vld [vmem:[#allocation10 + $0x598] sm:$0xff] }
 0xc0e   :  { %10446 = vst [vmem:[#allocation85_spill] sm:$0xff] %v7484_v47 }
 0xc0f   :  { %1934 = vmatpush.msrb.mxu0 %v7468_v27  ;;  %v7487_v27 = vld [vmem:[#allocation10 + $0x578] sm:$0xff] }
 0xc10   :  { %10447 = vst [vmem:[#allocation86_spill] sm:$0xff] %v7487_v27 }
 0xc11   :  { %1935 = vmatpush.msrb.mxu0 %v7471_v15  ;;  %v1817_v15 = vpop.f32.mrf.mxu2 }
 0xc12   :  { %1936 = vmatmul.f32.vlgmr.msrb.gmra.mxu0 %v7140_v30  ;;  %v7490_v30 = vld [vmem:[#allocation10 + $0x558] sm:$0xff] }
 0xc13   :  { %2000 = vmatpush.msra.mxu0 %v7475_v23  ;;  %10448 = vst [vmem:[#allocation87_spill] sm:$0xff] %v7490_v30  ;;  %v7493_v23 = vld [vmem:[#allocation10 + $0x538] sm:$0xff] }
 0xc14   :  { %10449 = vst [vmem:[#allocation88_spill] sm:$0xff] %v7493_v23 }
 0xc15   :  { %2001 = vmatpush.msra.mxu0 %v7478_v38  ;;  %v7496_v38 = vld [vmem:[#allocation10 + $0x518] sm:$0xff] }
 0xc16   :  { %10450 = vst [vmem:[#allocation89_spill] sm:$0xff] %v7496_v38 }
 0xc17   :  { %2002 = vmatpush.msra.mxu0 %v7481_v58  ;;  %v7499_v58 = vld [vmem:[#allocation10 + $0x4f8] sm:$0xff] }
 0xc18   :  { %10451 = vst [vmem:[#allocation90_spill] sm:$0xff] %v7499_v58 }
 0xc19   :  { %2003 = vmatpush.msra.mxu0 %v7484_v47  ;;  %v7502_v47 = vld [vmem:[#allocation10 + $0x4d8] sm:$0xff]  ;;  %v1897_v3 = vpop.f32.mrf.mxu2 }
 0xc1a   :  { %10452 = vst [vmem:[#allocation91_spill] sm:$0xff] %v7502_v47 }
 0xc1b   :  { %2004 = vmatpush.msra.mxu0 %v7487_v27  ;;  %v7505_v27 = vld [vmem:[#allocation10 + $0x4b8] sm:$0xff] }
 0xc1c   :  { %10453 = vst [vmem:[#allocation92_spill] sm:$0xff] %v7505_v27 }
 0xc1d   :  { %2005 = vmatpush.msra.mxu0 %v7490_v30  ;;  %v7508_v30 = vld [vmem:[#allocation10 + $0x498] sm:$0xff] }
 0xc1e   :  { %10454 = vst [vmem:[#allocation93_spill] sm:$0xff] %v7508_v30 }
 0xc1f   :  { %2006 = vmatpush.msra.mxu0 %v7493_v23  ;;  %v7511_v23 = vld [vmem:[#allocation10 + $0x478] sm:$0xff] }
 0xc20   :  { %10455 = vst [vmem:[#allocation94_spill] sm:$0xff] %v7511_v23 }
 0xc21   :  { %2007 = vmatpush.msra.mxu0 %v7496_v38  ;;  %v7514_v38 = vld [vmem:[#allocation10 + $0x458] sm:$0xff] }
 0xc22   :  { %10456 = vst [vmem:[#allocation95_spill] sm:$0xff] %v7514_v38 }
 0xc23   :  { %2008 = vmatpush.msra.mxu0 %v7499_v58  ;;  %v7517_v58 = vld [vmem:[#allocation10 + $0x438] sm:$0xff] }
 0xc24   :  { %10457 = vst [vmem:[#allocation96_spill] sm:$0xff] %v7517_v58 }
 0xc25   :  { %2009 = vmatpush.msra.mxu0 %v7502_v47  ;;  %v7520_v47 = vld [vmem:[#allocation10 + $0x418] sm:$0xff] }
 0xc26   :  { %10458 = vst [vmem:[#allocation97_spill] sm:$0xff] %v7520_v47 }
 0xc27   :  { %2010 = vmatpush.msra.mxu0 %v7505_v27  ;;  %v7524_v27 = vld [vmem:[#allocation10 + $0x1e0] sm:$0xff] }
 0xc28   :  { %10459 = vst [vmem:[#allocation98_spill] sm:$0xff] %v7524_v27 }
 0xc29   :  { %2011 = vmatpush.msra.mxu0 %v7508_v30  ;;  %v7527_v30 = vld [vmem:[#allocation10 + $0x1c0] sm:$0xff] }
 0xc2a   :  { %10460 = vst [vmem:[#allocation99_spill] sm:$0xff] %v7527_v30 }
 0xc2b   :  { %2012 = vmatpush.msra.mxu0 %v7511_v23  ;;  %v7530_v23 = vld [vmem:[#allocation10 + $0x1a0] sm:$0xff] }
 0xc2c   :  { %10461 = vst [vmem:[#allocation100_spill] sm:$0xff] %v7530_v23 }
 0xc2d   :  { %2013 = vmatpush.msra.mxu0 %v7514_v38  ;;  %v7533_v38 = vld [vmem:[#allocation10 + $0x180] sm:$0xff] }
 0xc2e   :  { %10462 = vst [vmem:[#allocation101_spill] sm:$0xff] %v7533_v38 }
 0xc2f   :  { %2014 = vmatpush.msra.mxu0 %v7517_v58  ;;  %v7536_v58 = vld [vmem:[#allocation10 + $0x160] sm:$0xff] }
 0xc30   :  { %10463 = vst [vmem:[#allocation102_spill] sm:$0xff] %v7536_v58 }
 0xc31   :  { %2015 = vmatpush.msra.mxu0 %v7520_v47  ;;  %v7623_v47 = vld [vmem:[#allocation10 + $0x208] sm:$0xff] }
 0xc32   :  { %2016 = vmatmul.f32.vlgmr.msra.gmra.mxu0 %v7086_v56  ;;  %v7539_v56 = vld [vmem:[#allocation10 + $0x140] sm:$0xff]  ;;  %10491 = vst [vmem:[#allocation127_spill] sm:$0xff] %v7623_v47 }
 0xc33   :  { %2239 = vmatpush.msrb.mxu0 %v7524_v27  ;;  %10464 = vst [vmem:[#allocation103_spill] sm:$0xff] %v7539_v56  ;;  %v7542_v27 = vld [vmem:[#allocation10 + $0x120] sm:$0xff] }
 0xc34   :  { %10465 = vst [vmem:[#allocation104_spill] sm:$0xff] %v7542_v27 }
 0xc35   :  { %2240 = vmatpush.msrb.mxu0 %v7527_v30  ;;  %v7545_v30 = vld [vmem:[#allocation10 + $0x100] sm:$0xff] }
 0xc36   :  { %10466 = vst [vmem:[#allocation105_spill] sm:$0xff] %v7545_v30 }
 0xc37   :  { %2241 = vmatpush.msrb.mxu0 %v7530_v23  ;;  %v7548_v23 = vld [vmem:[#allocation10 + $0xe0] sm:$0xff] }
 0xc38   :  { %10467 = vst [vmem:[#allocation106_spill] sm:$0xff] %v7548_v23 }
 0xc39   :  { %2242 = vmatpush.msrb.mxu0 %v7533_v38  ;;  %v7551_v38 = vld [vmem:[#allocation10 + $0xc0] sm:$0xff] }
 0xc3a   :  { %10468 = vst [vmem:[#allocation107_spill] sm:$0xff] %v7551_v38 }
 0xc3b   :  { %2243 = vmatpush.msrb.mxu0 %v7536_v58  ;;  %v7554_v58 = vld [vmem:[#allocation10 + $0xa0] sm:$0xff] }
 0xc3c   :  { %10469 = vst [vmem:[#allocation108_spill] sm:$0xff] %v7554_v58 }
 0xc3d   :  { %2244 = vmatpush.msrb.mxu0 %v7539_v56  ;;  %v7557_v56 = vld [vmem:[#allocation10 + $0x80] sm:$0xff] }
 0xc3e   :  { %10470 = vst [vmem:[#allocation109_spill] sm:$0xff] %v7557_v56 }
 0xc3f   :  { %2245 = vmatpush.msrb.mxu0 %v7542_v27  ;;  %v7560_v27 = vld [vmem:[#allocation10 + $0x60] sm:$0xff] }
 0xc40   :  { %10471 = vst [vmem:[#allocation110_spill] sm:$0xff] %v7560_v27 }
 0xc41   :  { %2246 = vmatpush.msrb.mxu0 %v7545_v30  ;;  %v7563_v30 = vld [vmem:[#allocation10 + $0x40] sm:$0xff] }
 0xc42   :  { %10472 = vst [vmem:[#allocation111_spill] sm:$0xff] %v7563_v30 }
 0xc43   :  { %2247 = vmatpush.msrb.mxu0 %v7548_v23  ;;  %v7566_v23 = vld [vmem:[#allocation10 + $0x20] sm:$0xff] }
 0xc44   :  { %10473 = vst [vmem:[#allocation112_spill] sm:$0xff] %v7566_v23 }
 0xc45   :  { %2248 = vmatpush.msrb.mxu0 %v7551_v38  ;;  %v7569_v38 = vld [vmem:[#allocation10] sm:$0xff] }
 0xc46   :  { %10474 = vst [vmem:[#allocation113_spill] sm:$0xff] %v7569_v38 }
 0xc47   :  { %2249 = vmatpush.msrb.mxu0 %v7554_v58  ;;  %v7572_v58 = vld [vmem:[#allocation10 + $0x3e8] sm:$0xff] }
 0xc48   :  { %10475 = vst [vmem:[#allocation114_spill] sm:$0xff] %v7572_v58 }
 0xc49   :  { %2250 = vmatpush.msrb.mxu0 %v7557_v56  ;;  %v7575_v56 = vld [vmem:[#allocation10 + $0x3c8] sm:$0xff] }
 0xc4a   :  { %10476 = vst [vmem:[#allocation115_spill] sm:$0xff] %v7575_v56 }
 0xc4b   :  { %2251 = vmatpush.msrb.mxu0 %v7560_v27  ;;  %v7578_v27 = vld [vmem:[#allocation10 + $0x3a8] sm:$0xff] }
 0xc4c   :  { %10477 = vst [vmem:[#allocation116_spill] sm:$0xff] %v7578_v27 }
 0xc4d   :  { %2252 = vmatpush.msrb.mxu0 %v7563_v30  ;;  %v7581_v30 = vld [vmem:[#allocation10 + $0x388] sm:$0xff] }
 0xc4e   :  { %10478 = vst [vmem:[#allocation118_spill] sm:$0xff] %v7581_v30 }
 0xc4f   :  { %2253 = vmatpush.msrb.mxu0 %v7566_v23  ;;  %v7584_v23 = vld [vmem:[#allocation10 + $0x368] sm:$0xff] }
 0xc50   :  { %10479 = vst [vmem:[#allocation117_spill] sm:$0xff] %v7584_v23 }
 0xc51   :  { %2254 = vmatpush.msrb.mxu0 %v7569_v38  ;;  %v7587_v38 = vld [vmem:[#allocation10 + $0x348] sm:$0xff] }
 0xc52   :  { %10480 = vst [vmem:[#allocation73_spill] sm:$0xff] %v7587_v38 }
 0xc53   :  { %2319 = vmatpush.msra.mxu0 %v7572_v58  ;;  %v7590_v58 = vld [vmem:[#allocation10 + $0x328] sm:$0xff] }
 0xc54   :  { %10481 = vst [vmem:[#allocation74_spill] sm:$0xff] %v7590_v58 }
 0xc55   :  { %2320 = vmatpush.msra.mxu0 %v7575_v56  ;;  %v7593_v56 = vld [vmem:[#allocation10 + $0x308] sm:$0xff] }
 0xc56   :  { %10482 = vst [vmem:[#allocation75_spill] sm:$0xff] %v7593_v56 }
 0xc57   :  { %2321 = vmatpush.msra.mxu0 %v7578_v27  ;;  %v7596_v27 = vld [vmem:[#allocation10 + $0x2e8] sm:$0xff] }
 0xc58   :  { %10483 = vst [vmem:[#allocation119_spill] sm:$0xff] %v7596_v27 }
 0xc59   :  { %2322 = vmatpush.msra.mxu0 %v7581_v30  ;;  %v7599_v30 = vld [vmem:[#allocation10 + $0x2c8] sm:$0xff] }
 0xc5a   :  { %10484 = vst [vmem:[#allocation120_spill] sm:$0xff] %v7599_v30 }
 0xc5b   :  { %2323 = vmatpush.msra.mxu0 %v7584_v23  ;;  %v7602_v23 = vld [vmem:[#allocation10 + $0x2a8] sm:$0xff] }
 0xc5c   :  { %10485 = vst [vmem:[#allocation121_spill] sm:$0xff] %v7602_v23 }
 0xc5d   :  { %2324 = vmatpush.msra.mxu0 %v7587_v38  ;;  %v7605_v38 = vld [vmem:[#allocation10 + $0x288] sm:$0xff] }
 0xc5e   :  { %10486 = vst [vmem:[#allocation122_spill] sm:$0xff] %v7605_v38 }
 0xc5f   :  { %2325 = vmatpush.msra.mxu0 %v7590_v58  ;;  %v7608_v58 = vld [vmem:[#allocation10 + $0x268] sm:$0xff] }
 0xc60   :  { %10487 = vst [vmem:[#allocation123_spill] sm:$0xff] %v7608_v58 }
 0xc61   :  { %2326 = vmatpush.msra.mxu0 %v7593_v56  ;;  %v7611_v56 = vld [vmem:[#allocation10 + $0x248] sm:$0xff] }
 0xc62   :  { %10488 = vst [vmem:[#allocation124_spill] sm:$0xff] %v7611_v56 }
 0xc63   :  { %2327 = vmatpush.msra.mxu0 %v7596_v27  ;;  %v7614_v27 = vld [vmem:[#allocation10 + $0x228] sm:$0xff] }
 0xc64   :  { %10489 = vst [vmem:[#allocation125_spill] sm:$0xff] %v7614_v27 }
 0xc65   :  { %2328 = vmatpush.msra.mxu0 %v7599_v30 }
 0xc67   :  { %2329 = vmatpush.msra.mxu0 %v7602_v23  ;;  %v7620_v23 = vld [vmem:[%s9341_s7] ss:$0 sm:$0xff] }
 0xc68   :  { %10490 = vst [vmem:[#allocation126_spill] sm:$0xff] %v7620_v23 }
 0xc69   :  { %2330 = vmatpush.msra.mxu0 %v7605_v38 }
 0xc6b   :  { %2331 = vmatpush.msra.mxu0 %v7608_v58 }
 0xc6d   :  { %2332 = vmatpush.msra.mxu0 %v7611_v56  ;;  %v1797_v56 = vpop.f32.mrf.mxu1 }
 0xc6e   :  { %v1798_v43 = vadd.f32 %v1797_v56, %v10493_v0 }
 0xc6f   :  { %2333 = vmatpush.msra.mxu0 %v7614_v27  ;;  %v1765_v30 = vpop.f32.mrf.mxu0 }
 0xc70   :  { %v1766_v38 = vadd.f32 %v7620_v23, %v1765_v30  ;;  %v1818_v42 = vadd.f32 %v1817_v15, %v1798_v43  ;;  %v1918_v43 = vadd.f32 %v1917_v63, %v10141_v46 }
 0xc71   :  { %2334 = vmatpush.msra.mxu0 %v7623_v47 }
 0xc72   :  { %v1769_v58 = vrot.slane %v1766_v38, 1  ;;  %1771 = vst [vmem:[#allocation16 + $0x2] sm:$0x1] %v1766_v38  ;;  %v1838_v23 = vadd.f32 %v1837_v6, %v1818_v42  ;;  %v1997_v6 = vpop.f32.mrf.mxu3 }
 0xc74   :  { %1772 = vst [vmem:[#allocation16 + $0xa] sm:$0x1] %v1769_v58  ;;  %v4102_v28 = vmul.f32 -1.442695, %v1838_v23 }
 0xc75   :  { %v1877_v52 = vpop.f32.mrf.mxu1 }
 0xc77   :  { %v1857_v62 = vpop.f32.mrf.mxu0 }
 0xc78   :  { %v1858_v27 = vadd.f32 %v1857_v62, %v10492_v53  ;;  %v1977_v53 = vpop.f32.mrf.mxu2 }
 0xc79   :  { %v1978_v42 = vadd.f32 %v1977_v53, %v10142_v49 }
 0xc7a   :  { %v1878_v33 = vadd.f32 %v1877_v52, %v1858_v27 }
 0xc7c   :  { %v1898_v30 = vadd.f32 %v1897_v3, %v1878_v33 }
 0xc7e   :  { %v4103_v55 = vmul.f32 -1.442695, %v1898_v30 }
 0xc80   :  { %4207 = vpow2.f32 %v4103_v55 }
 0xc81   :  { %4209 = vpow2.f32 %v4102_v28  ;;  %v1998_v28 = vadd.f32 %v1997_v6, %v1978_v42 }
 0xc86   :  { %v4208_v38 = vpop.eup %4207 }
 0xc87   :  { %v4210_v58 = vpop.eup %4209  ;;  %v2042_v47 = vadd.f32 1.0, %v4208_v38  ;;  %v1957_v38 = vpop.f32.mrf.mxu1 }
 0xc88   :  { %v2023_v31 = vadd.f32 1.0, %v4210_v58 }
 0xc89   :  { %4211 = vrcp.f32 %v2042_v47  ;;  %v2054_v45 = vand.u32 2147483648, %v2042_v47  ;;  %vm2048_vm10 = vweird.f32 %v2042_v47  ;;  %v2052_v53 = vand.u32 2147483647, %v2042_v47 }
 0xc8a   :  { %4213 = vrcp.f32 %v2023_v31  ;;  %vm2029_vm14 = vweird.f32 %v2023_v31 }
 0xc8b   :  { %vm2053_vm1 = vcmp.eq.f32.partialorder %v2052_v53, 8.507059e+37 }
 0xc8f   :  { %v4212_v62 = vpop.eup %4211  ;;  %v1937_v56 = vpop.f32.mrf.mxu0 }
 0xc90   :  { %v4214_v52 = vpop.eup %4213  ;;  %v2044_v27 = vmul.f32 %v4212_v62, %v2042_v47  ;;  %v1938_v33 = vadd.f32 %v1937_v56, %v1918_v43  ;;  %vm2049_vm9 = vweird.f32 %v4212_v62  ;;  %v2033_v56 = vand.u32 2147483647, %v2023_v31 }
 0xc91   :  { %v2025_v3 = vmul.f32 %v4214_v52, %v2023_v31  ;;  %vm2030_vm11 = vweird.f32 %v4214_v52  ;;  %vm2050_vm12 = vmor %vm2048_vm10, %vm2049_vm9 }
 0xc92   :  { %v2045_v55 = vsub.f32 1.0, %v2044_v27  ;;  %v1958_v0 = vadd.f32 %v1957_v38, %v1938_v33  ;;  %v2035_v27 = vand.u32 2147483648, %v2023_v31  ;;  %vm2031_vm15 = vmor %vm2029_vm14, %vm2030_vm11  ;;  %vm2034_vm2 = vcmp.eq.f32.partialorder %v2033_v56, 8.507059e+37 }
 0xc93   :  { %v2026_v23 = vsub.f32 1.0, %v2025_v3  ;;  %v2055_v3 = vor.u32 1.1754944e-38, %v2054_v45 }
 0xc94   :  { %v2046_v58 = vmul.f32 %v4212_v62, %v2045_v55 }
 0xc95   :  { %v2027_v37 = vmul.f32 %v4214_v52, %v2026_v23 }
 0xc96   :  { %v2047_v1 = vadd.f32 %v4212_v62, %v2046_v58 }
 0xc97   :  { %v2028_v63 = vadd.f32 %v4214_v52, %v2027_v37 }
 0xc98   :  { %v2051_v43 = vsel %vm2050_vm12, %v4212_v62, %v2047_v1 }
 0xc99   :  { %v2032_v6 = vsel %vm2031_vm15, %v4214_v52, %v2028_v63  ;;  %v2056_v33 = vsel %vm2053_vm1, %v2055_v3, %v2051_v43  ;;  %v7639_v43 = vld [vmem:[#allocation10 + $0x5e8] sm:$0xff] }
 0xc9a   :  { %v2078_v37 = vmul.f32 %v2056_v33, %v7083_v60  ;;  %v7651_v33 = vld [vmem:[#allocation10 + $0x5a8] sm:$0xff] }
 0xcaf   :  { %v2017_v15 = vpop.f32.mrf.mxu0 }
 0xcb0   :  { %v2018_v30 = vadd.f32 %v2017_v15, %v1998_v28  ;;  %v2036_v28 = vor.u32 1.1754944e-38, %v2035_v27 }
 0xcb2   :  { %v4104_v40 = vmul.f32 -1.442695, %v2018_v30 }
 0xcb4   :  { %4215 = vpow2.f32 %v4104_v40 }
 0xcb5   :  { %4217 = vtanh.f32 %v1958_v0  ;;  %v2037_v0 = vsel %vm2034_vm2, %v2036_v28, %v2032_v6 }
 0xcba   :  { %v4216_v42 = vpop.eup %4215 }
 0xcbb   :  { %v2062_v55 = vadd.f32 1.0, %v4216_v42  ;;  %v4218_v40 = vpop.eup %4217  ;;  %v7642_v42 = vld [vmem:[#allocation8] sm:$0xff] }
 0xcbc   :  { %v2079_v47 = vmul.f32 %v4218_v40, %v2037_v0  ;;  %v7648_v40 = vld [vmem:[#allocation8 + $0x8] sm:$0xff]  ;;  %v7654_v0 = vld [vmem:[#allocation10 + $0x588] sm:$0xff] }
 0xcbd   :  { %4219 = vrcp.f32 %v2062_v55  ;;  %v2074_v45 = vand.u32 2147483648, %v2062_v55  ;;  %v2072_v52 = vand.u32 2147483647, %v2062_v55  ;;  %vm2068_vm4 = vweird.f32 %v2062_v55 }
 0xcbe   :  { %v7631_v15 = vadd.f32 %v2079_v47, %v2078_v37  ;;  %v7657_v37 = vld [vmem:[#allocation10 + $0x568] sm:$0xff] }
 0xcbf   :  { %v2075_v38 = vor.u32 1.1754944e-38, %v2074_v45  ;;  %vm2073_vm6 = vcmp.eq.f32.partialorder %v2072_v52, 8.507059e+37  ;;  %v7660_v47 = vld [vmem:[#allocation10 + $0x548] sm:$0xff] }
 0xcc0   :  { %4221 = vtanh.f32 %v7631_v15  ;;  %10494 = vst [vmem:[#allocation128_spill] sm:$0xff] %v7660_v47  ;;  %v7672_v45 = vld [vmem:[#allocation10 + $0x4c8] sm:$0xff] }
 0xcc1   :  { %10498 = vst [vmem:[#allocation132_spill] sm:$0xff] %v7672_v45  ;;  %v7678_v52 = vld [vmem:[#allocation10 + $0x488] sm:$0xff] }
 0xcc2   :  { %10500 = vst [vmem:[#allocation134_spill] sm:$0xff] %v7678_v52 }
 0xcc3   :  { %v4220_v23 = vpop.eup %4219 }
 0xcc4   :  { %v2064_v31 = vmul.f32 %v4220_v23, %v2062_v55  ;;  %vm2069_vm3 = vweird.f32 %v4220_v23  ;;  %v7645_v55 = vld [vmem:[#allocation10 + $0x5c8] sm:$0xff] }
 0xcc5   :  { %vm2070_vm5 = vmor %vm2068_vm4, %vm2069_vm3 }
 0xcc6   :  { %v2065_v1 = vsub.f32 1.0, %v2064_v31  ;;  %v4222_v63 = vpop.eup %4221  ;;  %v7666_v31 = vld [vmem:[#allocation10 + $0x508] sm:$0xff] }
 0xcc7   :  { %10496 = vst [vmem:[#allocation130_spill] sm:$0xff] %v7666_v31 }
 0xcc8   :  { %v2066_v62 = vmul.f32 %v4220_v23, %v2065_v1  ;;  %v7669_v1 = vld [vmem:[#allocation10 + $0x4e8] sm:$0xff] }
 0xcc9   :  { %10497 = vst [vmem:[#allocation131_spill] sm:$0xff] %v7669_v1 }
 0xcca   :  { %v2067_v30 = vadd.f32 %v4220_v23, %v2066_v62  ;;  %v7675_v62 = vld [vmem:[#allocation10 + $0x4a8] sm:$0xff] }
 0xccb   :  { %10499 = vst [vmem:[#allocation133_spill] sm:$0xff] %v7675_v62 }
 0xccc   :  { %v2071_v58 = vsel %vm2070_vm5, %v4220_v23, %v2067_v30  ;;  %v7663_v23 = vld [vmem:[#allocation10 + $0x528] sm:$0xff] }
 0xccd   :  { %v2076_v60 = vsel %vm2073_vm6, %v2075_v38, %v2071_v58  ;;  %10495 = vst [vmem:[#allocation129_spill] sm:$0xff] %v7663_v23  ;;  %v7681_v30 = vld [vmem:[#allocation10 + $0x468] sm:$0xff] }
 0xcce   :  { %v7634_v53 = vmul.f32 %v4222_v63, %v2076_v60  ;;  %10501 = vst [vmem:[#allocation135_spill] sm:$0xff] %v7681_v30  ;;  %v7684_v38 = vld [vmem:[#allocation10 + $0x448] sm:$0xff] }
 0xccf   :  { %10502 = vst [vmem:[#allocation136_spill] sm:$0xff] %v7684_v38  ;;  %v7687_v58 = vld [vmem:[#allocation10 + $0x428] sm:$0xff] }
 0xcd0   :  { %2182 = vmatmul.f32.vlgmr.msra.gmra.mxu1 %v7634_v53  ;;  %v2085_v27 = vperm.slane %v7634_v53, 0  ;;  %v2084_v56 = vrot.slane %v7634_v53, 1  ;;  %10503 = vst [vmem:[#allocation137_spill] sm:$0xff] %v7687_v58  ;;  %v7690_v63 = vld [vmem:[#allocation10 + $0x408] sm:$0xff] }
 0xcd1   :  { %2339 = vmatpush.msra.mxu1 %v7639_v43  ;;  %10504 = vst [vmem:[#allocation138_spill] sm:$0xff] %v7690_v63 }
 0xcd2   :  { %v2089_v3 = vmul.f32 %v7642_v42, %v2085_v27  ;;  %v2086_v6 = vperm.slane %v2084_v56, 0 }
 0xcd3   :  { %2340 = vmatpush.msra.mxu1 %v7645_v55 }
 0xcd4   :  { %2091 = vadd.xlane.f32.xlu0 %v2089_v3  ;;  %v2090_v28 = vmul.f32 %v7648_v40, %v2086_v6 }
 0xcd5   :  { %2341 = vmatpush.msra.mxu1 %v7651_v33 }
 0xcd6   :  { %2093 = vadd.xlane.f32.xlu2 %v2090_v28 }
 0xcd7   :  { %2342 = vmatpush.msra.mxu1 %v7654_v0 }
 0xcd9   :  { %2343 = vmatpush.msra.mxu1 %v7657_v37 }
 0xcdb   :  { %2344 = vmatpush.msra.mxu1 %v7660_v47 }
 0xcdd   :  { %2345 = vmatpush.msra.mxu1 %v7663_v23 }
 0xcdf   :  { %2346 = vmatpush.msra.mxu1 %v7666_v31 }
 0xce1   :  { %2347 = vmatpush.msra.mxu1 %v7669_v1 }
 0xce3   :  { %2348 = vmatpush.msra.mxu1 %v7672_v45 }
 0xce5   :  { %2349 = vmatpush.msra.mxu1 %v7675_v62 }
 0xce7   :  { %2350 = vmatpush.msra.mxu1 %v7678_v52 }
 0xce9   :  { %2351 = vmatpush.msra.mxu1 %v7681_v30 }
 0xceb   :  { %2352 = vmatpush.msra.mxu1 %v7684_v38 }
 0xced   :  { %2353 = vmatpush.msra.mxu1 %v7687_v58 }
 0xcef   :  { %2354 = vmatpush.msra.mxu1 %v7690_v63 }
 0xd47   :  { %v2092_v60 = vpop.xlane.xlu0 %2091 }
 0xd48   :  { %v2097_v56 = vperm.slane %v2092_v60, %v10331_v41 }
 0xd49   :  { %v2094_v27 = vpop.xlane.xlu2 %2093 }
 0xd4a   :  { %v2098_v3 = vperm.slane %v2094_v27, %v10331_v41 }
 0xd4c   :  { %v2099_v6 = vsel %vm397_vm0, %v2098_v3, %v2097_v56 }
 0xd4d   :  { %v2101_v28 = vsel %vm723_vm13, %v2099_v6, -inf }
 0xd4e   :  { %2102 = vmax.xlane.f32.xlu1 %v2101_v28 }
 0xdc1   :  { %v2103_v38 = vpop.xlane.xlu1 %2102 }
 0xdc2   :  { %v2105_v30 = vperm.slane %v2103_v38, 0  ;;  %v2106_v52 = vperm.slane %v2103_v38, 1 }
 0xdc4   :  { %v2109_v62 = vsub.f32 %v2092_v60, %v2105_v30  ;;  %v2110_v58 = vsub.f32 %v2094_v27, %v2106_v52  ;;  %v2232_v60 = vld [vmem:[#allocation5 + $0x4] sm:$0x1]  ;;  %v2233_v27 = vld [vmem:[#allocation5 + $0xc] sm:$0x1] }
 0xdc5   :  { %v2236_v28 = vrot.slane %v2233_v27, 7  ;;  %v7744_v27 = vld [vmem:[#allocation10 + $0x450] sm:$0xff] }
 0xdc6   :  { %v2111_v45 = vmul.f32 1.442695, %v2109_v62  ;;  %v2113_v1 = vmul.f32 1.442695, %v2110_v58  ;;  %10518 = vst [vmem:[#allocation152_spill] sm:$0xff] %v7744_v27 }
 0xdc8   :  { %4223 = vpow2.f32 %v2111_v45 }
 0xdc9   :  { %4225 = vpow2.f32 %v2113_v1 }
 0xdce   :  { %v4224_v63 = vpop.eup %4223 }
 0xdcf   :  { %v4226_v31 = vpop.eup %4225  ;;  %2118 = vperm.xlu1 %4130, %v4224_v63  }
 0xdd0   :  { %2121 = vperm.xlu0 %4132, %v4226_v31  }
 0xe41   :  { %v2119_v23 = vpop.permute.xlu1 %2118 }
 0xe42   :  { %v2122_v47 = vpop.permute.xlu0 %2121  ;;  %v2123_v56 = vperm.slane %v2119_v23, %v10331_v41  ;;  %v7702_v23 = vsel %vm397_vm0, %v2236_v28, %v2232_v60  ;;  %v7741_v60 = vld [vmem:[#allocation10 + $0x470] sm:$0xff] }
 0xe43   :  { %v2124_v3 = vperm.slane %v2122_v47, %v10331_v41  ;;  %2255 = vmatmul.f32.vlgmr.msrb.gmra.mxu0 %v7702_v23  ;;  %v7705_v47 = vld [vmem:[#allocation10 + $0x5f0] sm:$0xff]  ;;  %10517 = vst [vmem:[#allocation151_spill] sm:$0xff] %v7741_v60 }
 0xe44   :  { %10505 = vst [vmem:[#allocation139_spill] sm:$0xff] %v7705_v47  ;;  %2399 = vmatpush.msrb.mxu0 %v7705_v47 }
 0xe45   :  { %v2125_v6 = vsel %vm397_vm0, %v2124_v3, %v2123_v56  ;;  %v7708_v56 = vld [vmem:[#allocation10 + $0x5d0] sm:$0xff] }
 0xe46   :  { %v2127_v38 = vsel %vm723_vm13, %v2125_v6, 0.0  ;;  %10506 = vst [vmem:[#allocation140_spill] sm:$0xff] %v7708_v56  ;;  %2400 = vmatpush.msrb.mxu0 %v7708_v56  ;;  %v7717_v3 = vld [vmem:[#allocation10 + $0x570] sm:$0xff] }
 0xe47   :  { %2128 = vadd.xlane.f32.xlu1 %v2127_v38  ;;  %10509 = vst [vmem:[#allocation143_spill] sm:$0xff] %v7717_v3  ;;  %v7720_v6 = vld [vmem:[#allocation10 + $0x550] sm:$0xff] }
 0xe48   :  { %10510 = vst [vmem:[#allocation144_spill] sm:$0xff] %v7720_v6  ;;  %v7723_v38 = vld [vmem:[#allocation10 + $0x530] sm:$0xff] }
 0xe49   :  { %10511 = vst [vmem:[#allocation145_spill] sm:$0xff] %v7723_v38 }
 0xeba   :  { %v2129_v52 = vpop.xlane.xlu1 %2128 }
 0xebb   :  { %4227 = vrcp.f32 %v2129_v52  ;;  %v7726_v52 = vld [vmem:[#allocation10 + $0x510] sm:$0xff] }
 0xebc   :  { %10512 = vst [vmem:[#allocation146_spill] sm:$0xff] %v7726_v52 }
 0xec1   :  { %v4228_v62 = vpop.eup %4227 }
 0xec2   :  { %v2133_v45 = vperm.slane %v4228_v62, 1  ;;  %v2132_v1 = vperm.slane %v4228_v62, 0  ;;  %v7729_v62 = vld [vmem:[#allocation10 + $0x4f0] sm:$0xff] }
 0xec3   :  { %10513 = vst [vmem:[#allocation147_spill] sm:$0xff] %v7729_v62 }
 0xec4   :  { %v2137_v30 = vmul.f32 %v4226_v31, %v2133_v45  ;;  %v2136_v58 = vmul.f32 %v4224_v63, %v2132_v1  ;;  %v7711_v31 = vld [vmem:[#allocation10 + $0x5b0] sm:$0xff] }
 0xec5   :  { %10507 = vst [vmem:[#allocation141_spill] sm:$0xff] %v7711_v31  ;;  %2401 = vmatpush.msrb.mxu0 %v7711_v31  ;;  %v7714_v63 = vld [vmem:[#allocation10 + $0x590] sm:$0xff] }
 0xec6   :  { %2145 = vperm.xlu0 %4132, %v2137_v30   ;;  %2140 = vperm.xlu2 %4131, %v2136_v58   ;;  %10508 = vst [vmem:[#allocation142_spill] sm:$0xff] %v7714_v63  ;;  %v7732_v45 = vld [vmem:[#allocation10 + $0x4d0] sm:$0xff] }
 0xec7   :  { %2402 = vmatpush.msrb.mxu0 %v7714_v63  ;;  %10514 = vst [vmem:[#allocation148_spill] sm:$0xff] %v7732_v45  ;;  %v7735_v1 = vld [vmem:[#allocation10 + $0x4b0] sm:$0xff] }
 0xec8   :  { %10515 = vst [vmem:[#allocation149_spill] sm:$0xff] %v7735_v1  ;;  %v7738_v30 = vld [vmem:[#allocation10 + $0x490] sm:$0xff] }
 0xec9   :  { %2403 = vmatpush.msrb.mxu0 %v7717_v3  ;;  %10516 = vst [vmem:[#allocation150_spill] sm:$0xff] %v7738_v30 }
 0xecb   :  { %2404 = vmatpush.msrb.mxu0 %v7720_v6 }
 0xecd   :  { %2405 = vmatpush.msrb.mxu0 %v7723_v38 }
 0xecf   :  { %2406 = vmatpush.msrb.mxu0 %v7726_v52 }
 0xed1   :  { %2407 = vmatpush.msrb.mxu0 %v7729_v62 }
 0xed3   :  { %2408 = vmatpush.msrb.mxu0 %v7732_v45  ;;  %v7748_v45 = vld [vmem:[#allocation10 + $0x430] sm:$0xff] }
 0xed4   :  { %10519 = vst [vmem:[#allocation153_spill] sm:$0xff] %v7748_v45 }
 0xed5   :  { %2409 = vmatpush.msrb.mxu0 %v7735_v1  ;;  %v7751_v1 = vld [vmem:[#allocation10 + $0x410] sm:$0xff] }
 0xed7   :  { %2410 = vmatpush.msrb.mxu0 %v7738_v30 }
 0xed9   :  { %2411 = vmatpush.msrb.mxu0 %v7741_v60 }
 0xedb   :  { %2412 = vmatpush.msrb.mxu0 %v7744_v27 }
 0xedd   :  { %2413 = vmatpush.msrb.mxu0 %v7748_v45 }
 0xedf   :  { %2414 = vmatpush.msrb.mxu0 %v7751_v1 }
 0xf20   :  { %v2141_v58 = vpop.permute.xlu2 %2140 }
 0xf21   :  { %v2148_v28 = vmul.f32 %v7642_v42, %v2141_v58 }
 0xf23   :  { %v2150_v30 = vrot.slane %v2148_v28, 4 }
 0xf25   :  { %v2151_v62 = vadd.f32 %v2150_v30, %v2148_v28  ;;  %v7832_v30 = vld [vmem:[#allocation13 + $0x30] sm:$0xff]  ;;  %v7853_v28 = vld [vmem:[#allocation13 + $0x18] sm:$0xff] }
 0xf26   :  { %10520 = vst [vmem:[#allocation154_spill] sm:$0xff] %v7853_v28 }
 0xf27   :  { %v2152_v38 = vrot.slane %v2151_v62, 2 }
 0xf29   :  { %v2153_v3 = vadd.f32 %v2152_v38, %v2151_v62  ;;  %v7818_v38 = vld [vmem:[#allocation13 + $0x40] sm:$0xff]  ;;  %v7825_v62 = vld [vmem:[#allocation13 + $0x38] sm:$0xff] }
 0xf2b   :  { %v2154_v31 = vrot.slane %v2153_v3, 1 }
 0xf2d   :  { %v2155_v47 = vadd.f32 %v2154_v31, %v2153_v3  ;;  %v7794_v31 = vld [vmem:[#allocation10 + $0x178] sm:$0xff]  ;;  %v7811_v3 = vld [vmem:[#allocation13 + $0x48] sm:$0xff] }
 0xf38   :  { %v2146_v52 = vpop.permute.xlu0 %2145 }
 0xf39   :  { %v2149_v60 = vmul.f32 %v7648_v40, %v2146_v52  ;;  %v7762_v52 = vld [vmem:[#allocation10 + $0x1f8] sm:$0xff] }
 0xf3b   :  { %v2156_v6 = vrot.slane %v2149_v60, 4 }
 0xf3d   :  { %v2157_v63 = vadd.f32 %v2156_v6, %v2149_v60  ;;  %v7765_v6 = vld [vmem:[#allocation13 + $0x78] sm:$0xff]  ;;  %v7839_v60 = vld [vmem:[#allocation13 + $0x28] sm:$0xff] }
 0xf3f   :  { %v2158_v27 = vrot.slane %v2157_v63, 2 }
 0xf41   :  { %v2159_v58 = vadd.f32 %v2158_v27, %v2157_v63  ;;  %v7804_v63 = vld [vmem:[#allocation13 + $0x50] sm:$0xff]  ;;  %v7846_v27 = vld [vmem:[#allocation13 + $0x20] sm:$0xff] }
 0xf43   :  { %v2160_v56 = vrot.slane %v2159_v58, 1 }
 0xf45   :  { %v2161_v41 = vadd.f32 %v2160_v56, %v2159_v58  ;;  %v7779_v56 = vld [vmem:[#allocation13 + $0x68] sm:$0xff]  ;;  %v7860_v58 = vld [vmem:[#allocation13 + $0x10] sm:$0xff] }
 0xf47   :  { %v7756_v45 = vsel %vm397_vm0, %v2161_v41, %v2155_v47  ;;  %v7769_v41 = vld [vmem:[#allocation10 + $0x1d8] sm:$0xff] }
 0xf48   :  { %2202 = vmatmul.f32.vlgmr.msra.gmra.mxu2 %v7756_v45  ;;  %2275 = vmatmul.f32.vlgmr.msrb.gmra.mxu1 %v7756_v45  ;;  %v7772_v47 = vld [vmem:[#allocation13 + $0x70] sm:$0xff] }
 0xf49   :  { %2335 = vmatmul.f32.vlgmr.msra.gmra.mxu0 %v7756_v45  ;;  %2359 = vmatpush.msra.mxu2 %v7145_v21  ;;  %v7776_v21 = vld [vmem:[#allocation10 + $0x1b8] sm:$0xff] }
 0xf4a   :  { %2419 = vmatpush.msrb.mxu1 %v7762_v52  ;;  %2625 = vmatpush.msra.mxu0 %v7765_v6 }
 0xf4b   :  { %2360 = vmatpush.msra.mxu2 %v7150_v54  ;;  %v7787_v54 = vld [vmem:[#allocation10 + $0x198] sm:$0xff] }
 0xf4c   :  { %2420 = vmatpush.msrb.mxu1 %v7769_v41  ;;  %2626 = vmatpush.msra.mxu0 %v7772_v47 }
 0xf4d   :  { %2361 = vmatpush.msra.mxu2 %v7155_v36  ;;  %v7790_v36 = vld [vmem:[#allocation13 + $0x60] sm:$0xff] }
 0xf4e   :  { %2421 = vmatpush.msrb.mxu1 %v7776_v21  ;;  %2627 = vmatpush.msra.mxu0 %v7779_v56 }
 0xf4f   :  { %2362 = vmatpush.msra.mxu2 %v7160_v29  ;;  %v7797_v29 = vld [vmem:[#allocation13 + $0x58] sm:$0xff] }
 0xf50   :  { %2295 = vmatmul.f32.vlgmr.msrb.gmra.mxu2 %v7634_v53  ;;  %2355 = vmatmul.f32.vlgmr.msra.gmra.mxu1 %v7634_v53 }
 0xf51   :  { %2363 = vmatpush.msra.mxu2 %v7165_v25  ;;  %2415 = vmatmul.f32.vlgmr.msrb.gmra.mxu0 %v7634_v53  ;;  %v7801_v25 = vld [vmem:[#allocation10 + $0x158] sm:$0xff] }
 0xf52   :  { %2422 = vmatpush.msrb.mxu1 %v7787_v54  ;;  %2628 = vmatpush.msra.mxu0 %v7790_v36 }
 0xf53   :  { %2364 = vmatpush.msra.mxu2 %v7171_v9  ;;  %v7808_v9 = vld [vmem:[#allocation10 + $0x138] sm:$0xff] }
 0xf54   :  { %2423 = vmatpush.msrb.mxu1 %v7794_v31  ;;  %2629 = vmatpush.msra.mxu0 %v7797_v29 }
 0xf55   :  { %2365 = vmatpush.msra.mxu2 %v7176_v34  ;;  %v7815_v34 = vld [vmem:[#allocation10 + $0x118] sm:$0xff] }
 0xf56   :  { %2424 = vmatpush.msrb.mxu1 %v7801_v25  ;;  %2630 = vmatpush.msra.mxu0 %v7804_v63 }
 0xf57   :  { %2366 = vmatpush.msra.mxu2 %v7181_v16  ;;  %v7822_v16 = vld [vmem:[#allocation10 + $0xf8] sm:$0xff] }
 0xf58   :  { %2425 = vmatpush.msrb.mxu1 %v7808_v9  ;;  %2631 = vmatpush.msra.mxu0 %v7811_v3 }
 0xf59   :  { %2367 = vmatpush.msra.mxu2 %v7186_v7  ;;  %v7829_v7 = vld [vmem:[#allocation10 + $0xd8] sm:$0xff] }
 0xf5a   :  { %2426 = vmatpush.msrb.mxu1 %v7815_v34  ;;  %2632 = vmatpush.msra.mxu0 %v7818_v38 }
 0xf5b   :  { %2368 = vmatpush.msra.mxu2 %v7191_v35  ;;  %v7836_v35 = vld [vmem:[#allocation10 + $0xb8] sm:$0xff] }
 0xf5c   :  { %2427 = vmatpush.msrb.mxu1 %v7822_v16  ;;  %2633 = vmatpush.msra.mxu0 %v7825_v62 }
 0xf5d   :  { %2369 = vmatpush.msra.mxu2 %v7196_v11  ;;  %v7843_v11 = vld [vmem:[#allocation10 + $0x98] sm:$0xff] }
 0xf5e   :  { %2428 = vmatpush.msrb.mxu1 %v7829_v7  ;;  %2634 = vmatpush.msra.mxu0 %v7832_v30 }
 0xf5f   :  { %2370 = vmatpush.msra.mxu2 %v7201_v10  ;;  %v7850_v10 = vld [vmem:[#allocation10 + $0x78] sm:$0xff] }
 0xf60   :  { %2429 = vmatpush.msrb.mxu1 %v7836_v35  ;;  %2635 = vmatpush.msra.mxu0 %v7839_v60 }
 0xf61   :  { %2371 = vmatpush.msra.mxu2 %v7206_v48  ;;  %v7857_v48 = vld [vmem:[#allocation10 + $0x58] sm:$0xff] }
 0xf62   :  { %2430 = vmatpush.msrb.mxu1 %v7843_v11  ;;  %2636 = vmatpush.msra.mxu0 %v7846_v27 }
 0xf63   :  { %2372 = vmatpush.msra.mxu2 %v7211_v14  ;;  %v7865_v14 = vld [vmem:[#allocation10 + $0x38] sm:$0xff] }
 0xf64   :  { %2431 = vmatpush.msrb.mxu1 %v7850_v10  ;;  %2637 = vmatpush.msra.mxu0 %v7853_v28  ;;  %10521 = vst [vmem:[#allocation155_spill] sm:$0xff] %v7865_v14  ;;  %v7869_v28 = vld [vmem:[#allocation13 + $0x8] sm:$0xff] }
 0xf65   :  { %2373 = vmatpush.msra.mxu2 %v7216_v17  ;;  %v7873_v17 = vld [vmem:[#allocation10 + $0x18] sm:$0xff] }
 0xf66   :  { %2432 = vmatpush.msrb.mxu1 %v7857_v48  ;;  %2638 = vmatpush.msra.mxu0 %v7860_v58  ;;  %10522 = vst [vmem:[#allocation156_spill] sm:$0xff] %v7873_v17 }
 0xf67   :  { %2374 = vmatpush.msra.mxu2 %v7221_v18  ;;  %v7877_v18 = vld [vmem:[#allocation13] sm:$0xff] }
 0xf68   :  { %2433 = vmatpush.msrb.mxu1 %v7865_v14  ;;  %2375 = vmatmul.f32.vlgmr.msra.gmra.mxu2 %v7702_v23  ;;  %10523 = vst [vmem:[#allocation157_spill] sm:$0xff] %v7877_v18  ;;  %v7884_v14 = vld [vmem:[#allocation10 + $0x3e0] sm:$0xff] }
 0xf69   :  { %2439 = vmatpush.msrb.mxu2 %v7224_v26  ;;  %2639 = vmatpush.msra.mxu0 %v7869_v28  ;;  %v7881_v26 = vld [vmem:[#allocation13 + $0xf8] sm:$0xff]  ;;  %10525 = vst [vmem:[#allocation159_spill] sm:$0xff] %v7884_v14 }
 0xf6a   :  { %2434 = vmatpush.msrb.mxu1 %v7873_v17  ;;  %10524 = vst [vmem:[#allocation158_spill] sm:$0xff] %v7881_v26  ;;  %v7892_v17 = vld [vmem:[#allocation10 + $0x378] sm:$0xff] }
 0xf6b   :  { %2440 = vmatpush.msrb.mxu2 %v7230_v22  ;;  %2435 = vmatmul.f32.vlgmr.msrb.gmra.mxu1 %v7702_v23  ;;  %v7888_v22 = vld [vmem:[#allocation13 + $0xf0] sm:$0xff]  ;;  %10527 = vst [vmem:[#allocation161_spill] sm:$0xff] %v7892_v17 }
 0xf6c   :  { %2640 = vmatpush.msra.mxu0 %v7877_v18  ;;  %2645 = vmatpush.msra.mxu1 %v7881_v26  ;;  %10526 = vst [vmem:[#allocation160_spill] sm:$0xff] %v7888_v22  ;;  %v7899_v26 = vld [vmem:[#allocation10 + $0x358] sm:$0xff] }
 0xf6d   :  { %2441 = vmatpush.msrb.mxu2 %v7236_v8  ;;  %v7895_v8 = vld [vmem:[#allocation13 + $0xe8] sm:$0xff]  ;;  %10529 = vst [vmem:[#allocation163_spill] sm:$0xff] %v7899_v26 }
 0xf6e   :  { %2718 = vmatpush.msrb.mxu0 %v7884_v14  ;;  %2646 = vmatpush.msra.mxu1 %v7888_v22  ;;  %10528 = vst [vmem:[#allocation162_spill] sm:$0xff] %v7895_v8 }
 0xf6f   :  { %2442 = vmatpush.msrb.mxu2 %v7241_v4  ;;  %v7902_v4 = vld [vmem:[#allocation13 + $0xe0] sm:$0xff] }
 0xf70   :  { %2719 = vmatpush.msrb.mxu0 %v7245_v2  ;;  %2647 = vmatpush.msra.mxu1 %v7895_v8  ;;  %10530 = vst [vmem:[#allocation164_spill] sm:$0xff] %v7902_v4  ;;  %v7906_v2 = vld [vmem:[#allocation10 + $0x338] sm:$0xff] }
 0xf71   :  { %2443 = vmatpush.msrb.mxu2 %v7892_v17  ;;  %10531 = vst [vmem:[#allocation165_spill] sm:$0xff] %v7906_v2  ;;  %v7909_v17 = vld [vmem:[#allocation13 + $0xd8] sm:$0xff] }
 0xf72   :  { %2720 = vmatpush.msrb.mxu0 %v7250_v39  ;;  %2648 = vmatpush.msra.mxu1 %v7902_v4  ;;  %10532 = vst [vmem:[#allocation166_spill] sm:$0xff] %v7909_v17  ;;  %v7913_v39 = vld [vmem:[#allocation10 + $0x318] sm:$0xff] }
 0xf73   :  { %2444 = vmatpush.msrb.mxu2 %v7899_v26  ;;  %10533 = vst [vmem:[#allocation167_spill] sm:$0xff] %v7913_v39  ;;  %v7916_v26 = vld [vmem:[#allocation13 + $0xd0] sm:$0xff] }
 0xf74   :  { %2721 = vmatpush.msrb.mxu0 %v7255_v50  ;;  %2649 = vmatpush.msra.mxu1 %v7909_v17  ;;  %10534 = vst [vmem:[#allocation168_spill] sm:$0xff] %v7916_v26  ;;  %v7920_v50 = vld [vmem:[#allocation10 + $0x2f8] sm:$0xff] }
 0xf75   :  { %2445 = vmatpush.msrb.mxu2 %v7906_v2  ;;  %10535 = vst [vmem:[#allocation169_spill] sm:$0xff] %v7920_v50  ;;  %v7923_v2 = vld [vmem:[#allocation13 + $0xc8] sm:$0xff] }
 0xf76   :  { %2722 = vmatpush.msrb.mxu0 %v7260_v20  ;;  %2650 = vmatpush.msra.mxu1 %v7916_v26  ;;  %10536 = vst [vmem:[#allocation170_spill] sm:$0xff] %v7923_v2  ;;  %v7927_v20 = vld [vmem:[#allocation10 + $0x2d8] sm:$0xff] }
 0xf77   :  { %2446 = vmatpush.msrb.mxu2 %v7913_v39  ;;  %10537 = vst [vmem:[#allocation171_spill] sm:$0xff] %v7927_v20  ;;  %v7930_v39 = vld [vmem:[#allocation13 + $0xc0] sm:$0xff] }
 0xf78   :  { %2723 = vmatpush.msrb.mxu0 %v7265_v44  ;;  %2651 = vmatpush.msra.mxu1 %v7923_v2  ;;  %10538 = vst [vmem:[#allocation172_spill] sm:$0xff] %v7930_v39  ;;  %v7934_v44 = vld [vmem:[#allocation10 + $0x2b8] sm:$0xff] }
 0xf79   :  { %2447 = vmatpush.msrb.mxu2 %v7920_v50  ;;  %10539 = vst [vmem:[#allocation173_spill] sm:$0xff] %v7934_v44  ;;  %v7937_v50 = vld [vmem:[#allocation13 + $0xb8] sm:$0xff] }
 0xf7a   :  { %2724 = vmatpush.msrb.mxu0 %v7270_v51  ;;  %2652 = vmatpush.msra.mxu1 %v7930_v39  ;;  %10540 = vst [vmem:[#allocation174_spill] sm:$0xff] %v7937_v50  ;;  %v7941_v51 = vld [vmem:[#allocation10 + $0x298] sm:$0xff] }
 0xf7b   :  { %2448 = vmatpush.msrb.mxu2 %v7927_v20  ;;  %10541 = vst [vmem:[#allocation175_spill] sm:$0xff] %v7941_v51  ;;  %v7944_v20 = vld [vmem:[#allocation13 + $0xb0] sm:$0xff] }
 0xf7c   :  { %2725 = vmatpush.msrb.mxu0 %v7275_v57  ;;  %2653 = vmatpush.msra.mxu1 %v7937_v50  ;;  %10542 = vst [vmem:[#allocation176_spill] sm:$0xff] %v7944_v20  ;;  %v7948_v57 = vld [vmem:[#allocation10 + $0x278] sm:$0xff] }
 0xf7d   :  { %2449 = vmatpush.msrb.mxu2 %v7934_v44  ;;  %10543 = vst [vmem:[#allocation177_spill] sm:$0xff] %v7948_v57  ;;  %v7951_v44 = vld [vmem:[#allocation13 + $0xa8] sm:$0xff] }
 0xf7e   :  { %2726 = vmatpush.msrb.mxu0 %v7280_v13  ;;  %2654 = vmatpush.msra.mxu1 %v7944_v20  ;;  %10544 = vst [vmem:[#allocation178_spill] sm:$0xff] %v7951_v44  ;;  %v7955_v13 = vld [vmem:[#allocation10 + $0x258] sm:$0xff] }
 0xf7f   :  { %2450 = vmatpush.msrb.mxu2 %v7941_v51  ;;  %10545 = vst [vmem:[#allocation179_spill] sm:$0xff] %v7955_v13  ;;  %v7958_v51 = vld [vmem:[#allocation13 + $0xa0] sm:$0xff] }
 0xf80   :  { %2727 = vmatpush.msrb.mxu0 %v7285_v24  ;;  %2655 = vmatpush.msra.mxu1 %v7951_v44  ;;  %10546 = vst [vmem:[#allocation180_spill] sm:$0xff] %v7958_v51  ;;  %v7962_v24 = vld [vmem:[#allocation10 + $0x238] sm:$0xff] }
 0xf81   :  { %2451 = vmatpush.msrb.mxu2 %v7948_v57  ;;  %10547 = vst [vmem:[#allocation181_spill] sm:$0xff] %v7962_v24  ;;  %v7965_v57 = vld [vmem:[#allocation13 + $0x98] sm:$0xff] }
 0xf82   :  { %2728 = vmatpush.msrb.mxu0 %v7290_v59  ;;  %2656 = vmatpush.msra.mxu1 %v7958_v51  ;;  %10548 = vst [vmem:[#allocation182_spill] sm:$0xff] %v7965_v57  ;;  %v7969_v59 = vld [vmem:[#allocation10 + $0x218] sm:$0xff] }
 0xf83   :  { %2452 = vmatpush.msrb.mxu2 %v7955_v13  ;;  %10549 = vst [vmem:[#allocation183_spill] sm:$0xff] %v7969_v59  ;;  %v7972_v13 = vld [vmem:[#allocation13 + $0x90] sm:$0xff]  ;;  %v10595_v44 = vld [vmem:[#allocation59_spill] sm:$0xff] }
 0xf84   :  { %2729 = vmatpush.msrb.mxu0 %v7295_v61  ;;  %2657 = vmatpush.msra.mxu1 %v7965_v57  ;;  %10550 = vst [vmem:[#allocation184_spill] sm:$0xff] %v7972_v13  ;;  %v7977_v61 = vld [vmem:[#allocation13 + $0x88] sm:$0xff]  ;;  %v10589_v57 = vld [vmem:[#allocation67_spill] sm:$0xff]  ;;  %v10592_v51 = vld [vmem:[#allocation50_spill] sm:$0xff] }
 0xf85   :  { %2453 = vmatpush.msrb.mxu2 %v7962_v24  ;;  %10551 = vst [vmem:[#allocation185_spill] sm:$0xff] %v7977_v61  ;;  %v7980_v24 = vld [vmem:[#allocation14 + $0x78] sm:$0xff] }
 0xf86   :  { %2730 = vmatpush.msrb.mxu0 %v7300_v19  ;;  %2658 = vmatpush.msra.mxu1 %v7972_v13  ;;  %10552 = vst [vmem:[#allocation36_spill] sm:$0xff] %v7980_v24  ;;  %v7984_v19 = vld [vmem:[#allocation13 + $0x80] sm:$0xff] }
 0xf87   :  { %2454 = vmatpush.msrb.mxu2 %v7969_v59  ;;  %10553 = vst [vmem:[#allocation35_spill] sm:$0xff] %v7984_v19  ;;  %v7987_v59 = vld [vmem:[#allocation14 + $0x70] sm:$0xff]  ;;  %v7990_v13 = vld [vmem:[#allocation10 + $0x5e0] sm:$0xff] }
 0xf88   :  { %2455 = vmatmul.f32.vlgmr.msrb.gmra.mxu2 %v7756_v45  ;;  %2731 = vmatpush.msrb.mxu0 %v7306_v12  ;;  %10554 = vst [vmem:[#allocation37_spill] sm:$0xff] %v7987_v59  ;;  %v7994_v12 = vld [vmem:[#allocation14 + $0x68] sm:$0xff] }
 0xf89   :  { %2659 = vmatpush.msra.mxu1 %v7977_v61  ;;  %2666 = vmatpush.msra.mxu2 %v7980_v24  ;;  %10555 = vst [vmem:[#allocation39_spill] sm:$0xff] %v7990_v13  ;;  %v7997_v24 = vld [vmem:[#allocation10 + $0x5c0] sm:$0xff] }
 0xf8a   :  { %2732 = vmatpush.msrb.mxu0 %v7311_v32  ;;  %10556 = vst [vmem:[#allocation41_spill] sm:$0xff] %v7994_v12  ;;  %v8000_v32 = vld [vmem:[#allocation14 + $0x60] sm:$0xff] }
 0xf8b   :  { %2660 = vmatpush.msra.mxu1 %v7984_v19  ;;  %2667 = vmatpush.msra.mxu2 %v7987_v59  ;;  %10557 = vst [vmem:[#allocation43_spill] sm:$0xff] %v7997_v24  ;;  %v8003_v19 = vld [vmem:[#allocation10 + $0x5a0] sm:$0xff] }
 0xf8c   :  { %2733 = vmatpush.msrb.mxu0 %v7317_v5  ;;  %10558 = vst [vmem:[#allocation46_spill] sm:$0xff] %v8000_v32  ;;  %v8006_v59 = vld [vmem:[#allocation14 + $0x58] sm:$0xff] }
 0xf8d   :  { %2738 = vmatpush.msrb.mxu1 %v7990_v13  ;;  %2668 = vmatpush.msra.mxu2 %v7994_v12  ;;  %10559 = vst [vmem:[#allocation49_spill] sm:$0xff] %v8003_v19  ;;  %v8009_v5 = vld [vmem:[#allocation10 + $0x580] sm:$0xff]  ;;  %v10562_v12 = vld [vmem:[#allocation58_spill] sm:$0xff] }
 0xf8e   :  { %10560 = vst [vmem:[#allocation52_spill] sm:$0xff] %v8006_v59  ;;  %v8013_v13 = vld [vmem:[#allocation10 + $0x560] sm:$0xff] }
 0xf8f   :  { %2739 = vmatpush.msrb.mxu1 %v7997_v24  ;;  %2669 = vmatpush.msra.mxu2 %v8000_v32  ;;  %10561 = vst [vmem:[#allocation55_spill] sm:$0xff] %v8009_v5  ;;  %v10564_v24 = vld [vmem:[#allocation61_spill] sm:$0xff]  ;;  %v8017_v32 = vld [vmem:[#allocation10 + $0x540] sm:$0xff] }
 0xf90   :  { %10563 = vst [vmem:[#allocation58_spill] sm:$0xff] %v8013_v13  ;;  %v8021_v61 = vld [vmem:[#allocation10 + $0x520] sm:$0xff] }
 0xf91   :  { %2740 = vmatpush.msrb.mxu1 %v8003_v19  ;;  %2670 = vmatpush.msra.mxu2 %v8006_v59  ;;  %10565 = vst [vmem:[#allocation61_spill] sm:$0xff] %v8017_v32  ;;  %v10566_v19 = vld [vmem:[#allocation63_spill] sm:$0xff]  ;;  %v10568_v59 = vld [vmem:[#allocation66_spill] sm:$0xff] }
 0xf92   :  { %10567 = vst [vmem:[#allocation63_spill] sm:$0xff] %v8021_v61 }
 0xf93   :  { %2741 = vmatpush.msrb.mxu1 %v8009_v5  ;;  %2671 = vmatpush.msra.mxu2 %v10562_v12  ;;  %v8025_v5 = vld [vmem:[#allocation10 + $0x500] sm:$0xff]  ;;  %v10570_v12 = vld [vmem:[#allocation38_spill] sm:$0xff] }
 0xf94   :  { %10569 = vst [vmem:[#allocation66_spill] sm:$0xff] %v8025_v5 }
 0xf95   :  { %2742 = vmatpush.msrb.mxu1 %v8013_v13  ;;  %2672 = vmatpush.msra.mxu2 %v10564_v24  ;;  %v8029_v13 = vld [vmem:[#allocation10 + $0x4e0] sm:$0xff] }
 0xf96   :  { %10571 = vst [vmem:[#allocation38_spill] sm:$0xff] %v8029_v13  ;;  %v10572_v24 = vld [vmem:[#allocation40_spill] sm:$0xff] }
 0xf97   :  { %2743 = vmatpush.msrb.mxu1 %v8017_v32  ;;  %2673 = vmatpush.msra.mxu2 %v10566_v19  ;;  %v8033_v32 = vld [vmem:[#allocation10 + $0x4c0] sm:$0xff]  ;;  %v10574_v19 = vld [vmem:[#allocation42_spill] sm:$0xff] }
 0xf98   :  { %10573 = vst [vmem:[#allocation40_spill] sm:$0xff] %v8033_v32 }
 0xf99   :  { %2744 = vmatpush.msrb.mxu1 %v8021_v61  ;;  %2674 = vmatpush.msra.mxu2 %v10568_v59  ;;  %v8037_v61 = vld [vmem:[#allocation10 + $0x4a0] sm:$0xff]  ;;  %v10576_v59 = vld [vmem:[#allocation45_spill] sm:$0xff] }
 0xf9a   :  { %10575 = vst [vmem:[#allocation42_spill] sm:$0xff] %v8037_v61 }
 0xf9b   :  { %2745 = vmatpush.msrb.mxu1 %v8025_v5  ;;  %2675 = vmatpush.msra.mxu2 %v10570_v12  ;;  %v8041_v5 = vld [vmem:[#allocation10 + $0x480] sm:$0xff] }
 0xf9c   :  { %10577 = vst [vmem:[#allocation45_spill] sm:$0xff] %v8041_v5  ;;  %v10578_v12 = vld [vmem:[#allocation48_spill] sm:$0xff] }
 0xf9d   :  { %2746 = vmatpush.msrb.mxu1 %v8029_v13  ;;  %2676 = vmatpush.msra.mxu2 %v10572_v24  ;;  %v8045_v13 = vld [vmem:[#allocation10 + $0x460] sm:$0xff] }
 0xf9e   :  { %10579 = vst [vmem:[#allocation48_spill] sm:$0xff] %v8045_v13  ;;  %v10580_v24 = vld [vmem:[#allocation51_spill] sm:$0xff] }
 0xf9f   :  { %2747 = vmatpush.msrb.mxu1 %v8033_v32  ;;  %2677 = vmatpush.msra.mxu2 %v10574_v19  ;;  %v8049_v32 = vld [vmem:[#allocation10 + $0x440] sm:$0xff]  ;;  %v10582_v19 = vld [vmem:[#allocation54_spill] sm:$0xff] }
 0xfa0   :  { %10581 = vst [vmem:[#allocation51_spill] sm:$0xff] %v8049_v32 }
 0xfa1   :  { %2748 = vmatpush.msrb.mxu1 %v8037_v61  ;;  %2678 = vmatpush.msra.mxu2 %v10576_v59  ;;  %v8053_v61 = vld [vmem:[#allocation10 + $0x420] sm:$0xff]  ;;  %v10584_v59 = vld [vmem:[#allocation57_spill] sm:$0xff] }
 0xfa2   :  { %10583 = vst [vmem:[#allocation54_spill] sm:$0xff] %v8053_v61 }
 0xfa3   :  { %2749 = vmatpush.msrb.mxu1 %v8041_v5  ;;  %2679 = vmatpush.msra.mxu2 %v10578_v12  ;;  %v8057_v5 = vld [vmem:[#allocation10 + $0x400] sm:$0xff] }
 0xfa4   :  { %10585 = vst [vmem:[#allocation57_spill] sm:$0xff] %v8057_v5  ;;  %v10586_v12 = vld [vmem:[#allocation60_spill] sm:$0xff] }
 0xfa5   :  { %2750 = vmatpush.msrb.mxu1 %v8045_v13  ;;  %2680 = vmatpush.msra.mxu2 %v10580_v24  ;;  %v10587_v13 = vld [vmem:[#allocation64_spill] sm:$0xff]  ;;  %v10588_v24 = vld [vmem:[#allocation69_spill] sm:$0xff] }
 0xfa7   :  { %2751 = vmatpush.msrb.mxu1 %v8049_v32  ;;  %2681 = vmatpush.msra.mxu2 %v10582_v19  ;;  %v10590_v32 = vld [vmem:[#allocation44_spill] sm:$0xff]  ;;  %v10591_v19 = vld [vmem:[#allocation47_spill] sm:$0xff] }
 0xfa9   :  { %2752 = vmatpush.msrb.mxu1 %v8053_v61  ;;  %2758 = vmatpush.msrb.mxu2 %v10584_v59  ;;  %v10593_v61 = vld [vmem:[#allocation53_spill] sm:$0xff]  ;;  %v10594_v59 = vld [vmem:[#allocation56_spill] sm:$0xff] }
 0xfab   :  { %2753 = vmatpush.msrb.mxu1 %v8057_v5  ;;  %2759 = vmatpush.msrb.mxu2 %v10586_v12  ;;  %v10596_v5 = vld [vmem:[#allocation62_spill] sm:$0xff]  ;;  %v10597_v12 = vld [vmem:[#allocation65_spill] sm:$0xff] }
 0xfad   :  { %2760 = vmatpush.msrb.mxu2 %v10587_v13  ;;  %v10598_v13 = vld [vmem:[#allocation68_spill] sm:$0xff] }
 0xfaf   :  { %2761 = vmatpush.msrb.mxu2 %v10588_v24  ;;  %v10599_v24 = vld [vmem:[#allocation70_spill] sm:$0xff] }
 0xfb1   :  { %2762 = vmatpush.msrb.mxu2 %v10589_v57  ;;  %v10600_v57 = vld [vmem:[#allocation23_spill] sm:$0xff] }
 0xfb3   :  { %2763 = vmatpush.msrb.mxu2 %v10590_v32  ;;  %v2183_v32 = vpop.f32.mrf.mxu1 }
 0xfb5   :  { %2764 = vmatpush.msrb.mxu2 %v10591_v19  ;;  %v10601_v19 = vld [vmem:[#allocation24_spill] sm:$0xff] }
 0xfb6   :  { %v2184_v20 = vadd.f32 %v10601_v19, %v2183_v32  ;;  %v10611_v32 = vld [vmem:[#allocation34_spill] sm:$0xff]  ;;  %v10612_v19 = vld [vmem:[#allocation76_spill] sm:$0xff] }
 0xfb7   :  { %2765 = vmatpush.msrb.mxu2 %v10592_v51 }
 0xfb9   :  { %2766 = vmatpush.msrb.mxu2 %v10593_v61 }
 0xfbb   :  { %2767 = vmatpush.msrb.mxu2 %v10594_v59  ;;  %v10602_v59 = vld [vmem:[#allocation25_spill] sm:$0xff] }
 0xfbd   :  { %2768 = vmatpush.msrb.mxu2 %v10595_v44  ;;  %v10603_v44 = vld [vmem:[#allocation26_spill] sm:$0xff] }
 0xfbf   :  { %2769 = vmatpush.msrb.mxu2 %v10596_v5  ;;  %v10604_v5 = vld [vmem:[#allocation27_spill] sm:$0xff] }
 0xfc1   :  { %2770 = vmatpush.msrb.mxu2 %v10597_v12  ;;  %v10605_v12 = vld [vmem:[#allocation28_spill] sm:$0xff] }
 0xfc3   :  { %2771 = vmatpush.msrb.mxu2 %v10598_v13  ;;  %v10606_v13 = vld [vmem:[#allocation29_spill] sm:$0xff] }
 0xfc5   :  { %2772 = vmatpush.msrb.mxu2 %v10599_v24  ;;  %v10607_v24 = vld [vmem:[#allocation30_spill] sm:$0xff] }
 0xfc7   :  { %2773 = vmatpush.msrb.mxu2 %v10600_v57  ;;  %v10608_v57 = vld [vmem:[#allocation31_spill] sm:$0xff] }
 0xfcb   :  { %v2203_v51 = vpop.f32.mrf.mxu2 }
 0xfcc   :  { %v2204_v50 = vadd.f32 %v2203_v51, %v2184_v20  ;;  %v10609_v20 = vld [vmem:[#allocation32_spill] sm:$0xff]  ;;  %v10613_v51 = vld [vmem:[#allocation77_spill] sm:$0xff] }
 0xfce   :  { %4229 = vtanh.f32 %v2204_v50  ;;  %v10610_v50 = vld [vmem:[#allocation33_spill] sm:$0xff] }
 0xfd3   :  { %v2296_v39 = vpop.f32.mrf.mxu2 }
 0xfd4   :  { %v4230_v61 = vpop.eup %4229 }
 0xfd5   :  { %2223 = vmatmul.f32.vlgmr.msra.gmra.mxu3 %v4230_v61  ;;  %v10614_v61 = vld [vmem:[#allocation78_spill] sm:$0xff] }
 0xfd6   :  { %2379 = vmatpush.msra.mxu3 %v10602_v59  ;;  %v10615_v59 = vld [vmem:[#allocation79_spill] sm:$0xff] }
 0xfd8   :  { %2380 = vmatpush.msra.mxu3 %v10603_v44  ;;  %v10617_v44 = vld [vmem:[#allocation81_spill] sm:$0xff] }
 0xfda   :  { %2381 = vmatpush.msra.mxu3 %v10604_v5  ;;  %v10618_v5 = vld [vmem:[#allocation82_spill] sm:$0xff] }
 0xfdc   :  { %2382 = vmatpush.msra.mxu3 %v10605_v12  ;;  %v10619_v12 = vld [vmem:[#allocation83_spill] sm:$0xff] }
 0xfdd   :  { %2315 = vmatmul.f32.vlgmr.msrb.gmra.mxu3 %v7702_v23  ;;  %v10616_v23 = vld [vmem:[#allocation80_spill] sm:$0xff] }
 0xfde   :  { %2383 = vmatpush.msra.mxu3 %v10606_v13  ;;  %v10620_v13 = vld [vmem:[#allocation84_spill] sm:$0xff] }
 0xfe0   :  { %2384 = vmatpush.msra.mxu3 %v10607_v24  ;;  %v10621_v24 = vld [vmem:[#allocation85_spill] sm:$0xff] }
 0xfe2   :  { %2385 = vmatpush.msra.mxu3 %v10608_v57  ;;  %v10622_v57 = vld [vmem:[#allocation86_spill] sm:$0xff] }
 0xfe4   :  { %2386 = vmatpush.msra.mxu3 %v10609_v20  ;;  %v10623_v20 = vld [vmem:[#allocation87_spill] sm:$0xff] }
 0xfe6   :  { %2387 = vmatpush.msra.mxu3 %v10610_v50  ;;  %v10624_v50 = vld [vmem:[#allocation88_spill] sm:$0xff] }
 0xfe8   :  { %2388 = vmatpush.msra.mxu3 %v10611_v32  ;;  %v10625_v32 = vld [vmem:[#allocation89_spill] sm:$0xff] }
 0xfea   :  { %2389 = vmatpush.msra.mxu3 %v10612_v19  ;;  %v10626_v19 = vld [vmem:[#allocation90_spill] sm:$0xff] }
 0xfeb   :  { %v2376_v4 = vpop.f32.mrf.mxu2 }
 0xfec   :  { %2390 = vmatpush.msra.mxu3 %v10613_v51  ;;  %v10627_v51 = vld [vmem:[#allocation91_spill] sm:$0xff] }
 0xfee   :  { %2391 = vmatpush.msra.mxu3 %v10614_v61  ;;  %v10629_v61 = vld [vmem:[#allocation93_spill] sm:$0xff] }
 0xff0   :  { %2392 = vmatpush.msra.mxu3 %v10615_v59  ;;  %v10630_v59 = vld [vmem:[#allocation94_spill] sm:$0xff] }
 0xff2   :  { %2393 = vmatpush.msra.mxu3 %v10616_v23  ;;  %v10631_v23 = vld [vmem:[#allocation95_spill] sm:$0xff] }
 0xff4   :  { %2394 = vmatpush.msra.mxu3 %v10617_v44  ;;  %v10632_v44 = vld [vmem:[#allocation96_spill] sm:$0xff] }
 0xff5   :  { %2395 = vmatmul.f32.vlgmr.msra.gmra.mxu3 %v7756_v45  ;;  %v10628_v45 = vld [vmem:[#allocation92_spill] sm:$0xff] }
 0xff6   :  { %2459 = vmatpush.msrb.mxu3 %v10618_v5  ;;  %v10633_v5 = vld [vmem:[#allocation97_spill] sm:$0xff] }
 0xff8   :  { %2460 = vmatpush.msrb.mxu3 %v10619_v12  ;;  %v10634_v12 = vld [vmem:[#allocation98_spill] sm:$0xff] }
 0xffa   :  { %2461 = vmatpush.msrb.mxu3 %v10620_v13  ;;  %v10635_v13 = vld [vmem:[#allocation99_spill] sm:$0xff] }
 0xffc   :  { %2462 = vmatpush.msrb.mxu3 %v10621_v24  ;;  %v10636_v24 = vld [vmem:[#allocation100_spill] sm:$0xff] }
 0xffe   :  { %2463 = vmatpush.msrb.mxu3 %v10622_v57  ;;  %v10637_v57 = vld [vmem:[#allocation101_spill] sm:$0xff] }
0x1000   :  { %2464 = vmatpush.msrb.mxu3 %v10623_v20  ;;  %v10638_v20 = vld [vmem:[#allocation102_spill] sm:$0xff] }
0x1002   :  { %2465 = vmatpush.msrb.mxu3 %v10624_v50  ;;  %v10639_v50 = vld [vmem:[#allocation103_spill] sm:$0xff] }
0x1004   :  { %2466 = vmatpush.msrb.mxu3 %v10625_v32  ;;  %v10640_v32 = vld [vmem:[#allocation104_spill] sm:$0xff] }
0x1006   :  { %2467 = vmatpush.msrb.mxu3 %v10626_v19  ;;  %v10641_v19 = vld [vmem:[#allocation105_spill] sm:$0xff] }
0x1008   :  { %2468 = vmatpush.msrb.mxu3 %v10627_v51  ;;  %v10642_v51 = vld [vmem:[#allocation106_spill] sm:$0xff] }
0x100a   :  { %2469 = vmatpush.msrb.mxu3 %v10628_v45  ;;  %v10643_v45 = vld [vmem:[#allocation107_spill] sm:$0xff] }
0x100c   :  { %2470 = vmatpush.msrb.mxu3 %v10629_v61  ;;  %v10645_v61 = vld [vmem:[#allocation109_spill] sm:$0xff] }
0x100e   :  { %2471 = vmatpush.msrb.mxu3 %v10630_v59  ;;  %v10646_v59 = vld [vmem:[#allocation110_spill] sm:$0xff] }
0x1010   :  { %2472 = vmatpush.msrb.mxu3 %v10631_v23  ;;  %v10647_v23 = vld [vmem:[#allocation111_spill] sm:$0xff] }
0x1012   :  { %2473 = vmatpush.msrb.mxu3 %v10632_v44  ;;  %v10648_v44 = vld [vmem:[#allocation112_spill] sm:$0xff] }
0x1014   :  { %2474 = vmatpush.msrb.mxu3 %v10633_v5  ;;  %v10649_v5 = vld [vmem:[#allocation113_spill] sm:$0xff] }
0x1015   :  { %2475 = vmatmul.f32.vlgmr.msrb.gmra.mxu3 %v7634_v53  ;;  %v10644_v53 = vld [vmem:[#allocation108_spill] sm:$0xff] }
0x1016   :  { %2698 = vmatpush.msra.mxu3 %v10634_v12  ;;  %v10650_v12 = vld [vmem:[#allocation114_spill] sm:$0xff] }
0x1018   :  { %2699 = vmatpush.msra.mxu3 %v10635_v13  ;;  %v10651_v13 = vld [vmem:[#allocation115_spill] sm:$0xff] }
0x101a   :  { %2700 = vmatpush.msra.mxu3 %v10636_v24  ;;  %v10652_v24 = vld [vmem:[#allocation116_spill] sm:$0xff] }
0x101c   :  { %2701 = vmatpush.msra.mxu3 %v10637_v57  ;;  %v10653_v57 = vld [vmem:[#allocation118_spill] sm:$0xff] }
0x101e   :  { %2702 = vmatpush.msra.mxu3 %v10638_v20  ;;  %v10654_v20 = vld [vmem:[#allocation117_spill] sm:$0xff] }
0x1020   :  { %2703 = vmatpush.msra.mxu3 %v10639_v50  ;;  %v10655_v50 = vld [vmem:[#allocation73_spill] sm:$0xff] }
0x1022   :  { %2704 = vmatpush.msra.mxu3 %v10640_v32  ;;  %v10656_v32 = vld [vmem:[#allocation74_spill] sm:$0xff] }
0x1024   :  { %2705 = vmatpush.msra.mxu3 %v10641_v19  ;;  %v10657_v19 = vld [vmem:[#allocation75_spill] sm:$0xff] }
0x1026   :  { %2706 = vmatpush.msra.mxu3 %v10642_v51  ;;  %v10658_v51 = vld [vmem:[#allocation119_spill] sm:$0xff] }
0x1028   :  { %2707 = vmatpush.msra.mxu3 %v10643_v45  ;;  %v10659_v45 = vld [vmem:[#allocation120_spill] sm:$0xff] }
0x102a   :  { %2708 = vmatpush.msra.mxu3 %v10644_v53  ;;  %v10660_v53 = vld [vmem:[#allocation121_spill] sm:$0xff] }
0x102c   :  { %2709 = vmatpush.msra.mxu3 %v10645_v61  ;;  %v10661_v61 = vld [vmem:[#allocation122_spill] sm:$0xff] }
0x102e   :  { %2710 = vmatpush.msra.mxu3 %v10646_v59  ;;  %v10662_v59 = vld [vmem:[#allocation123_spill] sm:$0xff] }
0x1030   :  { %2711 = vmatpush.msra.mxu3 %v10647_v23  ;;  %v10663_v23 = vld [vmem:[#allocation124_spill] sm:$0xff] }
0x1032   :  { %2712 = vmatpush.msra.mxu3 %v10648_v44  ;;  %v10664_v44 = vld [vmem:[#allocation125_spill] sm:$0xff] }
0x1034   :  { %2713 = vmatpush.msra.mxu3 %v10649_v5  ;;  %v10665_v5 = vld [vmem:[#allocation127_spill] sm:$0xff] }
0x1036   :  { %2778 = vmatpush.msrb.mxu3 %v10650_v12 }
0x1038   :  { %2779 = vmatpush.msrb.mxu3 %v10651_v13  ;;  %v10666_v13 = vld [vmem:[#allocation126_spill] sm:$0xff] }
0x103a   :  { %2780 = vmatpush.msrb.mxu3 %v10652_v24 }
0x103c   :  { %2781 = vmatpush.msrb.mxu3 %v10653_v57 }
0x103e   :  { %2782 = vmatpush.msrb.mxu3 %v10654_v20  ;;  %v2256_v20 = vpop.f32.mrf.mxu0 }
0x1040   :  { %2783 = vmatpush.msrb.mxu3 %v10655_v50  ;;  %v2276_v50 = vpop.f32.mrf.mxu1 }
0x1042   :  { %2784 = vmatpush.msrb.mxu3 %v10656_v32 }
0x1044   :  { %2785 = vmatpush.msrb.mxu3 %v10657_v19  ;;  %v10667_v19 = vld [vmem:[#allocation72_spill] sm:$0xff] }
0x1046   :  { %2786 = vmatpush.msrb.mxu3 %v10658_v51 }
0x1048   :  { %2787 = vmatpush.msrb.mxu3 %v10659_v45  ;;  %v2336_v45 = vpop.f32.mrf.mxu0 }
0x104a   :  { %2788 = vmatpush.msrb.mxu3 %v10660_v53  ;;  %v10668_v53 = vld [vmem:[#allocation71_spill] sm:$0xff] }
0x104c   :  { %2789 = vmatpush.msrb.mxu3 %v10661_v61  ;;  %v2257_v61 = vadd.f32 %v2256_v20, %v10668_v53 }
0x104e   :  { %2790 = vmatpush.msrb.mxu3 %v10662_v59 }
0x1050   :  { %2791 = vmatpush.msrb.mxu3 %v10663_v23  ;;  %v2356_v23 = vpop.f32.mrf.mxu1 }
0x1052   :  { %2792 = vmatpush.msrb.mxu3 %v10664_v44  ;;  %v2277_v44 = vadd.f32 %v2276_v50, %v2257_v61  ;;  %v2377_v50 = vadd.f32 %v2376_v4, %v10141_v46  ;;  %v2456_v61 = vpop.f32.mrf.mxu2 }
0x1054   :  { %2793 = vmatpush.msrb.mxu3 %v10665_v5  ;;  %v2297_v5 = vadd.f32 %v2296_v39, %v2277_v44 }
0x1056   :  { %v4105_v17 = vmul.f32 -1.442695, %v2297_v5 }
0x1058   :  { %v2224_v12 = vpop.f32.mrf.mxu3 }
0x1059   :  { %v2225_v24 = vadd.f32 %v10666_v13, %v2224_v12 }
0x105b   :  { %v2228_v57 = vrot.slane %v2225_v24, 1  ;;  %2230 = vst [vmem:[#allocation16 + $0x3] sm:$0x1] %v2225_v24 }
0x105d   :  { %2231 = vst [vmem:[#allocation16 + $0xb] sm:$0x1] %v2228_v57 }
0x1060   :  { %v2316_v32 = vpop.f32.mrf.mxu3 }
0x1061   :  { %v2317_v51 = vadd.f32 %v2316_v32, %v10667_v19  ;;  %v2436_v19 = vpop.f32.mrf.mxu1 }
0x1062   :  { %v2437_v39 = vadd.f32 %v2436_v19, %v10142_v49 }
0x1063   :  { %v2337_v59 = vadd.f32 %v2336_v45, %v2317_v51 }
0x1065   :  { %v2357_v2 = vadd.f32 %v2356_v23, %v2337_v59 }
0x1067   :  { %v4106_v26 = vmul.f32 -1.442695, %v2357_v2 }
0x1069   :  { %4231 = vpow2.f32 %v4106_v26 }
0x106a   :  { %4233 = vpow2.f32 %v4105_v17  ;;  %v2457_v17 = vadd.f32 %v2456_v61, %v2437_v39 }
0x106f   :  { %v4232_v12 = vpop.eup %4231 }
0x1070   :  { %v4234_v13 = vpop.eup %4233  ;;  %v2501_v24 = vadd.f32 1.0, %v4232_v12  ;;  %v2416_v12 = vpop.f32.mrf.mxu0 }
0x1071   :  { %v2482_v57 = vadd.f32 1.0, %v4234_v13 }
0x1072   :  { %4235 = vrcp.f32 %v2501_v24  ;;  %v2513_v18 = vand.u32 2147483648, %v2501_v24  ;;  %vm2507_vm8 = vweird.f32 %v2501_v24  ;;  %v2511_v19 = vand.u32 2147483647, %v2501_v24 }
0x1073   :  { %4237 = vrcp.f32 %v2482_v57  ;;  %vm2488_vm11 = vweird.f32 %v2482_v57 }
0x1074   :  { %vm2512_vm14 = vcmp.eq.f32.partialorder %v2511_v19, 8.507059e+37 }
0x1078   :  { %v4236_v32 = vpop.eup %4235  ;;  %v2396_v20 = vpop.f32.mrf.mxu3 }
0x1079   :  { %v4238_v51 = vpop.eup %4237  ;;  %v2503_v45 = vmul.f32 %v4236_v32, %v2501_v24  ;;  %v2397_v59 = vadd.f32 %v2396_v20, %v2377_v50  ;;  %vm2508_vm7 = vweird.f32 %v4236_v32  ;;  %v2492_v20 = vand.u32 2147483647, %v2482_v57 }
0x107a   :  { %v2484_v2 = vmul.f32 %v4238_v51, %v2482_v57  ;;  %vm2489_vm9 = vweird.f32 %v4238_v51  ;;  %vm2509_vm10 = vmor %vm2507_vm8, %vm2508_vm7 }
0x107b   :  { %v2504_v26 = vsub.f32 1.0, %v2503_v45  ;;  %v2417_v53 = vadd.f32 %v2416_v12, %v2397_v59  ;;  %v2494_v45 = vand.u32 2147483648, %v2482_v57  ;;  %vm2490_vm12 = vmor %vm2488_vm11, %vm2489_vm9  ;;  %vm2493_vm15 = vcmp.eq.f32.partialorder %v2492_v20, 8.507059e+37 }
0x107c   :  { %v2485_v23 = vsub.f32 1.0, %v2484_v2  ;;  %v2514_v2 = vor.u32 1.1754944e-38, %v2513_v18 }
0x107d   :  { %v2505_v13 = vmul.f32 %v4236_v32, %v2504_v26 }
0x107e   :  { %v2486_v22 = vmul.f32 %v4238_v51, %v2485_v23 }
0x107f   :  { %v2506_v14 = vadd.f32 %v4236_v32, %v2505_v13 }
0x1080   :  { %v2487_v4 = vadd.f32 %v4238_v51, %v2486_v22 }
0x1081   :  { %v2510_v50 = vsel %vm2509_vm10, %v4236_v32, %v2506_v14 }
0x1082   :  { %v2491_v61 = vsel %vm2490_vm12, %v4238_v51, %v2487_v4  ;;  %v2515_v59 = vsel %vm2512_vm14, %v2514_v2, %v2510_v50 }
0x1083   :  { %v2537_v22 = vmul.f32 %v2515_v59, %v7631_v15  ;;  %v10675_v59 = vld [vmem:[#allocation134_spill] sm:$0xff] }
0x1098   :  { %v2476_v44 = vpop.f32.mrf.mxu3 }
0x1099   :  { %v2477_v5 = vadd.f32 %v2476_v44, %v2457_v17  ;;  %v2495_v17 = vor.u32 1.1754944e-38, %v2494_v45 }
0x109b   :  { %v4107_v8 = vmul.f32 -1.442695, %v2477_v5 }
0x109d   :  { %4239 = vpow2.f32 %v4107_v8 }
0x109e   :  { %4241 = vtanh.f32 %v2417_v53  ;;  %v2496_v53 = vsel %vm2493_vm15, %v2495_v17, %v2491_v61  ;;  %v10669_v61 = vld [vmem:[#allocation128_spill] sm:$0xff] }
0x109f   :  { %v10673_v17 = vld [vmem:[#allocation132_spill] sm:$0xff] }
0x10a3   :  { %v4240_v39 = vpop.eup %4239 }
0x10a4   :  { %v2521_v26 = vadd.f32 1.0, %v4240_v39  ;;  %v4242_v8 = vpop.eup %4241 }
0x10a5   :  { %v2538_v24 = vmul.f32 %v4242_v8, %v2496_v53  ;;  %v10672_v8 = vld [vmem:[#allocation131_spill] sm:$0xff]  ;;  %v10677_v53 = vld [vmem:[#allocation136_spill] sm:$0xff] }
0x10a6   :  { %4243 = vrcp.f32 %v2521_v26  ;;  %v2533_v18 = vand.u32 2147483648, %v2521_v26  ;;  %v2531_v51 = vand.u32 2147483647, %v2521_v26  ;;  %vm2527_vm2 = vweird.f32 %v2521_v26 }
0x10a7   :  { %v8149_v44 = vadd.f32 %v2538_v24, %v2537_v22 }
0x10a8   :  { %v2534_v12 = vor.u32 1.1754944e-38, %v2533_v18  ;;  %vm2532_vm4 = vcmp.eq.f32.partialorder %v2531_v51, 8.507059e+37 }
0x10a9   :  { %4245 = vtanh.f32 %v8149_v44 }
0x10ac   :  { %v4244_v23 = vpop.eup %4243 }
0x10ad   :  { %v2523_v57 = vmul.f32 %v4244_v23, %v2521_v26  ;;  %vm2528_vm1 = vweird.f32 %v4244_v23  ;;  %v10670_v26 = vld [vmem:[#allocation129_spill] sm:$0xff] }
0x10ae   :  { %vm2529_vm3 = vmor %vm2527_vm2, %vm2528_vm1 }
0x10af   :  { %v2524_v14 = vsub.f32 1.0, %v2523_v57  ;;  %v4246_v4 = vpop.eup %4245 }
0x10b1   :  { %v2525_v32 = vmul.f32 %v4244_v23, %v2524_v14 }
0x10b3   :  { %v2526_v5 = vadd.f32 %v4244_v23, %v2525_v32 }
0x10b5   :  { %v2530_v13 = vsel %vm2529_vm3, %v4244_v23, %v2526_v5  ;;  %v10680_v23 = vld [vmem:[#allocation22_spill] sm:$0xff] }
0x10b6   :  { %v2535_v15 = vsel %vm2532_vm4, %v2534_v12, %v2530_v13 }
0x10b7   :  { %v8152_v19 = vmul.f32 %v4246_v4, %v2535_v15 }
0x10b9   :  { %2641 = vmatmul.f32.vlgmr.msra.gmra.mxu0 %v8152_v19  ;;  %v2544_v45 = vperm.slane %v8152_v19, 0  ;;  %v2543_v20 = vrot.slane %v8152_v19, 1 }
0x10ba   :  { %2798 = vmatpush.msra.mxu0 %v7639_v43  ;;  %v10671_v43 = vld [vmem:[#allocation130_spill] sm:$0xff] }
0x10bb   :  { %v2548_v50 = vmul.f32 %v7642_v42, %v2544_v45  ;;  %v2545_v39 = vperm.slane %v2543_v20, 0 }
0x10bc   :  { %2799 = vmatpush.msra.mxu0 %v7645_v55  ;;  %v10674_v55 = vld [vmem:[#allocation133_spill] sm:$0xff] }
0x10bd   :  { %2550 = vadd.xlane.f32.xlu0 %v2548_v50  ;;  %v2549_v2 = vmul.f32 %v7648_v40, %v2545_v39 }
0x10be   :  { %2800 = vmatpush.msra.mxu0 %v7651_v33  ;;  %v10676_v33 = vld [vmem:[#allocation135_spill] sm:$0xff] }
0x10bf   :  { %2552 = vadd.xlane.f32.xlu2 %v2549_v2 }
0x10c0   :  { %2801 = vmatpush.msra.mxu0 %v7654_v0  ;;  %v10678_v0 = vld [vmem:[#allocation137_spill] sm:$0xff] }
0x10c2   :  { %2802 = vmatpush.msra.mxu0 %v7657_v37  ;;  %v10679_v37 = vld [vmem:[#allocation138_spill] sm:$0xff] }
0x10c4   :  { %2803 = vmatpush.msra.mxu0 %v10669_v61 }
0x10c6   :  { %2804 = vmatpush.msra.mxu0 %v10670_v26 }
0x10c8   :  { %2805 = vmatpush.msra.mxu0 %v10671_v43 }
0x10ca   :  { %2806 = vmatpush.msra.mxu0 %v10672_v8 }
0x10cc   :  { %2807 = vmatpush.msra.mxu0 %v10673_v17  ;;  %v2691_v17 = vld [vmem:[#allocation5 + $0x5] sm:$0x1] }
0x10ce   :  { %2808 = vmatpush.msra.mxu0 %v10674_v55  ;;  %v2692_v55 = vld [vmem:[#allocation5 + $0xd] sm:$0x1] }
0x10d0   :  { %2809 = vmatpush.msra.mxu0 %v10675_v59  ;;  %v2695_v59 = vrot.slane %v2692_v55, 7 }
0x10d2   :  { %2810 = vmatpush.msra.mxu0 %v10676_v33  ;;  %v8184_v33 = vsel %vm397_vm0, %v2695_v59, %v2691_v17 }
0x10d3   :  { %2714 = vmatmul.f32.vlgmr.msra.gmra.mxu3 %v8184_v33 }
0x10d4   :  { %2811 = vmatpush.msra.mxu0 %v10677_v53  ;;  %v10681_v53 = vld [vmem:[#allocation139_spill] sm:$0xff] }
0x10d5   :  { %2858 = vmatpush.msra.mxu3 %v10681_v53 }
0x10d6   :  { %2812 = vmatpush.msra.mxu0 %v10678_v0  ;;  %v10682_v0 = vld [vmem:[#allocation140_spill] sm:$0xff] }
0x10d7   :  { %2859 = vmatpush.msra.mxu3 %v10682_v0 }
0x10d8   :  { %2813 = vmatpush.msra.mxu0 %v10679_v37  ;;  %v10683_v37 = vld [vmem:[#allocation141_spill] sm:$0xff] }
0x10d9   :  { %2860 = vmatpush.msra.mxu3 %v10683_v37 }
0x1130   :  { %v2551_v22 = vpop.xlane.xlu0 %2550 }
0x1131   :  { %v2556_v57 = vperm.slane %v2551_v22, %v10680_v23 }
0x1132   :  { %v2553_v24 = vpop.xlane.xlu2 %2552 }
0x1133   :  { %v2557_v14 = vperm.slane %v2553_v24, %v10680_v23 }
0x1135   :  { %v2558_v18 = vsel %vm397_vm0, %v2557_v14, %v2556_v57  ;;  %v10686_v57 = vld [vmem:[#allocation144_spill] sm:$0xff]  ;;  %v10687_v14 = vld [vmem:[#allocation145_spill] sm:$0xff] }
0x1136   :  { %v2560_v32 = vsel %vm723_vm13, %v2558_v18, -inf  ;;  %v10688_v18 = vld [vmem:[#allocation146_spill] sm:$0xff] }
0x1137   :  { %2561 = vmax.xlane.f32.xlu1 %v2560_v32 }
0x11aa   :  { %v2562_v51 = vpop.xlane.xlu1 %2561 }
0x11ab   :  { %v2564_v5 = vperm.slane %v2562_v51, 0  ;;  %v2565_v12 = vperm.slane %v2562_v51, 1  ;;  %v10689_v51 = vld [vmem:[#allocation147_spill] sm:$0xff] }
0x11ad   :  { %v2568_v13 = vsub.f32 %v2551_v22, %v2564_v5  ;;  %v2569_v4 = vsub.f32 %v2553_v24, %v2565_v12  ;;  %v10684_v22 = vld [vmem:[#allocation142_spill] sm:$0xff]  ;;  %v10685_v24 = vld [vmem:[#allocation143_spill] sm:$0xff]  ;;  %v10690_v5 = vld [vmem:[#allocation148_spill] sm:$0xff] }
0x11ae   :  { %2861 = vmatpush.msra.mxu3 %v10684_v22  ;;  %v10691_v12 = vld [vmem:[#allocation149_spill] sm:$0xff] }
0x11af   :  { %v2570_v15 = vmul.f32 1.442695, %v2568_v13  ;;  %v2572_v45 = vmul.f32 1.442695, %v2569_v4  ;;  %v10692_v4 = vld [vmem:[#allocation150_spill] sm:$0xff] }
0x11b0   :  { %2862 = vmatpush.msra.mxu3 %v10685_v24 }
0x11b1   :  { %4247 = vpow2.f32 %v2570_v15 }
0x11b2   :  { %4249 = vpow2.f32 %v2572_v45  ;;  %2863 = vmatpush.msra.mxu3 %v10686_v57 }
0x11b4   :  { %2864 = vmatpush.msra.mxu3 %v10687_v14 }
0x11b6   :  { %2865 = vmatpush.msra.mxu3 %v10688_v18 }
0x11b7   :  { %v4248_v20 = vpop.eup %4247 }
0x11b8   :  { %v4250_v50 = vpop.eup %4249  ;;  %2577 = vperm.xlu1 %4130, %v4248_v20   ;;  %2866 = vmatpush.msra.mxu3 %v10689_v51 }
0x11b9   :  { %2580 = vperm.xlu0 %4132, %v4250_v50  }
0x11ba   :  { %2867 = vmatpush.msra.mxu3 %v10690_v5  ;;  %v8221_v5 = vld [vmem:[#allocation10 + $0x1b0] sm:$0xff] }
0x11bc   :  { %2868 = vmatpush.msra.mxu3 %v10691_v12  ;;  %v8226_v12 = vld [vmem:[#allocation10 + $0x190] sm:$0xff] }
0x11be   :  { %2869 = vmatpush.msra.mxu3 %v10692_v4  ;;  %v8321_v4 = vld [vmem:[#allocation10 + $0x380] sm:$0xff] }
0x122a   :  { %v2578_v39 = vpop.permute.xlu1 %2577 }
0x122b   :  { %v2581_v2 = vpop.permute.xlu0 %2580  ;;  %v2582_v61 = vperm.slane %v2578_v39, %v10680_v23  ;;  %v10693_v39 = vld [vmem:[#allocation151_spill] sm:$0xff] }
0x122c   :  { %v2583_v26 = vperm.slane %v2581_v2, %v10680_v23  ;;  %2870 = vmatpush.msra.mxu3 %v10693_v39  ;;  %v8326_v39 = vld [vmem:[#allocation10 + $0x360] sm:$0xff] }
0x122e   :  { %v2584_v43 = vsel %vm397_vm0, %v2583_v26, %v2582_v61  ;;  %v10694_v26 = vld [vmem:[#allocation152_spill] sm:$0xff] }
0x122f   :  { %v2586_v8 = vsel %vm723_vm13, %v2584_v43, 0.0  ;;  %2871 = vmatpush.msra.mxu3 %v10694_v26  ;;  %v10695_v43 = vld [vmem:[#allocation153_spill] sm:$0xff]  ;;  %v8331_v26 = vld [vmem:[#allocation10 + $0x340] sm:$0xff] }
0x1230   :  { %2587 = vadd.xlane.f32.xlu2 %v2586_v8 }
0x1231   :  { %2872 = vmatpush.msra.mxu3 %v10695_v43  ;;  %v10711_v43 = vld [vmem:[#allocation169_spill] sm:$0xff] }
0x1233   :  { %2873 = vmatpush.msra.mxu3 %v7751_v1 }
0x12a3   :  { %v2588_v32 = vpop.xlane.xlu2 %2587 }
0x12a4   :  { %4251 = vrcp.f32 %v2588_v32 }
0x12aa   :  { %v4252_v13 = vpop.eup %4251 }
0x12ab   :  { %v2592_v15 = vperm.slane %v4252_v13, 1  ;;  %v2591_v45 = vperm.slane %v4252_v13, 0  ;;  %v10706_v13 = vld [vmem:[#allocation164_spill] sm:$0xff] }
0x12ad   :  { %v2596_v2 = vmul.f32 %v4250_v50, %v2592_v15  ;;  %v2595_v61 = vmul.f32 %v4248_v20, %v2591_v45  ;;  %v10707_v15 = vld [vmem:[#allocation165_spill] sm:$0xff]  ;;  %v10708_v45 = vld [vmem:[#allocation166_spill] sm:$0xff] }
0x12af   :  { %2604 = vperm.xlu1 %4130, %v2596_v2   ;;  %2599 = vperm.xlu0 %4132, %v2595_v61   ;;  %v10709_v2 = vld [vmem:[#allocation167_spill] sm:$0xff]  ;;  %v10710_v61 = vld [vmem:[#allocation168_spill] sm:$0xff] }
0x1321   :  { %v2605_v8 = vpop.permute.xlu1 %2604  ;;  %v2600_v17 = vpop.permute.xlu0 %2599 }
0x1322   :  { %v2608_v55 = vmul.f32 %v7648_v40, %v2605_v8  ;;  %v2607_v59 = vmul.f32 %v7642_v42, %v2600_v17  ;;  %v8211_v42 = vld [vmem:[#allocation10 + $0x1f0] sm:$0xff]  ;;  %v8336_v17 = vld [vmem:[#allocation10 + $0x320] sm:$0xff] }
0x1323   :  { %v8216_v40 = vld [vmem:[#allocation10 + $0x1d0] sm:$0xff] }
0x1324   :  { %v2615_v53 = vrot.slane %v2608_v55, 4  ;;  %v2609_v0 = vrot.slane %v2607_v59, 4  ;;  %v10712_v8 = vld [vmem:[#allocation170_spill] sm:$0xff] }
0x1326   :  { %v2616_v37 = vadd.f32 %v2615_v53, %v2608_v55  ;;  %v2610_v22 = vadd.f32 %v2609_v0, %v2607_v59  ;;  %v10713_v55 = vld [vmem:[#allocation171_spill] sm:$0xff]  ;;  %v10714_v59 = vld [vmem:[#allocation172_spill] sm:$0xff]  ;;  %v10715_v0 = vld [vmem:[#allocation173_spill] sm:$0xff] }
0x1327   :  { %v8341_v53 = vld [vmem:[#allocation10 + $0x300] sm:$0xff] }
0x1328   :  { %v2617_v50 = vrot.slane %v2616_v37, 2  ;;  %v2611_v20 = vrot.slane %v2610_v22, 2 }
0x132a   :  { %v2618_v24 = vadd.f32 %v2617_v50, %v2616_v37  ;;  %v2612_v57 = vadd.f32 %v2611_v20, %v2610_v22  ;;  %v10716_v37 = vld [vmem:[#allocation174_spill] sm:$0xff]  ;;  %v8346_v22 = vld [vmem:[#allocation10 + $0x2e0] sm:$0xff] }
0x132b   :  { %v10717_v50 = vld [vmem:[#allocation175_spill] sm:$0xff]  ;;  %v10718_v20 = vld [vmem:[#allocation176_spill] sm:$0xff] }
0x132c   :  { %v2619_v14 = vrot.slane %v2618_v24, 1  ;;  %v2613_v18 = vrot.slane %v2612_v57, 1 }
0x132e   :  { %v2620_v32 = vadd.f32 %v2619_v14, %v2618_v24  ;;  %v2614_v51 = vadd.f32 %v2613_v18, %v2612_v57  ;;  %v8351_v24 = vld [vmem:[#allocation10 + $0x2c0] sm:$0xff]  ;;  %v10719_v57 = vld [vmem:[#allocation177_spill] sm:$0xff]  ;;  %v10720_v14 = vld [vmem:[#allocation178_spill] sm:$0xff] }
0x132f   :  { %v8356_v18 = vld [vmem:[#allocation10 + $0x2a0] sm:$0xff] }
0x1330   :  { %v8206_v1 = vsel %vm397_vm0, %v2620_v32, %v2614_v51  ;;  %v10721_v32 = vld [vmem:[#allocation179_spill] sm:$0xff]  ;;  %v10722_v51 = vld [vmem:[#allocation180_spill] sm:$0xff] }
0x1331   :  { %2661 = vmatmul.f32.vlgmr.msra.gmra.mxu1 %v8206_v1  ;;  %2734 = vmatmul.f32.vlgmr.msrb.gmra.mxu0 %v8206_v1 }
0x1332   :  { %2794 = vmatmul.f32.vlgmr.msrb.gmra.mxu3 %v8206_v1  ;;  %2818 = vmatpush.msra.mxu1 %v8211_v42 }
0x1333   :  { %2878 = vmatpush.msrb.mxu0 %v7762_v52  ;;  %3084 = vmatpush.msrb.mxu3 %v7765_v6  ;;  %v8231_v52 = vld [vmem:[#allocation10 + $0x170] sm:$0xff] }
0x1334   :  { %2819 = vmatpush.msra.mxu1 %v8216_v40  ;;  %v8237_v6 = vld [vmem:[#allocation10 + $0x150] sm:$0xff] }
0x1335   :  { %2879 = vmatpush.msrb.mxu0 %v7769_v41  ;;  %3085 = vmatpush.msrb.mxu3 %v7772_v47  ;;  %v8242_v41 = vld [vmem:[#allocation10 + $0x130] sm:$0xff] }
0x1336   :  { %2820 = vmatpush.msra.mxu1 %v8221_v5  ;;  %v8247_v47 = vld [vmem:[#allocation10 + $0x110] sm:$0xff] }
0x1337   :  { %2880 = vmatpush.msrb.mxu0 %v7776_v21  ;;  %3086 = vmatpush.msrb.mxu3 %v7779_v56  ;;  %v8252_v21 = vld [vmem:[#allocation10 + $0xf0] sm:$0xff] }
0x1338   :  { %2821 = vmatpush.msra.mxu1 %v8226_v12  ;;  %v8257_v56 = vld [vmem:[#allocation10 + $0xd0] sm:$0xff] }
0x1339   :  { %2754 = vmatmul.f32.vlgmr.msrb.gmra.mxu1 %v8152_v19  ;;  %2814 = vmatmul.f32.vlgmr.msra.gmra.mxu0 %v8152_v19 }
0x133a   :  { %2822 = vmatpush.msra.mxu1 %v8231_v52  ;;  %2874 = vmatmul.f32.vlgmr.msra.gmra.mxu3 %v8152_v19 }
0x133b   :  { %2881 = vmatpush.msrb.mxu0 %v7787_v54  ;;  %3087 = vmatpush.msrb.mxu3 %v7790_v36  ;;  %v8262_v54 = vld [vmem:[#allocation10 + $0xb0] sm:$0xff] }
0x133c   :  { %2823 = vmatpush.msra.mxu1 %v8237_v6  ;;  %v8267_v36 = vld [vmem:[#allocation10 + $0x90] sm:$0xff] }
0x133d   :  { %2882 = vmatpush.msrb.mxu0 %v7794_v31  ;;  %3088 = vmatpush.msrb.mxu3 %v7797_v29  ;;  %v8272_v31 = vld [vmem:[#allocation10 + $0x70] sm:$0xff] }
0x133e   :  { %2824 = vmatpush.msra.mxu1 %v8242_v41  ;;  %v8277_v29 = vld [vmem:[#allocation10 + $0x50] sm:$0xff] }
0x133f   :  { %2883 = vmatpush.msrb.mxu0 %v7801_v25  ;;  %3089 = vmatpush.msrb.mxu3 %v7804_v63  ;;  %v10696_v25 = vld [vmem:[#allocation154_spill] sm:$0xff] }
0x1340   :  { %2825 = vmatpush.msra.mxu1 %v8247_v47  ;;  %v8282_v63 = vld [vmem:[#allocation10 + $0x30] sm:$0xff] }
0x1341   :  { %2884 = vmatpush.msrb.mxu0 %v7808_v9  ;;  %3090 = vmatpush.msrb.mxu3 %v7811_v3  ;;  %v8287_v9 = vld [vmem:[#allocation10 + $0x10] sm:$0xff]  ;;  %v8290_v3 = vld [vmem:[#allocation10 + $0x3f8] sm:$0xff] }
0x1342   :  { %2826 = vmatpush.msra.mxu1 %v8252_v21 }
0x1343   :  { %2885 = vmatpush.msrb.mxu0 %v7815_v34  ;;  %3091 = vmatpush.msrb.mxu3 %v7818_v38  ;;  %v10697_v34 = vld [vmem:[#allocation155_spill] sm:$0xff] }
0x1344   :  { %2827 = vmatpush.msra.mxu1 %v8257_v56  ;;  %v8296_v38 = vld [vmem:[#allocation10 + $0x3d8] sm:$0xff] }
0x1345   :  { %2886 = vmatpush.msrb.mxu0 %v7822_v16  ;;  %3092 = vmatpush.msrb.mxu3 %v7825_v62  ;;  %v10698_v16 = vld [vmem:[#allocation156_spill] sm:$0xff]  ;;  %v10699_v62 = vld [vmem:[#allocation157_spill] sm:$0xff] }
0x1346   :  { %2828 = vmatpush.msra.mxu1 %v8262_v54 }
0x1347   :  { %2887 = vmatpush.msrb.mxu0 %v7829_v7  ;;  %3093 = vmatpush.msrb.mxu3 %v7832_v30  ;;  %v8302_v7 = vld [vmem:[#allocation10 + $0x3b8] sm:$0xff] }
0x1348   :  { %2829 = vmatpush.msra.mxu1 %v8267_v36  ;;  %v10700_v30 = vld [vmem:[#allocation158_spill] sm:$0xff] }
0x1349   :  { %2888 = vmatpush.msrb.mxu0 %v7836_v35  ;;  %3094 = vmatpush.msrb.mxu3 %v7839_v60  ;;  %v10701_v35 = vld [vmem:[#allocation159_spill] sm:$0xff] }
0x134a   :  { %2830 = vmatpush.msra.mxu1 %v8272_v31  ;;  %v8307_v60 = vld [vmem:[#allocation10 + $0x398] sm:$0xff] }
0x134b   :  { %2889 = vmatpush.msrb.mxu0 %v7843_v11  ;;  %3095 = vmatpush.msrb.mxu3 %v7846_v27  ;;  %v10702_v11 = vld [vmem:[#allocation160_spill] sm:$0xff] }
0x134c   :  { %2831 = vmatpush.msra.mxu1 %v8277_v29  ;;  %v8311_v27 = vld [vmem:[#allocation10 + $0x3c0] sm:$0xff] }
0x134d   :  { %2890 = vmatpush.msrb.mxu0 %v7850_v10  ;;  %3096 = vmatpush.msrb.mxu3 %v10696_v25  ;;  %v10703_v10 = vld [vmem:[#allocation161_spill] sm:$0xff]  ;;  %v8361_v25 = vld [vmem:[#allocation10 + $0x280] sm:$0xff] }
0x134e   :  { %2832 = vmatpush.msra.mxu1 %v8282_v63 }
0x134f   :  { %2891 = vmatpush.msrb.mxu0 %v7857_v48  ;;  %3097 = vmatpush.msrb.mxu3 %v7860_v58  ;;  %v8316_v48 = vld [vmem:[#allocation10 + $0x3a0] sm:$0xff] }
0x1350   :  { %2833 = vmatpush.msra.mxu1 %v8287_v9  ;;  %v10705_v58 = vld [vmem:[#allocation163_spill] sm:$0xff] }
0x1351   :  { %2892 = vmatpush.msrb.mxu0 %v10697_v34  ;;  %2834 = vmatmul.f32.vlgmr.msra.gmra.mxu1 %v8184_v33  ;;  %v10723_v34 = vld [vmem:[#allocation181_spill] sm:$0xff] }
0x1352   :  { %2898 = vmatpush.msrb.mxu1 %v8290_v3  ;;  %3098 = vmatpush.msrb.mxu3 %v7869_v28  ;;  %v10704_v28 = vld [vmem:[#allocation162_spill] sm:$0xff] }
0x1353   :  { %2893 = vmatpush.msrb.mxu0 %v10698_v16  ;;  %v10724_v16 = vld [vmem:[#allocation182_spill] sm:$0xff] }
0x1354   :  { %2899 = vmatpush.msrb.mxu1 %v8296_v38  ;;  %2894 = vmatmul.f32.vlgmr.msrb.gmra.mxu0 %v8184_v33 }
0x1355   :  { %3099 = vmatpush.msrb.mxu3 %v10699_v62  ;;  %3104 = vmatpush.msra.mxu0 %v10700_v30  ;;  %v8366_v62 = vld [vmem:[#allocation10 + $0x260] sm:$0xff] }
0x1356   :  { %2900 = vmatpush.msrb.mxu1 %v8302_v7  ;;  %v10725_v30 = vld [vmem:[#allocation183_spill] sm:$0xff] }
0x1357   :  { %3177 = vmatpush.msra.mxu3 %v10701_v35  ;;  %3105 = vmatpush.msra.mxu0 %v10702_v11  ;;  %v10726_v35 = vld [vmem:[#allocation184_spill] sm:$0xff] }
0x1358   :  { %2901 = vmatpush.msrb.mxu1 %v8307_v60  ;;  %v8372_v11 = vld [vmem:[#allocation10 + $0x240] sm:$0xff] }
0x1359   :  { %3178 = vmatpush.msra.mxu3 %v8311_v27  ;;  %3106 = vmatpush.msra.mxu0 %v10704_v28  ;;  %v10728_v28 = vld [vmem:[#allocation36_spill] sm:$0xff] }
0x135a   :  { %2902 = vmatpush.msrb.mxu1 %v10703_v10  ;;  %v10727_v10 = vld [vmem:[#allocation185_spill] sm:$0xff] }
0x135b   :  { %3179 = vmatpush.msra.mxu3 %v8316_v48  ;;  %3107 = vmatpush.msra.mxu0 %v10706_v13  ;;  %v10729_v13 = vld [vmem:[#allocation35_spill] sm:$0xff] }
0x135c   :  { %2903 = vmatpush.msrb.mxu1 %v10705_v58  ;;  %v8377_v58 = vld [vmem:[#allocation10 + $0x220] sm:$0xff] }
0x135d   :  { %3180 = vmatpush.msra.mxu3 %v8321_v4  ;;  %3108 = vmatpush.msra.mxu0 %v10708_v45  ;;  %v10731_v45 = vld [vmem:[#allocation39_spill] sm:$0xff] }
0x135e   :  { %2904 = vmatpush.msrb.mxu1 %v10707_v15  ;;  %v10730_v15 = vld [vmem:[#allocation37_spill] sm:$0xff] }
0x135f   :  { %3181 = vmatpush.msra.mxu3 %v8326_v39  ;;  %3109 = vmatpush.msra.mxu0 %v10710_v61  ;;  %v10732_v61 = vld [vmem:[#allocation41_spill] sm:$0xff] }
0x1360   :  { %2905 = vmatpush.msrb.mxu1 %v10709_v2  ;;  %v8383_v2 = vld [vmem:[#allocation10 + $0x200] sm:$0xff] }
0x1361   :  { %3182 = vmatpush.msra.mxu3 %v8331_v26  ;;  %3110 = vmatpush.msra.mxu0 %v10712_v8  ;;  %v10734_v8 = vld [vmem:[#allocation46_spill] sm:$0xff] }
0x1362   :  { %2906 = vmatpush.msrb.mxu1 %v10711_v43  ;;  %v10733_v43 = vld [vmem:[#allocation43_spill] sm:$0xff] }
0x1363   :  { %3183 = vmatpush.msra.mxu3 %v8336_v17  ;;  %3111 = vmatpush.msra.mxu0 %v10714_v59  ;;  %v10736_v59 = vld [vmem:[#allocation52_spill] sm:$0xff] }
0x1364   :  { %2907 = vmatpush.msrb.mxu1 %v10713_v55  ;;  %v10735_v55 = vld [vmem:[#allocation49_spill] sm:$0xff] }
0x1365   :  { %3184 = vmatpush.msra.mxu3 %v8341_v53  ;;  %3112 = vmatpush.msra.mxu0 %v10716_v37  ;;  %v8392_v37 = vld [vmem:[#allocation14 + $0x50] sm:$0xff] }
0x1366   :  { %2908 = vmatpush.msrb.mxu1 %v10715_v0  ;;  %v10737_v0 = vld [vmem:[#allocation55_spill] sm:$0xff]  ;;  %10738 = vst [vmem:[#allocation60_spill] sm:$0xff] %v8392_v37 }
0x1367   :  { %3185 = vmatpush.msra.mxu3 %v8346_v22  ;;  %3113 = vmatpush.msra.mxu0 %v10718_v20  ;;  %v8396_v20 = vld [vmem:[#allocation14 + $0x48] sm:$0xff] }
0x1368   :  { %2909 = vmatpush.msrb.mxu1 %v10717_v50  ;;  %v10739_v50 = vld [vmem:[#allocation58_spill] sm:$0xff]  ;;  %10740 = vst [vmem:[#allocation64_spill] sm:$0xff] %v8396_v20 }
0x1369   :  { %3186 = vmatpush.msra.mxu3 %v8351_v24  ;;  %3114 = vmatpush.msra.mxu0 %v10720_v14  ;;  %v8400_v14 = vld [vmem:[#allocation14 + $0x40] sm:$0xff] }
0x136a   :  { %2910 = vmatpush.msrb.mxu1 %v10719_v57  ;;  %v10741_v57 = vld [vmem:[#allocation61_spill] sm:$0xff]  ;;  %10742 = vst [vmem:[#allocation69_spill] sm:$0xff] %v8400_v14 }
0x136b   :  { %3187 = vmatpush.msra.mxu3 %v8356_v18  ;;  %3115 = vmatpush.msra.mxu0 %v10722_v51  ;;  %v8404_v51 = vld [vmem:[#allocation14 + $0x38] sm:$0xff] }
0x136c   :  { %2911 = vmatpush.msrb.mxu1 %v10721_v32  ;;  %v10743_v32 = vld [vmem:[#allocation63_spill] sm:$0xff]  ;;  %10744 = vst [vmem:[#allocation67_spill] sm:$0xff] %v8404_v51 }
0x136d   :  { %3188 = vmatpush.msra.mxu3 %v8361_v25  ;;  %3116 = vmatpush.msra.mxu0 %v10724_v16  ;;  %v8408_v16 = vld [vmem:[#allocation14 + $0x30] sm:$0xff] }
0x136e   :  { %2912 = vmatpush.msrb.mxu1 %v10723_v34  ;;  %v10745_v34 = vld [vmem:[#allocation66_spill] sm:$0xff]  ;;  %10746 = vst [vmem:[#allocation44_spill] sm:$0xff] %v8408_v16 }
0x136f   :  { %3189 = vmatpush.msra.mxu3 %v8366_v62  ;;  %3117 = vmatpush.msra.mxu0 %v10726_v35  ;;  %v8412_v35 = vld [vmem:[#allocation14 + $0x28] sm:$0xff] }
0x1370   :  { %2913 = vmatpush.msrb.mxu1 %v10725_v30  ;;  %v10747_v30 = vld [vmem:[#allocation38_spill] sm:$0xff]  ;;  %10748 = vst [vmem:[#allocation47_spill] sm:$0xff] %v8412_v35 }
0x1371   :  { %2914 = vmatmul.f32.vlgmr.msrb.gmra.mxu1 %v8206_v1  ;;  %3190 = vmatpush.msra.mxu3 %v8372_v11 }
0x1372   :  { %3118 = vmatpush.msra.mxu0 %v10727_v10  ;;  %3125 = vmatpush.msra.mxu1 %v10728_v28  ;;  %v10749_v10 = vld [vmem:[#allocation40_spill] sm:$0xff] }
0x1373   :  { %3191 = vmatpush.msra.mxu3 %v8377_v58  ;;  %v8416_v28 = vld [vmem:[#allocation14 + $0x20] sm:$0xff] }
0x1374   :  { %3119 = vmatpush.msra.mxu0 %v10729_v13  ;;  %3126 = vmatpush.msra.mxu1 %v10730_v15  ;;  %10750 = vst [vmem:[#allocation50_spill] sm:$0xff] %v8416_v28  ;;  %v10751_v13 = vld [vmem:[#allocation42_spill] sm:$0xff]  ;;  %v8420_v15 = vld [vmem:[#allocation14 + $0x18] sm:$0xff] }
0x1375   :  { %3192 = vmatpush.msra.mxu3 %v8383_v2  ;;  %10752 = vst [vmem:[#allocation53_spill] sm:$0xff] %v8420_v15 }
0x1376   :  { %3197 = vmatpush.msrb.mxu0 %v10731_v45  ;;  %3127 = vmatpush.msra.mxu1 %v10732_v61  ;;  %v10753_v45 = vld [vmem:[#allocation45_spill] sm:$0xff]  ;;  %v8424_v61 = vld [vmem:[#allocation14 + $0x10] sm:$0xff] }
0x1377   :  { %10754 = vst [vmem:[#allocation56_spill] sm:$0xff] %v8424_v61 }
0x1378   :  { %3198 = vmatpush.msrb.mxu0 %v10733_v43  ;;  %3128 = vmatpush.msra.mxu1 %v10734_v8  ;;  %v10755_v43 = vld [vmem:[#allocation48_spill] sm:$0xff]  ;;  %v8428_v8 = vld [vmem:[#allocation14 + $0x8] sm:$0xff] }
0x1379   :  { %10756 = vst [vmem:[#allocation59_spill] sm:$0xff] %v8428_v8 }
0x137a   :  { %3199 = vmatpush.msrb.mxu0 %v10735_v55  ;;  %3129 = vmatpush.msra.mxu1 %v10736_v59  ;;  %v10757_v55 = vld [vmem:[#allocation51_spill] sm:$0xff]  ;;  %v8432_v59 = vld [vmem:[#allocation14] sm:$0xff] }
0x137b   :  { %10758 = vst [vmem:[#allocation62_spill] sm:$0xff] %v8432_v59 }
0x137c   :  { %3200 = vmatpush.msrb.mxu0 %v10737_v0  ;;  %3130 = vmatpush.msra.mxu1 %v8392_v37  ;;  %v10759_v0 = vld [vmem:[#allocation54_spill] sm:$0xff] }
0x137e   :  { %3201 = vmatpush.msrb.mxu0 %v10739_v50  ;;  %3131 = vmatpush.msra.mxu1 %v8396_v20  ;;  %v8436_v50 = vld [vmem:[#allocation10 + $0x1e8] sm:$0xff] }
0x137f   :  { %10760 = vst [vmem:[#allocation65_spill] sm:$0xff] %v8436_v50 }
0x1380   :  { %3202 = vmatpush.msrb.mxu0 %v10741_v57  ;;  %3132 = vmatpush.msra.mxu1 %v8400_v14  ;;  %v10761_v57 = vld [vmem:[#allocation57_spill] sm:$0xff] }
0x1382   :  { %3203 = vmatpush.msrb.mxu0 %v10743_v32  ;;  %3133 = vmatpush.msra.mxu1 %v8404_v51  ;;  %v8440_v32 = vld [vmem:[#allocation10 + $0x1c8] sm:$0xff] }
0x1383   :  { %10762 = vst [vmem:[#allocation68_spill] sm:$0xff] %v8440_v32 }
0x1384   :  { %3204 = vmatpush.msrb.mxu0 %v10745_v34  ;;  %3134 = vmatpush.msra.mxu1 %v8408_v16  ;;  %v8443_v34 = vld [vmem:[#allocation10 + $0x1a8] sm:$0xff] }
0x1385   :  { %10763 = vst [vmem:[#allocation70_spill] sm:$0xff] %v8443_v34 }
0x1386   :  { %3205 = vmatpush.msrb.mxu0 %v10747_v30  ;;  %3135 = vmatpush.msra.mxu1 %v8412_v35  ;;  %v8446_v30 = vld [vmem:[#allocation10 + $0x188] sm:$0xff] }
0x1387   :  { %10764 = vst [vmem:[#allocation23_spill] sm:$0xff] %v8446_v30 }
0x1388   :  { %3206 = vmatpush.msrb.mxu0 %v10749_v10  ;;  %3136 = vmatpush.msra.mxu1 %v8416_v28  ;;  %v8449_v10 = vld [vmem:[#allocation10 + $0x168] sm:$0xff] }
0x1389   :  { %10765 = vst [vmem:[#allocation24_spill] sm:$0xff] %v8449_v10 }
0x138a   :  { %3207 = vmatpush.msrb.mxu0 %v10751_v13  ;;  %3137 = vmatpush.msra.mxu1 %v8420_v15  ;;  %v8452_v13 = vld [vmem:[#allocation10 + $0x148] sm:$0xff] }
0x138b   :  { %10766 = vst [vmem:[#allocation25_spill] sm:$0xff] %v8452_v13 }
0x138c   :  { %3208 = vmatpush.msrb.mxu0 %v10753_v45  ;;  %3138 = vmatpush.msra.mxu1 %v8424_v61  ;;  %v8455_v45 = vld [vmem:[#allocation10 + $0x128] sm:$0xff] }
0x138d   :  { %10767 = vst [vmem:[#allocation26_spill] sm:$0xff] %v8455_v45 }
0x138e   :  { %3209 = vmatpush.msrb.mxu0 %v10755_v43  ;;  %3139 = vmatpush.msra.mxu1 %v8428_v8  ;;  %v8458_v43 = vld [vmem:[#allocation10 + $0x108] sm:$0xff] }
0x138f   :  { %10768 = vst [vmem:[#allocation27_spill] sm:$0xff] %v8458_v43 }
0x1390   :  { %3210 = vmatpush.msrb.mxu0 %v10757_v55  ;;  %3140 = vmatpush.msra.mxu1 %v8432_v59  ;;  %v8461_v55 = vld [vmem:[#allocation10 + $0xe8] sm:$0xff] }
0x1391   :  { %10769 = vst [vmem:[#allocation28_spill] sm:$0xff] %v8461_v55 }
0x1392   :  { %3211 = vmatpush.msrb.mxu0 %v10759_v0  ;;  %3217 = vmatpush.msrb.mxu1 %v8436_v50  ;;  %v8464_v0 = vld [vmem:[#allocation10 + $0xc8] sm:$0xff] }
0x1393   :  { %10770 = vst [vmem:[#allocation29_spill] sm:$0xff] %v8464_v0 }
0x1394   :  { %3212 = vmatpush.msrb.mxu0 %v10761_v57  ;;  %3218 = vmatpush.msrb.mxu1 %v8440_v32  ;;  %v8467_v57 = vld [vmem:[#allocation10 + $0xa8] sm:$0xff]  ;;  %v8497_v32 = vld [vmem:[#allocation10 + $0x3b0] sm:$0xff] }
0x1395   :  { %10771 = vst [vmem:[#allocation30_spill] sm:$0xff] %v8467_v57 }
0x1396   :  { %3219 = vmatpush.msrb.mxu1 %v8443_v34  ;;  %10780 = vst [vmem:[#allocation80_spill] sm:$0xff] %v8497_v32 }
0x1398   :  { %3220 = vmatpush.msrb.mxu1 %v8446_v30  ;;  %v8488_v30 = vld [vmem:[#allocation10 + $0x8] sm:$0xff] }
0x1399   :  { %10777 = vst [vmem:[#allocation77_spill] sm:$0xff] %v8488_v30 }
0x139a   :  { %3221 = vmatpush.msrb.mxu1 %v8449_v10  ;;  %v8476_v10 = vld [vmem:[#allocation10 + $0x48] sm:$0xff] }
0x139b   :  { %10774 = vst [vmem:[#allocation33_spill] sm:$0xff] %v8476_v10 }
0x139c   :  { %3222 = vmatpush.msrb.mxu1 %v8452_v13  ;;  %v8470_v13 = vld [vmem:[#allocation10 + $0x88] sm:$0xff] }
0x139d   :  { %10772 = vst [vmem:[#allocation31_spill] sm:$0xff] %v8470_v13 }
0x139e   :  { %3223 = vmatpush.msrb.mxu1 %v8455_v45  ;;  %v8473_v45 = vld [vmem:[#allocation10 + $0x68] sm:$0xff] }
0x139f   :  { %10773 = vst [vmem:[#allocation32_spill] sm:$0xff] %v8473_v45 }
0x13a0   :  { %3224 = vmatpush.msrb.mxu1 %v8458_v43  ;;  %v2642_v43 = vpop.f32.mrf.mxu0 }
0x13a2   :  { %3225 = vmatpush.msrb.mxu1 %v8461_v55  ;;  %v8479_v55 = vld [vmem:[#allocation10 + $0x28] sm:$0xff] }
0x13a3   :  { %10775 = vst [vmem:[#allocation34_spill] sm:$0xff] %v8479_v55 }
0x13a4   :  { %3226 = vmatpush.msrb.mxu1 %v8464_v0 }
0x13a6   :  { %3227 = vmatpush.msrb.mxu1 %v8467_v57  ;;  %v8485_v57 = vld [vmem:[%s9339_s5] ss:$0 sm:$0xff] }
0x13a7   :  { %10776 = vst [vmem:[#allocation76_spill] sm:$0xff] %v8485_v57 }
0x13a8   :  { %3228 = vmatpush.msrb.mxu1 %v8470_v13  ;;  %v2643_v13 = vadd.f32 %v8485_v57, %v2642_v43  ;;  %v8500_v43 = vld [vmem:[#allocation10 + $0x390] sm:$0xff] }
0x13a9   :  { %10781 = vst [vmem:[#allocation81_spill] sm:$0xff] %v8500_v43 }
0x13aa   :  { %3229 = vmatpush.msrb.mxu1 %v8473_v45 }
0x13ac   :  { %3230 = vmatpush.msrb.mxu1 %v8476_v10  ;;  %v8491_v10 = vld [vmem:[#allocation10 + $0x3f0] sm:$0xff] }
0x13ad   :  { %10778 = vst [vmem:[#allocation78_spill] sm:$0xff] %v8491_v10 }
0x13ae   :  { %3231 = vmatpush.msrb.mxu1 %v8479_v55  ;;  %v2662_v0 = vpop.f32.mrf.mxu1  ;;  %v8494_v55 = vld [vmem:[#allocation10 + $0x3d0] sm:$0xff] }
0x13af   :  { %v2663_v45 = vadd.f32 %v2662_v0, %v2643_v13  ;;  %10779 = vst [vmem:[#allocation79_spill] sm:$0xff] %v8494_v55  ;;  %v8504_v13 = vld [vmem:[#allocation10 + $0x370] sm:$0xff] }
0x13b0   :  { %3232 = vmatpush.msrb.mxu1 %v8488_v30  ;;  %10782 = vst [vmem:[#allocation82_spill] sm:$0xff] %v8504_v13  ;;  %v8513_v0 = vld [vmem:[#allocation10 + $0x310] sm:$0xff]  ;;  %v10844_v30 = vld [vmem:[#allocation71_spill] sm:$0xff] }
0x13b1   :  { %4253 = vtanh.f32 %v2663_v45  ;;  %v8510_v45 = vld [vmem:[#allocation10 + $0x330] sm:$0xff]  ;;  %10785 = vst [vmem:[#allocation85_spill] sm:$0xff] %v8513_v0 }
0x13b2   :  { %10784 = vst [vmem:[#allocation84_spill] sm:$0xff] %v8510_v45 }
0x13b6   :  { %v2755_v50 = vpop.f32.mrf.mxu1 }
0x13b7   :  { %v4254_v34 = vpop.eup %4253 }
0x13b8   :  { %2682 = vmatmul.f32.vlgmr.msra.gmra.mxu2 %v4254_v34  ;;  %v8507_v34 = vld [vmem:[#allocation10 + $0x350] sm:$0xff] }
0x13b9   :  { %2838 = vmatpush.msra.mxu2 %v8491_v10  ;;  %10783 = vst [vmem:[#allocation83_spill] sm:$0xff] %v8507_v34 }
0x13bb   :  { %2839 = vmatpush.msra.mxu2 %v8494_v55  ;;  %v10843_v55 = vld [vmem:[#allocation72_spill] sm:$0xff] }
0x13bd   :  { %2840 = vmatpush.msra.mxu2 %v8497_v32  ;;  %v8516_v32 = vld [vmem:[#allocation10 + $0x2f0] sm:$0xff] }
0x13be   :  { %10786 = vst [vmem:[#allocation86_spill] sm:$0xff] %v8516_v32 }
0x13bf   :  { %2841 = vmatpush.msra.mxu2 %v8500_v43 }
0x13c0   :  { %2774 = vmatmul.f32.vlgmr.msrb.gmra.mxu2 %v8184_v33  ;;  %v8519_v33 = vld [vmem:[#allocation10 + $0x2d0] sm:$0xff] }
0x13c1   :  { %2842 = vmatpush.msra.mxu2 %v8504_v13  ;;  %10787 = vst [vmem:[#allocation87_spill] sm:$0xff] %v8519_v33  ;;  %v8522_v13 = vld [vmem:[#allocation10 + $0x2b0] sm:$0xff] }
0x13c2   :  { %10788 = vst [vmem:[#allocation88_spill] sm:$0xff] %v8522_v13 }
0x13c3   :  { %2843 = vmatpush.msra.mxu2 %v8507_v34  ;;  %v8525_v34 = vld [vmem:[#allocation10 + $0x290] sm:$0xff] }
0x13c4   :  { %10789 = vst [vmem:[#allocation89_spill] sm:$0xff] %v8525_v34 }
0x13c5   :  { %2844 = vmatpush.msra.mxu2 %v8510_v45  ;;  %v8528_v45 = vld [vmem:[#allocation10 + $0x270] sm:$0xff] }
0x13c6   :  { %10790 = vst [vmem:[#allocation90_spill] sm:$0xff] %v8528_v45 }
0x13c7   :  { %2845 = vmatpush.msra.mxu2 %v8513_v0  ;;  %v8531_v0 = vld [vmem:[#allocation10 + $0x250] sm:$0xff] }
0x13c8   :  { %10791 = vst [vmem:[#allocation91_spill] sm:$0xff] %v8531_v0 }
0x13c9   :  { %2846 = vmatpush.msra.mxu2 %v8516_v32  ;;  %v8534_v32 = vld [vmem:[#allocation10 + $0x230] sm:$0xff] }
0x13ca   :  { %10792 = vst [vmem:[#allocation92_spill] sm:$0xff] %v8534_v32 }
0x13cb   :  { %2847 = vmatpush.msra.mxu2 %v8519_v33  ;;  %v8537_v33 = vld [vmem:[#allocation10 + $0x210] sm:$0xff] }
0x13cc   :  { %10793 = vst [vmem:[#allocation93_spill] sm:$0xff] %v8537_v33 }
0x13cd   :  { %2848 = vmatpush.msra.mxu2 %v8522_v13  ;;  %v8541_v13 = vld [vmem:[#allocation10 + $0x5f8] sm:$0xff] }
0x13ce   :  { %10794 = vst [vmem:[#allocation94_spill] sm:$0xff] %v8541_v13  ;;  %v2835_v16 = vpop.f32.mrf.mxu1 }
0x13cf   :  { %2849 = vmatpush.msra.mxu2 %v8525_v34  ;;  %v8544_v34 = vld [vmem:[#allocation10 + $0x5d8] sm:$0xff] }
0x13d0   :  { %10795 = vst [vmem:[#allocation95_spill] sm:$0xff] %v8544_v34 }
0x13d1   :  { %2850 = vmatpush.msra.mxu2 %v8528_v45  ;;  %v8547_v45 = vld [vmem:[#allocation10 + $0x5b8] sm:$0xff] }
0x13d2   :  { %10796 = vst [vmem:[#allocation96_spill] sm:$0xff] %v8547_v45 }
0x13d3   :  { %2851 = vmatpush.msra.mxu2 %v8531_v0  ;;  %v8550_v0 = vld [vmem:[#allocation10 + $0x598] sm:$0xff] }
0x13d4   :  { %10797 = vst [vmem:[#allocation97_spill] sm:$0xff] %v8550_v0 }
0x13d5   :  { %2852 = vmatpush.msra.mxu2 %v8534_v32  ;;  %v8553_v32 = vld [vmem:[#allocation10 + $0x578] sm:$0xff] }
0x13d6   :  { %10798 = vst [vmem:[#allocation98_spill] sm:$0xff] %v8553_v32 }
0x13d7   :  { %2853 = vmatpush.msra.mxu2 %v8537_v33  ;;  %v2735_v33 = vpop.f32.mrf.mxu0 }
0x13d8   :  { %2854 = vmatmul.f32.vlgmr.msra.gmra.mxu2 %v8206_v1  ;;  %v8556_v1 = vld [vmem:[#allocation10 + $0x558] sm:$0xff] }
0x13d9   :  { %2918 = vmatpush.msrb.mxu2 %v8541_v13  ;;  %10799 = vst [vmem:[#allocation99_spill] sm:$0xff] %v8556_v1  ;;  %v8559_v13 = vld [vmem:[#allocation10 + $0x538] sm:$0xff] }
0x13da   :  { %10800 = vst [vmem:[#allocation100_spill] sm:$0xff] %v8559_v13 }
0x13db   :  { %2919 = vmatpush.msrb.mxu2 %v8544_v34  ;;  %v8562_v34 = vld [vmem:[#allocation10 + $0x518] sm:$0xff] }
0x13dc   :  { %10801 = vst [vmem:[#allocation101_spill] sm:$0xff] %v8562_v34 }
0x13dd   :  { %2920 = vmatpush.msrb.mxu2 %v8547_v45  ;;  %v8565_v45 = vld [vmem:[#allocation10 + $0x4f8] sm:$0xff] }
0x13de   :  { %10802 = vst [vmem:[#allocation102_spill] sm:$0xff] %v8565_v45 }
0x13df   :  { %2921 = vmatpush.msrb.mxu2 %v8550_v0  ;;  %v8568_v0 = vld [vmem:[#allocation10 + $0x4d8] sm:$0xff]  ;;  %v2815_v59 = vpop.f32.mrf.mxu0 }
0x13e0   :  { %10803 = vst [vmem:[#allocation103_spill] sm:$0xff] %v8568_v0 }
0x13e1   :  { %2922 = vmatpush.msrb.mxu2 %v8553_v32  ;;  %v8571_v32 = vld [vmem:[#allocation10 + $0x4b8] sm:$0xff] }
0x13e2   :  { %10804 = vst [vmem:[#allocation104_spill] sm:$0xff] %v8571_v32 }
0x13e3   :  { %2923 = vmatpush.msrb.mxu2 %v8556_v1  ;;  %v8574_v1 = vld [vmem:[#allocation10 + $0x498] sm:$0xff] }
0x13e4   :  { %10805 = vst [vmem:[#allocation105_spill] sm:$0xff] %v8574_v1 }
0x13e5   :  { %2924 = vmatpush.msrb.mxu2 %v8559_v13  ;;  %v8577_v13 = vld [vmem:[#allocation10 + $0x478] sm:$0xff] }
0x13e6   :  { %10806 = vst [vmem:[#allocation106_spill] sm:$0xff] %v8577_v13 }
0x13e7   :  { %2925 = vmatpush.msrb.mxu2 %v8562_v34  ;;  %v8580_v34 = vld [vmem:[#allocation10 + $0x458] sm:$0xff] }
0x13e8   :  { %10807 = vst [vmem:[#allocation107_spill] sm:$0xff] %v8580_v34 }
0x13e9   :  { %2926 = vmatpush.msrb.mxu2 %v8565_v45  ;;  %v8583_v45 = vld [vmem:[#allocation10 + $0x438] sm:$0xff] }
0x13ea   :  { %10808 = vst [vmem:[#allocation108_spill] sm:$0xff] %v8583_v45 }
0x13eb   :  { %2927 = vmatpush.msrb.mxu2 %v8568_v0  ;;  %v8586_v0 = vld [vmem:[#allocation10 + $0x418] sm:$0xff] }
0x13ec   :  { %10809 = vst [vmem:[#allocation109_spill] sm:$0xff] %v8586_v0 }
0x13ed   :  { %2928 = vmatpush.msrb.mxu2 %v8571_v32  ;;  %v8590_v32 = vld [vmem:[#allocation10 + $0x1e0] sm:$0xff] }
0x13ee   :  { %10810 = vst [vmem:[#allocation110_spill] sm:$0xff] %v8590_v32 }
0x13ef   :  { %2929 = vmatpush.msrb.mxu2 %v8574_v1  ;;  %v8593_v1 = vld [vmem:[#allocation10 + $0x1c0] sm:$0xff] }
0x13f0   :  { %10811 = vst [vmem:[#allocation111_spill] sm:$0xff] %v8593_v1 }
0x13f1   :  { %2930 = vmatpush.msrb.mxu2 %v8577_v13  ;;  %v8596_v13 = vld [vmem:[#allocation10 + $0x1a0] sm:$0xff] }
0x13f2   :  { %10812 = vst [vmem:[#allocation112_spill] sm:$0xff] %v8596_v13 }
0x13f3   :  { %2931 = vmatpush.msrb.mxu2 %v8580_v34  ;;  %v8599_v34 = vld [vmem:[#allocation10 + $0x180] sm:$0xff] }
0x13f4   :  { %10813 = vst [vmem:[#allocation113_spill] sm:$0xff] %v8599_v34 }
0x13f5   :  { %2932 = vmatpush.msrb.mxu2 %v8583_v45  ;;  %v8602_v45 = vld [vmem:[#allocation10 + $0x160] sm:$0xff] }
0x13f6   :  { %10814 = vst [vmem:[#allocation114_spill] sm:$0xff] %v8602_v45 }
0x13f7   :  { %2933 = vmatpush.msrb.mxu2 %v8586_v0 }
0x13f8   :  { %2934 = vmatmul.f32.vlgmr.msrb.gmra.mxu2 %v8152_v19  ;;  %v8605_v19 = vld [vmem:[#allocation10 + $0x140] sm:$0xff] }
0x13f9   :  { %3157 = vmatpush.msra.mxu2 %v8590_v32  ;;  %10815 = vst [vmem:[#allocation115_spill] sm:$0xff] %v8605_v19  ;;  %v8608_v32 = vld [vmem:[#allocation10 + $0x120] sm:$0xff] }
0x13fa   :  { %10816 = vst [vmem:[#allocation116_spill] sm:$0xff] %v8608_v32 }
0x13fb   :  { %3158 = vmatpush.msra.mxu2 %v8593_v1  ;;  %v8611_v1 = vld [vmem:[#allocation10 + $0x100] sm:$0xff] }
0x13fc   :  { %10817 = vst [vmem:[#allocation118_spill] sm:$0xff] %v8611_v1 }
0x13fd   :  { %3159 = vmatpush.msra.mxu2 %v8596_v13  ;;  %v8614_v13 = vld [vmem:[#allocation10 + $0xe0] sm:$0xff] }
0x13fe   :  { %10818 = vst [vmem:[#allocation117_spill] sm:$0xff] %v8614_v13 }
0x13ff   :  { %3160 = vmatpush.msra.mxu2 %v8599_v34  ;;  %v8617_v34 = vld [vmem:[#allocation10 + $0xc0] sm:$0xff] }
0x1400   :  { %10819 = vst [vmem:[#allocation73_spill] sm:$0xff] %v8617_v34 }
0x1401   :  { %3161 = vmatpush.msra.mxu2 %v8602_v45  ;;  %v8620_v45 = vld [vmem:[#allocation10 + $0xa0] sm:$0xff] }
0x1402   :  { %10820 = vst [vmem:[#allocation74_spill] sm:$0xff] %v8620_v45 }
0x1403   :  { %3162 = vmatpush.msra.mxu2 %v8605_v19  ;;  %v8623_v19 = vld [vmem:[#allocation10 + $0x80] sm:$0xff] }
0x1404   :  { %10821 = vst [vmem:[#allocation75_spill] sm:$0xff] %v8623_v19 }
0x1405   :  { %3163 = vmatpush.msra.mxu2 %v8608_v32  ;;  %v8626_v32 = vld [vmem:[#allocation10 + $0x60] sm:$0xff] }
0x1406   :  { %10822 = vst [vmem:[#allocation119_spill] sm:$0xff] %v8626_v32 }
0x1407   :  { %3164 = vmatpush.msra.mxu2 %v8611_v1  ;;  %v8629_v1 = vld [vmem:[#allocation10 + $0x40] sm:$0xff] }
0x1408   :  { %10823 = vst [vmem:[#allocation120_spill] sm:$0xff] %v8629_v1 }
0x1409   :  { %3165 = vmatpush.msra.mxu2 %v8614_v13  ;;  %v8632_v13 = vld [vmem:[#allocation10 + $0x20] sm:$0xff] }
0x140a   :  { %10824 = vst [vmem:[#allocation121_spill] sm:$0xff] %v8632_v13 }
0x140b   :  { %3166 = vmatpush.msra.mxu2 %v8617_v34  ;;  %v8635_v34 = vld [vmem:[#allocation10] sm:$0xff] }
0x140c   :  { %10825 = vst [vmem:[#allocation122_spill] sm:$0xff] %v8635_v34 }
0x140d   :  { %3167 = vmatpush.msra.mxu2 %v8620_v45  ;;  %v8638_v45 = vld [vmem:[#allocation10 + $0x3e8] sm:$0xff] }
0x140e   :  { %10826 = vst [vmem:[#allocation123_spill] sm:$0xff] %v8638_v45 }
0x140f   :  { %3168 = vmatpush.msra.mxu2 %v8623_v19  ;;  %v8641_v19 = vld [vmem:[#allocation10 + $0x3c8] sm:$0xff] }
0x1410   :  { %10827 = vst [vmem:[#allocation124_spill] sm:$0xff] %v8641_v19 }
0x1411   :  { %3169 = vmatpush.msra.mxu2 %v8626_v32  ;;  %v8644_v32 = vld [vmem:[#allocation10 + $0x3a8] sm:$0xff] }
0x1412   :  { %10828 = vst [vmem:[#allocation125_spill] sm:$0xff] %v8644_v32 }
0x1413   :  { %3170 = vmatpush.msra.mxu2 %v8629_v1  ;;  %v8647_v1 = vld [vmem:[#allocation10 + $0x388] sm:$0xff] }
0x1414   :  { %10829 = vst [vmem:[#allocation127_spill] sm:$0xff] %v8647_v1 }
0x1415   :  { %3171 = vmatpush.msra.mxu2 %v8632_v13  ;;  %v8650_v13 = vld [vmem:[#allocation10 + $0x368] sm:$0xff] }
0x1416   :  { %10830 = vst [vmem:[#allocation126_spill] sm:$0xff] %v8650_v13 }
0x1417   :  { %3172 = vmatpush.msra.mxu2 %v8635_v34  ;;  %v8653_v34 = vld [vmem:[#allocation10 + $0x348] sm:$0xff] }
0x1418   :  { %10831 = vst [vmem:[#allocation128_spill] sm:$0xff] %v8653_v34 }
0x1419   :  { %3237 = vmatpush.msrb.mxu2 %v8638_v45  ;;  %v8656_v45 = vld [vmem:[#allocation10 + $0x328] sm:$0xff] }
0x141a   :  { %10832 = vst [vmem:[#allocation129_spill] sm:$0xff] %v8656_v45 }
0x141b   :  { %3238 = vmatpush.msrb.mxu2 %v8641_v19  ;;  %v8659_v19 = vld [vmem:[#allocation10 + $0x308] sm:$0xff] }
0x141c   :  { %10833 = vst [vmem:[#allocation130_spill] sm:$0xff] %v8659_v19 }
0x141d   :  { %3239 = vmatpush.msrb.mxu2 %v8644_v32  ;;  %v8662_v32 = vld [vmem:[#allocation10 + $0x2e8] sm:$0xff] }
0x141e   :  { %10834 = vst [vmem:[#allocation131_spill] sm:$0xff] %v8662_v32 }
0x141f   :  { %3240 = vmatpush.msrb.mxu2 %v8647_v1  ;;  %v8665_v1 = vld [vmem:[#allocation10 + $0x2c8] sm:$0xff] }
0x1420   :  { %10835 = vst [vmem:[#allocation132_spill] sm:$0xff] %v8665_v1 }
0x1421   :  { %3241 = vmatpush.msrb.mxu2 %v8650_v13  ;;  %v8668_v13 = vld [vmem:[#allocation10 + $0x2a8] sm:$0xff] }
0x1422   :  { %10836 = vst [vmem:[#allocation133_spill] sm:$0xff] %v8668_v13 }
0x1423   :  { %3242 = vmatpush.msrb.mxu2 %v8653_v34  ;;  %v8671_v34 = vld [vmem:[#allocation10 + $0x288] sm:$0xff] }
0x1424   :  { %10837 = vst [vmem:[#allocation134_spill] sm:$0xff] %v8671_v34 }
0x1425   :  { %3243 = vmatpush.msrb.mxu2 %v8656_v45  ;;  %v8674_v45 = vld [vmem:[#allocation10 + $0x268] sm:$0xff] }
0x1426   :  { %10838 = vst [vmem:[#allocation135_spill] sm:$0xff] %v8674_v45 }
0x1427   :  { %3244 = vmatpush.msrb.mxu2 %v8659_v19  ;;  %v8677_v19 = vld [vmem:[#allocation10 + $0x248] sm:$0xff] }
0x1428   :  { %10839 = vst [vmem:[#allocation136_spill] sm:$0xff] %v8677_v19 }
0x1429   :  { %3245 = vmatpush.msrb.mxu2 %v8662_v32  ;;  %v8680_v32 = vld [vmem:[#allocation10 + $0x228] sm:$0xff] }
0x142a   :  { %10840 = vst [vmem:[#allocation137_spill] sm:$0xff] %v8680_v32 }
0x142b   :  { %3246 = vmatpush.msrb.mxu2 %v8665_v1  ;;  %v8683_v1 = vld [vmem:[#allocation10 + $0x208] sm:$0xff] }
0x142c   :  { %10841 = vst [vmem:[#allocation138_spill] sm:$0xff] %v8683_v1 }
0x142d   :  { %3247 = vmatpush.msrb.mxu2 %v8668_v13 }
0x142f   :  { %3248 = vmatpush.msrb.mxu2 %v8671_v34  ;;  %v8689_v34 = vld [vmem:[%s9341_s7] ss:$0 sm:$0xff] }
0x1430   :  { %10842 = vst [vmem:[#allocation139_spill] sm:$0xff] %v8689_v34 }
0x1431   :  { %3249 = vmatpush.msrb.mxu2 %v8674_v45 }
0x1433   :  { %3250 = vmatpush.msrb.mxu2 %v8677_v19  ;;  %v2715_v19 = vpop.f32.mrf.mxu3 }
0x1434   :  { %v2716_v57 = vadd.f32 %v2715_v19, %v10844_v30 }
0x1435   :  { %3251 = vmatpush.msrb.mxu2 %v8680_v32 }
0x1436   :  { %v2736_v8 = vadd.f32 %v2735_v33, %v2716_v57  ;;  %v2836_v57 = vadd.f32 %v2835_v16, %v10141_v46 }
0x1437   :  { %3252 = vmatpush.msrb.mxu2 %v8683_v1 }
0x1438   :  { %v2756_v15 = vadd.f32 %v2755_v50, %v2736_v8 }
0x143a   :  { %v4108_v35 = vmul.f32 -1.442695, %v2756_v15  ;;  %v2915_v15 = vpop.f32.mrf.mxu1 }
0x143b   :  { %v2683_v13 = vpop.f32.mrf.mxu2  ;;  %v2795_v10 = vpop.f32.mrf.mxu3 }
0x143c   :  { %v2684_v45 = vadd.f32 %v8689_v34, %v2683_v13 }
0x143e   :  { %v2687_v0 = vrot.slane %v2684_v45, 1  ;;  %2689 = vst [vmem:[#allocation16 + $0x4] sm:$0x1] %v2684_v45 }
0x1440   :  { %2690 = vst [vmem:[#allocation16 + $0xc] sm:$0x1] %v2687_v0 }
0x1443   :  { %v2775_v43 = vpop.f32.mrf.mxu2 }
0x1444   :  { %v2776_v32 = vadd.f32 %v2775_v43, %v10843_v55  ;;  %v2895_v55 = vpop.f32.mrf.mxu0 }
0x1445   :  { %v2896_v8 = vadd.f32 %v2895_v55, %v10142_v49 }
0x1446   :  { %v2796_v1 = vadd.f32 %v2795_v10, %v2776_v32 }
0x1448   :  { %v2816_v61 = vadd.f32 %v2815_v59, %v2796_v1 }
0x144a   :  { %v4109_v28 = vmul.f32 -1.442695, %v2816_v61 }
0x144c   :  { %4255 = vpow2.f32 %v4109_v28 }
0x144d   :  { %4257 = vpow2.f32 %v4108_v35  ;;  %v2916_v35 = vadd.f32 %v2915_v15, %v2896_v8 }
0x1452   :  { %v4256_v13 = vpop.eup %4255 }
0x1453   :  { %v4258_v45 = vpop.eup %4257  ;;  %v2960_v0 = vadd.f32 1.0, %v4256_v13  ;;  %v2875_v13 = vpop.f32.mrf.mxu3 }
0x1454   :  { %v2941_v34 = vadd.f32 1.0, %v4258_v45 }
0x1455   :  { %4259 = vrcp.f32 %v2960_v0  ;;  %v2972_v37 = vand.u32 2147483648, %v2960_v0  ;;  %vm2966_vm6 = vweird.f32 %v2960_v0  ;;  %v2970_v55 = vand.u32 2147483647, %v2960_v0 }
0x1456   :  { %4261 = vrcp.f32 %v2941_v34  ;;  %vm2947_vm9 = vweird.f32 %v2941_v34 }
0x1457   :  { %vm2971_vm11 = vcmp.eq.f32.partialorder %v2970_v55, 8.507059e+37 }
0x145b   :  { %v4260_v43 = vpop.eup %4259  ;;  %v2855_v19 = vpop.f32.mrf.mxu2 }
0x145c   :  { %v4262_v32 = vpop.eup %4261  ;;  %v2962_v10 = vmul.f32 %v4260_v43, %v2960_v0  ;;  %v2856_v59 = vadd.f32 %v2855_v19, %v2836_v57  ;;  %vm2967_vm5 = vweird.f32 %v4260_v43  ;;  %v2951_v19 = vand.u32 2147483647, %v2941_v34 }
0x145d   :  { %v2943_v61 = vmul.f32 %v4262_v32, %v2941_v34  ;;  %vm2948_vm7 = vweird.f32 %v4262_v32  ;;  %vm2968_vm8 = vmor %vm2966_vm6, %vm2967_vm5 }
0x145e   :  { %v2963_v28 = vsub.f32 1.0, %v2962_v10  ;;  %v2876_v30 = vadd.f32 %v2875_v13, %v2856_v59  ;;  %v2953_v10 = vand.u32 2147483648, %v2941_v34  ;;  %vm2949_vm10 = vmor %vm2947_vm9, %vm2948_vm7  ;;  %vm2952_vm12 = vcmp.eq.f32.partialorder %v2951_v19, 8.507059e+37 }
0x145f   :  { %v2944_v50 = vsub.f32 1.0, %v2943_v61  ;;  %v2973_v61 = vor.u32 1.1754944e-38, %v2972_v37 }
0x1460   :  { %v2964_v45 = vmul.f32 %v4260_v43, %v2963_v28 }
0x1461   :  { %v2945_v14 = vmul.f32 %v4262_v32, %v2944_v50 }
0x1462   :  { %v2965_v20 = vadd.f32 %v4260_v43, %v2964_v45 }
0x1463   :  { %v2946_v16 = vadd.f32 %v4262_v32, %v2945_v14 }
0x1464   :  { %v2969_v57 = vsel %vm2968_vm8, %v4260_v43, %v2965_v20 }
0x1465   :  { %v2950_v15 = vsel %vm2949_vm10, %v4262_v32, %v2946_v16  ;;  %v2974_v59 = vsel %vm2971_vm11, %v2973_v61, %v2969_v57  ;;  %v8705_v57 = vld [vmem:[#allocation10 + $0x5e8] sm:$0xff] }
0x1466   :  { %v2996_v14 = vmul.f32 %v2974_v59, %v8149_v44  ;;  %v8717_v59 = vld [vmem:[#allocation10 + $0x5a8] sm:$0xff] }
0x147b   :  { %v2935_v33 = vpop.f32.mrf.mxu2 }
0x147c   :  { %v2936_v1 = vadd.f32 %v2935_v33, %v2916_v35  ;;  %v2954_v35 = vor.u32 1.1754944e-38, %v2953_v10 }
0x147e   :  { %v4110_v51 = vmul.f32 -1.442695, %v2936_v1 }
0x1480   :  { %4263 = vpow2.f32 %v4110_v51 }
0x1481   :  { %4265 = vtanh.f32 %v2876_v30  ;;  %v2955_v30 = vsel %vm2952_vm12, %v2954_v35, %v2950_v15 }
0x1486   :  { %v4264_v8 = vpop.eup %4263 }
0x1487   :  { %v2980_v28 = vadd.f32 1.0, %v4264_v8  ;;  %v4266_v51 = vpop.eup %4265  ;;  %v8708_v8 = vld [vmem:[#allocation8] sm:$0xff] }
0x1488   :  { %v2997_v0 = vmul.f32 %v4266_v51, %v2955_v30  ;;  %v8714_v51 = vld [vmem:[#allocation8 + $0x8] sm:$0xff]  ;;  %v8720_v30 = vld [vmem:[#allocation10 + $0x588] sm:$0xff] }
0x1489   :  { %4267 = vrcp.f32 %v2980_v28  ;;  %v2992_v37 = vand.u32 2147483648, %v2980_v28  ;;  %v2990_v32 = vand.u32 2147483647, %v2980_v28  ;;  %vm2986_vm15 = vweird.f32 %v2980_v28 }
0x148a   :  { %v8697_v33 = vadd.f32 %v2997_v0, %v2996_v14  ;;  %v8723_v14 = vld [vmem:[#allocation10 + $0x568] sm:$0xff] }
0x148b   :  { %v2993_v13 = vor.u32 1.1754944e-38, %v2992_v37  ;;  %vm2991_vm2 = vcmp.eq.f32.partialorder %v2990_v32, 8.507059e+37  ;;  %v8726_v0 = vld [vmem:[#allocation10 + $0x548] sm:$0xff] }
0x148c   :  { %4269 = vtanh.f32 %v8697_v33  ;;  %10845 = vst [vmem:[#allocation140_spill] sm:$0xff] %v8726_v0  ;;  %v8738_v37 = vld [vmem:[#allocation10 + $0x4c8] sm:$0xff] }
0x148d   :  { %10849 = vst [vmem:[#allocation144_spill] sm:$0xff] %v8738_v37  ;;  %v8744_v32 = vld [vmem:[#allocation10 + $0x488] sm:$0xff] }
0x148e   :  { %10851 = vst [vmem:[#allocation146_spill] sm:$0xff] %v8744_v32 }
0x148f   :  { %v4268_v50 = vpop.eup %4267 }
0x1490   :  { %v2982_v34 = vmul.f32 %v4268_v50, %v2980_v28  ;;  %vm2987_vm14 = vweird.f32 %v4268_v50  ;;  %v8711_v28 = vld [vmem:[#allocation10 + $0x5c8] sm:$0xff] }
0x1491   :  { %vm2988_vm1 = vmor %vm2986_vm15, %vm2987_vm14 }
0x1492   :  { %v2983_v20 = vsub.f32 1.0, %v2982_v34  ;;  %v4270_v16 = vpop.eup %4269  ;;  %v8732_v34 = vld [vmem:[#allocation10 + $0x508] sm:$0xff] }
0x1493   :  { %10847 = vst [vmem:[#allocation142_spill] sm:$0xff] %v8732_v34 }
0x1494   :  { %v2984_v43 = vmul.f32 %v4268_v50, %v2983_v20  ;;  %v8735_v20 = vld [vmem:[#allocation10 + $0x4e8] sm:$0xff] }
0x1495   :  { %10848 = vst [vmem:[#allocation143_spill] sm:$0xff] %v8735_v20 }
0x1496   :  { %v2985_v1 = vadd.f32 %v4268_v50, %v2984_v43  ;;  %v8741_v43 = vld [vmem:[#allocation10 + $0x4a8] sm:$0xff] }
0x1497   :  { %10850 = vst [vmem:[#allocation145_spill] sm:$0xff] %v8741_v43 }
0x1498   :  { %v2989_v45 = vsel %vm2988_vm1, %v4268_v50, %v2985_v1  ;;  %v8729_v50 = vld [vmem:[#allocation10 + $0x528] sm:$0xff] }
0x1499   :  { %v2994_v44 = vsel %vm2991_vm2, %v2993_v13, %v2989_v45  ;;  %10846 = vst [vmem:[#allocation141_spill] sm:$0xff] %v8729_v50  ;;  %v8747_v1 = vld [vmem:[#allocation10 + $0x468] sm:$0xff] }
0x149a   :  { %v8700_v55 = vmul.f32 %v4270_v16, %v2994_v44  ;;  %10852 = vst [vmem:[#allocation147_spill] sm:$0xff] %v8747_v1  ;;  %v8750_v13 = vld [vmem:[#allocation10 + $0x448] sm:$0xff] }
0x149b   :  { %10853 = vst [vmem:[#allocation148_spill] sm:$0xff] %v8750_v13  ;;  %v8753_v45 = vld [vmem:[#allocation10 + $0x428] sm:$0xff] }
0x149c   :  { %3100 = vmatmul.f32.vlgmr.msrb.gmra.mxu3 %v8700_v55  ;;  %v3003_v10 = vperm.slane %v8700_v55, 0  ;;  %v3002_v19 = vrot.slane %v8700_v55, 1  ;;  %10854 = vst [vmem:[#allocation149_spill] sm:$0xff] %v8753_v45  ;;  %v8756_v16 = vld [vmem:[#allocation10 + $0x408] sm:$0xff] }
0x149d   :  { %3257 = vmatpush.msrb.mxu3 %v8705_v57  ;;  %10855 = vst [vmem:[#allocation150_spill] sm:$0xff] %v8756_v16 }
0x149e   :  { %v3007_v61 = vmul.f32 %v8708_v8, %v3003_v10  ;;  %v3004_v15 = vperm.slane %v3002_v19, 0 }
0x149f   :  { %3258 = vmatpush.msrb.mxu3 %v8711_v28 }
0x14a0   :  { %3009 = vadd.xlane.f32.xlu2 %v3007_v61  ;;  %v3008_v35 = vmul.f32 %v8714_v51, %v3004_v15 }
0x14a1   :  { %3259 = vmatpush.msrb.mxu3 %v8717_v59 }
0x14a2   :  { %3011 = vadd.xlane.f32.xlu0 %v3008_v35 }
0x14a3   :  { %3260 = vmatpush.msrb.mxu3 %v8720_v30 }
0x14a5   :  { %3261 = vmatpush.msrb.mxu3 %v8723_v14 }
0x14a7   :  { %3262 = vmatpush.msrb.mxu3 %v8726_v0 }
0x14a9   :  { %3263 = vmatpush.msrb.mxu3 %v8729_v50 }
0x14ab   :  { %3264 = vmatpush.msrb.mxu3 %v8732_v34 }
0x14ad   :  { %3265 = vmatpush.msrb.mxu3 %v8735_v20 }
0x14af   :  { %3266 = vmatpush.msrb.mxu3 %v8738_v37 }
0x14b1   :  { %3267 = vmatpush.msrb.mxu3 %v8741_v43 }
0x14b3   :  { %3268 = vmatpush.msrb.mxu3 %v8744_v32 }
0x14b5   :  { %3269 = vmatpush.msrb.mxu3 %v8747_v1 }
0x14b7   :  { %3270 = vmatpush.msrb.mxu3 %v8750_v13 }
0x14b9   :  { %3271 = vmatpush.msrb.mxu3 %v8753_v45 }
0x14bb   :  { %3272 = vmatpush.msrb.mxu3 %v8756_v16 }
0x1513   :  { %v3010_v44 = vpop.xlane.xlu2 %3009 }
0x1514   :  { %v3015_v19 = vperm.slane %v3010_v44, %v10680_v23 }
0x1515   :  { %v3012_v10 = vpop.xlane.xlu0 %3011 }
0x1516   :  { %v3016_v61 = vperm.slane %v3012_v10, %v10680_v23 }
0x1518   :  { %v3017_v15 = vsel %vm397_vm0, %v3016_v61, %v3015_v19 }
0x1519   :  { %v3019_v35 = vsel %vm723_vm13, %v3017_v15, -inf }
0x151a   :  { %3020 = vmax.xlane.f32.xlu1 %v3019_v35  ;;  %v8789_v35 = vld [vmem:[#allocation10 + $0x530] sm:$0xff] }
0x151b   :  { %10862 = vst [vmem:[#allocation157_spill] sm:$0xff] %v8789_v35 }
0x158d   :  { %v3021_v13 = vpop.xlane.xlu1 %3020 }
0x158e   :  { %v3023_v1 = vperm.slane %v3021_v13, 0  ;;  %v3024_v32 = vperm.slane %v3021_v13, 1 }
0x1590   :  { %v3027_v43 = vsub.f32 %v3010_v44, %v3023_v1  ;;  %v3028_v37 = vsub.f32 %v3012_v10, %v3024_v32  ;;  %v3151_v32 = vld [vmem:[#allocation5 + $0xe] sm:$0x1]  ;;  %v8783_v44 = vld [vmem:[#allocation10 + $0x570] sm:$0xff] }
0x1591   :  { %v3154_v1 = vrot.slane %v3151_v32, 7  ;;  %10860 = vst [vmem:[#allocation155_spill] sm:$0xff] %v8783_v44  ;;  %v8786_v10 = vld [vmem:[#allocation10 + $0x550] sm:$0xff] }
0x1592   :  { %v3029_v45 = vmul.f32 1.442695, %v3027_v43  ;;  %v3031_v20 = vmul.f32 1.442695, %v3028_v37  ;;  %v3150_v43 = vld [vmem:[#allocation5 + $0x6] sm:$0x1] }
0x1593   :  { %v8768_v37 = vsel %vm397_vm0, %v3154_v1, %v3150_v43  ;;  %10861 = vst [vmem:[#allocation156_spill] sm:$0xff] %v8786_v10  ;;  %v8801_v43 = vld [vmem:[#allocation10 + $0x4b0] sm:$0xff] }
0x1594   :  { %4271 = vpow2.f32 %v3029_v45  ;;  %3173 = vmatmul.f32.vlgmr.msra.gmra.mxu2 %v8768_v37  ;;  %v8780_v45 = vld [vmem:[#allocation10 + $0x590] sm:$0xff]  ;;  %10866 = vst [vmem:[#allocation161_spill] sm:$0xff] %v8801_v43 }
0x1595   :  { %4273 = vpow2.f32 %v3031_v20  ;;  %v8771_v20 = vld [vmem:[#allocation10 + $0x5f0] sm:$0xff]  ;;  %10859 = vst [vmem:[#allocation154_spill] sm:$0xff] %v8780_v45 }
0x1596   :  { %10856 = vst [vmem:[#allocation151_spill] sm:$0xff] %v8771_v20  ;;  %3317 = vmatpush.msra.mxu2 %v8771_v20  ;;  %v8804_v1 = vld [vmem:[#allocation10 + $0x490] sm:$0xff] }
0x1597   :  { %10867 = vst [vmem:[#allocation162_spill] sm:$0xff] %v8804_v1 }
0x159a   :  { %v4272_v16 = vpop.eup %4271 }
0x159b   :  { %3036 = vperm.xlu2 %4131, %v4272_v16   ;;  %v4274_v34 = vpop.eup %4273 }
0x15a3   :  { %3039 = vperm.xlu2 %4131, %v4274_v34  }
0x15f5   :  { %v3037_v50 = vpop.permute.xlu2 %3036 }
0x15f6   :  { %v3041_v19 = vperm.slane %v3037_v50, %v10680_v23  ;;  %v8774_v50 = vld [vmem:[#allocation10 + $0x5d0] sm:$0xff] }
0x15f7   :  { %10857 = vst [vmem:[#allocation152_spill] sm:$0xff] %v8774_v50  ;;  %3318 = vmatpush.msra.mxu2 %v8774_v50 }
0x15fd   :  { %v3040_v0 = vpop.permute.xlu2 %3039 }
0x15fe   :  { %v3042_v61 = vperm.slane %v3040_v0, %v10680_v23  ;;  %v8777_v0 = vld [vmem:[#allocation10 + $0x5b0] sm:$0xff] }
0x15ff   :  { %10858 = vst [vmem:[#allocation153_spill] sm:$0xff] %v8777_v0  ;;  %3319 = vmatpush.msra.mxu2 %v8777_v0 }
0x1600   :  { %v3043_v15 = vsel %vm397_vm0, %v3042_v61, %v3041_v19  ;;  %v8792_v19 = vld [vmem:[#allocation10 + $0x510] sm:$0xff] }
0x1601   :  { %v3045_v13 = vsel %vm723_vm13, %v3043_v15, 0.0  ;;  %3320 = vmatpush.msra.mxu2 %v8780_v45  ;;  %10863 = vst [vmem:[#allocation158_spill] sm:$0xff] %v8792_v19  ;;  %v8795_v15 = vld [vmem:[#allocation10 + $0x4f0] sm:$0xff] }
0x1602   :  { %3046 = vadd.xlane.f32.xlu2 %v3045_v13  ;;  %10864 = vst [vmem:[#allocation159_spill] sm:$0xff] %v8795_v15  ;;  %v8798_v13 = vld [vmem:[#allocation10 + $0x4d0] sm:$0xff] }
0x1603   :  { %3321 = vmatpush.msra.mxu2 %v8783_v44  ;;  %10865 = vst [vmem:[#allocation160_spill] sm:$0xff] %v8798_v13  ;;  %v8810_v44 = vld [vmem:[#allocation10 + $0x450] sm:$0xff] }
0x1604   :  { %10869 = vst [vmem:[#allocation164_spill] sm:$0xff] %v8810_v44 }
0x1605   :  { %3322 = vmatpush.msra.mxu2 %v8786_v10 }
0x1607   :  { %3323 = vmatpush.msra.mxu2 %v8789_v35 }
0x1609   :  { %3324 = vmatpush.msra.mxu2 %v8792_v19 }
0x160b   :  { %3325 = vmatpush.msra.mxu2 %v8795_v15 }
0x160d   :  { %3326 = vmatpush.msra.mxu2 %v8798_v13  ;;  %v8816_v13 = vld [vmem:[#allocation10 + $0x410] sm:$0xff] }
0x160e   :  { %10871 = vst [vmem:[#allocation166_spill] sm:$0xff] %v8816_v13 }
0x160f   :  { %3327 = vmatpush.msra.mxu2 %v8801_v43  ;;  %v8813_v43 = vld [vmem:[#allocation10 + $0x430] sm:$0xff] }
0x1610   :  { %10870 = vst [vmem:[#allocation165_spill] sm:$0xff] %v8813_v43 }
0x1611   :  { %3328 = vmatpush.msra.mxu2 %v8804_v1 }
0x1675   :  { %v3047_v61 = vpop.xlane.xlu2 %3046 }
0x1676   :  { %4275 = vrcp.f32 %v3047_v61  ;;  %v8807_v61 = vld [vmem:[#allocation10 + $0x470] sm:$0xff] }
0x1677   :  { %10868 = vst [vmem:[#allocation163_spill] sm:$0xff] %v8807_v61  ;;  %3329 = vmatpush.msra.mxu2 %v8807_v61 }
0x1679   :  { %3330 = vmatpush.msra.mxu2 %v8810_v44 }
0x167b   :  { %3331 = vmatpush.msra.mxu2 %v8813_v43 }
0x167c   :  { %v4276_v32 = vpop.eup %4275 }
0x167d   :  { %v3051_v19 = vperm.slane %v4276_v32, 1  ;;  %v3050_v35 = vperm.slane %v4276_v32, 0  ;;  %3332 = vmatpush.msra.mxu2 %v8816_v13 }
0x167f   :  { %v3055_v15 = vmul.f32 %v4274_v34, %v3051_v19  ;;  %v3054_v10 = vmul.f32 %v4272_v16, %v3050_v35 }
0x1681   :  { %3063 = vperm.xlu1 %4130, %v3055_v15   ;;  %3058 = vperm.xlu0 %4132, %v3054_v10  }
0x16f3   :  { %v3064_v32 = vpop.permute.xlu1 %3063  ;;  %v3059_v1 = vpop.permute.xlu0 %3058 }
0x16f4   :  { %v3067_v61 = vmul.f32 %v8714_v51, %v3064_v32  ;;  %v3066_v34 = vmul.f32 %v8708_v8, %v3059_v1  ;;  %v8828_v1 = vld [vmem:[#allocation10 + $0x1f8] sm:$0xff] }
0x16f5   :  { %v8891_v32 = vld [vmem:[#allocation13 + $0x38] sm:$0xff] }
0x16f6   :  { %v3074_v16 = vrot.slane %v3067_v61, 4  ;;  %v3068_v35 = vrot.slane %v3066_v34, 4 }
0x16f8   :  { %v3075_v19 = vadd.f32 %v3074_v16, %v3067_v61  ;;  %v3069_v44 = vadd.f32 %v3068_v35, %v3066_v34  ;;  %v8884_v61 = vld [vmem:[#allocation13 + $0x40] sm:$0xff]  ;;  %v8898_v34 = vld [vmem:[#allocation13 + $0x30] sm:$0xff]  ;;  %v8905_v16 = vld [vmem:[#allocation13 + $0x28] sm:$0xff] }
0x16f9   :  { %v8912_v35 = vld [vmem:[#allocation13 + $0x20] sm:$0xff] }
0x16fa   :  { %v3076_v15 = vrot.slane %v3075_v19, 2  ;;  %v3070_v10 = vrot.slane %v3069_v44, 2 }
0x16fc   :  { %v3077_v45 = vadd.f32 %v3076_v15, %v3075_v19  ;;  %v3071_v0 = vadd.f32 %v3070_v10, %v3069_v44  ;;  %v8831_v44 = vld [vmem:[#allocation13 + $0x78] sm:$0xff]  ;;  %v8926_v15 = vld [vmem:[#allocation13 + $0x10] sm:$0xff]  ;;  %v8935_v10 = vld [vmem:[#allocation13 + $0x8] sm:$0xff] }
0x16fd   :  { %v8919_v19 = vld [vmem:[#allocation13 + $0x18] sm:$0xff] }
0x16fe   :  { %v3078_v50 = vrot.slane %v3077_v45, 1  ;;  %v3072_v43 = vrot.slane %v3071_v0, 1 }
0x1700   :  { %v3079_v20 = vadd.f32 %v3078_v50, %v3077_v45  ;;  %v3073_v23 = vadd.f32 %v3072_v43, %v3071_v0  ;;  %v8845_v50 = vld [vmem:[#allocation13 + $0x68] sm:$0xff]  ;;  %v8860_v0 = vld [vmem:[#allocation10 + $0x178] sm:$0xff] }
0x1701   :  { %v8870_v45 = vld [vmem:[#allocation13 + $0x50] sm:$0xff]  ;;  %v8877_v43 = vld [vmem:[#allocation13 + $0x48] sm:$0xff] }
0x1702   :  { %v8822_v13 = vsel %vm397_vm0, %v3079_v20, %v3073_v23  ;;  %v8835_v23 = vld [vmem:[#allocation10 + $0x1d8] sm:$0xff] }
0x1703   :  { %3120 = vmatmul.f32.vlgmr.msra.gmra.mxu0 %v8822_v13  ;;  %3193 = vmatmul.f32.vlgmr.msra.gmra.mxu3 %v8822_v13  ;;  %v8838_v20 = vld [vmem:[#allocation13 + $0x70] sm:$0xff] }
0x1704   :  { %3253 = vmatmul.f32.vlgmr.msrb.gmra.mxu2 %v8822_v13  ;;  %3277 = vmatpush.msra.mxu0 %v8211_v42  ;;  %v8842_v42 = vld [vmem:[#allocation10 + $0x1b8] sm:$0xff] }
0x1705   :  { %3337 = vmatpush.msra.mxu3 %v8828_v1  ;;  %3543 = vmatpush.msrb.mxu2 %v8831_v44 }
0x1706   :  { %3278 = vmatpush.msra.mxu0 %v8216_v40  ;;  %v8853_v40 = vld [vmem:[#allocation10 + $0x198] sm:$0xff] }
0x1707   :  { %3338 = vmatpush.msra.mxu3 %v8835_v23  ;;  %3544 = vmatpush.msrb.mxu2 %v8838_v20 }
0x1708   :  { %3279 = vmatpush.msra.mxu0 %v8221_v5  ;;  %v8856_v5 = vld [vmem:[#allocation13 + $0x60] sm:$0xff] }
0x1709   :  { %3339 = vmatpush.msra.mxu3 %v8842_v42  ;;  %3545 = vmatpush.msrb.mxu2 %v8845_v50 }
0x170a   :  { %3280 = vmatpush.msra.mxu0 %v8226_v12  ;;  %v8863_v12 = vld [vmem:[#allocation13 + $0x58] sm:$0xff] }
0x170b   :  { %3213 = vmatmul.f32.vlgmr.msrb.gmra.mxu0 %v8700_v55  ;;  %3273 = vmatmul.f32.vlgmr.msrb.gmra.mxu3 %v8700_v55 }
0x170c   :  { %3281 = vmatpush.msra.mxu0 %v8231_v52  ;;  %3333 = vmatmul.f32.vlgmr.msra.gmra.mxu2 %v8700_v55  ;;  %v8867_v52 = vld [vmem:[#allocation10 + $0x158] sm:$0xff] }
0x170d   :  { %3340 = vmatpush.msra.mxu3 %v8853_v40  ;;  %3546 = vmatpush.msrb.mxu2 %v8856_v5 }
0x170e   :  { %3282 = vmatpush.msra.mxu0 %v8237_v6  ;;  %v8874_v6 = vld [vmem:[#allocation10 + $0x138] sm:$0xff] }
0x170f   :  { %3341 = vmatpush.msra.mxu3 %v8860_v0  ;;  %3547 = vmatpush.msrb.mxu2 %v8863_v12 }
0x1710   :  { %3283 = vmatpush.msra.mxu0 %v8242_v41  ;;  %v8881_v41 = vld [vmem:[#allocation10 + $0x118] sm:$0xff] }
0x1711   :  { %3342 = vmatpush.msra.mxu3 %v8867_v52  ;;  %3548 = vmatpush.msrb.mxu2 %v8870_v45 }
0x1712   :  { %3284 = vmatpush.msra.mxu0 %v8247_v47  ;;  %v8888_v47 = vld [vmem:[#allocation10 + $0xf8] sm:$0xff] }
0x1713   :  { %3343 = vmatpush.msra.mxu3 %v8874_v6  ;;  %3549 = vmatpush.msrb.mxu2 %v8877_v43 }
0x1714   :  { %3285 = vmatpush.msra.mxu0 %v8252_v21  ;;  %v8895_v21 = vld [vmem:[#allocation10 + $0xd8] sm:$0xff] }
0x1715   :  { %3344 = vmatpush.msra.mxu3 %v8881_v41  ;;  %3550 = vmatpush.msrb.mxu2 %v8884_v61 }
0x1716   :  { %3286 = vmatpush.msra.mxu0 %v8257_v56  ;;  %v8902_v56 = vld [vmem:[#allocation10 + $0xb8] sm:$0xff] }
0x1717   :  { %3345 = vmatpush.msra.mxu3 %v8888_v47  ;;  %3551 = vmatpush.msrb.mxu2 %v8891_v32 }
0x1718   :  { %3287 = vmatpush.msra.mxu0 %v8262_v54  ;;  %v8909_v54 = vld [vmem:[#allocation10 + $0x98] sm:$0xff] }
0x1719   :  { %3346 = vmatpush.msra.mxu3 %v8895_v21  ;;  %3552 = vmatpush.msrb.mxu2 %v8898_v34 }
0x171a   :  { %3288 = vmatpush.msra.mxu0 %v8267_v36  ;;  %v8916_v36 = vld [vmem:[#allocation10 + $0x78] sm:$0xff] }
0x171b   :  { %3347 = vmatpush.msra.mxu3 %v8902_v56  ;;  %3553 = vmatpush.msrb.mxu2 %v8905_v16 }
0x171c   :  { %3289 = vmatpush.msra.mxu0 %v8272_v31  ;;  %v8923_v31 = vld [vmem:[#allocation10 + $0x58] sm:$0xff] }
0x171d   :  { %3348 = vmatpush.msra.mxu3 %v8909_v54  ;;  %3554 = vmatpush.msrb.mxu2 %v8912_v35 }
0x171e   :  { %3290 = vmatpush.msra.mxu0 %v8277_v29  ;;  %v8931_v29 = vld [vmem:[#allocation10 + $0x38] sm:$0xff] }
0x171f   :  { %3349 = vmatpush.msra.mxu3 %v8916_v36  ;;  %3555 = vmatpush.msrb.mxu2 %v8919_v19  ;;  %10872 = vst [vmem:[#allocation167_spill] sm:$0xff] %v8931_v29 }
0x1720   :  { %3291 = vmatpush.msra.mxu0 %v8282_v63  ;;  %v8939_v63 = vld [vmem:[#allocation10 + $0x18] sm:$0xff] }
0x1721   :  { %3350 = vmatpush.msra.mxu3 %v8923_v31  ;;  %3556 = vmatpush.msrb.mxu2 %v8926_v15  ;;  %10873 = vst [vmem:[#allocation168_spill] sm:$0xff] %v8939_v63 }
0x1722   :  { %3292 = vmatpush.msra.mxu0 %v8287_v9  ;;  %v8943_v9 = vld [vmem:[#allocation13] sm:$0xff] }
0x1723   :  { %3351 = vmatpush.msra.mxu3 %v8931_v29  ;;  %3293 = vmatmul.f32.vlgmr.msra.gmra.mxu0 %v8768_v37  ;;  %10874 = vst [vmem:[#allocation169_spill] sm:$0xff] %v8943_v9  ;;  %v5014_v29 = vld [vmem:[#allocation10 + $0x3e0] sm:$0xff] }
0x1724   :  { %3357 = vmatpush.msrb.mxu0 %v8290_v3  ;;  %3557 = vmatpush.msrb.mxu2 %v8935_v10  ;;  %v8947_v3 = vld [vmem:[#allocation13 + $0xf8] sm:$0xff] }
0x1725   :  { %3352 = vmatpush.msra.mxu3 %v8939_v63  ;;  %10875 = vst [vmem:[#allocation170_spill] sm:$0xff] %v8947_v3  ;;  %v8955_v63 = vld [vmem:[#allocation10 + $0x378] sm:$0xff] }
0x1726   :  { %3358 = vmatpush.msrb.mxu0 %v8296_v38  ;;  %3353 = vmatmul.f32.vlgmr.msra.gmra.mxu3 %v8768_v37  ;;  %v8951_v38 = vld [vmem:[#allocation13 + $0xf0] sm:$0xff]  ;;  %10877 = vst [vmem:[#allocation172_spill] sm:$0xff] %v8955_v63 }
0x1727   :  { %3558 = vmatpush.msrb.mxu2 %v8943_v9  ;;  %3563 = vmatpush.msrb.mxu3 %v8947_v3  ;;  %10876 = vst [vmem:[#allocation171_spill] sm:$0xff] %v8951_v38  ;;  %v8958_v9 = vld [vmem:[#allocation13 + $0xe8] sm:$0xff] }
0x1728   :  { %3359 = vmatpush.msrb.mxu0 %v8302_v7  ;;  %10878 = vst [vmem:[#allocation173_spill] sm:$0xff] %v8958_v9  ;;  %v8962_v7 = vld [vmem:[#allocation10 + $0x358] sm:$0xff] }
0x1729   :  { %3636 = vmatpush.msra.mxu2 %v5014_v29  ;;  %3564 = vmatpush.msrb.mxu3 %v8951_v38  ;;  %10879 = vst [vmem:[#allocation174_spill] sm:$0xff] %v8962_v7  ;;  %v8972_v29 = vld [vmem:[#allocation13 + $0xd8] sm:$0xff] }
0x172a   :  { %3360 = vmatpush.msrb.mxu0 %v8307_v60  ;;  %v8965_v60 = vld [vmem:[#allocation13 + $0xe0] sm:$0xff]  ;;  %10882 = vst [vmem:[#allocation177_spill] sm:$0xff] %v8972_v29 }
0x172b   :  { %3637 = vmatpush.msra.mxu2 %v8311_v27  ;;  %3565 = vmatpush.msrb.mxu3 %v8958_v9  ;;  %10880 = vst [vmem:[#allocation175_spill] sm:$0xff] %v8965_v60  ;;  %v8969_v27 = vld [vmem:[#allocation10 + $0x338] sm:$0xff] }
0x172c   :  { %3361 = vmatpush.msrb.mxu0 %v8955_v63  ;;  %10881 = vst [vmem:[#allocation176_spill] sm:$0xff] %v8969_v27 }
0x172d   :  { %3638 = vmatpush.msra.mxu2 %v8316_v48  ;;  %3566 = vmatpush.msrb.mxu3 %v8965_v60  ;;  %v8976_v48 = vld [vmem:[#allocation10 + $0x318] sm:$0xff] }
0x172e   :  { %3362 = vmatpush.msrb.mxu0 %v8962_v7  ;;  %10883 = vst [vmem:[#allocation178_spill] sm:$0xff] %v8976_v48  ;;  %v8979_v7 = vld [vmem:[#allocation13 + $0xd0] sm:$0xff] }
0x172f   :  { %3639 = vmatpush.msra.mxu2 %v8321_v4  ;;  %3567 = vmatpush.msrb.mxu3 %v8972_v29  ;;  %10884 = vst [vmem:[#allocation179_spill] sm:$0xff] %v8979_v7  ;;  %v8983_v4 = vld [vmem:[#allocation10 + $0x2f8] sm:$0xff] }
0x1730   :  { %3363 = vmatpush.msrb.mxu0 %v8969_v27  ;;  %10885 = vst [vmem:[#allocation180_spill] sm:$0xff] %v8983_v4  ;;  %v8986_v27 = vld [vmem:[#allocation13 + $0xc8] sm:$0xff] }
0x1731   :  { %3640 = vmatpush.msra.mxu2 %v8326_v39  ;;  %3568 = vmatpush.msrb.mxu3 %v8979_v7  ;;  %10886 = vst [vmem:[#allocation181_spill] sm:$0xff] %v8986_v27  ;;  %v8990_v39 = vld [vmem:[#allocation10 + $0x2d8] sm:$0xff] }
0x1732   :  { %3364 = vmatpush.msrb.mxu0 %v8976_v48  ;;  %10887 = vst [vmem:[#allocation182_spill] sm:$0xff] %v8990_v39  ;;  %v8993_v48 = vld [vmem:[#allocation13 + $0xc0] sm:$0xff] }
0x1733   :  { %3641 = vmatpush.msra.mxu2 %v8331_v26  ;;  %3569 = vmatpush.msrb.mxu3 %v8986_v27  ;;  %10888 = vst [vmem:[#allocation183_spill] sm:$0xff] %v8993_v48  ;;  %v8997_v26 = vld [vmem:[#allocation10 + $0x2b8] sm:$0xff] }
0x1734   :  { %3365 = vmatpush.msrb.mxu0 %v8983_v4  ;;  %10889 = vst [vmem:[#allocation184_spill] sm:$0xff] %v8997_v26  ;;  %v9000_v4 = vld [vmem:[#allocation13 + $0xb8] sm:$0xff] }
0x1735   :  { %3642 = vmatpush.msra.mxu2 %v8336_v17  ;;  %3570 = vmatpush.msrb.mxu3 %v8993_v48  ;;  %10890 = vst [vmem:[#allocation185_spill] sm:$0xff] %v9000_v4  ;;  %v9004_v17 = vld [vmem:[#allocation10 + $0x298] sm:$0xff] }
0x1736   :  { %3366 = vmatpush.msrb.mxu0 %v8990_v39  ;;  %10891 = vst [vmem:[#allocation36_spill] sm:$0xff] %v9004_v17  ;;  %v9007_v39 = vld [vmem:[#allocation13 + $0xb0] sm:$0xff] }
0x1737   :  { %3643 = vmatpush.msra.mxu2 %v8341_v53  ;;  %3571 = vmatpush.msrb.mxu3 %v9000_v4  ;;  %10892 = vst [vmem:[#allocation35_spill] sm:$0xff] %v9007_v39  ;;  %v9011_v53 = vld [vmem:[#allocation10 + $0x278] sm:$0xff]  ;;  %v10935_v4 = vld [vmem:[#allocation77_spill] sm:$0xff] }
0x1738   :  { %3367 = vmatpush.msrb.mxu0 %v8997_v26  ;;  %10893 = vst [vmem:[#allocation37_spill] sm:$0xff] %v9011_v53  ;;  %v9014_v26 = vld [vmem:[#allocation13 + $0xa8] sm:$0xff] }
0x1739   :  { %3644 = vmatpush.msra.mxu2 %v8346_v22  ;;  %3572 = vmatpush.msrb.mxu3 %v9007_v39  ;;  %10894 = vst [vmem:[#allocation39_spill] sm:$0xff] %v9014_v26  ;;  %v9018_v22 = vld [vmem:[#allocation10 + $0x258] sm:$0xff] }
0x173a   :  { %3368 = vmatpush.msrb.mxu0 %v9004_v17  ;;  %10895 = vst [vmem:[#allocation41_spill] sm:$0xff] %v9018_v22  ;;  %v9021_v17 = vld [vmem:[#allocation13 + $0xa0] sm:$0xff] }
0x173b   :  { %3645 = vmatpush.msra.mxu2 %v8351_v24  ;;  %3573 = vmatpush.msrb.mxu3 %v9014_v26  ;;  %10896 = vst [vmem:[#allocation43_spill] sm:$0xff] %v9021_v17  ;;  %v9025_v24 = vld [vmem:[#allocation10 + $0x238] sm:$0xff]  ;;  %v10912_v26 = vld [vmem:[#allocation44_spill] sm:$0xff] }
0x173c   :  { %3369 = vmatpush.msrb.mxu0 %v9011_v53  ;;  %10897 = vst [vmem:[#allocation46_spill] sm:$0xff] %v9025_v24  ;;  %v9028_v53 = vld [vmem:[#allocation13 + $0x98] sm:$0xff] }
0x173d   :  { %3646 = vmatpush.msra.mxu2 %v8356_v18  ;;  %3574 = vmatpush.msrb.mxu3 %v9021_v17  ;;  %10898 = vst [vmem:[#allocation49_spill] sm:$0xff] %v9028_v53  ;;  %v9032_v18 = vld [vmem:[#allocation10 + $0x218] sm:$0xff]  ;;  %v5053_v17 = vld [vmem:[#allocation10 + $0x520] sm:$0xff] }
0x173e   :  { %3370 = vmatpush.msrb.mxu0 %v9018_v22  ;;  %10899 = vst [vmem:[#allocation52_spill] sm:$0xff] %v9032_v18  ;;  %v9035_v22 = vld [vmem:[#allocation13 + $0x90] sm:$0xff] }
0x173f   :  { %3647 = vmatpush.msra.mxu2 %v8361_v25  ;;  %3575 = vmatpush.msrb.mxu3 %v9028_v53  ;;  %10900 = vst [vmem:[#allocation55_spill] sm:$0xff] %v9035_v22  ;;  %v9040_v25 = vld [vmem:[#allocation13 + $0x88] sm:$0xff]  ;;  %v10909_v53 = vld [vmem:[#allocation64_spill] sm:$0xff] }
0x1740   :  { %3371 = vmatpush.msrb.mxu0 %v9025_v24  ;;  %10901 = vst [vmem:[#allocation58_spill] sm:$0xff] %v9040_v25  ;;  %v9043_v24 = vld [vmem:[#allocation14 + $0x78] sm:$0xff] }
0x1741   :  { %3648 = vmatpush.msra.mxu2 %v8366_v62  ;;  %3576 = vmatpush.msrb.mxu3 %v9035_v22  ;;  %10902 = vst [vmem:[#allocation61_spill] sm:$0xff] %v9043_v24  ;;  %v9047_v62 = vld [vmem:[#allocation13 + $0x80] sm:$0xff] }
0x1742   :  { %3372 = vmatpush.msrb.mxu0 %v9032_v18  ;;  %10903 = vst [vmem:[#allocation63_spill] sm:$0xff] %v9047_v62  ;;  %v9050_v18 = vld [vmem:[#allocation14 + $0x70] sm:$0xff]  ;;  %v5044_v22 = vld [vmem:[#allocation10 + $0x5e0] sm:$0xff] }
0x1743   :  { %3373 = vmatmul.f32.vlgmr.msrb.gmra.mxu0 %v8822_v13  ;;  %3649 = vmatpush.msra.mxu2 %v8372_v11  ;;  %10904 = vst [vmem:[#allocation66_spill] sm:$0xff] %v9050_v18  ;;  %v9054_v11 = vld [vmem:[#allocation14 + $0x68] sm:$0xff] }
0x1744   :  { %3577 = vmatpush.msrb.mxu3 %v9040_v25  ;;  %3584 = vmatpush.msra.mxu0 %v9043_v24  ;;  %10905 = vst [vmem:[#allocation38_spill] sm:$0xff] %v9054_v11  ;;  %v5046_v25 = vld [vmem:[#allocation10 + $0x5c0] sm:$0xff] }
0x1745   :  { %3650 = vmatpush.msra.mxu2 %v8377_v58  ;;  %v9057_v24 = vld [vmem:[#allocation14 + $0x60] sm:$0xff] }
0x1746   :  { %3578 = vmatpush.msrb.mxu3 %v9047_v62  ;;  %3585 = vmatpush.msra.mxu0 %v9050_v18  ;;  %10906 = vst [vmem:[#allocation40_spill] sm:$0xff] %v9057_v24  ;;  %v5048_v58 = vld [vmem:[#allocation10 + $0x5a0] sm:$0xff] }
0x1747   :  { %3651 = vmatpush.msra.mxu2 %v8383_v2  ;;  %v9060_v62 = vld [vmem:[#allocation14 + $0x58] sm:$0xff] }
0x1748   :  { %3656 = vmatpush.msra.mxu3 %v5044_v22  ;;  %3586 = vmatpush.msra.mxu0 %v9054_v11  ;;  %10907 = vst [vmem:[#allocation42_spill] sm:$0xff] %v9060_v62  ;;  %v5050_v18 = vld [vmem:[#allocation10 + $0x580] sm:$0xff] }
0x1749   :  { %v10908_v22 = vld [vmem:[#allocation60_spill] sm:$0xff] }
0x174a   :  { %3657 = vmatpush.msra.mxu3 %v5046_v25  ;;  %3587 = vmatpush.msra.mxu0 %v9057_v24  ;;  %v5051_v2 = vld [vmem:[#allocation10 + $0x560] sm:$0xff]  ;;  %v10910_v25 = vld [vmem:[#allocation69_spill] sm:$0xff] }
0x174b   :  { %v5052_v11 = vld [vmem:[#allocation10 + $0x540] sm:$0xff] }
0x174c   :  { %3658 = vmatpush.msra.mxu3 %v5048_v58  ;;  %3588 = vmatpush.msra.mxu0 %v9060_v62  ;;  %v10911_v24 = vld [vmem:[#allocation67_spill] sm:$0xff] }
0x174d   :  { %v5054_v58 = vld [vmem:[#allocation10 + $0x500] sm:$0xff] }
0x174e   :  { %3659 = vmatpush.msra.mxu3 %v5050_v18  ;;  %3589 = vmatpush.msra.mxu0 %v10908_v22  ;;  %v5055_v62 = vld [vmem:[#allocation10 + $0x4e0] sm:$0xff] }
0x174f   :  { %v10913_v18 = vld [vmem:[#allocation47_spill] sm:$0xff] }
0x1750   :  { %3660 = vmatpush.msra.mxu3 %v5051_v2  ;;  %3590 = vmatpush.msra.mxu0 %v10909_v53  ;;  %v5056_v22 = vld [vmem:[#allocation10 + $0x4c0] sm:$0xff]  ;;  %v10914_v2 = vld [vmem:[#allocation50_spill] sm:$0xff] }
0x1751   :  { %v5057_v53 = vld [vmem:[#allocation10 + $0x4a0] sm:$0xff] }
0x1752   :  { %3661 = vmatpush.msra.mxu3 %v5052_v11  ;;  %3591 = vmatpush.msra.mxu0 %v10910_v25  ;;  %v10915_v11 = vld [vmem:[#allocation53_spill] sm:$0xff]  ;;  %v5058_v25 = vld [vmem:[#allocation10 + $0x480] sm:$0xff] }
0x1754   :  { %3662 = vmatpush.msra.mxu3 %v5053_v17  ;;  %3592 = vmatpush.msra.mxu0 %v10911_v24  ;;  %v10916_v17 = vld [vmem:[#allocation56_spill] sm:$0xff] }
0x1755   :  { %v5059_v24 = vld [vmem:[#allocation10 + $0x460] sm:$0xff] }
0x1756   :  { %3663 = vmatpush.msra.mxu3 %v5054_v58  ;;  %3593 = vmatpush.msra.mxu0 %v10912_v26  ;;  %v10917_v58 = vld [vmem:[#allocation59_spill] sm:$0xff] }
0x1757   :  { %v5060_v26 = vld [vmem:[#allocation10 + $0x440] sm:$0xff] }
0x1758   :  { %3664 = vmatpush.msra.mxu3 %v5055_v62  ;;  %3594 = vmatpush.msra.mxu0 %v10913_v18  ;;  %v10918_v62 = vld [vmem:[#allocation62_spill] sm:$0xff]  ;;  %v5061_v18 = vld [vmem:[#allocation10 + $0x420] sm:$0xff] }
0x175a   :  { %3665 = vmatpush.msra.mxu3 %v5056_v22  ;;  %3595 = vmatpush.msra.mxu0 %v10914_v2  ;;  %v10919_v22 = vld [vmem:[#allocation65_spill] sm:$0xff]  ;;  %v5062_v2 = vld [vmem:[#allocation10 + $0x400] sm:$0xff] }
0x175c   :  { %3666 = vmatpush.msra.mxu3 %v5057_v53  ;;  %3596 = vmatpush.msra.mxu0 %v10915_v11  ;;  %v10920_v53 = vld [vmem:[#allocation68_spill] sm:$0xff]  ;;  %v10921_v11 = vld [vmem:[#allocation70_spill] sm:$0xff] }
0x175e   :  { %3667 = vmatpush.msra.mxu3 %v5058_v25  ;;  %3597 = vmatpush.msra.mxu0 %v10916_v17  ;;  %v10922_v25 = vld [vmem:[#allocation23_spill] sm:$0xff]  ;;  %v10923_v17 = vld [vmem:[#allocation24_spill] sm:$0xff] }
0x1760   :  { %3668 = vmatpush.msra.mxu3 %v5059_v24  ;;  %3598 = vmatpush.msra.mxu0 %v10917_v58  ;;  %v10924_v24 = vld [vmem:[#allocation25_spill] sm:$0xff]  ;;  %v10925_v58 = vld [vmem:[#allocation26_spill] sm:$0xff] }
0x1762   :  { %3669 = vmatpush.msra.mxu3 %v5060_v26  ;;  %3599 = vmatpush.msra.mxu0 %v10918_v62  ;;  %v10926_v26 = vld [vmem:[#allocation27_spill] sm:$0xff]  ;;  %v10927_v62 = vld [vmem:[#allocation28_spill] sm:$0xff] }
0x1764   :  { %3670 = vmatpush.msra.mxu3 %v5061_v18  ;;  %3676 = vmatpush.msrb.mxu0 %v10919_v22  ;;  %v10928_v18 = vld [vmem:[#allocation29_spill] sm:$0xff]  ;;  %v10929_v22 = vld [vmem:[#allocation30_spill] sm:$0xff] }
0x1766   :  { %3671 = vmatpush.msra.mxu3 %v5062_v2  ;;  %3677 = vmatpush.msrb.mxu0 %v10920_v53  ;;  %v10930_v2 = vld [vmem:[#allocation31_spill] sm:$0xff]  ;;  %v10931_v53 = vld [vmem:[#allocation32_spill] sm:$0xff] }
0x1768   :  { %3678 = vmatpush.msrb.mxu0 %v10921_v11  ;;  %v3101_v11 = vpop.f32.mrf.mxu3 }
0x176a   :  { %3679 = vmatpush.msrb.mxu0 %v10922_v25  ;;  %v10932_v25 = vld [vmem:[#allocation33_spill] sm:$0xff] }
0x176c   :  { %3680 = vmatpush.msrb.mxu0 %v10923_v17  ;;  %v10933_v17 = vld [vmem:[#allocation34_spill] sm:$0xff] }
0x176e   :  { %3681 = vmatpush.msrb.mxu0 %v10924_v24  ;;  %v10934_v24 = vld [vmem:[#allocation76_spill] sm:$0xff] }
0x176f   :  { %v3102_v39 = vadd.f32 %v10934_v24, %v3101_v11  ;;  %v10941_v11 = vld [vmem:[#allocation83_spill] sm:$0xff] }
0x1770   :  { %3682 = vmatpush.msrb.mxu0 %v10925_v58  ;;  %v10945_v24 = vld [vmem:[#allocation87_spill] sm:$0xff] }
0x1772   :  { %3683 = vmatpush.msrb.mxu0 %v10926_v26 }
0x1774   :  { %3684 = vmatpush.msrb.mxu0 %v10927_v62 }
0x1776   :  { %3685 = vmatpush.msrb.mxu0 %v10928_v18  ;;  %v10936_v18 = vld [vmem:[#allocation78_spill] sm:$0xff] }
0x1778   :  { %3686 = vmatpush.msrb.mxu0 %v10929_v22  ;;  %v10937_v22 = vld [vmem:[#allocation79_spill] sm:$0xff] }
0x177a   :  { %3687 = vmatpush.msrb.mxu0 %v10930_v2  ;;  %v10938_v2 = vld [vmem:[#allocation80_spill] sm:$0xff] }
0x177c   :  { %3688 = vmatpush.msrb.mxu0 %v10931_v53  ;;  %v10939_v53 = vld [vmem:[#allocation81_spill] sm:$0xff] }
0x177e   :  { %3689 = vmatpush.msrb.mxu0 %v10932_v25  ;;  %v10940_v25 = vld [vmem:[#allocation82_spill] sm:$0xff] }
0x1780   :  { %3690 = vmatpush.msrb.mxu0 %v10933_v17  ;;  %v3121_v58 = vpop.f32.mrf.mxu0  ;;  %v10942_v17 = vld [vmem:[#allocation84_spill] sm:$0xff] }
0x1781   :  { %v3122_v26 = vadd.f32 %v3121_v58, %v3102_v39  ;;  %v10944_v39 = vld [vmem:[#allocation86_spill] sm:$0xff]  ;;  %v10946_v58 = vld [vmem:[#allocation88_spill] sm:$0xff] }
0x1782   :  { %3691 = vmatpush.msrb.mxu0 %v10935_v4  ;;  %v10943_v4 = vld [vmem:[#allocation85_spill] sm:$0xff] }
0x1783   :  { %4277 = vtanh.f32 %v3122_v26  ;;  %v10947_v26 = vld [vmem:[#allocation89_spill] sm:$0xff] }
0x1788   :  { %v3214_v48 = vpop.f32.mrf.mxu0 }
0x1789   :  { %v4278_v62 = vpop.eup %4277 }
0x178a   :  { %3141 = vmatmul.f32.vlgmr.msra.gmra.mxu1 %v4278_v62  ;;  %v10948_v62 = vld [vmem:[#allocation90_spill] sm:$0xff] }
0x178b   :  { %3297 = vmatpush.msra.mxu1 %v10936_v18  ;;  %v10949_v18 = vld [vmem:[#allocation91_spill] sm:$0xff] }
0x178d   :  { %3298 = vmatpush.msra.mxu1 %v10937_v22  ;;  %v10951_v22 = vld [vmem:[#allocation93_spill] sm:$0xff] }
0x178f   :  { %3299 = vmatpush.msra.mxu1 %v10938_v2  ;;  %v10952_v2 = vld [vmem:[#allocation94_spill] sm:$0xff] }
0x1791   :  { %3300 = vmatpush.msra.mxu1 %v10939_v53  ;;  %v10953_v53 = vld [vmem:[#allocation95_spill] sm:$0xff] }
0x1792   :  { %3233 = vmatmul.f32.vlgmr.msrb.gmra.mxu1 %v8768_v37  ;;  %v10950_v37 = vld [vmem:[#allocation92_spill] sm:$0xff] }
0x1793   :  { %3301 = vmatpush.msra.mxu1 %v10940_v25  ;;  %v10954_v25 = vld [vmem:[#allocation96_spill] sm:$0xff] }
0x1795   :  { %3302 = vmatpush.msra.mxu1 %v10941_v11  ;;  %v10955_v11 = vld [vmem:[#allocation97_spill] sm:$0xff] }
0x1797   :  { %3303 = vmatpush.msra.mxu1 %v10942_v17  ;;  %v10956_v17 = vld [vmem:[#allocation98_spill] sm:$0xff] }
0x1799   :  { %3304 = vmatpush.msra.mxu1 %v10943_v4  ;;  %v10957_v4 = vld [vmem:[#allocation99_spill] sm:$0xff] }
0x179b   :  { %3305 = vmatpush.msra.mxu1 %v10944_v39  ;;  %v10958_v39 = vld [vmem:[#allocation100_spill] sm:$0xff] }
0x179d   :  { %3306 = vmatpush.msra.mxu1 %v10945_v24  ;;  %v10959_v24 = vld [vmem:[#allocation101_spill] sm:$0xff] }
0x179f   :  { %3307 = vmatpush.msra.mxu1 %v10946_v58  ;;  %v10960_v58 = vld [vmem:[#allocation102_spill] sm:$0xff] }
0x17a0   :  { %v3294_v60 = vpop.f32.mrf.mxu0 }
0x17a1   :  { %3308 = vmatpush.msra.mxu1 %v10947_v26  ;;  %v10961_v26 = vld [vmem:[#allocation103_spill] sm:$0xff] }
0x17a3   :  { %3309 = vmatpush.msra.mxu1 %v10948_v62  ;;  %v10963_v62 = vld [vmem:[#allocation105_spill] sm:$0xff] }
0x17a5   :  { %3310 = vmatpush.msra.mxu1 %v10949_v18  ;;  %v10964_v18 = vld [vmem:[#allocation106_spill] sm:$0xff] }
0x17a7   :  { %3311 = vmatpush.msra.mxu1 %v10950_v37  ;;  %v10965_v37 = vld [vmem:[#allocation107_spill] sm:$0xff] }
0x17a9   :  { %3312 = vmatpush.msra.mxu1 %v10951_v22  ;;  %v10966_v22 = vld [vmem:[#allocation108_spill] sm:$0xff] }
0x17aa   :  { %3313 = vmatmul.f32.vlgmr.msra.gmra.mxu1 %v8822_v13  ;;  %v10962_v13 = vld [vmem:[#allocation104_spill] sm:$0xff] }
0x17ab   :  { %3377 = vmatpush.msrb.mxu1 %v10952_v2  ;;  %v10967_v2 = vld [vmem:[#allocation109_spill] sm:$0xff] }
0x17ad   :  { %3378 = vmatpush.msrb.mxu1 %v10953_v53  ;;  %v10968_v53 = vld [vmem:[#allocation110_spill] sm:$0xff] }
0x17af   :  { %3379 = vmatpush.msrb.mxu1 %v10954_v25  ;;  %v10969_v25 = vld [vmem:[#allocation111_spill] sm:$0xff] }
0x17b1   :  { %3380 = vmatpush.msrb.mxu1 %v10955_v11  ;;  %v10970_v11 = vld [vmem:[#allocation112_spill] sm:$0xff] }
0x17b3   :  { %3381 = vmatpush.msrb.mxu1 %v10956_v17  ;;  %v10971_v17 = vld [vmem:[#allocation113_spill] sm:$0xff] }
0x17b5   :  { %3382 = vmatpush.msrb.mxu1 %v10957_v4  ;;  %v10972_v4 = vld [vmem:[#allocation114_spill] sm:$0xff] }
0x17b7   :  { %3383 = vmatpush.msrb.mxu1 %v10958_v39  ;;  %v10973_v39 = vld [vmem:[#allocation115_spill] sm:$0xff] }
0x17b9   :  { %3384 = vmatpush.msrb.mxu1 %v10959_v24  ;;  %v10974_v24 = vld [vmem:[#allocation116_spill] sm:$0xff] }
0x17bb   :  { %3385 = vmatpush.msrb.mxu1 %v10960_v58  ;;  %v10975_v58 = vld [vmem:[#allocation118_spill] sm:$0xff] }
0x17bd   :  { %3386 = vmatpush.msrb.mxu1 %v10961_v26  ;;  %v10976_v26 = vld [vmem:[#allocation117_spill] sm:$0xff] }
0x17bf   :  { %3387 = vmatpush.msrb.mxu1 %v10962_v13  ;;  %v10977_v13 = vld [vmem:[#allocation73_spill] sm:$0xff] }
0x17c1   :  { %3388 = vmatpush.msrb.mxu1 %v10963_v62  ;;  %v10979_v62 = vld [vmem:[#allocation75_spill] sm:$0xff] }
0x17c3   :  { %3389 = vmatpush.msrb.mxu1 %v10964_v18  ;;  %v10980_v18 = vld [vmem:[#allocation119_spill] sm:$0xff] }
0x17c5   :  { %3390 = vmatpush.msrb.mxu1 %v10965_v37  ;;  %v10981_v37 = vld [vmem:[#allocation120_spill] sm:$0xff] }
0x17c7   :  { %3391 = vmatpush.msrb.mxu1 %v10966_v22  ;;  %v10982_v22 = vld [vmem:[#allocation121_spill] sm:$0xff] }
0x17c9   :  { %3392 = vmatpush.msrb.mxu1 %v10967_v2  ;;  %v10983_v2 = vld [vmem:[#allocation122_spill] sm:$0xff] }
0x17ca   :  { %3393 = vmatmul.f32.vlgmr.msrb.gmra.mxu1 %v8700_v55  ;;  %v10978_v55 = vld [vmem:[#allocation74_spill] sm:$0xff] }
0x17cb   :  { %3616 = vmatpush.msra.mxu1 %v10968_v53  ;;  %v10984_v53 = vld [vmem:[#allocation123_spill] sm:$0xff] }
0x17cd   :  { %3617 = vmatpush.msra.mxu1 %v10969_v25  ;;  %v10985_v25 = vld [vmem:[#allocation124_spill] sm:$0xff] }
0x17cf   :  { %3618 = vmatpush.msra.mxu1 %v10970_v11  ;;  %v10986_v11 = vld [vmem:[#allocation125_spill] sm:$0xff] }
0x17d1   :  { %3619 = vmatpush.msra.mxu1 %v10971_v17  ;;  %v10987_v17 = vld [vmem:[#allocation127_spill] sm:$0xff] }
0x17d3   :  { %3620 = vmatpush.msra.mxu1 %v10972_v4  ;;  %v10988_v4 = vld [vmem:[#allocation126_spill] sm:$0xff] }
0x17d5   :  { %3621 = vmatpush.msra.mxu1 %v10973_v39  ;;  %v10989_v39 = vld [vmem:[#allocation128_spill] sm:$0xff] }
0x17d7   :  { %3622 = vmatpush.msra.mxu1 %v10974_v24  ;;  %v10990_v24 = vld [vmem:[#allocation129_spill] sm:$0xff] }
0x17d9   :  { %3623 = vmatpush.msra.mxu1 %v10975_v58  ;;  %v10991_v58 = vld [vmem:[#allocation130_spill] sm:$0xff] }
0x17db   :  { %3624 = vmatpush.msra.mxu1 %v10976_v26  ;;  %v10992_v26 = vld [vmem:[#allocation131_spill] sm:$0xff] }
0x17dd   :  { %3625 = vmatpush.msra.mxu1 %v10977_v13  ;;  %v10993_v13 = vld [vmem:[#allocation132_spill] sm:$0xff] }
0x17df   :  { %3626 = vmatpush.msra.mxu1 %v10978_v55  ;;  %v10994_v55 = vld [vmem:[#allocation133_spill] sm:$0xff] }
0x17e1   :  { %3627 = vmatpush.msra.mxu1 %v10979_v62  ;;  %v10995_v62 = vld [vmem:[#allocation134_spill] sm:$0xff] }
0x17e3   :  { %3628 = vmatpush.msra.mxu1 %v10980_v18  ;;  %v10996_v18 = vld [vmem:[#allocation135_spill] sm:$0xff] }
0x17e5   :  { %3629 = vmatpush.msra.mxu1 %v10981_v37  ;;  %v10997_v37 = vld [vmem:[#allocation136_spill] sm:$0xff] }
0x17e7   :  { %3630 = vmatpush.msra.mxu1 %v10982_v22  ;;  %v10998_v22 = vld [vmem:[#allocation137_spill] sm:$0xff] }
0x17e9   :  { %3631 = vmatpush.msra.mxu1 %v10983_v2 }
0x17eb   :  { %3696 = vmatpush.msrb.mxu1 %v10984_v53  ;;  %v10999_v53 = vld [vmem:[#allocation139_spill] sm:$0xff] }
0x17ed   :  { %3697 = vmatpush.msrb.mxu1 %v10985_v25 }
0x17ef   :  { %3698 = vmatpush.msrb.mxu1 %v10986_v11  ;;  %v11000_v11 = vld [vmem:[#allocation138_spill] sm:$0xff] }
0x17f1   :  { %3699 = vmatpush.msrb.mxu1 %v10987_v17 }
0x17f3   :  { %3700 = vmatpush.msrb.mxu1 %v10988_v4  ;;  %v3174_v4 = vpop.f32.mrf.mxu2 }
0x17f5   :  { %3701 = vmatpush.msrb.mxu1 %v10989_v39  ;;  %v3194_v39 = vpop.f32.mrf.mxu3 }
0x17f7   :  { %3702 = vmatpush.msrb.mxu1 %v10990_v24 }
0x17f9   :  { %3703 = vmatpush.msrb.mxu1 %v10991_v58  ;;  %v11001_v58 = vld [vmem:[#allocation72_spill] sm:$0xff] }
0x17fb   :  { %3704 = vmatpush.msrb.mxu1 %v10992_v26 }
0x17fd   :  { %3705 = vmatpush.msrb.mxu1 %v10993_v13  ;;  %v11002_v13 = vld [vmem:[#allocation71_spill] sm:$0xff] }
0x17ff   :  { %3706 = vmatpush.msrb.mxu1 %v10994_v55  ;;  %v3175_v55 = vadd.f32 %v3174_v4, %v11002_v13 }
0x1801   :  { %3707 = vmatpush.msrb.mxu1 %v10995_v62  ;;  %v3254_v62 = vpop.f32.mrf.mxu2 }
0x1803   :  { %3708 = vmatpush.msrb.mxu1 %v10996_v18 }
0x1805   :  { %3709 = vmatpush.msrb.mxu1 %v10997_v37  ;;  %v3195_v37 = vadd.f32 %v3194_v39, %v3175_v55  ;;  %v3295_v55 = vadd.f32 %v3294_v60, %v10141_v46 }
0x1807   :  { %3710 = vmatpush.msrb.mxu1 %v10998_v22  ;;  %v3142_v2 = vpop.f32.mrf.mxu1  ;;  %v3274_v22 = vpop.f32.mrf.mxu3  ;;  %v3215_v7 = vadd.f32 %v3214_v48, %v3195_v37 }
0x1808   :  { %v3143_v25 = vadd.f32 %v10999_v53, %v3142_v2 }
0x1809   :  { %3711 = vmatpush.msrb.mxu1 %v11000_v11  ;;  %v4111_v53 = vmul.f32 -1.442695, %v3215_v7  ;;  %v3374_v7 = vpop.f32.mrf.mxu0 }
0x180a   :  { %v3146_v17 = vrot.slane %v3143_v25, 1  ;;  %3148 = vst [vmem:[#allocation16 + $0x5] sm:$0x1] %v3143_v25 }
0x180c   :  { %3149 = vst [vmem:[#allocation16 + $0xd] sm:$0x1] %v3146_v17 }
0x180f   :  { %v3234_v24 = vpop.f32.mrf.mxu1  ;;  %v3354_v4 = vpop.f32.mrf.mxu3 }
0x1810   :  { %v3235_v26 = vadd.f32 %v3234_v24, %v11001_v58  ;;  %v3355_v48 = vadd.f32 %v3354_v4, %v10142_v49 }
0x1812   :  { %v3255_v18 = vadd.f32 %v3254_v62, %v3235_v26 }
0x1814   :  { %v3275_v27 = vadd.f32 %v3274_v22, %v3255_v18  ;;  %v3375_v18 = vadd.f32 %v3374_v7, %v3355_v48 }
0x1816   :  { %v4112_v2 = vmul.f32 -1.442695, %v3275_v27 }
0x1818   :  { %4279 = vpow2.f32 %v4112_v2 }
0x1819   :  { %4281 = vpow2.f32 %v4111_v53 }
0x181e   :  { %v4280_v25 = vpop.eup %4279 }
0x181f   :  { %v4282_v11 = vpop.eup %4281  ;;  %v3419_v17 = vadd.f32 1.0, %v4280_v25  ;;  %v3334_v25 = vpop.f32.mrf.mxu2 }
0x1820   :  { %v3400_v29 = vadd.f32 1.0, %v4282_v11 }
0x1821   :  { %4283 = vrcp.f32 %v3419_v17  ;;  %v3431_v3 = vand.u32 2147483648, %v3419_v17  ;;  %vm3425_vm4 = vweird.f32 %v3419_v17  ;;  %v3429_v4 = vand.u32 2147483647, %v3419_v17 }
0x1822   :  { %4285 = vrcp.f32 %v3400_v29  ;;  %vm3406_vm7 = vweird.f32 %v3400_v29 }
0x1823   :  { %vm3430_vm9 = vcmp.eq.f32.partialorder %v3429_v4, 8.507059e+37 }
0x1827   :  { %v4284_v24 = vpop.eup %4283  ;;  %v3314_v58 = vpop.f32.mrf.mxu1 }
0x1828   :  { %v4286_v26 = vpop.eup %4285  ;;  %v3421_v39 = vmul.f32 %v4284_v24, %v3419_v17  ;;  %v3315_v37 = vadd.f32 %v3314_v58, %v3295_v55  ;;  %vm3426_vm3 = vweird.f32 %v4284_v24  ;;  %v3410_v58 = vand.u32 2147483647, %v3400_v29 }
0x1829   :  { %v3402_v27 = vmul.f32 %v4286_v26, %v3400_v29  ;;  %vm3407_vm5 = vweird.f32 %v4286_v26  ;;  %vm3427_vm6 = vmor %vm3425_vm4, %vm3426_vm3 }
0x182a   :  { %v3422_v62 = vsub.f32 1.0, %v3421_v39  ;;  %v3335_v13 = vadd.f32 %v3334_v25, %v3315_v37  ;;  %v3412_v39 = vand.u32 2147483648, %v3400_v29  ;;  %vm3408_vm8 = vmor %vm3406_vm7, %vm3407_vm5  ;;  %vm3411_vm10 = vcmp.eq.f32.partialorder %v3410_v58, 8.507059e+37 }
0x182b   :  { %v3403_v22 = vsub.f32 1.0, %v3402_v27  ;;  %v3432_v27 = vor.u32 1.1754944e-38, %v3431_v3 }
0x182c   :  { %v3423_v11 = vmul.f32 %v4284_v24, %v3422_v62 }
0x182d   :  { %v3404_v63 = vmul.f32 %v4286_v26, %v3403_v22 }
0x182e   :  { %v3424_v38 = vadd.f32 %v4284_v24, %v3423_v11 }
0x182f   :  { %v3405_v60 = vadd.f32 %v4286_v26, %v3404_v63 }
0x1830   :  { %v3428_v55 = vsel %vm3427_vm6, %v4284_v24, %v3424_v38 }
0x1831   :  { %v3409_v7 = vsel %vm3408_vm8, %v4286_v26, %v3405_v60  ;;  %v3433_v37 = vsel %vm3430_vm9, %v3432_v27, %v3428_v55 }
0x1832   :  { %v3455_v63 = vmul.f32 %v3433_v37, %v8697_v33  ;;  %v11009_v37 = vld [vmem:[#allocation146_spill] sm:$0xff] }
0x1847   :  { %v3394_v2 = vpop.f32.mrf.mxu1 }
0x1848   :  { %v3395_v53 = vadd.f32 %v3394_v2, %v3375_v18  ;;  %v3413_v18 = vor.u32 1.1754944e-38, %v3412_v39 }
0x184a   :  { %v4113_v9 = vmul.f32 -1.442695, %v3395_v53 }
0x184c   :  { %4287 = vpow2.f32 %v4113_v9 }
0x184d   :  { %4289 = vtanh.f32 %v3335_v13  ;;  %v3414_v13 = vsel %vm3411_vm10, %v3413_v18, %v3409_v7  ;;  %v11003_v7 = vld [vmem:[#allocation140_spill] sm:$0xff] }
0x184e   :  { %v11007_v18 = vld [vmem:[#allocation144_spill] sm:$0xff] }
0x1852   :  { %v4288_v48 = vpop.eup %4287 }
0x1853   :  { %v3439_v62 = vadd.f32 1.0, %v4288_v48  ;;  %v4290_v9 = vpop.eup %4289 }
0x1854   :  { %v3456_v17 = vmul.f32 %v4290_v9, %v3414_v13  ;;  %v11006_v9 = vld [vmem:[#allocation143_spill] sm:$0xff]  ;;  %v11011_v13 = vld [vmem:[#allocation148_spill] sm:$0xff] }
0x1855   :  { %4291 = vrcp.f32 %v3439_v62  ;;  %v3451_v3 = vand.u32 2147483648, %v3439_v62  ;;  %v3449_v26 = vand.u32 2147483647, %v3439_v62  ;;  %vm3445_vm12 = vweird.f32 %v3439_v62 }
0x1856   :  { %v9164_v2 = vadd.f32 %v3456_v17, %v3455_v63 }
0x1857   :  { %v3452_v25 = vor.u32 1.1754944e-38, %v3451_v3  ;;  %vm3450_vm15 = vcmp.eq.f32.partialorder %v3449_v26, 8.507059e+37 }
0x1858   :  { %4293 = vtanh.f32 %v9164_v2 }
0x185b   :  { %v4292_v22 = vpop.eup %4291 }
0x185c   :  { %v3441_v29 = vmul.f32 %v4292_v22, %v3439_v62  ;;  %vm3446_vm11 = vweird.f32 %v4292_v22  ;;  %v11004_v62 = vld [vmem:[#allocation141_spill] sm:$0xff] }
0x185d   :  { %vm3447_vm14 = vmor %vm3445_vm12, %vm3446_vm11 }
0x185e   :  { %v3442_v38 = vsub.f32 1.0, %v3441_v29  ;;  %v4294_v60 = vpop.eup %4293 }
0x1860   :  { %v3443_v24 = vmul.f32 %v4292_v22, %v3442_v38 }
0x1862   :  { %v3444_v53 = vadd.f32 %v4292_v22, %v3443_v24 }
0x1864   :  { %v3448_v11 = vsel %vm3447_vm14, %v4292_v22, %v3444_v53  ;;  %v11014_v22 = vld [vmem:[#allocation22_spill] sm:$0xff] }
0x1865   :  { %v3453_v33 = vsel %vm3450_vm15, %v3452_v25, %v3448_v11 }
0x1866   :  { %v9167_v4 = vmul.f32 %v4294_v60, %v3453_v33 }
0x1868   :  { %3559 = vmatmul.f32.vlgmr.msrb.gmra.mxu2 %v9167_v4  ;;  %v3462_v39 = vperm.slane %v9167_v4, 0  ;;  %v3461_v58 = vrot.slane %v9167_v4, 1 }
0x1869   :  { %3716 = vmatpush.msrb.mxu2 %v8705_v57  ;;  %v11005_v57 = vld [vmem:[#allocation142_spill] sm:$0xff] }
0x186a   :  { %v3466_v55 = vmul.f32 %v8708_v8, %v3462_v39  ;;  %v3463_v48 = vperm.slane %v3461_v58, 0 }
0x186b   :  { %3717 = vmatpush.msrb.mxu2 %v8711_v28  ;;  %v11008_v28 = vld [vmem:[#allocation145_spill] sm:$0xff] }
0x186c   :  { %3468 = vadd.xlane.f32.xlu0 %v3466_v55  ;;  %v3467_v27 = vmul.f32 %v8714_v51, %v3463_v48 }
0x186d   :  { %3718 = vmatpush.msrb.mxu2 %v8717_v59  ;;  %v11010_v59 = vld [vmem:[#allocation147_spill] sm:$0xff] }
0x186e   :  { %3470 = vadd.xlane.f32.xlu1 %v3467_v27 }
0x186f   :  { %3719 = vmatpush.msrb.mxu2 %v8720_v30  ;;  %v11012_v30 = vld [vmem:[#allocation149_spill] sm:$0xff] }
0x1871   :  { %3720 = vmatpush.msrb.mxu2 %v8723_v14  ;;  %v11013_v14 = vld [vmem:[#allocation150_spill] sm:$0xff] }
0x1873   :  { %3721 = vmatpush.msrb.mxu2 %v11003_v7 }
0x1875   :  { %3722 = vmatpush.msrb.mxu2 %v11004_v62 }
0x1877   :  { %3723 = vmatpush.msrb.mxu2 %v11005_v57 }
0x1879   :  { %3724 = vmatpush.msrb.mxu2 %v11006_v9 }
0x187b   :  { %3725 = vmatpush.msrb.mxu2 %v11007_v18  ;;  %v3609_v18 = vld [vmem:[#allocation5 + $0x7] sm:$0x1] }
0x187d   :  { %3726 = vmatpush.msrb.mxu2 %v11008_v28  ;;  %v3610_v28 = vld [vmem:[#allocation5 + $0xf] sm:$0x1] }
0x187f   :  { %3727 = vmatpush.msrb.mxu2 %v11009_v37  ;;  %v3613_v37 = vrot.slane %v3610_v28, 7 }
0x1881   :  { %3728 = vmatpush.msrb.mxu2 %v11010_v59  ;;  %v9199_v59 = vsel %vm397_vm0, %v3613_v37, %v3609_v18 }
0x1882   :  { %3632 = vmatmul.f32.vlgmr.msra.gmra.mxu1 %v9199_v59 }
0x1883   :  { %3729 = vmatpush.msrb.mxu2 %v11011_v13  ;;  %v11015_v13 = vld [vmem:[#allocation151_spill] sm:$0xff] }
0x1884   :  { %3776 = vmatpush.msra.mxu1 %v11015_v13 }
0x1885   :  { %3730 = vmatpush.msrb.mxu2 %v11012_v30  ;;  %v11016_v30 = vld [vmem:[#allocation152_spill] sm:$0xff] }
0x1886   :  { %3777 = vmatpush.msra.mxu1 %v11016_v30 }
0x1887   :  { %3731 = vmatpush.msrb.mxu2 %v11013_v14  ;;  %v11017_v14 = vld [vmem:[#allocation153_spill] sm:$0xff] }
0x1888   :  { %3778 = vmatpush.msra.mxu1 %v11017_v14 }
0x18df   :  { %v3469_v63 = vpop.xlane.xlu0 %3468 }
0x18e0   :  { %v3474_v29 = vperm.slane %v3469_v63, %v11014_v22 }
0x18e1   :  { %v3471_v17 = vpop.xlane.xlu1 %3470 }
0x18e2   :  { %v3475_v38 = vperm.slane %v3471_v17, %v11014_v22 }
0x18e4   :  { %v3476_v3 = vsel %vm397_vm0, %v3475_v38, %v3474_v29  ;;  %v11020_v29 = vld [vmem:[#allocation156_spill] sm:$0xff]  ;;  %v11021_v38 = vld [vmem:[#allocation157_spill] sm:$0xff] }
0x18e5   :  { %v3478_v24 = vsel %vm723_vm13, %v3476_v3, -inf  ;;  %v11022_v3 = vld [vmem:[#allocation158_spill] sm:$0xff] }
0x18e6   :  { %3479 = vmax.xlane.f32.xlu2 %v3478_v24 }
0x1959   :  { %v3480_v26 = vpop.xlane.xlu2 %3479 }
0x195a   :  { %v3482_v53 = vperm.slane %v3480_v26, 0  ;;  %v3483_v25 = vperm.slane %v3480_v26, 1  ;;  %v11023_v26 = vld [vmem:[#allocation159_spill] sm:$0xff] }
0x195c   :  { %v3486_v11 = vsub.f32 %v3469_v63, %v3482_v53  ;;  %v3487_v60 = vsub.f32 %v3471_v17, %v3483_v25  ;;  %v11018_v63 = vld [vmem:[#allocation154_spill] sm:$0xff]  ;;  %v11019_v17 = vld [vmem:[#allocation155_spill] sm:$0xff]  ;;  %v11024_v53 = vld [vmem:[#allocation160_spill] sm:$0xff] }
0x195d   :  { %3779 = vmatpush.msra.mxu1 %v11018_v63  ;;  %v11025_v25 = vld [vmem:[#allocation161_spill] sm:$0xff] }
0x195e   :  { %v3488_v33 = vmul.f32 1.442695, %v3486_v11  ;;  %v3490_v39 = vmul.f32 1.442695, %v3487_v60  ;;  %v11026_v60 = vld [vmem:[#allocation162_spill] sm:$0xff] }
0x195f   :  { %3780 = vmatpush.msra.mxu1 %v11019_v17 }
0x1960   :  { %4295 = vpow2.f32 %v3488_v33 }
0x1961   :  { %4297 = vpow2.f32 %v3490_v39  ;;  %3781 = vmatpush.msra.mxu1 %v11020_v29 }
0x1963   :  { %3782 = vmatpush.msra.mxu1 %v11021_v38 }
0x1965   :  { %3783 = vmatpush.msra.mxu1 %v11022_v3 }
0x1966   :  { %v4296_v58 = vpop.eup %4295 }
0x1967   :  { %v4298_v55 = vpop.eup %4297  ;;  %3495 = vperm.xlu2 %4131, %v4296_v58   ;;  %3784 = vmatpush.msra.mxu1 %v11023_v26 }
0x1968   :  { %3498 = vperm.xlu0 %4132, %v4298_v55  }
0x1969   :  { %3785 = vmatpush.msra.mxu1 %v11024_v53 }
0x196b   :  { %3786 = vmatpush.msra.mxu1 %v11025_v25 }
0x196d   :  { %3787 = vmatpush.msra.mxu1 %v11026_v60  ;;  %v5066_v60 = vld [vmem:[#allocation10 + $0x190] sm:$0xff] }
0x19c1   :  { %v3496_v48 = vpop.permute.xlu2 %3495 }
0x19c2   :  { %v3500_v7 = vperm.slane %v3496_v48, %v11014_v22  ;;  %v11027_v48 = vld [vmem:[#allocation163_spill] sm:$0xff] }
0x19c3   :  { %3788 = vmatpush.msra.mxu1 %v11027_v48  ;;  %v11046_v48 = vld [vmem:[#allocation182_spill] sm:$0xff] }
0x19da   :  { %v3499_v27 = vpop.permute.xlu0 %3498 }
0x19db   :  { %v3501_v62 = vperm.slane %v3499_v27, %v11014_v22 }
0x19dd   :  { %v3502_v57 = vsel %vm397_vm0, %v3501_v62, %v3500_v7  ;;  %v11028_v62 = vld [vmem:[#allocation164_spill] sm:$0xff] }
0x19de   :  { %v3504_v9 = vsel %vm723_vm13, %v3502_v57, 0.0  ;;  %3789 = vmatpush.msra.mxu1 %v11028_v62  ;;  %v11029_v57 = vld [vmem:[#allocation165_spill] sm:$0xff] }
0x19df   :  { %3505 = vadd.xlane.f32.xlu2 %v3504_v9  ;;  %v11030_v9 = vld [vmem:[#allocation166_spill] sm:$0xff]  ;;  %v11049_v62 = vld [vmem:[#allocation185_spill] sm:$0xff] }
0x19e0   :  { %3790 = vmatpush.msra.mxu1 %v11029_v57  ;;  %v11050_v57 = vld [vmem:[#allocation36_spill] sm:$0xff] }
0x19e2   :  { %3791 = vmatpush.msra.mxu1 %v11030_v9  ;;  %v11051_v9 = vld [vmem:[#allocation35_spill] sm:$0xff] }
0x1a52   :  { %v3506_v24 = vpop.xlane.xlu2 %3505 }
0x1a53   :  { %4299 = vrcp.f32 %v3506_v24 }
0x1a59   :  { %v4300_v11 = vpop.eup %4299 }
0x1a5a   :  { %v3510_v33 = vperm.slane %v4300_v11, 1  ;;  %v3509_v39 = vperm.slane %v4300_v11, 0  ;;  %v5065_v11 = vld [vmem:[#allocation10 + $0x1b0] sm:$0xff] }
0x1a5c   :  { %v3514_v27 = vmul.f32 %v4298_v55, %v3510_v33  ;;  %v3513_v7 = vmul.f32 %v4296_v58, %v3509_v39  ;;  %v11044_v33 = vld [vmem:[#allocation180_spill] sm:$0xff]  ;;  %v11045_v39 = vld [vmem:[#allocation181_spill] sm:$0xff] }
0x1a5e   :  { %3522 = vperm.xlu0 %4132, %v3514_v27   ;;  %3517 = vperm.xlu1 %4130, %v3513_v7   ;;  %v11047_v27 = vld [vmem:[#allocation183_spill] sm:$0xff]  ;;  %v11048_v7 = vld [vmem:[#allocation184_spill] sm:$0xff] }
0x1ad0   :  { %v3523_v18 = vpop.permute.xlu0 %3522  ;;  %v3518_v28 = vpop.permute.xlu1 %3517 }
0x1ad1   :  { %v3526_v37 = vmul.f32 %v8714_v51, %v3523_v18  ;;  %v3525_v13 = vmul.f32 %v8708_v8, %v3518_v28  ;;  %v5063_v8 = vld [vmem:[#allocation10 + $0x1f0] sm:$0xff]  ;;  %v11053_v28 = vld [vmem:[#allocation39_spill] sm:$0xff] }
0x1ad2   :  { %v5064_v51 = vld [vmem:[#allocation10 + $0x1d0] sm:$0xff] }
0x1ad3   :  { %v3533_v30 = vrot.slane %v3526_v37, 4  ;;  %v3527_v14 = vrot.slane %v3525_v13, 4  ;;  %v11052_v18 = vld [vmem:[#allocation37_spill] sm:$0xff] }
0x1ad5   :  { %v3534_v63 = vadd.f32 %v3533_v30, %v3526_v37  ;;  %v3528_v17 = vadd.f32 %v3527_v14, %v3525_v13  ;;  %v11054_v37 = vld [vmem:[#allocation41_spill] sm:$0xff]  ;;  %v11055_v13 = vld [vmem:[#allocation43_spill] sm:$0xff]  ;;  %v11056_v30 = vld [vmem:[#allocation46_spill] sm:$0xff] }
0x1ad6   :  { %v11057_v14 = vld [vmem:[#allocation49_spill] sm:$0xff] }
0x1ad7   :  { %v3535_v55 = vrot.slane %v3534_v63, 2  ;;  %v3529_v58 = vrot.slane %v3528_v17, 2 }
0x1ad9   :  { %v3536_v29 = vadd.f32 %v3535_v55, %v3534_v63  ;;  %v3530_v38 = vadd.f32 %v3529_v58, %v3528_v17  ;;  %v11058_v63 = vld [vmem:[#allocation52_spill] sm:$0xff]  ;;  %v11059_v17 = vld [vmem:[#allocation55_spill] sm:$0xff]  ;;  %v11060_v55 = vld [vmem:[#allocation58_spill] sm:$0xff] }
0x1ada   :  { %v11061_v58 = vld [vmem:[#allocation61_spill] sm:$0xff] }
0x1adb   :  { %v3537_v3 = vrot.slane %v3536_v29, 1  ;;  %v3531_v24 = vrot.slane %v3530_v38, 1 }
0x1add   :  { %v3538_v26 = vadd.f32 %v3537_v3, %v3536_v29  ;;  %v3532_v53 = vadd.f32 %v3531_v24, %v3530_v38  ;;  %v11062_v29 = vld [vmem:[#allocation63_spill] sm:$0xff]  ;;  %v11063_v38 = vld [vmem:[#allocation66_spill] sm:$0xff]  ;;  %v11065_v24 = vld [vmem:[#allocation40_spill] sm:$0xff] }
0x1ade   :  { %v11064_v3 = vld [vmem:[#allocation38_spill] sm:$0xff] }
0x1adf   :  { %v9221_v25 = vsel %vm397_vm0, %v3538_v26, %v3532_v53  ;;  %v11066_v26 = vld [vmem:[#allocation42_spill] sm:$0xff] }
0x1ae0   :  { %3579 = vmatmul.f32.vlgmr.msrb.gmra.mxu3 %v9221_v25  ;;  %3652 = vmatmul.f32.vlgmr.msra.gmra.mxu2 %v9221_v25  ;;  %v5083_v53 = vld [vmem:[#allocation14 + $0x50] sm:$0xff] }
0x1ae1   :  { %3712 = vmatmul.f32.vlgmr.msrb.gmra.mxu1 %v9221_v25  ;;  %3736 = vmatpush.msrb.mxu3 %v5063_v8  ;;  %v5084_v8 = vld [vmem:[#allocation14 + $0x48] sm:$0xff] }
0x1ae2   :  { %3796 = vmatpush.msra.mxu2 %v8828_v1  ;;  %4002 = vmatpush.msrb.mxu1 %v8831_v44  ;;  %v5067_v1 = vld [vmem:[#allocation10 + $0x170] sm:$0xff] }
0x1ae3   :  { %3737 = vmatpush.msrb.mxu3 %v5064_v51  ;;  %v5068_v44 = vld [vmem:[#allocation10 + $0x150] sm:$0xff]  ;;  %v5085_v51 = vld [vmem:[#allocation14 + $0x40] sm:$0xff] }
0x1ae4   :  { %3797 = vmatpush.msra.mxu2 %v8835_v23  ;;  %4003 = vmatpush.msrb.mxu1 %v8838_v20  ;;  %v5069_v23 = vld [vmem:[#allocation10 + $0x130] sm:$0xff] }
0x1ae5   :  { %3738 = vmatpush.msrb.mxu3 %v5065_v11  ;;  %v5070_v20 = vld [vmem:[#allocation10 + $0x110] sm:$0xff]  ;;  %v5086_v11 = vld [vmem:[#allocation14 + $0x38] sm:$0xff] }
0x1ae6   :  { %3798 = vmatpush.msra.mxu2 %v8842_v42  ;;  %4004 = vmatpush.msrb.mxu1 %v8845_v50  ;;  %v5071_v42 = vld [vmem:[#allocation10 + $0xf0] sm:$0xff] }
0x1ae7   :  { %3739 = vmatpush.msrb.mxu3 %v5066_v60  ;;  %v5072_v50 = vld [vmem:[#allocation10 + $0xd0] sm:$0xff] }
0x1ae8   :  { %3672 = vmatmul.f32.vlgmr.msra.gmra.mxu3 %v9167_v4  ;;  %3732 = vmatmul.f32.vlgmr.msrb.gmra.mxu2 %v9167_v4  ;;  %v5087_v60 = vld [vmem:[#allocation14 + $0x30] sm:$0xff] }
0x1ae9   :  { %3740 = vmatpush.msrb.mxu3 %v5067_v1  ;;  %3792 = vmatmul.f32.vlgmr.msra.gmra.mxu1 %v9167_v4  ;;  %v5088_v1 = vld [vmem:[#allocation14 + $0x28] sm:$0xff] }
0x1aea   :  { %3799 = vmatpush.msra.mxu2 %v8853_v40  ;;  %4005 = vmatpush.msrb.mxu1 %v8856_v5  ;;  %v5073_v40 = vld [vmem:[#allocation10 + $0xb0] sm:$0xff] }
0x1aeb   :  { %3741 = vmatpush.msrb.mxu3 %v5068_v44  ;;  %v5074_v5 = vld [vmem:[#allocation10 + $0x90] sm:$0xff]  ;;  %v5089_v44 = vld [vmem:[#allocation14 + $0x20] sm:$0xff] }
0x1aec   :  { %3800 = vmatpush.msra.mxu2 %v8860_v0  ;;  %4006 = vmatpush.msrb.mxu1 %v8863_v12  ;;  %v5075_v0 = vld [vmem:[#allocation10 + $0x70] sm:$0xff] }
0x1aed   :  { %3742 = vmatpush.msrb.mxu3 %v5069_v23  ;;  %v5076_v12 = vld [vmem:[#allocation10 + $0x50] sm:$0xff]  ;;  %v5090_v23 = vld [vmem:[#allocation14 + $0x18] sm:$0xff] }
0x1aee   :  { %3801 = vmatpush.msra.mxu2 %v8867_v52  ;;  %4007 = vmatpush.msrb.mxu1 %v8870_v45  ;;  %v5077_v52 = vld [vmem:[#allocation10 + $0x30] sm:$0xff] }
0x1aef   :  { %3743 = vmatpush.msrb.mxu3 %v5070_v20  ;;  %v5078_v45 = vld [vmem:[#allocation10 + $0x10] sm:$0xff] }
0x1af0   :  { %3802 = vmatpush.msra.mxu2 %v8874_v6  ;;  %4008 = vmatpush.msrb.mxu1 %v8877_v43  ;;  %v5079_v6 = vld [vmem:[#allocation10 + $0x3f8] sm:$0xff] }
0x1af1   :  { %3744 = vmatpush.msrb.mxu3 %v5071_v42  ;;  %v11031_v43 = vld [vmem:[#allocation167_spill] sm:$0xff]  ;;  %v5091_v20 = vld [vmem:[#allocation14 + $0x10] sm:$0xff]  ;;  %v5092_v42 = vld [vmem:[#allocation14 + $0x8] sm:$0xff] }
0x1af2   :  { %3803 = vmatpush.msra.mxu2 %v8881_v41  ;;  %4009 = vmatpush.msrb.mxu1 %v8884_v61  ;;  %v5080_v41 = vld [vmem:[#allocation10 + $0x3d8] sm:$0xff]  ;;  %v11032_v61 = vld [vmem:[#allocation168_spill] sm:$0xff] }
0x1af3   :  { %3745 = vmatpush.msrb.mxu3 %v5072_v50  ;;  %v5093_v50 = vld [vmem:[#allocation14] sm:$0xff] }
0x1af4   :  { %3804 = vmatpush.msra.mxu2 %v8888_v47  ;;  %4010 = vmatpush.msrb.mxu1 %v8891_v32  ;;  %v11033_v47 = vld [vmem:[#allocation169_spill] sm:$0xff]  ;;  %v5081_v32 = vld [vmem:[#allocation10 + $0x3b8] sm:$0xff] }
0x1af5   :  { %3746 = vmatpush.msrb.mxu3 %v5073_v40  ;;  %v3560_v40 = vpop.f32.mrf.mxu2 }
0x1af6   :  { %3805 = vmatpush.msra.mxu2 %v8895_v21  ;;  %4011 = vmatpush.msrb.mxu1 %v8898_v34  ;;  %v11034_v21 = vld [vmem:[#allocation170_spill] sm:$0xff] }
0x1af7   :  { %3747 = vmatpush.msrb.mxu3 %v5074_v5  ;;  %v5082_v34 = vld [vmem:[#allocation10 + $0x398] sm:$0xff] }
0x1af8   :  { %3806 = vmatpush.msra.mxu2 %v8902_v56  ;;  %4012 = vmatpush.msrb.mxu1 %v8905_v16  ;;  %v11035_v56 = vld [vmem:[#allocation171_spill] sm:$0xff]  ;;  %v11036_v16 = vld [vmem:[#allocation172_spill] sm:$0xff]  ;;  %v9300_v5 = vld [vmem:[%s9339_s5] ss:$0 sm:$0xff] }
0x1af9   :  { %3748 = vmatpush.msrb.mxu3 %v5075_v0  ;;  %v3561_v0 = vadd.f32 %v9300_v5, %v3560_v40 }
0x1afa   :  { %3807 = vmatpush.msra.mxu2 %v8909_v54  ;;  %4013 = vmatpush.msrb.mxu1 %v8912_v35  ;;  %v11037_v54 = vld [vmem:[#allocation173_spill] sm:$0xff]  ;;  %v11038_v35 = vld [vmem:[#allocation174_spill] sm:$0xff] }
0x1afb   :  { %3749 = vmatpush.msrb.mxu3 %v5076_v12 }
0x1afc   :  { %3808 = vmatpush.msra.mxu2 %v8916_v36  ;;  %4014 = vmatpush.msrb.mxu1 %v8919_v19  ;;  %v11039_v36 = vld [vmem:[#allocation175_spill] sm:$0xff]  ;;  %v11040_v19 = vld [vmem:[#allocation176_spill] sm:$0xff] }
0x1afd   :  { %3750 = vmatpush.msrb.mxu3 %v5077_v52 }
0x1afe   :  { %3809 = vmatpush.msra.mxu2 %v8923_v31  ;;  %4015 = vmatpush.msrb.mxu1 %v8926_v15  ;;  %v11041_v31 = vld [vmem:[#allocation177_spill] sm:$0xff]  ;;  %v11042_v15 = vld [vmem:[#allocation178_spill] sm:$0xff] }
0x1aff   :  { %3751 = vmatpush.msrb.mxu3 %v5078_v45 }
0x1b00   :  { %3810 = vmatpush.msra.mxu2 %v11031_v43  ;;  %3752 = vmatmul.f32.vlgmr.msrb.gmra.mxu3 %v9199_v59  ;;  %v5096_v43 = vld [vmem:[#allocation10 + $0x3d0] sm:$0xff] }
0x1b01   :  { %3816 = vmatpush.msra.mxu3 %v5079_v6  ;;  %4016 = vmatpush.msrb.mxu1 %v8935_v10  ;;  %v11043_v10 = vld [vmem:[#allocation179_spill] sm:$0xff]  ;;  %v5095_v6 = vld [vmem:[#allocation10 + $0x3f0] sm:$0xff] }
0x1b02   :  { %3811 = vmatpush.msra.mxu2 %v11032_v61  ;;  %v5098_v61 = vld [vmem:[#allocation10 + $0x390] sm:$0xff] }
0x1b03   :  { %3817 = vmatpush.msra.mxu3 %v5080_v41  ;;  %3812 = vmatmul.f32.vlgmr.msra.gmra.mxu2 %v9199_v59  ;;  %v5097_v41 = vld [vmem:[#allocation10 + $0x3b0] sm:$0xff] }
0x1b04   :  { %4017 = vmatpush.msrb.mxu1 %v11033_v47  ;;  %4022 = vmatpush.msrb.mxu2 %v11034_v21  ;;  %v5099_v47 = vld [vmem:[#allocation10 + $0x370] sm:$0xff] }
0x1b05   :  { %3818 = vmatpush.msra.mxu3 %v5081_v32  ;;  %v5100_v32 = vld [vmem:[#allocation10 + $0x350] sm:$0xff] }
0x1b06   :  { %4023 = vmatpush.msrb.mxu2 %v11035_v56  ;;  %v5101_v21 = vld [vmem:[#allocation10 + $0x330] sm:$0xff] }
0x1b07   :  { %3819 = vmatpush.msra.mxu3 %v5082_v34  ;;  %v5102_v34 = vld [vmem:[#allocation10 + $0x310] sm:$0xff] }
0x1b08   :  { %4024 = vmatpush.msrb.mxu2 %v11037_v54  ;;  %v5103_v56 = vld [vmem:[#allocation10 + $0x2f0] sm:$0xff] }
0x1b09   :  { %3820 = vmatpush.msra.mxu3 %v11036_v16  ;;  %v5104_v16 = vld [vmem:[#allocation10 + $0x2d0] sm:$0xff] }
0x1b0a   :  { %4025 = vmatpush.msrb.mxu2 %v11039_v36  ;;  %v5105_v54 = vld [vmem:[#allocation10 + $0x2b0] sm:$0xff] }
0x1b0b   :  { %3821 = vmatpush.msra.mxu3 %v11038_v35  ;;  %v5106_v35 = vld [vmem:[#allocation10 + $0x290] sm:$0xff] }
0x1b0c   :  { %4026 = vmatpush.msrb.mxu2 %v11041_v31  ;;  %v5107_v36 = vld [vmem:[#allocation10 + $0x270] sm:$0xff] }
0x1b0d   :  { %3822 = vmatpush.msra.mxu3 %v11040_v19  ;;  %v5108_v19 = vld [vmem:[#allocation10 + $0x250] sm:$0xff] }
0x1b0e   :  { %4027 = vmatpush.msrb.mxu2 %v11043_v10  ;;  %v5110_v31 = vld [vmem:[#allocation10 + $0x210] sm:$0xff]  ;;  %v5112_v10 = vld [vmem:[#allocation10 + $0x5d8] sm:$0xff] }
0x1b0f   :  { %3823 = vmatpush.msra.mxu3 %v11042_v15  ;;  %v5111_v15 = vld [vmem:[#allocation10 + $0x5f8] sm:$0xff] }
0x1b10   :  { %4028 = vmatpush.msrb.mxu2 %v11045_v39  ;;  %v5114_v39 = vld [vmem:[#allocation10 + $0x598] sm:$0xff] }
0x1b11   :  { %3824 = vmatpush.msra.mxu3 %v11044_v33  ;;  %v5113_v33 = vld [vmem:[#allocation10 + $0x5b8] sm:$0xff] }
0x1b12   :  { %4029 = vmatpush.msrb.mxu2 %v11047_v27  ;;  %v5116_v27 = vld [vmem:[#allocation10 + $0x558] sm:$0xff] }
0x1b13   :  { %3825 = vmatpush.msra.mxu3 %v11046_v48  ;;  %v5115_v48 = vld [vmem:[#allocation10 + $0x578] sm:$0xff] }
0x1b14   :  { %4030 = vmatpush.msrb.mxu2 %v11049_v62  ;;  %v5118_v62 = vld [vmem:[#allocation10 + $0x518] sm:$0xff] }
0x1b15   :  { %3826 = vmatpush.msra.mxu3 %v11048_v7  ;;  %v5117_v7 = vld [vmem:[#allocation10 + $0x538] sm:$0xff] }
0x1b16   :  { %4031 = vmatpush.msrb.mxu2 %v11051_v9  ;;  %v5120_v9 = vld [vmem:[#allocation10 + $0x4d8] sm:$0xff] }
0x1b17   :  { %3827 = vmatpush.msra.mxu3 %v11050_v57  ;;  %v5119_v57 = vld [vmem:[#allocation10 + $0x4f8] sm:$0xff] }
0x1b18   :  { %4032 = vmatpush.msrb.mxu2 %v11053_v28  ;;  %v5123_v28 = vld [vmem:[#allocation10 + $0x478] sm:$0xff] }
0x1b19   :  { %3828 = vmatpush.msra.mxu3 %v11052_v18  ;;  %v5122_v18 = vld [vmem:[#allocation10 + $0x498] sm:$0xff] }
0x1b1a   :  { %4033 = vmatpush.msrb.mxu2 %v11055_v13  ;;  %v5125_v13 = vld [vmem:[#allocation10 + $0x438] sm:$0xff] }
0x1b1b   :  { %3829 = vmatpush.msra.mxu3 %v11054_v37  ;;  %v5124_v37 = vld [vmem:[#allocation10 + $0x458] sm:$0xff] }
0x1b1c   :  { %4034 = vmatpush.msrb.mxu2 %v11057_v14  ;;  %v3633_v14 = vpop.f32.mrf.mxu1 }
0x1b1d   :  { %3830 = vmatpush.msra.mxu3 %v11056_v30  ;;  %v5126_v30 = vld [vmem:[#allocation10 + $0x418] sm:$0xff] }
0x1b1e   :  { %4035 = vmatpush.msrb.mxu2 %v11059_v17 }
0x1b1f   :  { %3831 = vmatpush.msra.mxu3 %v11058_v63  ;;  %v11067_v63 = vld [vmem:[#allocation71_spill] sm:$0xff] }
0x1b20   :  { %3832 = vmatmul.f32.vlgmr.msra.gmra.mxu3 %v9221_v25  ;;  %4036 = vmatpush.msrb.mxu2 %v11060_v55  ;;  %v3634_v17 = vadd.f32 %v3633_v14, %v11067_v63 }
0x1b21   :  { %4043 = vmatpush.msrb.mxu3 %v11061_v58 }
0x1b22   :  { %4037 = vmatpush.msrb.mxu2 %v11062_v29 }
0x1b23   :  { %4044 = vmatpush.msrb.mxu3 %v11063_v38 }
0x1b25   :  { %4045 = vmatpush.msrb.mxu3 %v11064_v3 }
0x1b27   :  { %4046 = vmatpush.msrb.mxu3 %v11065_v24 }
0x1b29   :  { %4047 = vmatpush.msrb.mxu3 %v11066_v26  ;;  %v9310_v26 = vld [vmem:[%s9341_s7] ss:$0 sm:$0xff]  ;;  %s5320_s7 = smov [#allocation16]  }
0x1b2a   :  { %s4075_s0 = sshll.u32 %s5320_s7, 4  ;;  %s4076_s0 = int_to_ptr.vmem [resolvable:$true] %s4075_s0 }
0x1b2b   :  { %4048 = vmatpush.msrb.mxu3 %v5083_v53 }
0x1b2d   :  { %4049 = vmatpush.msrb.mxu3 %v5084_v8 }
0x1b2f   :  { %4050 = vmatpush.msrb.mxu3 %v5085_v51 }
0x1b31   :  { %4051 = vmatpush.msrb.mxu3 %v5086_v11  ;;  %v11068_v11 = vld [vmem:[#allocation72_spill] sm:$0xff] }
0x1b33   :  { %4052 = vmatpush.msrb.mxu3 %v5087_v60 }
0x1b35   :  { %4053 = vmatpush.msrb.mxu3 %v5088_v1 }
0x1b37   :  { %4054 = vmatpush.msrb.mxu3 %v5089_v44 }
0x1b39   :  { %4055 = vmatpush.msrb.mxu3 %v5090_v23 }
0x1b3b   :  { %4056 = vmatpush.msrb.mxu3 %v5091_v20 }
0x1b3d   :  { %4057 = vmatpush.msrb.mxu3 %v5092_v42 }
0x1b3f   :  { %4058 = vmatpush.msrb.mxu3 %v5093_v50 }
0x1b5e   :  { %v3713_v1 = vpop.f32.mrf.mxu1 }
0x1b63   :  { %v3580_v12 = vpop.f32.mrf.mxu3  ;;  %v3653_v55 = vpop.f32.mrf.mxu2 }
0x1b64   :  { %v3581_v52 = vadd.f32 %v3580_v12, %v3561_v0  ;;  %v3654_v29 = vadd.f32 %v3653_v55, %v3634_v17 }
0x1b66   :  { %4301 = vtanh.f32 %v3581_v52 }
0x1b6b   :  { %v3673_v58 = vpop.f32.mrf.mxu3  ;;  %v3733_v20 = vpop.f32.mrf.mxu2 }
0x1b6c   :  { %v4302_v45 = vpop.eup %4301  ;;  %v3674_v38 = vadd.f32 %v3673_v58, %v3654_v29 }
0x1b6d   :  { %3600 = vmatmul.f32.vlgmr.msra.gmra.mxu0 %v4302_v45 }
0x1b6e   :  { %3756 = vmatpush.msra.mxu0 %v5095_v6  ;;  %v4114_v3 = vmul.f32 -1.442695, %v3674_v38 }
0x1b70   :  { %3757 = vmatpush.msra.mxu0 %v5096_v43  ;;  %4303 = vpow2.f32 %v4114_v3 }
0x1b72   :  { %3758 = vmatpush.msra.mxu0 %v5097_v41 }
0x1b74   :  { %3759 = vmatpush.msra.mxu0 %v5098_v61 }
0x1b75   :  { %3692 = vmatmul.f32.vlgmr.msrb.gmra.mxu0 %v9199_v59  ;;  %v5109_v59 = vld [vmem:[#allocation10 + $0x230] sm:$0xff] }
0x1b76   :  { %3760 = vmatpush.msra.mxu0 %v5099_v47 }
0x1b78   :  { %3761 = vmatpush.msra.mxu0 %v5100_v32 }
0x1b7a   :  { %3762 = vmatpush.msra.mxu0 %v5101_v21 }
0x1b7c   :  { %3763 = vmatpush.msra.mxu0 %v5102_v34  ;;  %v3793_v34 = vpop.f32.mrf.mxu1 }
0x1b7e   :  { %3764 = vmatpush.msra.mxu0 %v5103_v56 }
0x1b80   :  { %3765 = vmatpush.msra.mxu0 %v5104_v16 }
0x1b82   :  { %3766 = vmatpush.msra.mxu0 %v5105_v54 }
0x1b83   :  { %v3753_v6 = vpop.f32.mrf.mxu3 }
0x1b84   :  { %3767 = vmatpush.msra.mxu0 %v5106_v35  ;;  %v3754_v43 = vadd.f32 %v3753_v6, %v10141_v46 }
0x1b86   :  { %3768 = vmatpush.msra.mxu0 %v5107_v36 }
0x1b88   :  { %3769 = vmatpush.msra.mxu0 %v5108_v19 }
0x1b8a   :  { %3770 = vmatpush.msra.mxu0 %v5109_v59 }
0x1b8c   :  { %3771 = vmatpush.msra.mxu0 %v5110_v31 }
0x1b8d   :  { %3772 = vmatmul.f32.vlgmr.msra.gmra.mxu0 %v9221_v25  ;;  %v5121_v25 = vld [vmem:[#allocation10 + $0x4b8] sm:$0xff] }
0x1b8e   :  { %3836 = vmatpush.msrb.mxu0 %v5111_v15 }
0x1b90   :  { %3837 = vmatpush.msrb.mxu0 %v5112_v10 }
0x1b92   :  { %3838 = vmatpush.msrb.mxu0 %v5113_v33 }
0x1b94   :  { %3839 = vmatpush.msrb.mxu0 %v5114_v39 }
0x1b96   :  { %3840 = vmatpush.msrb.mxu0 %v5115_v48 }
0x1b98   :  { %3841 = vmatpush.msrb.mxu0 %v5116_v27 }
0x1b9a   :  { %3842 = vmatpush.msrb.mxu0 %v5117_v7 }
0x1b9c   :  { %3843 = vmatpush.msrb.mxu0 %v5118_v62 }
0x1b9e   :  { %3844 = vmatpush.msrb.mxu0 %v5119_v57 }
0x1ba0   :  { %3845 = vmatpush.msrb.mxu0 %v5120_v9 }
0x1ba2   :  { %3846 = vmatpush.msrb.mxu0 %v5121_v25  ;;  %v3813_v25 = vpop.f32.mrf.mxu2 }
0x1ba4   :  { %3847 = vmatpush.msrb.mxu0 %v5122_v18  ;;  %v3814_v18 = vadd.f32 %v3813_v25, %v10142_v49 }
0x1ba6   :  { %3848 = vmatpush.msrb.mxu0 %v5123_v28  ;;  %v3833_v28 = vpop.f32.mrf.mxu3 }
0x1ba8   :  { %3849 = vmatpush.msrb.mxu0 %v5124_v37  ;;  %v3834_v37 = vadd.f32 %v3833_v28, %v3814_v18 }
0x1baa   :  { %3850 = vmatpush.msrb.mxu0 %v5125_v13 }
0x1bac   :  { %3851 = vmatpush.msrb.mxu0 %v5126_v30 }
0x1bad   :  { %3852 = vmatmul.f32.vlgmr.msrb.gmra.mxu0 %v9167_v4  ;;  %v4304_v4 = vpop.eup %4303 }
0x1bae   :  { %v3859_v44 = vadd.f32 1.0, %v4304_v4 }
0x1bb0   :  { %4305 = vrcp.f32 %v3859_v44  ;;  %v3871_v54 = vand.u32 2147483648, %v3859_v44  ;;  %vm3865_vm3 = vweird.f32 %v3859_v44  ;;  %v3869_v31 = vand.u32 2147483647, %v3859_v44 }
0x1bb2   :  { %v3872_v33 = vor.u32 1.1754944e-38, %v3871_v54  ;;  %vm3870_vm8 = vcmp.eq.f32.partialorder %v3869_v31, 8.507059e+37 }
0x1bb6   :  { %v4306_v40 = vpop.eup %4305 }
0x1bb7   :  { %v3861_v12 = vmul.f32 %v4306_v40, %v3859_v44  ;;  %vm3866_vm1 = vweird.f32 %v4306_v40 }
0x1bb8   :  { %vm3867_vm5 = vmor %vm3865_vm3, %vm3866_vm1 }
0x1bb9   :  { %v3862_v45 = vsub.f32 1.0, %v3861_v12 }
0x1bbb   :  { %v3863_v61 = vmul.f32 %v4306_v40, %v3862_v45 }
0x1bbd   :  { %v3864_v36 = vadd.f32 %v4306_v40, %v3863_v61 }
0x1bbf   :  { %v3868_v15 = vsel %vm3867_vm5, %v4306_v40, %v3864_v36 }
0x1bc0   :  { %v3873_v7 = vsel %vm3870_vm8, %v3872_v33, %v3868_v15 }
0x1bea   :  { %v3601_v24 = vpop.f32.mrf.mxu0 }
0x1beb   :  { %v3602_v53 = vadd.f32 %v9310_v26, %v3601_v24 }
0x1bed   :  { %v3605_v8 = vrot.slane %v3602_v53, 1  ;;  %3607 = vst [vmem:[#allocation16 + $0x6] sm:$0x1] %v3602_v53 }
0x1bef   :  { %3608 = vst [vmem:[#allocation16 + $0xe] sm:$0x1] %v3605_v8 }
0x1bf2   :  { %v3693_v51 = vpop.f32.mrf.mxu0 }
0x1bf3   :  { %v3694_v60 = vadd.f32 %v3693_v51, %v11068_v11 }
0x1bf5   :  { %v3714_v23 = vadd.f32 %v3713_v1, %v3694_v60  ;;  %v5128_v1 = vld [vmem:[#allocation8] sm:$0xff] }
0x1bf7   :  { %v3734_v42 = vadd.f32 %v3733_v20, %v3714_v23  ;;  %v5129_v20 = vld [vmem:[#allocation8 + $0x8] sm:$0xff] }
0x1bf9   :  { %v4115_v50 = vmul.f32 -1.442695, %v3734_v42 }
0x1bfb   :  { %4307 = vpow2.f32 %v4115_v50 }
0x1c01   :  { %v4308_v0 = vpop.eup %4307 }
0x1c02   :  { %v3878_v52 = vadd.f32 1.0, %v4308_v0 }
0x1c04   :  { %4309 = vrcp.f32 %v3878_v52  ;;  %v3890_v35 = vand.u32 2147483648, %v3878_v52  ;;  %v3888_v59 = vand.u32 2147483647, %v3878_v52  ;;  %vm3884_vm4 = vweird.f32 %v3878_v52 }
0x1c06   :  { %v3891_v10 = vor.u32 1.1754944e-38, %v3890_v35  ;;  %vm3889_vm7 = vcmp.eq.f32.partialorder %v3888_v59, 8.507059e+37 }
0x1c0a   :  { %v4310_v41 = vpop.eup %4309  ;;  %v3773_v47 = vpop.f32.mrf.mxu0 }
0x1c0b   :  { %v3880_v32 = vmul.f32 %v4310_v41, %v3878_v52  ;;  %v3774_v21 = vadd.f32 %v3773_v47, %v3754_v43  ;;  %vm3885_vm2 = vweird.f32 %v4310_v41 }
0x1c0c   :  { %vm3886_vm6 = vmor %vm3884_vm4, %vm3885_vm2 }
0x1c0d   :  { %v3881_v56 = vsub.f32 1.0, %v3880_v32  ;;  %v3794_v16 = vadd.f32 %v3793_v34, %v3774_v21 }
0x1c0f   :  { %v3882_v19 = vmul.f32 %v4310_v41, %v3881_v56  ;;  %4311 = vtanh.f32 %v3794_v16 }
0x1c11   :  { %v3883_v46 = vadd.f32 %v4310_v41, %v3882_v19 }
0x1c13   :  { %v3887_v39 = vsel %vm3886_vm6, %v4310_v41, %v3883_v46 }
0x1c14   :  { %v3892_v48 = vsel %vm3889_vm7, %v3891_v10, %v3887_v39 }
0x1c15   :  { %v4312_v27 = vpop.eup %4311  ;;  %v3914_v62 = vmul.f32 %v3892_v48, %v9164_v2 }
0x1c16   :  { %v3915_v57 = vmul.f32 %v4312_v27, %v3873_v7 }
0x1c18   :  { %v3916_v9 = vadd.f32 %v3915_v57, %v3914_v62 }
0x1c1a   :  { %4069 = vst [vmem:[#allocation3] sm:$0x3] %v3916_v9 }
0x1c2a   :  { %v3853_v13 = vpop.f32.mrf.mxu0 }
0x1c2b   :  { %v3854_v30 = vadd.f32 %v3853_v13, %v3834_v37 }
0x1c2d   :  { %v4116_v14 = vmul.f32 -1.442695, %v3854_v30 }
0x1c2f   :  { %4313 = vpow2.f32 %v4116_v14 }
0x1c35   :  { %v4314_v63 = vpop.eup %4313 }
0x1c36   :  { %v3898_v17 = vadd.f32 1.0, %v4314_v63 }
0x1c38   :  { %4315 = vrcp.f32 %v3898_v17  ;;  %v3910_v2 = vand.u32 2147483648, %v3898_v17  ;;  %v3908_v3 = vand.u32 2147483647, %v3898_v17  ;;  %vm3904_vm10 = vweird.f32 %v3898_v17 }
0x1c39   :  { %4317 = vtanh.f32 %v3916_v9 }
0x1c3a   :  { %v3911_v49 = vor.u32 1.1754944e-38, %v3910_v2  ;;  %vm3909_vm12 = vcmp.eq.f32.partialorder %v3908_v3, 8.507059e+37 }
0x1c3e   :  { %v4316_v55 = vpop.eup %4315 }
0x1c3f   :  { %v3900_v58 = vmul.f32 %v4316_v55, %v3898_v17  ;;  %vm3905_vm9 = vweird.f32 %v4316_v55  ;;  %v4318_v8 = vpop.eup %4317 }
0x1c40   :  { %vm3906_vm11 = vmor %vm3904_vm10, %vm3905_vm9 }
0x1c41   :  { %v3901_v29 = vsub.f32 1.0, %v3900_v58 }
0x1c43   :  { %v3902_v38 = vmul.f32 %v4316_v55, %v3901_v29 }
0x1c45   :  { %v3903_v24 = vadd.f32 %v4316_v55, %v3902_v38 }
0x1c47   :  { %v3907_v53 = vsel %vm3906_vm11, %v4316_v55, %v3903_v24 }
0x1c48   :  { %v3912_v4 = vsel %vm3909_vm12, %v3911_v49, %v3907_v53 }
0x1c49   :  { %v3918_v51 = vmul.f32 %v4318_v8, %v3912_v4 }
0x1c4b   :  { %4018 = vmatmul.f32.vlgmr.msrb.gmra.mxu1 %v3918_v51  ;;  %4068 = vst [vmem:[#allocation2] sm:$0x3] %v3918_v51  ;;  %v3921_v11 = vperm.slane %v3918_v51, 0  ;;  %v3920_v60 = vrot.slane %v3918_v51, 1 }
0x1c4d   :  { %v3925_v44 = vmul.f32 %v5128_v1, %v3921_v11  ;;  %v3922_v23 = vperm.slane %v3920_v60, 0 }
0x1c4f   :  { %3927 = vadd.xlane.f32.xlu0 %v3925_v44  ;;  %v3926_v42 = vmul.f32 %v5129_v20, %v3922_v23 }
0x1c51   :  { %3929 = vadd.xlane.f32.xlu1 %v3926_v42 }
0x1cc2   :  { %v3928_v50 = vpop.xlane.xlu0 %3927 }
0x1cc3   :  { %v3933_v0 = vperm.slane %v3928_v50, %v11014_v22 }
0x1cc4   :  { %v3930_v40 = vpop.xlane.xlu1 %3929 }
0x1cc5   :  { %v3934_v12 = vperm.slane %v3930_v40, %v11014_v22 }
0x1cc7   :  { %v3935_v52 = vsel %vm397_vm0, %v3934_v12, %v3933_v0 }
0x1cc8   :  { %v3937_v45 = vsel %vm723_vm13, %v3935_v52, -inf  ;;  %v4019_v58 = vpop.f32.mrf.mxu1 }
0x1cc9   :  { %3938 = vmax.xlane.f32.xlu2 %v3937_v45  ;;  %v4020_v29 = vadd.f32 %v9300_v5, %v4019_v58 }
0x1d3c   :  { %v3939_v6 = vpop.xlane.xlu2 %3938 }
0x1d3d   :  { %v3941_v43 = vperm.slane %v3939_v6, 0  ;;  %v3942_v41 = vperm.slane %v3939_v6, 1 }
0x1d3f   :  { %v3945_v61 = vsub.f32 %v3928_v50, %v3941_v43  ;;  %v3946_v47 = vsub.f32 %v3930_v40, %v3942_v41 }
0x1d41   :  { %v3947_v32 = vmul.f32 1.442695, %v3945_v61  ;;  %v3949_v21 = vmul.f32 1.442695, %v3946_v47 }
0x1d43   :  { %4319 = vpow2.f32 %v3947_v32 }
0x1d44   :  { %4321 = vpow2.f32 %v3949_v21 }
0x1d49   :  { %v4320_v34 = vpop.eup %4319 }
0x1d4a   :  { %v4322_v56 = vpop.eup %4321  ;;  %3954 = vperm.xlu2 %4131, %v4320_v34  }
0x1d4b   :  { %3957 = vperm.xlu0 %4132, %v4322_v56  }
0x1da4   :  { %v3955_v16 = vpop.permute.xlu2 %3954 }
0x1da5   :  { %v3959_v35 = vperm.slane %v3955_v16, %v11014_v22 }
0x1dbd   :  { %v3958_v54 = vpop.permute.xlu0 %3957 }
0x1dbe   :  { %v3960_v36 = vperm.slane %v3958_v54, %v11014_v22 }
0x1dc0   :  { %v3961_v19 = vsel %vm397_vm0, %v3960_v36, %v3959_v35 }
0x1dc1   :  { %v3963_v59 = vsel %vm723_vm13, %v3961_v19, 0.0 }
0x1dc2   :  { %3964 = vadd.xlane.f32.xlu1 %v3963_v59 }
0x1e35   :  { %v3965_v31 = vpop.xlane.xlu1 %3964 }
0x1e36   :  { %4323 = vrcp.f32 %v3965_v31 }
0x1e3c   :  { %v4324_v46 = vpop.eup %4323 }
0x1e3d   :  { %v3969_v15 = vperm.slane %v4324_v46, 1  ;;  %v3968_v10 = vperm.slane %v4324_v46, 0 }
0x1e3f   :  { %v3973_v33 = vmul.f32 %v4322_v56, %v3969_v15  ;;  %v3972_v39 = vmul.f32 %v4320_v34, %v3968_v10 }
0x1e41   :  { %3981 = vperm.xlu1 %4130, %v3973_v33   ;;  %3976 = vperm.xlu2 %4131, %v3972_v39  }
0x1e9b   :  { %v3977_v48 = vpop.permute.xlu2 %3976 }
0x1e9c   :  { %v3984_v27 = vmul.f32 %v5128_v1, %v3977_v48 }
0x1e9e   :  { %v3986_v7 = vrot.slane %v3984_v27, 4 }
0x1ea0   :  { %v3987_v62 = vadd.f32 %v3986_v7, %v3984_v27 }
0x1ea2   :  { %v3988_v22 = vrot.slane %v3987_v62, 2 }
0x1ea4   :  { %v3989_v18 = vadd.f32 %v3988_v22, %v3987_v62 }
0x1ea6   :  { %v3990_v13 = vrot.slane %v3989_v18, 1 }
0x1ea8   :  { %v3991_v63 = vadd.f32 %v3990_v13, %v3989_v18 }
0x1eb3   :  { %v3982_v57 = vpop.permute.xlu1 %3981 }
0x1eb4   :  { %v3985_v9 = vmul.f32 %v5129_v20, %v3982_v57 }
0x1eb6   :  { %v3992_v25 = vrot.slane %v3985_v9, 4 }
0x1eb8   :  { %v3993_v28 = vadd.f32 %v3992_v25, %v3985_v9 }
0x1eba   :  { %v3994_v37 = vrot.slane %v3993_v28, 2 }
0x1ebc   :  { %v3995_v30 = vadd.f32 %v3994_v37, %v3993_v28 }
0x1ebe   :  { %v3996_v14 = vrot.slane %v3995_v30, 1 }
0x1ec0   :  { %v3997_v17 = vadd.f32 %v3996_v14, %v3995_v30 }
0x1ec2   :  { %v4000_v55 = vsel %vm397_vm0, %v3997_v17, %v3991_v63 }
0x1ec3   :  { %4038 = vmatmul.f32.vlgmr.msrb.gmra.mxu2 %v4000_v55  ;;  %4070 = vst [vmem:[#allocation4] sm:$0x3] %v4000_v55 }
0x1f46   :  { %v4039_v2 = vpop.f32.mrf.mxu2 }
0x1f47   :  { %v4040_v38 = vadd.f32 %v4039_v2, %v4020_v29 }
0x1f49   :  { %4325 = vtanh.f32 %v4040_v38 }
0x1f4f   :  { %v4326_v3 = vpop.eup %4325 }
0x1f50   :  { %4059 = vmatmul.f32.vlgmr.msrb.gmra.mxu3 %v4326_v3 }
0x1fd3   :  { %v4060_v24 = vpop.f32.mrf.mxu3 }
0x1fd4   :  { %v4061_v49 = vadd.f32 %v9310_v26, %v4060_v24 }
0x1fd6   :  { %v4064_v53 = vrot.slane %v4061_v49, 1  ;;  %4066 = vst [vmem:[#allocation16 + $0x7] sm:$0x1] %v4061_v49 }
0x1fd8   :  { %4067 = vst [vmem:[#allocation16 + $0xf] sm:$0x1] %v4064_v53 }
0x1fd9   :  { %4083 = dma.vmem_to_hbm [thread:$0]  %s4076_s0, 256, %s4078_s28, [#allocation7], %s5309_s13, %s5309_s13, %s5310_s14  }
0x1fda   :  { %5306 = dma.done.wait [#allocation7], 256  }
0x1fdb   :  { %5307 = vsyncadd [#allocation7], 4294967040 }
0x1fdc   :  { %4088 = vsyncpa [#allocation6], 1 }
0x1fdd   :  { %4089 = vsyncpa [#allocation9], 1 }
0x1fde   :  { %4090 = vsyncpa [#allocation12], 1 }
0x1fdf   :  { %4091 = vsyncpa [#allocation15], 1 }
0x1fe0   :  { %4092 = vsyncpa [#allocation7], 1 }

</bundles_post_ra>
